<compile_context>
chip_gen: v5e
topology: v5e:2x2
jax: 0.10.0
libtpu: 0.0.40
codegen_flags: <defaults>
</compile_context>

<pallas_src>
import functools

import jax
import jax.numpy as jnp
from jax.experimental import pallas as pl
from jax.experimental.pallas import tpu as pltpu

_VMEM_LIMIT = 32 * 1024 * 1024  # > v5e's 16 MiB scoped default, safe on v7x


# --------------------------- conv3x3 (pad=1) + ReLU --------------------------
def _conv3x3_relu_kernel(x_ref, w_ref, b_ref, o_ref, acc_ref):
    # x_ref:   (1, (H+2)*(W+2), Cin)  zero-padded input, spatial dims flattened
    # w_ref:   (9, Cin, Cout)         bf16, tap index = dy*3 + dx
    # b_ref:   (1, Cout)              f32
    # o_ref:   (1, H, W, Cout)
    # acc_ref: (L, Cout) f32 scratch, L = (H-1)*(W+2) + W
    H, W, Cout = o_ref.shape[1], o_ref.shape[2], o_ref.shape[3]
    Wp = W + 2
    L = acc_ref.shape[0]

    # Fold the bias into the accumulator init (broadcast done exactly once).
    acc_ref[...] = jnp.broadcast_to(b_ref[...], acc_ref.shape)

    # Nine whole-image taps: each is one big MXU matmul.  Flat index math:
    # for output pixel p = h*(W+2)+w, slab[p] = padded[h+dy, w+dx].
    # Positions that straddle a row boundary compute garbage and are simply
    # never stored below.
    for dy in range(3):
        for dx in range(3):
            slab = x_ref[0, pl.ds(dy * Wp + dx, L), :].astype(jnp.bfloat16)
            acc_ref[...] += jnp.dot(slab, w_ref[dy * 3 + dx],
                                    preferred_element_type=jnp.float32)

    # Extract the valid W columns of each output row, apply ReLU, store.
    @pl.loop(0, H)
    def _(h):
        start = h * Wp
        if Wp % 8 == 0:
            start = pl.multiple_of(start, 8)
        row = acc_ref[pl.ds(start, W), :]
        o_ref[0, h] = jnp.maximum(row, 0.0).astype(o_ref.dtype)


def conv3x3_relu(x, w, b):
    # x: (N, H, W, Cin) f32 NHWC; w: (3, 3, Cin, Cout) bf16 HWIO; b: (Cout,) f32
    N, H, W, Cin = x.shape
    Cout = w.shape[-1]

    # Pad tiny channel counts (Cin=3 for the first layer) up to 8 lanes.
    pad_c = (-Cin) % 8
    if pad_c:
        x = jnp.pad(x, ((0, 0), (0, 0), (0, 0), (0, pad_c)))
        w = jnp.pad(w, ((0, 0), (0, 0), (0, pad_c), (0, 0)))
        Cin += pad_c

    Hp, Wp = H + 2, W + 2
    # TODO(synk): the pad=1 halo is materialized by jnp.pad in the wrapper
    # (one extra HBM copy of the small activation); an in-kernel DMA halo
    # would remove it at real VGG resolutions.
    xp = jnp.pad(x, ((0, 0), (1, 1), (1, 1), (0, 0)))
    xf = xp.reshape(N, Hp * Wp, Cin)          # free reshape: flatten spatial
    w9 = w.reshape(9, Cin, Cout).astype(jnp.bfloat16)
    b2 = b.reshape(1, Cout).astype(jnp.float32)
    L = (H - 1) * Wp + W

    return pl.pallas_call(
        _conv3x3_relu_kernel,
        out_shape=jax.ShapeDtypeStruct((N, H, W, Cout), x.dtype),
        grid_spec=pltpu.PrefetchScalarGridSpec(
            num_scalar_prefetch=0,
            grid=(N,),
            in_specs=[
                pl.BlockSpec((1, Hp * Wp, Cin), lambda n: (n, 0, 0)),
                pl.BlockSpec((9, Cin, Cout), lambda n: (0, 0, 0)),
                pl.BlockSpec((1, Cout), lambda n: (0, 0)),
            ],
            out_specs=pl.BlockSpec((1, H, W, Cout), lambda n: (n, 0, 0, 0)),
            scratch_shapes=[pltpu.VMEM((L, Cout), jnp.float32)],
        ),
        compiler_params=pltpu.CompilerParams(
            dimension_semantics=("parallel",),
            vmem_limit_bytes=_VMEM_LIMIT),
    )(xf, w9, b2)


# --------------------------- 2x2 pooling (max / avg) -------------------------
def _pool2x2_kernel(x_ref, o_ref, *, op):
    # x_ref: (1, 2*Ho, Wo, 2*C)  -- width pairs folded into the channel axis
    #                               (a free, contiguous reshape done outside)
    # o_ref: (1, Ho, Wo, C)
    Ho, C = o_ref.shape[1], o_ref.shape[3]

    @pl.loop(0, Ho)
    def _(ho):
        r0 = x_ref[0, 2 * ho]          # (Wo, 2C) : row 2*ho
        r1 = x_ref[0, 2 * ho + 1]      # (Wo, 2C) : row 2*ho + 1
        if op == "max":
            m = jnp.maximum(r0, r1)
            o_ref[0, ho] = jnp.maximum(m[:, :C], m[:, C:]).astype(o_ref.dtype)
        else:  # "avg"
            s = r0 + r1
            o_ref[0, ho] = ((s[:, :C] + s[:, C:]) * 0.25).astype(o_ref.dtype)


def pool2x2(x, op):
    # x: (N, H, W, C) with H, W even.
    N, H, W, C = x.shape
    Ho, Wo = H // 2, W // 2
    xr = x.reshape(N, H, Wo, 2 * C)    # contiguous view reshape (glue)
    return pl.pallas_call(
        functools.partial(_pool2x2_kernel, op=op),
        out_shape=jax.ShapeDtypeStruct((N, Ho, Wo, C), x.dtype),
        grid_spec=pltpu.PrefetchScalarGridSpec(
            num_scalar_prefetch=0,
            grid=(N,),
            in_specs=[pl.BlockSpec((1, H, Wo, 2 * C), lambda n: (n, 0, 0, 0))],
            out_specs=pl.BlockSpec((1, Ho, Wo, C), lambda n: (n, 0, 0, 0)),
        ),
        compiler_params=pltpu.CompilerParams(
            dimension_semantics=("parallel",)),
    )(xr)


# ----------------------------- Linear (+ ReLU) --------------------------------
def _linear_kernel(x_ref, w_ref, b_ref, o_ref, acc_ref, *, relu):
    # grid = (N_blocks [parallel], K_blocks [arbitrary/reduction, last])
    k = pl.program_id(1)

    @pl.when(k == 0)
    def _():
        acc_ref[...] = jnp.zeros_like(acc_ref)

    acc_ref[...] += jnp.dot(x_ref[...], w_ref[...],
                            preferred_element_type=jnp.float32)

    @pl.when(k == pl.num_programs(1) - 1)
    def _():
        y = acc_ref[...] + b_ref[...]
        if relu:
            y = jnp.maximum(y, 0.0)
        o_ref[...] = y.astype(o_ref.dtype)


def linear(x, w, b, *, relu=False, block_k=512, block_n=2048):
    # x: (M, K); w: (K, N) bf16 (transposed vs. torch's (N, K)); b: (N,) f32
    M, K = x.shape
    N = w.shape[1]
    while K % block_k:           # 25088 and 4096 are divisible by 512
        block_k //= 2
    if N % block_n:              # last layer N=1000: keep a single N block
        block_n = N

    x = x.astype(jnp.bfloat16)   # bf16 activations, f32 accumulation
    w = w.astype(jnp.bfloat16)
    b2 = b.reshape(1, N).astype(jnp.float32)

    return pl.pallas_call(
        functools.partial(_linear_kernel, relu=relu),
        out_shape=jax.ShapeDtypeStruct((M, N), jnp.float32),
        grid_spec=pltpu.PrefetchScalarGridSpec(
            num_scalar_prefetch=0,
            grid=(N // block_n, K // block_k),
            in_specs=[
                pl.BlockSpec((M, block_k), lambda j, k: (0, k)),
                pl.BlockSpec((block_k, block_n), lambda j, k: (k, j)),
                pl.BlockSpec((1, block_n), lambda j, k: (0, j)),
            ],
            out_specs=pl.BlockSpec((M, block_n), lambda j, k: (0, j)),
            scratch_shapes=[pltpu.VMEM((M, block_n), jnp.float32)],
        ),
        compiler_params=pltpu.CompilerParams(
            dimension_semantics=("parallel", "arbitrary"),
            vmem_limit_bytes=_VMEM_LIMIT),
    )(x, w, b2)


# ----------------------------- parameter init ---------------------------------
def init_params(key, num_classes=1000):
    # Feature extractor cfg: conv3->64, ReLU, MaxPool2, conv64->128, ReLU,
    # conv128->512, ReLU.  (28x28 input -> 14x14x512 feature map.)
    cfg = [(3, 64), "M", (64, 128), (128, 512)]
    params = {"features": [], "classifier": []}
    for item in cfg:
        if item == "M":
            params["features"].append(("maxpool", None))
            continue
        cin, cout = item
        key, kw = jax.random.split(key)
        # kaiming_normal_, mode='fan_out', nonlinearity='relu'
        std = (2.0 / (cout * 3 * 3)) ** 0.5
        w = (std * jax.random.normal(kw, (3, 3, cin, cout), jnp.float32))
        params["features"].append(("conv", (w.astype(jnp.bfloat16),
                                            jnp.zeros((cout,), jnp.float32))))
    # classifier: Linear(512*7*7, 4096), Linear(4096, 4096), Linear(4096, C)
    for din, dout in [(512 * 7 * 7, 4096), (4096, 4096), (4096, num_classes)]:
        key, kw = jax.random.split(key)
        w = 0.01 * jax.random.normal(kw, (din, dout), jnp.float32)  # N(0, 0.01)
        params["classifier"].append((w.astype(jnp.bfloat16),
                                     jnp.zeros((dout,), jnp.float32)))
    return params


# -------------------------------- forward --------------------------------------
def vgg_forward(x_nchw, params, return_features=False):
    # x_nchw: (N, 3, H, W) float32 (PyTorch layout); internally NHWC.
    x = jnp.transpose(x_nchw, (0, 2, 3, 1)).astype(jnp.float32)
    for kind, p in params["features"]:
        if kind == "conv":
            w, b = p
            x = conv3x3_relu(x, w, b)
        else:
            x = pool2x2(x, op="max")
    # AdaptiveAvgPool2d((7,7)): feature map here is (N, 14, 14, 512) -> exact
    # 2x2 average pooling.
    # TODO(synk): general fractional-bin adaptive pooling not implemented;
    # specialized to spatial dims that are an integer multiple of (7, 7).
    assert x.shape[1] == 14 and x.shape[2] == 14 and x.shape[3] == 512
    x = pool2x2(x, op="avg")                                   # (N, 7, 7, 512)
    # torch.flatten(x, 1) on NCHW flattens in (C, H, W) order.
    feats = jnp.transpose(x, (0, 3, 1, 2)).reshape(x.shape[0], -1)  # (N, 25088)
    (w1, b1), (w2, b2), (w3, b3) = params["classifier"]
    h = linear(feats, w1, b1, relu=True)
    # TODO(synk): nn.Dropout treated as identity (eval / inference mode).
    h = linear(h, w2, b2, relu=True)
    out = linear(h, w3, b3, relu=False)
    if return_features:
        return out, feats
    return out


if __name__ == "__main__":
    key = jax.random.PRNGKey(0)
    kx, kp = jax.random.split(key)
    params = init_params(kp, num_classes=1000)
    x = jax.random.normal(kx, (2, 3, 28, 28), jnp.float32)     # NCHW like PyTorch
    out = vgg_forward(x, params)
    out = jax.block_until_ready(out)
    assert out.shape == (2, 1000)
    assert bool(jnp.all(jnp.isfinite(out)))
    print("KERNEL_OK")
</pallas_src>

<mosaic_0001>
module attributes {stable_mosaic.version = 11 : i64} {
  func.func @_conv3x3_relu_kernel(%arg0: i32, %arg1: memref<1x900x8xf32, #tpu.memory_space<vmem>>, %arg2: memref<9x8x64xbf16, #tpu.memory_space<vmem>>, %arg3: memref<1x64xf32, #tpu.memory_space<vmem>>, %arg4: memref<1x28x28x64xf32, #tpu.memory_space<vmem>>, %arg5: memref<838x64xf32, #tpu.memory_space<vmem>>) attributes {dimension_semantics = [#tpu.dimension_semantics<parallel>], iteration_bounds = array<i64: 2>, scalar_prefetch = 0 : i64, scratch_operands = 1 : i64, tpu.core_type = #tpu.core_type<tc>, window_params = [{transform_indices = @transform_0, window_bounds = array<i64: 1, 900, 8>}, {pipeline_mode = #tpu.pipeline_mode<synchronous>, transform_indices = @transform_1, window_bounds = array<i64: 9, 8, 64>}, {pipeline_mode = #tpu.pipeline_mode<synchronous>, transform_indices = @transform_2, window_bounds = array<i64: 1, 64>}, {transform_indices = @transform_3, window_bounds = array<i64: 1, 28, 28, 64>}]} {
    %c0 = arith.constant 0 : index
    %c0_0 = arith.constant 0 : index
    %0 = vector.load %arg3[%c0, %c0_0] : memref<1x64xf32, #tpu.memory_space<vmem>>, vector<1x64xf32>
    %1 = vector.shape_cast %0 : vector<1x64xf32> to vector<1x64xf32>
    %2 = vector.broadcast %1 : vector<1x64xf32> to vector<838x64xf32>
    %c0_1 = arith.constant 0 : index
    %c0_2 = arith.constant 0 : index
    %3 = vector.load %arg5[%c0_1, %c0_2] : memref<838x64xf32, #tpu.memory_space<vmem>>, vector<838x64xf32>
    tpu.vector_store %arg5[%c0_1, %c0_2], %2 {strides = array<i32>} : memref<838x64xf32, #tpu.memory_space<vmem>>, vector<838x64xf32>,
    %c0_3 = arith.constant 0 : index
    %c0_4 = arith.constant 0 : index
    %c0_5 = arith.constant 0 : index
    %4 = vector.load %arg1[%c0_3, %c0_4, %c0_5] : memref<1x900x8xf32, #tpu.memory_space<vmem>>, vector<1x838x8xf32>
    %5 = vector.shape_cast %4 : vector<1x838x8xf32> to vector<838x8xf32>
    %6 = arith.truncf %5 : vector<838x8xf32> to vector<838x8xbf16>
    %c0_6 = arith.constant 0 : index
    %c0_7 = arith.constant 0 : index
    %7 = vector.load %arg5[%c0_6, %c0_7] : memref<838x64xf32, #tpu.memory_space<vmem>>, vector<838x64xf32>
    %c0_8 = arith.constant 0 : index
    %c0_9 = arith.constant 0 : index
    %c0_10 = arith.constant 0 : index
    %8 = vector.load %arg2[%c0_8, %c0_9, %c0_10] : memref<9x8x64xbf16, #tpu.memory_space<vmem>>, vector<1x8x64xbf16>
    %9 = vector.shape_cast %8 : vector<1x8x64xbf16> to vector<8x64xbf16>
    %cst = arith.constant dense<0.000000e+00> : vector<838x64xf32>
    %10 = tpu.matmul %6, %9, %cst {dimension_numbers = #tpu.dot_dimension_numbers<[1], [0], [0], [1], [0, 0, 1, 1], [], []>} : vector<838x8xbf16>, vector<8x64xbf16>, vector<838x64xf32> -> vector<838x64xf32>
    %11 = arith.addf %7, %10 : vector<838x64xf32>
    %c0_11 = arith.constant 0 : index
    %c0_12 = arith.constant 0 : index
    %12 = vector.load %arg5[%c0_11, %c0_12] : memref<838x64xf32, #tpu.memory_space<vmem>>, vector<838x64xf32>
    tpu.vector_store %arg5[%c0_11, %c0_12], %11 {strides = array<i32>} : memref<838x64xf32, #tpu.memory_space<vmem>>, vector<838x64xf32>,
    %c0_13 = arith.constant 0 : index
    %c1 = arith.constant 1 : index
    %c0_14 = arith.constant 0 : index
    %13 = vector.load %arg1[%c0_13, %c1, %c0_14] : memref<1x900x8xf32, #tpu.memory_space<vmem>>, vector<1x838x8xf32>
    %14 = vector.shape_cast %13 : vector<1x838x8xf32> to vector<838x8xf32>
    %15 = arith.truncf %14 : vector<838x8xf32> to vector<838x8xbf16>
    %c0_15 = arith.constant 0 : index
    %c0_16 = arith.constant 0 : index
    %16 = vector.load %arg5[%c0_15, %c0_16] : memref<838x64xf32, #tpu.memory_space<vmem>>, vector<838x64xf32>
    %c1_17 = arith.constant 1 : index
    %c0_18 = arith.constant 0 : index
    %c0_19 = arith.constant 0 : index
    %17 = vector.load %arg2[%c1_17, %c0_18, %c0_19] : memref<9x8x64xbf16, #tpu.memory_space<vmem>>, vector<1x8x64xbf16>
    %18 = vector.shape_cast %17 : vector<1x8x64xbf16> to vector<8x64xbf16>
    %cst_20 = arith.constant dense<0.000000e+00> : vector<838x64xf32>
    %19 = tpu.matmul %15, %18, %cst_20 {dimension_numbers = #tpu.dot_dimension_numbers<[1], [0], [0], [1], [0, 0, 1, 1], [], []>} : vector<838x8xbf16>, vector<8x64xbf16>, vector<838x64xf32> -> vector<838x64xf32>
    %20 = arith.addf %16, %19 : vector<838x64xf32>
    %c0_21 = arith.constant 0 : index
    %c0_22 = arith.constant 0 : index
    %21 = vector.load %arg5[%c0_21, %c0_22] : memref<838x64xf32, #tpu.memory_space<vmem>>, vector<838x64xf32>
    tpu.vector_store %arg5[%c0_21, %c0_22], %20 {strides = array<i32>} : memref<838x64xf32, #tpu.memory_space<vmem>>, vector<838x64xf32>,
    %c0_23 = arith.constant 0 : index
    %c2 = arith.constant 2 : index
    %c0_24 = arith.constant 0 : index
    %22 = vector.load %arg1[%c0_23, %c2, %c0_24] : memref<1x900x8xf32, #tpu.memory_space<vmem>>, vector<1x838x8xf32>
    %23 = vector.shape_cast %22 : vector<1x838x8xf32> to vector<838x8xf32>
    %24 = arith.truncf %23 : vector<838x8xf32> to vector<838x8xbf16>
    %c0_25 = arith.constant 0 : index
    %c0_26 = arith.constant 0 : index
    %25 = vector.load %arg5[%c0_25, %c0_26] : memref<838x64xf32, #tpu.memory_space<vmem>>, vector<838x64xf32>
    %c2_27 = arith.constant 2 : index
    %c0_28 = arith.constant 0 : index
    %c0_29 = arith.constant 0 : index
    %26 = vector.load %arg2[%c2_27, %c0_28, %c0_29] : memref<9x8x64xbf16, #tpu.memory_space<vmem>>, vector<1x8x64xbf16>
    %27 = vector.shape_cast %26 : vector<1x8x64xbf16> to vector<8x64xbf16>
    %cst_30 = arith.constant dense<0.000000e+00> : vector<838x64xf32>
    %28 = tpu.matmul %24, %27, %cst_30 {dimension_numbers = #tpu.dot_dimension_numbers<[1], [0], [0], [1], [0, 0, 1, 1], [], []>} : vector<838x8xbf16>, vector<8x64xbf16>, vector<838x64xf32> -> vector<838x64xf32>
    %29 = arith.addf %25, %28 : vector<838x64xf32>
    %c0_31 = arith.constant 0 : index
    %c0_32 = arith.constant 0 : index
    %30 = vector.load %arg5[%c0_31, %c0_32] : memref<838x64xf32, #tpu.memory_space<vmem>>, vector<838x64xf32>
    tpu.vector_store %arg5[%c0_31, %c0_32], %29 {strides = array<i32>} : memref<838x64xf32, #tpu.memory_space<vmem>>, vector<838x64xf32>,
    %c0_33 = arith.constant 0 : index
    %c30 = arith.constant 30 : index
    %c0_34 = arith.constant 0 : index
    %31 = vector.load %arg1[%c0_33, %c30, %c0_34] : memref<1x900x8xf32, #tpu.memory_space<vmem>>, vector<1x838x8xf32>
    %32 = vector.shape_cast %31 : vector<1x838x8xf32> to vector<838x8xf32>
    %33 = arith.truncf %32 : vector<838x8xf32> to vector<838x8xbf16>
    %c0_35 = arith.constant 0 : index
    %c0_36 = arith.constant 0 : index
    %34 = vector.load %arg5[%c0_35, %c0_36] : memref<838x64xf32, #tpu.memory_space<vmem>>, vector<838x64xf32>
    %c3 = arith.constant 3 : index
    %c0_37 = arith.constant 0 : index
    %c0_38 = arith.constant 0 : index
    %35 = vector.load %arg2[%c3, %c0_37, %c0_38] : memref<9x8x64xbf16, #tpu.memory_space<vmem>>, vector<1x8x64xbf16>
    %36 = vector.shape_cast %35 : vector<1x8x64xbf16> to vector<8x64xbf16>
    %cst_39 = arith.constant dense<0.000000e+00> : vector<838x64xf32>
    %37 = tpu.matmul %33, %36, %cst_39 {dimension_numbers = #tpu.dot_dimension_numbers<[1], [0], [0], [1], [0, 0, 1, 1], [], []>} : vector<838x8xbf16>, vector<8x64xbf16>, vector<838x64xf32> -> vector<838x64xf32>
    %38 = arith.addf %34, %37 : vector<838x64xf32>
    %c0_40 = arith.constant 0 : index
    %c0_41 = arith.constant 0 : index
    %39 = vector.load %arg5[%c0_40, %c0_41] : memref<838x64xf32, #tpu.memory_space<vmem>>, vector<838x64xf32>
    tpu.vector_store %arg5[%c0_40, %c0_41], %38 {strides = array<i32>} : memref<838x64xf32, #tpu.memory_space<vmem>>, vector<838x64xf32>,
    %c0_42 = arith.constant 0 : index
    %c31 = arith.constant 31 : index
    %c0_43 = arith.constant 0 : index
    %40 = vector.load %arg1[%c0_42, %c31, %c0_43] : memref<1x900x8xf32, #tpu.memory_space<vmem>>, vector<1x838x8xf32>
    %41 = vector.shape_cast %40 : vector<1x838x8xf32> to vector<838x8xf32>
    %42 = arith.truncf %41 : vector<838x8xf32> to vector<838x8xbf16>
    %c0_44 = arith.constant 0 : index
    %c0_45 = arith.constant 0 : index
    %43 = vector.load %arg5[%c0_44, %c0_45] : memref<838x64xf32, #tpu.memory_space<vmem>>, vector<838x64xf32>
    %c4 = arith.constant 4 : index
    %c0_46 = arith.constant 0 : index
    %c0_47 = arith.constant 0 : index
    %44 = vector.load %arg2[%c4, %c0_46, %c0_47] : memref<9x8x64xbf16, #tpu.memory_space<vmem>>, vector<1x8x64xbf16>
    %45 = vector.shape_cast %44 : vector<1x8x64xbf16> to vector<8x64xbf16>
    %cst_48 = arith.constant dense<0.000000e+00> : vector<838x64xf32>
    %46 = tpu.matmul %42, %45, %cst_48 {dimension_numbers = #tpu.dot_dimension_numbers<[1], [0], [0], [1], [0, 0, 1, 1], [], []>} : vector<838x8xbf16>, vector<8x64xbf16>, vector<838x64xf32> -> vector<838x64xf32>
    %47 = arith.addf %43, %46 : vector<838x64xf32>
    %c0_49 = arith.constant 0 : index
    %c0_50 = arith.constant 0 : index
    %48 = vector.load %arg5[%c0_49, %c0_50] : memref<838x64xf32, #tpu.memory_space<vmem>>, vector<838x64xf32>
    tpu.vector_store %arg5[%c0_49, %c0_50], %47 {strides = array<i32>} : memref<838x64xf32, #tpu.memory_space<vmem>>, vector<838x64xf32>,
    %c0_51 = arith.constant 0 : index
    %c32 = arith.constant 32 : index
    %c0_52 = arith.constant 0 : index
    %49 = vector.load %arg1[%c0_51, %c32, %c0_52] : memref<1x900x8xf32, #tpu.memory_space<vmem>>, vector<1x838x8xf32>
    %50 = vector.shape_cast %49 : vector<1x838x8xf32> to vector<838x8xf32>
    %51 = arith.truncf %50 : vector<838x8xf32> to vector<838x8xbf16>
    %c0_53 = arith.constant 0 : index
    %c0_54 = arith.constant 0 : index
    %52 = vector.load %arg5[%c0_53, %c0_54] : memref<838x64xf32, #tpu.memory_space<vmem>>, vector<838x64xf32>
    %c5 = arith.constant 5 : index
    %c0_55 = arith.constant 0 : index
    %c0_56 = arith.constant 0 : index
    %53 = vector.load %arg2[%c5, %c0_55, %c0_56] : memref<9x8x64xbf16, #tpu.memory_space<vmem>>, vector<1x8x64xbf16>
    %54 = vector.shape_cast %53 : vector<1x8x64xbf16> to vector<8x64xbf16>
    %cst_57 = arith.constant dense<0.000000e+00> : vector<838x64xf32>
    %55 = tpu.matmul %51, %54, %cst_57 {dimension_numbers = #tpu.dot_dimension_numbers<[1], [0], [0], [1], [0, 0, 1, 1], [], []>} : vector<838x8xbf16>, vector<8x64xbf16>, vector<838x64xf32> -> vector<838x64xf32>
    %56 = arith.addf %52, %55 : vector<838x64xf32>
    %c0_58 = arith.constant 0 : index
    %c0_59 = arith.constant 0 : index
    %57 = vector.load %arg5[%c0_58, %c0_59] : memref<838x64xf32, #tpu.memory_space<vmem>>, vector<838x64xf32>
    tpu.vector_store %arg5[%c0_58, %c0_59], %56 {strides = array<i32>} : memref<838x64xf32, #tpu.memory_space<vmem>>, vector<838x64xf32>,
    %c0_60 = arith.constant 0 : index
    %c60 = arith.constant 60 : index
    %c0_61 = arith.constant 0 : index
    %58 = vector.load %arg1[%c0_60, %c60, %c0_61] : memref<1x900x8xf32, #tpu.memory_space<vmem>>, vector<1x838x8xf32>
    %59 = vector.shape_cast %58 : vector<1x838x8xf32> to vector<838x8xf32>
    %60 = arith.truncf %59 : vector<838x8xf32> to vector<838x8xbf16>
    %c0_62 = arith.constant 0 : index
    %c0_63 = arith.constant 0 : index
    %61 = vector.load %arg5[%c0_62, %c0_63] : memref<838x64xf32, #tpu.memory_space<vmem>>, vector<838x64xf32>
    %c6 = arith.constant 6 : index
    %c0_64 = arith.constant 0 : index
    %c0_65 = arith.constant 0 : index
    %62 = vector.load %arg2[%c6, %c0_64, %c0_65] : memref<9x8x64xbf16, #tpu.memory_space<vmem>>, vector<1x8x64xbf16>
    %63 = vector.shape_cast %62 : vector<1x8x64xbf16> to vector<8x64xbf16>
    %cst_66 = arith.constant dense<0.000000e+00> : vector<838x64xf32>
    %64 = tpu.matmul %60, %63, %cst_66 {dimension_numbers = #tpu.dot_dimension_numbers<[1], [0], [0], [1], [0, 0, 1, 1], [], []>} : vector<838x8xbf16>, vector<8x64xbf16>, vector<838x64xf32> -> vector<838x64xf32>
    %65 = arith.addf %61, %64 : vector<838x64xf32>
    %c0_67 = arith.constant 0 : index
    %c0_68 = arith.constant 0 : index
    %66 = vector.load %arg5[%c0_67, %c0_68] : memref<838x64xf32, #tpu.memory_space<vmem>>, vector<838x64xf32>
    tpu.vector_store %arg5[%c0_67, %c0_68], %65 {strides = array<i32>} : memref<838x64xf32, #tpu.memory_space<vmem>>, vector<838x64xf32>,
    %c0_69 = arith.constant 0 : index
    %c61 = arith.constant 61 : index
    %c0_70 = arith.constant 0 : index
    %67 = vector.load %arg1[%c0_69, %c61, %c0_70] : memref<1x900x8xf32, #tpu.memory_space<vmem>>, vector<1x838x8xf32>
    %68 = vector.shape_cast %67 : vector<1x838x8xf32> to vector<838x8xf32>
    %69 = arith.truncf %68 : vector<838x8xf32> to vector<838x8xbf16>
    %c0_71 = arith.constant 0 : index
    %c0_72 = arith.constant 0 : index
    %70 = vector.load %arg5[%c0_71, %c0_72] : memref<838x64xf32, #tpu.memory_space<vmem>>, vector<838x64xf32>
    %c7 = arith.constant 7 : index
    %c0_73 = arith.constant 0 : index
    %c0_74 = arith.constant 0 : index
    %71 = vector.load %arg2[%c7, %c0_73, %c0_74] : memref<9x8x64xbf16, #tpu.memory_space<vmem>>, vector<1x8x64xbf16>
    %72 = vector.shape_cast %71 : vector<1x8x64xbf16> to vector<8x64xbf16>
    %cst_75 = arith.constant dense<0.000000e+00> : vector<838x64xf32>
    %73 = tpu.matmul %69, %72, %cst_75 {dimension_numbers = #tpu.dot_dimension_numbers<[1], [0], [0], [1], [0, 0, 1, 1], [], []>} : vector<838x8xbf16>, vector<8x64xbf16>, vector<838x64xf32> -> vector<838x64xf32>
    %74 = arith.addf %70, %73 : vector<838x64xf32>
    %c0_76 = arith.constant 0 : index
    %c0_77 = arith.constant 0 : index
    %75 = vector.load %arg5[%c0_76, %c0_77] : memref<838x64xf32, #tpu.memory_space<vmem>>, vector<838x64xf32>
    tpu.vector_store %arg5[%c0_76, %c0_77], %74 {strides = array<i32>} : memref<838x64xf32, #tpu.memory_space<vmem>>, vector<838x64xf32>,
    %c0_78 = arith.constant 0 : index
    %c62 = arith.constant 62 : index
    %c0_79 = arith.constant 0 : index
    %76 = vector.load %arg1[%c0_78, %c62, %c0_79] : memref<1x900x8xf32, #tpu.memory_space<vmem>>, vector<1x838x8xf32>
    %77 = vector.shape_cast %76 : vector<1x838x8xf32> to vector<838x8xf32>
    %78 = arith.truncf %77 : vector<838x8xf32> to vector<838x8xbf16>
    %c0_80 = arith.constant 0 : index
    %c0_81 = arith.constant 0 : index
    %79 = vector.load %arg5[%c0_80, %c0_81] : memref<838x64xf32, #tpu.memory_space<vmem>>, vector<838x64xf32>
    %c8 = arith.constant 8 : index
    %c0_82 = arith.constant 0 : index
    %c0_83 = arith.constant 0 : index
    %80 = vector.load %arg2[%c8, %c0_82, %c0_83] : memref<9x8x64xbf16, #tpu.memory_space<vmem>>, vector<1x8x64xbf16>
    %81 = vector.shape_cast %80 : vector<1x8x64xbf16> to vector<8x64xbf16>
    %cst_84 = arith.constant dense<0.000000e+00> : vector<838x64xf32>
    %82 = tpu.matmul %78, %81, %cst_84 {dimension_numbers = #tpu.dot_dimension_numbers<[1], [0], [0], [1], [0, 0, 1, 1], [], []>} : vector<838x8xbf16>, vector<8x64xbf16>, vector<838x64xf32> -> vector<838x64xf32>
    %83 = arith.addf %79, %82 : vector<838x64xf32>
    %c0_85 = arith.constant 0 : index
    %c0_86 = arith.constant 0 : index
    %84 = vector.load %arg5[%c0_85, %c0_86] : memref<838x64xf32, #tpu.memory_space<vmem>>, vector<838x64xf32>
    tpu.vector_store %arg5[%c0_85, %c0_86], %83 {strides = array<i32>} : memref<838x64xf32, #tpu.memory_space<vmem>>, vector<838x64xf32>,
    %c0_i32 = arith.constant 0 : i32
    %c28_i32 = arith.constant 28 : i32
    %85 = arith.addi %c0_i32, %c28_i32 : i32
    %c1_i32 = arith.constant 1 : i32
    scf.for %arg6 = %c0_i32 to %85 step %c1_i32  : i32 {
      %c1_i32_88 = arith.constant 1 : i32
      %86 = arith.muli %arg6, %c1_i32_88 : i32
      %c0_i32_89 = arith.constant 0 : i32
      %87 = arith.addi %c0_i32_89, %86 : i32
      %c30_i32 = arith.constant 30 : i32
      %88 = arith.muli %87, %c30_i32 : i32
      %89 = arith.index_cast %88 : i32 to index
      %c0_90 = arith.constant 0 : index
      %90 = vector.load %arg5[%89, %c0_90] : memref<838x64xf32, #tpu.memory_space<vmem>>, vector<28x64xf32>
      %cst_91 = arith.constant 0.000000e+00 : f32
      %91 = vector.broadcast %cst_91 : f32 to vector<28x64xf32>
      %92 = arith.maximumf %90, %91 : vector<28x64xf32>
      %c0_92 = arith.constant 0 : index
      %93 = arith.index_cast %87 : i32 to index
      %c0_93 = arith.constant 0 : index
      %c0_94 = arith.constant 0 : index
      %94 = vector.load %arg4[%c0_92, %93, %c0_93, %c0_94] : memref<1x28x28x64xf32, #tpu.memory_space<vmem>>, vector<1x1x28x64xf32>
      %95 = vector.shape_cast %94 : vector<1x1x28x64xf32> to vector<28x64xf32>
      %96 = vector.shape_cast %92 : vector<28x64xf32> to vector<1x1x28x64xf32>
      tpu.vector_store %arg4[%c0_92, %93, %c0_93, %c0_94], %96 {strides = array<i32>} : memref<1x28x28x64xf32, #tpu.memory_space<vmem>>, vector<1x1x28x64xf32>,
    }
    %c28_i32_87 = arith.constant 28 : i32
    return
  }
  func.func @transform_0(%arg0: i32) -> (i32, i32, i32) {
    %c0_i32 = arith.constant 0 : i32
    %c0_i32_0 = arith.constant 0 : i32
    %c0_i32_1 = arith.constant 0 : i32
    return %arg0, %c0_i32, %c0_i32_0 : i32, i32, i32
  }
  func.func @transform_1(%arg0: i32) -> (i32, i32, i32) {
    %c0_i32 = arith.constant 0 : i32
    %c0_i32_0 = arith.constant 0 : i32
    %c0_i32_1 = arith.constant 0 : i32
    %c0_i32_2 = arith.constant 0 : i32
    return %c0_i32, %c0_i32_0, %c0_i32_1 : i32, i32, i32
  }
  func.func @transform_2(%arg0: i32) -> (i32, i32) {
    %c0_i32 = arith.constant 0 : i32
    %c0_i32_0 = arith.constant 0 : i32
    %c0_i32_1 = arith.constant 0 : i32
    return %c0_i32, %c0_i32_0 : i32, i32
  }
  func.func @transform_3(%arg0: i32) -> (i32, i32, i32, i32) {
    %c0_i32 = arith.constant 0 : i32
    %c0_i32_0 = arith.constant 0 : i32
    %c0_i32_1 = arith.constant 0 : i32
    %c0_i32_2 = arith.constant 0 : i32
    return %arg0, %c0_i32, %c0_i32_0, %c0_i32_1 : i32, i32, i32, i32
  }
}

</mosaic_0001>

<bundles_post_ra>
// kernel: tpu_custom_call.1
= control target key start
LH: loop header
LB: loop body
LE: loop exit
PB: predicated region body
PF: predicated region fallthrough
CT: control target
= control target key end

     0   :  { %s9114_s12 = smov 0   ;;  %s11799_s0 = inlined_call_operand.vmem [shape: f32[2,900,8], index: 0, kind: input, shape index: {}]   ;;  %s11800_s1 = inlined_call_operand.vmem [shape: bf16[9,8,64], index: 1, kind: input, shape index: {}]   ;;  %s11801_s2 = inlined_call_operand.vmem [shape: f32[1,64], index: 2, kind: input, shape index: {}]   ;;  %s11802_s3 = inlined_call_operand.vmem [shape: f32[2,28,28,64], index: 3, kind: output, shape index: {}]  }
   0x1 LB: > { %s8561_s13 = sadd.s32 4294967295, %s9088_s12   ;;  %p8565_p0 = scmp.ge.s32.totalorder %s9088_s12, 1  ;;  %s9088_s12 = sphi %s9114_s12, %s13_s12  }
   0x2   : > { %p137_p1 = scmp.lt.s32.totalorder %s9088_s12, 3 }
   0x4   : > { %p138_p2 = pnand %p8565_p0, %p137_p1 }
   0x5   : > { %p161_p3 = scmp.lt.s32.totalorder (!%p138_p2), %s8561_s13, 1  ;;  %s9090_s16 = smov (!%p138_p2), 0  }
   0x6   : > { %141 = sbr.rel (%p138_p2) target bundleno = 2095 (0x82f), region = 32 }
   0xb   : > { %v546_v0 = vld [vmem:[%s11800_s1] sm:$0xf]  ;;  %vm707_vm0 = vcmask 1043456   ;;  %v8621_v2 = vld [vmem:[%s11800_s1 + $0x4] sm:$0xf]  ;;  %s11804_s13 = smov (!%p161_p3, %s8561_s13), 1 }
   0xc   : > { %v709_v1 = vsel %vm707_vm0, %v546_v0, 0  ;;  %v8675_v3 = vld [vmem:[%s11800_s1 + $0x8] sm:$0xf]  ;;  %v1619_v4 = vsel %vm707_vm0, %v8621_v2, 0  ;;  %v8783_v6 = vld [vmem:[%s11800_s1 + $0x10] sm:$0xf] }
   0xd   : > { %9056 = vmatpush.bf16.msra.mxu1 %v709_v1  ;;  %9057 = vmatpush.bf16.msra.mxu2 %v709_v1  ;;  %v2529_v5 = vsel %vm707_vm0, %v8675_v3, 0  ;;  %v4349_v7 = vsel %vm707_vm0, %v8783_v6, 0  ;;  %s9059_s22 = smul.u32 904, %s11804_s13  ;;  %vm547_vm1 = vcmask 64512   ;;  %v8729_v28 = vld [vmem:[%s11800_s1 + $0xc] sm:$0xf] }
   0xe   : > { %718 = vmatpush.bf16.msra.mxu0 %v709_v1  ;;  %9058 = vmatpush.bf16.msra.mxu3 %v709_v1  ;;  %s9060_s23 = smul.u32 896, %s11804_s13  ;;  %v3439_v30 = vsel %vm707_vm0, %v8729_v28, 0  ;;  %vm176_vm2 = vcmask 523264   ;;  %vm281_vm3 = vcmask 521216  }
   0xf   : > { %s9141_s26 = scalar_lea.vmem %s11799_s0, %s9059_s22 }
  0x10   : > { %s9146_s29 = scalar_lea.vmem %s11802_s3, %s9060_s23  ;;  %v311_v8 = vld [vmem:[%s9141_s26 + $0xe0] sm:$0xff]  ;;  %v312_v9 = vld [vmem:[%s9141_s26 + $0xe8] sm:$0xff]  ;;  %v313_v17 = vld [vmem:[%s9141_s26 + $0xf0] sm:$0xff] }
  0x11   : > { %1628 = vmatpush.bf16.msrb.mxu1 %v1619_v4  ;;  %2538 = vmatpush.bf16.msrb.mxu2 %v2529_v5  ;;  %v339_v10 = vld [vmem:[%s9141_s26 + $0x1c0] sm:$0xff]  ;;  %v402_v11 = vpack.c.bf16 %v312_v9, %v311_v8  ;;  %v340_v12 = vld [vmem:[%s9141_s26 + $0x1c8] sm:$0xff]  ;;  %v314_v18 = vld [vmem:[%s9141_s26 + $0xf8] sm:$0xff] }
  0x12   : > { %4358 = vmatpush.bf16.msrb.mxu0 %v4349_v7  ;;  %v416_v13 = vpack.c.bf16 %v340_v12, %v339_v10  ;;  %v283_v14 = vld [vmem:[%s9141_s26] sm:$0xff]  ;;  %v284_v15 = vld [vmem:[%s9141_s26 + $0x8] sm:$0xff]  ;;  %v341_v19 = vld [vmem:[%s9141_s26 + $0x1d0] sm:$0xff]  ;;  %v403_v21 = vpack.c.bf16 %v314_v18, %v313_v17  ;;  %3448 = vmatpush.bf16.msrb.mxu3 %v3439_v30 }
  0x13   : > { %8582 = vmatmul.msk.bf16.vlgmr.msra.gmra.mxu1 %vm547_vm1, %v402_v11  ;;  %v388_v16 = vpack.c.bf16 %v284_v15, %v283_v14  ;;  %v342_v20 = vld [vmem:[%s9141_s26 + $0x1d8] sm:$0xff]  ;;  %v285_v22 = vld [vmem:[%s9141_s26 + $0x10] sm:$0xff]  ;;  %v367_v26 = vld [vmem:[%s9141_s26 + $0x2a0] sm:$0xff] }
  0x14   : > { %8596 = vmatmul.msk.bf16.vlgmr.msra.gmra.mxu2 %vm547_vm1, %v416_v13  ;;  %v286_v23 = vld [vmem:[%s9141_s26 + $0x18] sm:$0xff]  ;;  %v417_v24 = vpack.c.bf16 %v342_v20, %v341_v19  ;;  %v368_v27 = vld [vmem:[%s9141_s26 + $0x2a8] sm:$0xff]  ;;  %v315_v31 = vld [vmem:[%s9141_s26 + $0x100] sm:$0xff] }
  0x15   : > { %8568 = vmatmul.msk.bf16.vlgmr.msra.gmra.mxu0 %vm547_vm1, %v388_v16  ;;  %v389_v25 = vpack.c.bf16 %v286_v23, %v285_v22  ;;  %v430_v29 = vpack.c.bf16 %v368_v27, %v367_v26  ;;  %v316_v32 = vld [vmem:[%s9141_s26 + $0x108] sm:$0xff]  ;;  %v343_v33 = vld [vmem:[%s9141_s26 + $0x1e0] sm:$0xff]  ;;  %v369_v40 = vld [vmem:[%s9141_s26 + $0x2b0] sm:$0xff] }
  0x16   : > { %v344_v34 = vld [vmem:[%s9141_s26 + $0x1e8] sm:$0xff]  ;;  %v404_v35 = vpack.c.bf16 %v316_v32, %v315_v31  ;;  %v287_v36 = vld [vmem:[%s9141_s26 + $0x20] sm:$0xff]  ;;  %v370_v41 = vld [vmem:[%s9141_s26 + $0x2b8] sm:$0xff] }
  0x17   : > { %8610 = vmatmul.msk.bf16.vlgmr.msra.gmra.mxu3 %vm547_vm1, %v430_v29  ;;  %v288_v37 = vld [vmem:[%s9141_s26 + $0x28] sm:$0xff]  ;;  %v418_v38 = vpack.c.bf16 %v344_v34, %v343_v33  ;;  %v431_v42 = vpack.c.bf16 %v370_v41, %v369_v40  ;;  %v317_v43 = vld [vmem:[%s9141_s26 + $0x110] sm:$0xff]  ;;  %v318_v44 = vld [vmem:[%s9141_s26 + $0x118] sm:$0xff] }
  0x18   : > { %v390_v39 = vpack.c.bf16 %v288_v37, %v287_v36  ;;  %v345_v45 = vld [vmem:[%s9141_s26 + $0x1f0] sm:$0xff]  ;;  %v346_v46 = vld [vmem:[%s9141_s26 + $0x1f8] sm:$0xff]  ;;  %v405_v47 = vpack.c.bf16 %v318_v44, %v317_v43  ;;  %v371_v52 = vld [vmem:[%s9141_s26 + $0x2c0] sm:$0xff] }
  0x19   : > { %v289_v48 = vld [vmem:[%s9141_s26 + $0x30] sm:$0xff]  ;;  %v290_v49 = vld [vmem:[%s9141_s26 + $0x38] sm:$0xff]  ;;  %v419_v50 = vpack.c.bf16 %v346_v46, %v345_v45  ;;  %v372_v53 = vld [vmem:[%s9141_s26 + $0x2c8] sm:$0xff] }
  0x1a   : > { %v391_v51 = vpack.c.bf16 %v290_v49, %v289_v48  ;;  %v432_v54 = vpack.c.bf16 %v372_v53, %v371_v52  ;;  %v319_v55 = vld [vmem:[%s9141_s26 + $0x120] sm:$0xff]  ;;  %v320_v56 = vld [vmem:[%s9141_s26 + $0x128] sm:$0xff]  ;;  %v373_v0 = vld [vmem:[%s9141_s26 + $0x2d0] sm:$0xff] }
  0x1b   : > { %v347_v57 = vld [vmem:[%s9141_s26 + $0x200] sm:$0xff]  ;;  %v348_v58 = vld [vmem:[%s9141_s26 + $0x208] sm:$0xff]  ;;  %v406_v59 = vpack.c.bf16 %v320_v56, %v319_v55  ;;  %v374_v1 = vld [vmem:[%s9141_s26 + $0x2d8] sm:$0xff] }
  0x1c   : > { %v291_v60 = vld [vmem:[%s9141_s26 + $0x40] sm:$0xff]  ;;  %v292_v61 = vld [vmem:[%s9141_s26 + $0x48] sm:$0xff]  ;;  %v420_v62 = vpack.c.bf16 %v348_v58, %v347_v57  ;;  %v433_v2 = vpack.c.bf16 %v374_v1, %v373_v0  ;;  %v321_v3 = vld [vmem:[%s9141_s26 + $0x130] sm:$0xff] }
  0x1d   : > { %v392_v63 = vpack.c.bf16 %v292_v61, %v291_v60  ;;  %v322_v4 = vld [vmem:[%s9141_s26 + $0x138] sm:$0xff]  ;;  %v349_v5 = vld [vmem:[%s9141_s26 + $0x210] sm:$0xff]  ;;  %v375_v12 = vld [vmem:[%s9141_s26 + $0x2e0] sm:$0xff] }
  0x1e   : > { %v350_v6 = vld [vmem:[%s9141_s26 + $0x218] sm:$0xff]  ;;  %v407_v7 = vpack.c.bf16 %v322_v4, %v321_v3  ;;  %v293_v8 = vld [vmem:[%s9141_s26 + $0x50] sm:$0xff]  ;;  %v376_v13 = vld [vmem:[%s9141_s26 + $0x2e8] sm:$0xff] }
  0x1f   : > { %v294_v9 = vld [vmem:[%s9141_s26 + $0x58] sm:$0xff]  ;;  %v421_v10 = vpack.c.bf16 %v350_v6, %v349_v5  ;;  %v9222_v14 = vld [vmem:[%s11801_s2] ss:$0 sm:$0xff]  ;;  %v434_v15 = vpack.c.bf16 %v376_v13, %v375_v12  ;;  %v324_v17 = vld [vmem:[%s9141_s26 + $0x148] sm:$0xff] }
  0x20   : > { %v393_v11 = vpack.c.bf16 %v294_v9, %v293_v8  ;;  %205 = vst.msk [vmem:[#allocation2 + $0xe0] sm:$0xff] %vm176_vm2, %v9222_v14  ;;  %v323_v16 = vld [vmem:[%s9141_s26 + $0x140] sm:$0xff]  ;;  %v352_v19 = vld [vmem:[%s9141_s26 + $0x228] sm:$0xff]  ;;  %v326_v26 = vld [vmem:[%s9141_s26 + $0x158] sm:$0xff] }
  0x21   : > { %177 = vst.msk [vmem:[#allocation2] sm:$0xff] %vm176_vm2, %v9222_v14  ;;  %v351_v18 = vld [vmem:[%s9141_s26 + $0x220] sm:$0xff]  ;;  %v408_v20 = vpack.c.bf16 %v324_v17, %v323_v16  ;;  %v296_v22 = vld [vmem:[%s9141_s26 + $0x68] sm:$0xff]  ;;  %v353_v27 = vld [vmem:[%s9141_s26 + $0x230] sm:$0xff] }
  0x22   : > { %178 = vst.msk [vmem:[#allocation2 + $0x8] sm:$0xff] %vm176_vm2, %v9222_v14  ;;  %v422_v23 = vpack.c.bf16 %v352_v19, %v351_v18  ;;  %v354_v28 = vld [vmem:[%s9141_s26 + $0x238] sm:$0xff]  ;;  %v297_v30 = vld [vmem:[%s9141_s26 + $0x70] sm:$0xff]  ;;  %v327_v34 = vld [vmem:[%s9141_s26 + $0x160] sm:$0xff] }
  0x23   : > { %8583 = vmatmul.msk.bf16.gmra.mxu1 %vm547_vm1, %v403_v21  ;;  %179 = vst.msk [vmem:[#allocation2 + $0x10] sm:$0xff] %vm176_vm2, %v9222_v14  ;;  %v295_v21 = vld [vmem:[%s9141_s26 + $0x60] sm:$0xff]  ;;  %v298_v31 = vld [vmem:[%s9141_s26 + $0x78] sm:$0xff]  ;;  %v423_v32 = vpack.c.bf16 %v354_v28, %v353_v27  ;;  %v356_v37 = vld [vmem:[%s9141_s26 + $0x248] sm:$0xff] }
  0x24   : > { %8597 = vmatmul.msk.bf16.gmra.mxu2 %vm547_vm1, %v417_v24  ;;  %180 = vst.msk [vmem:[#allocation2 + $0x18] sm:$0xff] %vm176_vm2, %v9222_v14  ;;  %v394_v24 = vpack.c.bf16 %v296_v22, %v295_v21  ;;  %v395_v33 = vpack.c.bf16 %v298_v31, %v297_v30  ;;  %v355_v36 = vld [vmem:[%s9141_s26 + $0x240] sm:$0xff]  ;;  %v377_v45 = vld [vmem:[%s9141_s26 + $0x2f0] sm:$0xff]  ;;  %v378_v46 = vld [vmem:[%s9141_s26 + $0x2f8] sm:$0xff] }
  0x25   : > { %8569 = vmatmul.msk.bf16.gmra.mxu0 %vm547_vm1, %v389_v25  ;;  %181 = vst.msk [vmem:[#allocation2 + $0x20] sm:$0xff] %vm176_vm2, %v9222_v14  ;;  %v325_v25 = vld [vmem:[%s9141_s26 + $0x150] sm:$0xff]  ;;  %v424_v41 = vpack.c.bf16 %v356_v37, %v355_v36  ;;  %v330_v52 = vld [vmem:[%s9141_s26 + $0x178] sm:$0xff]  ;;  %v299_v56 = vld [vmem:[%s9141_s26 + $0x80] sm:$0xff] }
  0x26   : > { %182 = vst.msk [vmem:[#allocation2 + $0x28] sm:$0xff] %vm176_vm2, %v9222_v14  ;;  %v409_v29 = vpack.c.bf16 %v326_v26, %v325_v25  ;;  %v357_v53 = vld [vmem:[%s9141_s26 + $0x250] sm:$0xff]  ;;  %v358_v55 = vld [vmem:[%s9141_s26 + $0x258] sm:$0xff]  ;;  %v300_v57 = vld [vmem:[%s9141_s26 + $0x88] sm:$0xff] }
  0x27   : > { %8611 = vmatmul.msk.bf16.gmra.mxu3 %vm547_vm1, %v431_v42  ;;  %183 = vst.msk [vmem:[#allocation2 + $0x30] sm:$0xff] %vm176_vm2, %v9222_v14  ;;  %v425_v58 = vpack.c.bf16 %v358_v55, %v357_v53  ;;  %v379_v60 = vld [vmem:[%s9141_s26 + $0x300] sm:$0xff]  ;;  %v380_v61 = vld [vmem:[%s9141_s26 + $0x308] sm:$0xff]  ;;  %v302_v8 = vld [vmem:[%s9141_s26 + $0x98] sm:$0xff] }
  0x28   : > { %184 = vst.msk [vmem:[#allocation2 + $0x38] sm:$0xff] %vm176_vm2, %v9222_v14  ;;  %v436_v1 = vpack.c.bf16 %v380_v61, %v379_v60  ;;  %v332_v3 = vld [vmem:[%s9141_s26 + $0x188] sm:$0xff]  ;;  %v359_v4 = vld [vmem:[%s9141_s26 + $0x260] sm:$0xff]  ;;  %v381_v16 = vld [vmem:[%s9141_s26 + $0x310] sm:$0xff] }
  0x29   : > { %185 = vst.msk [vmem:[#allocation2 + $0x40] sm:$0xff] %vm176_vm2, %v9222_v14  ;;  %v360_v6 = vld [vmem:[%s9141_s26 + $0x268] sm:$0xff]  ;;  %v382_v17 = vld [vmem:[%s9141_s26 + $0x318] sm:$0xff]  ;;  %v333_v37 = vld [vmem:[%s9141_s26 + $0x190] sm:$0xff] }
  0x2a   : > { %186 = vst.msk [vmem:[#allocation2 + $0x48] sm:$0xff] %vm176_vm2, %v9222_v14  ;;  %v426_v12 = vpack.c.bf16 %v360_v6, %v359_v4 }
  0x2b   : > { %187 = vst.msk [vmem:[#allocation2 + $0x50] sm:$0xff] %vm176_vm2, %v9222_v14  ;;  %v444_v60 = vld [vmem:[#allocation2 + $0x18] sm:$0xff] }
  0x2c   : > { %188 = vst.msk [vmem:[#allocation2 + $0x58] sm:$0xff] %vm176_vm2, %v9222_v14  ;;  %v445_v4 = vld [vmem:[#allocation2 + $0x20] sm:$0xff] }
  0x2d   : > { %189 = vst.msk [vmem:[#allocation2 + $0x60] sm:$0xff] %vm176_vm2, %v9222_v14 }
  0x2e   : > { %190 = vst.msk [vmem:[#allocation2 + $0x68] sm:$0xff] %vm176_vm2, %v9222_v14 }
  0x2f   : > { %191 = vst.msk [vmem:[#allocation2 + $0x70] sm:$0xff] %vm176_vm2, %v9222_v14 }
  0x30   : > { %192 = vst.msk [vmem:[#allocation2 + $0x78] sm:$0xff] %vm176_vm2, %v9222_v14 }
  0x31   : > { %193 = vst.msk [vmem:[#allocation2 + $0x80] sm:$0xff] %vm176_vm2, %v9222_v14 }
  0x32   : > { %194 = vst.msk [vmem:[#allocation2 + $0x88] sm:$0xff] %vm176_vm2, %v9222_v14 }
  0x33   : > { %8584 = vmatmul.msk.bf16.gmra.mxu1 %vm547_vm1, %v404_v35  ;;  %195 = vst.msk [vmem:[#allocation2 + $0x90] sm:$0xff] %vm176_vm2, %v9222_v14  ;;  %v328_v35 = vld [vmem:[%s9141_s26 + $0x168] sm:$0xff] }
  0x34   : > { %8598 = vmatmul.msk.bf16.gmra.mxu2 %vm547_vm1, %v418_v38  ;;  %196 = vst.msk [vmem:[#allocation2 + $0x98] sm:$0xff] %vm176_vm2, %v9222_v14  ;;  %v469_v38 = vld [vmem:[#allocation2 + $0xe0] sm:$0xff] }
  0x35   : > { %8570 = vmatmul.msk.bf16.gmra.mxu0 %vm547_vm1, %v390_v39  ;;  %197 = vst.msk [vmem:[#allocation2 + $0xa0] sm:$0xff] %vm176_vm2, %v9222_v14  ;;  %v410_v39 = vpack.c.bf16 %v328_v35, %v327_v34  ;;  %v442_v34 = vld [vmem:[#allocation2 + $0x8] sm:$0xff] }
  0x36   : > { %198 = vst.msk [vmem:[#allocation2 + $0xa8] sm:$0xff] %vm176_vm2, %v9222_v14 }
  0x37   : > { %8612 = vmatmul.msk.bf16.gmra.mxu3 %vm547_vm1, %v432_v54  ;;  %199 = vst.msk [vmem:[#allocation2 + $0xb0] sm:$0xff] %vm176_vm2, %v9222_v14 }
  0x38   : > { %200 = vst.msk [vmem:[#allocation2 + $0xb8] sm:$0xff] %vm176_vm2, %v9222_v14 }
  0x39   : > { %201 = vst.msk [vmem:[#allocation2 + $0xc0] sm:$0xff] %vm176_vm2, %v9222_v14 }
  0x3a   : > { %202 = vst.msk [vmem:[#allocation2 + $0xc8] sm:$0xff] %vm176_vm2, %v9222_v14 }
  0x3b   : > { %203 = vst.msk [vmem:[#allocation2 + $0xd0] sm:$0xff] %vm176_vm2, %v9222_v14 }
  0x3c   : > { %204 = vst.msk [vmem:[#allocation2 + $0xd8] sm:$0xff] %vm176_vm2, %v9222_v14 }
  0x3d   : > { %206 = vst.msk [vmem:[#allocation2 + $0xe8] sm:$0xff] %vm176_vm2, %v9222_v14 }
  0x3e   : > { %207 = vst.msk [vmem:[#allocation2 + $0xf0] sm:$0xff] %vm176_vm2, %v9222_v14 }
  0x3f   : > { %208 = vst.msk [vmem:[#allocation2 + $0xf8] sm:$0xff] %vm176_vm2, %v9222_v14 }
  0x40   : > { %209 = vst.msk [vmem:[#allocation2 + $0x100] sm:$0xff] %vm176_vm2, %v9222_v14 }
  0x41   : > { %210 = vst.msk [vmem:[#allocation2 + $0x108] sm:$0xff] %vm176_vm2, %v9222_v14 }
  0x42   : > { %211 = vst.msk [vmem:[#allocation2 + $0x110] sm:$0xff] %vm176_vm2, %v9222_v14 }
  0x43   : > { %8585 = vmatmul.msk.bf16.gmra.mxu1 %vm547_vm1, %v405_v47  ;;  %212 = vst.msk [vmem:[#allocation2 + $0x118] sm:$0xff] %vm176_vm2, %v9222_v14  ;;  %v435_v47 = vpack.c.bf16 %v378_v46, %v377_v45 }
  0x44   : > { %8599 = vmatmul.msk.bf16.gmra.mxu2 %vm547_vm1, %v419_v50  ;;  %213 = vst.msk [vmem:[#allocation2 + $0x120] sm:$0xff] %vm176_vm2, %v9222_v14 }
  0x45   : > { %8571 = vmatmul.msk.bf16.gmra.mxu0 %vm547_vm1, %v391_v51  ;;  %214 = vst.msk [vmem:[#allocation2 + $0x128] sm:$0xff] %vm176_vm2, %v9222_v14  ;;  %v329_v51 = vld [vmem:[%s9141_s26 + $0x170] sm:$0xff] }
  0x46   : > { %215 = vst.msk [vmem:[#allocation2 + $0x130] sm:$0xff] %vm176_vm2, %v9222_v14  ;;  %v411_v54 = vpack.c.bf16 %v330_v52, %v329_v51  ;;  %v471_v26 = vld [vmem:[#allocation2 + $0xf0] sm:$0xff] }
  0x47   : > { %8613 = vmatmul.msk.bf16.gmra.mxu3 %vm547_vm1, %v433_v2  ;;  %216 = vst.msk [vmem:[#allocation2 + $0x138] sm:$0xff] %vm176_vm2, %v9222_v14  ;;  %v331_v2 = vld [vmem:[%s9141_s26 + $0x180] sm:$0xff] }
  0x48   : > { %217 = vst.msk [vmem:[#allocation2 + $0x140] sm:$0xff] %vm176_vm2, %v9222_v14  ;;  %v473_v46 = vld [vmem:[#allocation2 + $0x100] sm:$0xff] }
  0x49   : > { %218 = vst.msk [vmem:[#allocation2 + $0x148] sm:$0xff] %vm176_vm2, %v9222_v14 }
  0x4a   : > { %219 = vst.msk [vmem:[#allocation2 + $0x150] sm:$0xff] %vm176_vm2, %v9222_v14 }
  0x4b   : > { %220 = vst.msk [vmem:[#allocation2 + $0x158] sm:$0xff] %vm176_vm2, %v9222_v14 }
  0x4c   : > { %221 = vst.msk [vmem:[#allocation2 + $0x160] sm:$0xff] %vm176_vm2, %v9222_v14 }
  0x4d   : > { %222 = vst.msk [vmem:[#allocation2 + $0x168] sm:$0xff] %vm176_vm2, %v9222_v14 }
  0x4e   : > { %223 = vst.msk [vmem:[#allocation2 + $0x170] sm:$0xff] %vm176_vm2, %v9222_v14 }
  0x4f   : > { %224 = vst.msk [vmem:[#allocation2 + $0x178] sm:$0xff] %vm176_vm2, %v9222_v14 }
  0x50   : > { %225 = vst.msk [vmem:[#allocation2 + $0x180] sm:$0xff] %vm176_vm2, %v9222_v14 }
  0x51   : > { %226 = vst.msk [vmem:[#allocation2 + $0x188] sm:$0xff] %vm176_vm2, %v9222_v14 }
  0x52   : > { %227 = vst.msk [vmem:[#allocation2 + $0x190] sm:$0xff] %vm176_vm2, %v9222_v14 }
  0x53   : > { %8586 = vmatmul.msk.bf16.gmra.mxu1 %vm547_vm1, %v406_v59  ;;  %228 = vst.msk [vmem:[#allocation2 + $0x198] sm:$0xff] %vm176_vm2, %v9222_v14  ;;  %v396_v59 = vpack.c.bf16 %v300_v57, %v299_v56 }
  0x54   : > { %8600 = vmatmul.msk.bf16.gmra.mxu2 %vm547_vm1, %v420_v62  ;;  %229 = vst.msk [vmem:[#allocation2 + $0x1a0] sm:$0xff] %vm176_vm2, %v9222_v14 }
  0x55   : > { %8572 = vmatmul.msk.bf16.gmra.mxu0 %vm547_vm1, %v392_v63  ;;  %230 = vst.msk [vmem:[#allocation2 + $0x1a8] sm:$0xff] %vm176_vm2, %v9222_v14 }
  0x56   : > { %231 = vst.msk [vmem:[#allocation2 + $0x1b0] sm:$0xff] %vm176_vm2, %v9222_v14 }
  0x57   : > { %8614 = vmatmul.msk.bf16.gmra.mxu3 %vm547_vm1, %v434_v15  ;;  %232 = vst.msk [vmem:[#allocation2 + $0x1b8] sm:$0xff] %vm176_vm2, %v9222_v14 }
  0x58   : > { %233 = vst.msk [vmem:[#allocation2 + $0x1c0] sm:$0xff] %vm176_vm2, %v9222_v14 }
  0x59   : > { %234 = vst.msk [vmem:[#allocation2 + $0x1c8] sm:$0xff] %vm176_vm2, %v9222_v14 }
  0x5a   : > { %235 = vst.msk [vmem:[#allocation2 + $0x1d0] sm:$0xff] %vm176_vm2, %v9222_v14 }
  0x5b   : > { %236 = vst.msk [vmem:[#allocation2 + $0x1d8] sm:$0xff] %vm176_vm2, %v9222_v14 }
  0x5c   : > { %237 = vst.msk [vmem:[#allocation2 + $0x1e0] sm:$0xff] %vm176_vm2, %v9222_v14 }
  0x5d   : > { %238 = vst.msk [vmem:[#allocation2 + $0x1e8] sm:$0xff] %vm176_vm2, %v9222_v14 }
  0x5e   : > { %239 = vst.msk [vmem:[#allocation2 + $0x1f0] sm:$0xff] %vm176_vm2, %v9222_v14 }
  0x5f   : > { %240 = vst.msk [vmem:[#allocation2 + $0x1f8] sm:$0xff] %vm176_vm2, %v9222_v14  ;;  %v497_v18 = vld [vmem:[#allocation2 + $0x1c0] sm:$0xff] }
  0x60   : > { %241 = vst.msk [vmem:[#allocation2 + $0x200] sm:$0xff] %vm176_vm2, %v9222_v14  ;;  %v498_v21 = vld [vmem:[#allocation2 + $0x1c8] sm:$0xff] }
  0x61   : > { %242 = vst.msk [vmem:[#allocation2 + $0x208] sm:$0xff] %vm176_vm2, %v9222_v14  ;;  %v499_v31 = vld [vmem:[#allocation2 + $0x1d0] sm:$0xff] }
  0x62   : > { %243 = vst.msk [vmem:[#allocation2 + $0x210] sm:$0xff] %vm176_vm2, %v9222_v14  ;;  %v500_v35 = vld [vmem:[#allocation2 + $0x1d8] sm:$0xff] }
  0x63   : > { %8587 = vmatmul.msk.bf16.gmra.mxu1 %vm547_vm1, %v407_v7  ;;  %244 = vst.msk [vmem:[#allocation2 + $0x218] sm:$0xff] %vm176_vm2, %v9222_v14  ;;  %v301_v7 = vld [vmem:[%s9141_s26 + $0x90] sm:$0xff]  ;;  %v501_v53 = vld [vmem:[#allocation2 + $0x1e0] sm:$0xff] }
  0x64   : > { %8601 = vmatmul.msk.bf16.gmra.mxu2 %vm547_vm1, %v421_v10  ;;  %245 = vst.msk [vmem:[#allocation2 + $0x220] sm:$0xff] %vm176_vm2, %v9222_v14  ;;  %v397_v13 = vpack.c.bf16 %v302_v8, %v301_v7 }
  0x65   : > { %8573 = vmatmul.msk.bf16.gmra.mxu0 %vm547_vm1, %v393_v11  ;;  %246 = vst.msk [vmem:[#allocation2 + $0x228] sm:$0xff] %vm176_vm2, %v9222_v14  ;;  %v412_v11 = vpack.c.bf16 %v332_v3, %v331_v2  ;;  %v384_v2 = vld [vmem:[%s9141_s26 + $0x328] sm:$0xff]  ;;  %v503_v7 = vld [vmem:[#allocation2 + $0x1f0] sm:$0xff] }
  0x66   : > { %247 = vst.msk [vmem:[#allocation2 + $0x230] sm:$0xff] %vm176_vm2, %v9222_v14 }
  0x67   : > { %248 = vst.msk [vmem:[#allocation2 + $0x238] sm:$0xff] %vm176_vm2, %v9222_v14  ;;  %8615 = vmatmul.msk.bf16.gmra.mxu3 %vm547_vm1, %v435_v47 }
  0x68   : > { %249 = vst.msk [vmem:[#allocation2 + $0x240] sm:$0xff] %vm176_vm2, %v9222_v14 }
  0x69   : > { %250 = vst.msk [vmem:[#allocation2 + $0x248] sm:$0xff] %vm176_vm2, %v9222_v14 }
  0x6a   : > { %251 = vst.msk [vmem:[#allocation2 + $0x250] sm:$0xff] %vm176_vm2, %v9222_v14 }
  0x6b   : > { %252 = vst.msk [vmem:[#allocation2 + $0x258] sm:$0xff] %vm176_vm2, %v9222_v14 }
  0x6c   : > { %253 = vst.msk [vmem:[#allocation2 + $0x260] sm:$0xff] %vm176_vm2, %v9222_v14 }
  0x6d   : > { %254 = vst.msk [vmem:[#allocation2 + $0x268] sm:$0xff] %vm176_vm2, %v9222_v14 }
  0x6e   : > { %255 = vst.msk [vmem:[#allocation2 + $0x270] sm:$0xff] %vm176_vm2, %v9222_v14 }
  0x6f   : > { %256 = vst.msk [vmem:[#allocation2 + $0x278] sm:$0xff] %vm176_vm2, %v9222_v14 }
  0x70   : > { %257 = vst.msk [vmem:[#allocation2 + $0x280] sm:$0xff] %vm176_vm2, %v9222_v14 }
  0x71   : > { %258 = vst.msk [vmem:[#allocation2 + $0x288] sm:$0xff] %vm176_vm2, %v9222_v14 }
  0x72   : > { %259 = vst.msk [vmem:[#allocation2 + $0x290] sm:$0xff] %vm176_vm2, %v9222_v14 }
  0x73   : > { %8588 = vmatmul.msk.bf16.gmra.mxu1 %vm547_vm1, %v408_v20  ;;  %260 = vst.msk [vmem:[#allocation2 + $0x298] sm:$0xff] %vm176_vm2, %v9222_v14  ;;  %v470_v20 = vld [vmem:[#allocation2 + $0xe8] sm:$0xff] }
  0x74   : > { %8602 = vmatmul.msk.bf16.gmra.mxu2 %vm547_vm1, %v422_v23  ;;  %261 = vst.msk [vmem:[#allocation2 + $0x2a0] sm:$0xff] %vm176_vm2, %v9222_v14 }
  0x75   : > { %8574 = vmatmul.msk.bf16.gmra.mxu0 %vm547_vm1, %v394_v24  ;;  %262 = vst.msk [vmem:[#allocation2 + $0x2a8] sm:$0xff] %vm176_vm2, %v9222_v14  ;;  %v437_v24 = vpack.c.bf16 %v382_v17, %v381_v16  ;;  %v446_v16 = vld [vmem:[#allocation2 + $0x28] sm:$0xff] }
  0x76   : > { %263 = vst.msk [vmem:[#allocation2 + $0x2b0] sm:$0xff] %vm176_vm2, %v9222_v14 }
  0x77   : > { %264 = vst.msk [vmem:[#allocation2 + $0x2b8] sm:$0xff] %vm176_vm2, %v9222_v14  ;;  %8616 = vmatmul.msk.bf16.gmra.mxu3 %vm547_vm1, %v436_v1  ;;  %v383_v1 = vld [vmem:[%s9141_s26 + $0x320] sm:$0xff] }
  0x78   : > { %265 = vst.msk [vmem:[#allocation2 + $0x2c0] sm:$0xff] %vm176_vm2, %v9222_v14 }
  0x79   : > { %266 = vst.msk [vmem:[#allocation2 + $0x2c8] sm:$0xff] %vm176_vm2, %v9222_v14 }
  0x7a   : > { %267 = vst.msk [vmem:[#allocation2 + $0x2d0] sm:$0xff] %vm176_vm2, %v9222_v14 }
  0x7b   : > { %268 = vst.msk [vmem:[#allocation2 + $0x2d8] sm:$0xff] %vm176_vm2, %v9222_v14 }
  0x7c   : > { %269 = vst.msk [vmem:[#allocation2 + $0x2e0] sm:$0xff] %vm176_vm2, %v9222_v14 }
  0x7d   : > { %270 = vst.msk [vmem:[#allocation2 + $0x2e8] sm:$0xff] %vm176_vm2, %v9222_v14 }
  0x7e   : > { %271 = vst.msk [vmem:[#allocation2 + $0x2f0] sm:$0xff] %vm176_vm2, %v9222_v14 }
  0x7f   : > { %272 = vst.msk [vmem:[#allocation2 + $0x2f8] sm:$0xff] %vm176_vm2, %v9222_v14 }
  0x80   : > { %273 = vst.msk [vmem:[#allocation2 + $0x300] sm:$0xff] %vm176_vm2, %v9222_v14 }
  0x81   : > { %274 = vst.msk [vmem:[#allocation2 + $0x308] sm:$0xff] %vm176_vm2, %v9222_v14 }
  0x82   : > { %275 = vst.msk [vmem:[#allocation2 + $0x310] sm:$0xff] %vm176_vm2, %v9222_v14 }
  0x83   : > { %8589 = vmatmul.msk.bf16.gmra.mxu1 %vm547_vm1, %v409_v29  ;;  %276 = vst.msk [vmem:[#allocation2 + $0x318] sm:$0xff] %vm176_vm2, %v9222_v14  ;;  %v441_v29 = vld [vmem:[#allocation2] sm:$0xff] }
  0x84   : > { %8603 = vmatmul.msk.bf16.gmra.mxu2 %vm547_vm1, %v423_v32  ;;  %277 = vst.msk [vmem:[#allocation2 + $0x320] sm:$0xff] %vm176_vm2, %v9222_v14 }
  0x85   : > { %8575 = vmatmul.msk.bf16.gmra.mxu0 %vm547_vm1, %v395_v33  ;;  %278 = vst.msk [vmem:[#allocation2 + $0x328] sm:$0xff] %vm176_vm2, %v9222_v14  ;;  %v472_v33 = vld [vmem:[#allocation2 + $0xf8] sm:$0xff] }
  0x86   : > { %279 = vst.msk [vmem:[#allocation2 + $0x330] sm:$0xff] %vm176_vm2, %v9222_v14 }
  0x87   : > { %280 = vst.msk [vmem:[#allocation2 + $0x338] sm:$0xff] %vm176_vm2, %v9222_v14  ;;  %8617 = vmatmul.msk.bf16.gmra.mxu3 %vm547_vm1, %v437_v24  ;;  %v447_v24 = vld [vmem:[#allocation2 + $0x30] sm:$0xff] }
  0x88   : > { %282 = vst.msk [vmem:[#allocation2 + $0x340] sm:$0x3f] %vm281_vm3, %v9222_v14 }
  0x8c   : > { %v542_v14 = vld [vmem:[#allocation2 + $0x328] sm:$0xff] }
  0x90   : > { %v790_v40 = vpop.f32.mrf.mxu1 }
  0x91   : > { %v1012_v42 = vadd.f32 %v790_v40, %v469_v38  ;;  %v334_v38 = vld [vmem:[%s9141_s26 + $0x198] sm:$0xff] }
  0x92   : > { %v9414_v50 = vpop.f32.mrf.mxu0  ;;  %v413_v51 = vpack.c.bf16 %v334_v38, %v333_v37 }
  0x93   : > { %1117 = vst.msk [vmem:[#allocation2 + $0xe0] sm:$0xff] %vm176_vm2, %v1012_v42  ;;  %8590 = vmatmul.msk.bf16.gmra.mxu1 %vm547_vm1, %v410_v39  ;;  %v984_v36 = vadd.f32 %v9414_v50, %v441_v29  ;;  %v361_v39 = vld [vmem:[%s9141_s26 + $0x270] sm:$0xff]  ;;  %v362_v42 = vld [vmem:[%s9141_s26 + $0x278] sm:$0xff]  ;;  %v363_v29 = vld [vmem:[%s9141_s26 + $0x280] sm:$0xff] }
  0x94   : > { %8604 = vmatmul.msk.bf16.gmra.mxu2 %vm547_vm1, %v424_v41 }
  0x95   : > { %8576 = vmatmul.msk.bf16.gmra.mxu0 %vm547_vm1, %v396_v59  ;;  %1089 = vst.msk [vmem:[#allocation2] sm:$0xff] %vm176_vm2, %v984_v36  ;;  %v527_v36 = vld [vmem:[#allocation2 + $0x2b0] sm:$0xff] }
  0x97   : > { %v9379_v43 = vpop.f32.mrf.mxu2 }
  0x98   : > { %v9389_v44 = vpop.f32.mrf.mxu1  ;;  %v1040_v25 = vadd.f32 %v9379_v43, %v497_v18  ;;  %v303_v43 = vld [vmem:[%s9141_s26 + $0xa0] sm:$0xff] }
  0x99   : > { %v1013_v28 = vadd.f32 %v9389_v44, %v470_v20  ;;  %v304_v44 = vld [vmem:[%s9141_s26 + $0xa8] sm:$0xff] }
  0x9a   : > { %v9447_v0 = vpop.f32.mrf.mxu0  ;;  %v9480_v15 = vpop.f32.mrf.mxu3  ;;  %1145 = vst.msk [vmem:[#allocation2 + $0x1c0] sm:$0xff] %vm176_vm2, %v1040_v25  ;;  %v398_v55 = vpack.c.bf16 %v304_v44, %v303_v43  ;;  %v335_v25 = vld [vmem:[%s9141_s26 + $0x1a0] sm:$0xff] }
  0x9b   : > { %1118 = vst.msk [vmem:[#allocation2 + $0xe8] sm:$0xff] %vm176_vm2, %v1013_v28  ;;  %v985_v47 = vadd.f32 %v9447_v0, %v442_v34  ;;  %v475_v0 = vld [vmem:[#allocation2 + $0x110] sm:$0xff]  ;;  %v336_v28 = vld [vmem:[%s9141_s26 + $0x1a8] sm:$0xff] }
  0x9c   : > { %v526_v34 = vld [vmem:[#allocation2 + $0x2a8] sm:$0xff] }
  0x9d   : > { %1090 = vst.msk [vmem:[#allocation2 + $0x8] sm:$0xff] %vm176_vm2, %v985_v47 }
  0x9f   : > { %v9406_v48 = vpop.f32.mrf.mxu2 }
  0xa0   : > { %v9412_v49 = vpop.f32.mrf.mxu1  ;;  %v1041_v30 = vadd.f32 %v9406_v48, %v498_v21  ;;  %v443_v48 = vld [vmem:[#allocation2 + $0x10] sm:$0xff]  ;;  %v504_v21 = vld [vmem:[#allocation2 + $0x1f8] sm:$0xff] }
  0xa1   : > { %v1014_v32 = vadd.f32 %v9412_v49, %v471_v26 }
  0xa2   : > { %v9476_v10 = vpop.f32.mrf.mxu0  ;;  %v9504_v27 = vpop.f32.mrf.mxu3  ;;  %1146 = vst.msk [vmem:[#allocation2 + $0x1c8] sm:$0xff] %vm176_vm2, %v1041_v30  ;;  %v364_v30 = vld [vmem:[%s9141_s26 + $0x288] sm:$0xff] }
  0xa3   : > { %8591 = vmatmul.msk.bf16.gmra.mxu1 %vm547_vm1, %v411_v54  ;;  %1119 = vst.msk [vmem:[#allocation2 + $0xf0] sm:$0xff] %vm176_vm2, %v1014_v32  ;;  %v427_v54 = vpack.c.bf16 %v362_v42, %v361_v39  ;;  %v986_v59 = vadd.f32 %v9476_v10, %v443_v48  ;;  %v305_v32 = vld [vmem:[%s9141_s26 + $0xb0] sm:$0xff]  ;;  %v414_v39 = vpack.c.bf16 %v336_v28, %v335_v25 }
  0xa4   : > { %8605 = vmatmul.msk.bf16.gmra.mxu2 %vm547_vm1, %v425_v58  ;;  %v474_v58 = vld [vmem:[#allocation2 + $0x108] sm:$0xff]  ;;  %v1069_v44 = vadd.f32 %v9504_v27, %v526_v34  ;;  %v385_v27 = vld [vmem:[%s9141_s26 + $0x330] sm:$0xff] }
  0xa5   : > { %8577 = vmatmul.msk.bf16.gmra.mxu0 %vm547_vm1, %v397_v13  ;;  %1091 = vst.msk [vmem:[#allocation2 + $0x10] sm:$0xff] %vm176_vm2, %v986_v59  ;;  %v507_v28 = vld [vmem:[#allocation2 + $0x210] sm:$0xff]  ;;  %v450_v34 = vld [vmem:[#allocation2 + $0x48] sm:$0xff] }
  0xa6   : > { %1174 = vst.msk [vmem:[#allocation2 + $0x2a8] sm:$0xff] %vm176_vm2, %v1069_v44  ;;  %v481_v44 = vld [vmem:[#allocation2 + $0x140] sm:$0xff] }
  0xa7   : > { %v9439_v62 = vpop.f32.mrf.mxu2 }
  0xa8   : > { %v9445_v63 = vpop.f32.mrf.mxu1  ;;  %v1042_v40 = vadd.f32 %v9439_v62, %v499_v31  ;;  %v502_v62 = vld [vmem:[#allocation2 + $0x1e8] sm:$0xff] }
  0xa9   : > { %v1015_v45 = vadd.f32 %v9445_v63, %v472_v33  ;;  %v306_v33 = vld [vmem:[%s9141_s26 + $0xb8] sm:$0xff] }
  0xaa   : > { %v727_v23 = vpop.f32.mrf.mxu0  ;;  %v9532_v56 = vpop.f32.mrf.mxu3  ;;  %1147 = vst.msk [vmem:[#allocation2 + $0x1d0] sm:$0xff] %vm176_vm2, %v1042_v40  ;;  %v428_v40 = vpack.c.bf16 %v364_v30, %v363_v29  ;;  %v399_v43 = vpack.c.bf16 %v306_v33, %v305_v32  ;;  %v8945_v29 = vld [vmem:[%s11800_s1 + $0x1c] sm:$0xf]  ;;  %v387_v30 = vld [vmem:[%s9141_s26 + $0x340] sm:$0x3f] }
  0xab   : > { %1120 = vst.msk [vmem:[#allocation2 + $0xf8] sm:$0xff] %vm176_vm2, %v1015_v45  ;;  %v987_v3 = vadd.f32 %v727_v23, %v444_v60  ;;  %v477_v23 = vld [vmem:[#allocation2 + $0x120] sm:$0xff]  ;;  %v1070_v47 = vadd.f32 %v9532_v56, %v527_v36  ;;  %v480_v33 = vld [vmem:[#allocation2 + $0x138] sm:$0xff] }
  0xac   : > { %v529_v45 = vld [vmem:[#allocation2 + $0x2c0] sm:$0xff]  ;;  %v532_v36 = vld [vmem:[#allocation2 + $0x2d8] sm:$0xff] }
  0xad   : > { %1092 = vst.msk [vmem:[#allocation2 + $0x18] sm:$0xff] %vm176_vm2, %v987_v3 }
  0xae   : > { %1175 = vst.msk [vmem:[#allocation2 + $0x2b0] sm:$0xff] %vm176_vm2, %v1070_v47  ;;  %v1195_v47 = vld [vmem:[%s9141_s26 + $0x9] sm:$0xff] }
  0xaf   : > { %v9465_v5 = vpop.f32.mrf.mxu2 }
  0xb0   : > { %v9474_v9 = vpop.f32.mrf.mxu1  ;;  %v1043_v52 = vadd.f32 %v9465_v5, %v500_v35 }
  0xb1   : > { %v1016_v57 = vadd.f32 %v9474_v9, %v473_v46  ;;  %v476_v9 = vld [vmem:[#allocation2 + $0x118] sm:$0xff] }
  0xb2   : > { %v730_v50 = vpop.f32.mrf.mxu0  ;;  %1148 = vst.msk [vmem:[#allocation2 + $0x1d8] sm:$0xff] %vm176_vm2, %v1043_v52  ;;  %v937_v17 = vpop.f32.mrf.mxu3  ;;  %v8837_v52 = vld [vmem:[%s11800_s1 + $0x14] sm:$0xf] }
  0xb3   : > { %8592 = vmatmul.msk.bf16.gmra.mxu1 %vm547_vm1, %v412_v11  ;;  %1121 = vst.msk [vmem:[#allocation2 + $0x100] sm:$0xff] %vm176_vm2, %v1016_v57  ;;  %v988_v13 = vadd.f32 %v730_v50, %v445_v4  ;;  %v5259_v56 = vsel %vm707_vm0, %v8837_v52, 0  ;;  %v506_v4 = vld [vmem:[#allocation2 + $0x208] sm:$0xff]  ;;  %v310_v52 = vld [vmem:[%s9141_s26 + $0xd8] sm:$0xff] }
  0xb4   : > { %8606 = vmatmul.msk.bf16.gmra.mxu2 %vm547_vm1, %v426_v12  ;;  %v438_v12 = vpack.c.bf16 %v384_v2, %v383_v1  ;;  %5268 = vmatpush.bf16.msra.mxu1 %v5259_v56  ;;  %v8891_v1 = vld [vmem:[%s11800_s1 + $0x18] sm:$0xf] }
  0xb5   : > { %8578 = vmatmul.msk.bf16.gmra.mxu0 %vm547_vm1, %v398_v55  ;;  %1093 = vst.msk [vmem:[#allocation2 + $0x20] sm:$0xff] %vm176_vm2, %v988_v13  ;;  %v448_v55 = vld [vmem:[#allocation2 + $0x38] sm:$0xff]  ;;  %v6169_v3 = vsel %vm707_vm0, %v8891_v1, 0  ;;  %v308_v13 = vld [vmem:[%s9141_s26 + $0xc8] sm:$0xff]  ;;  %v509_v1 = vld [vmem:[#allocation2 + $0x220] sm:$0xff] }
  0xb6   : > { %8618 = vmatmul.msk.bf16.gmra.mxu3 %vm547_vm1, %v438_v12  ;;  %6178 = vmatpush.bf16.msra.mxu2 %v6169_v3  ;;  %v307_v12 = vld [vmem:[%s9141_s26 + $0xc0] sm:$0xff] }
  0xb7   : > { %v870_v19 = vpop.f32.mrf.mxu2  ;;  %v3015_v3 = vld [vmem:[%s9141_s26 + $0x26] sm:$0xff] }
  0xb8   : > { %v802_v22 = vpop.f32.mrf.mxu1  ;;  %v1044_v61 = vadd.f32 %v870_v19, %v501_v53  ;;  %v525_v19 = vld [vmem:[#allocation2 + $0x2a0] sm:$0xff] }
  0xb9   : > { %v1017_v63 = vadd.f32 %v802_v22, %v474_v58  ;;  %v1068_v26 = vadd.f32 %v9480_v15, %v525_v19  ;;  %v528_v15 = vld [vmem:[#allocation2 + $0x2b8] sm:$0xff]  ;;  %v530_v58 = vld [vmem:[#allocation2 + $0x2c8] sm:$0xff] }
  0xba   : > { %1149 = vst.msk [vmem:[#allocation2 + $0x1e0] sm:$0xff] %vm176_vm2, %v1044_v61  ;;  %v732_v11 = vpop.f32.mrf.mxu0  ;;  %v940_v46 = vpop.f32.mrf.mxu3  ;;  %v1071_v48 = vadd.f32 %v937_v17, %v528_v15  ;;  %v531_v17 = vld [vmem:[#allocation2 + $0x2d0] sm:$0xff] }
  0xbb   : > { %1122 = vst.msk [vmem:[#allocation2 + $0x108] sm:$0xff] %vm176_vm2, %v1017_v63  ;;  %v989_v22 = vadd.f32 %v732_v11, %v446_v16  ;;  %v1072_v50 = vadd.f32 %v940_v46, %v529_v45  ;;  %v366_v11 = vld [vmem:[%s9141_s26 + $0x298] sm:$0xff]  ;;  %v451_v45 = vld [vmem:[#allocation2 + $0x50] sm:$0xff]  ;;  %v1194_v46 = vld [vmem:[%s9141_s26 + $0x1] sm:$0xff] }
  0xbc   : > { %1173 = vst.msk [vmem:[#allocation2 + $0x2a0] sm:$0xff] %vm176_vm2, %v1068_v26 }
  0xbd   : > { %1094 = vst.msk [vmem:[#allocation2 + $0x28] sm:$0xff] %vm176_vm2, %v989_v22 }
  0xbe   : > { %1176 = vst.msk [vmem:[#allocation2 + $0x2b8] sm:$0xff] %vm176_vm2, %v1071_v48  ;;  %v2104_v48 = vld [vmem:[%s9141_s26 + $0x2] sm:$0xff] }
  0xbf   : > { %v872_v41 = vpop.f32.mrf.mxu2  ;;  %1177 = vst.msk [vmem:[#allocation2 + $0x2c0] sm:$0xff] %vm176_vm2, %v1072_v50 }
  0xc0   : > { %v805_v49 = vpop.f32.mrf.mxu1  ;;  %v1045_v6 = vadd.f32 %v872_v41, %v502_v62 }
  0xc1   : > { %v1018_v8 = vadd.f32 %v805_v49, %v475_v0  ;;  %v505_v49 = vld [vmem:[#allocation2 + $0x200] sm:$0xff] }
  0xc2   : > { %1150 = vst.msk [vmem:[#allocation2 + $0x1e8] sm:$0xff] %vm176_vm2, %v1045_v6  ;;  %v735_v38 = vpop.f32.mrf.mxu0  ;;  %v942_v0 = vpop.f32.mrf.mxu3  ;;  %v449_v6 = vld [vmem:[#allocation2 + $0x40] sm:$0xff] }
  0xc3   : > { %8593 = vmatmul.msk.bf16.gmra.mxu1 %vm547_vm1, %v413_v51  ;;  %1123 = vst.msk [vmem:[#allocation2 + $0x110] sm:$0xff] %vm176_vm2, %v1018_v8  ;;  %v990_v42 = vadd.f32 %v735_v38, %v447_v24  ;;  %v386_v51 = vld [vmem:[%s9141_s26 + $0x338] sm:$0xff]  ;;  %v1073_v2 = vadd.f32 %v942_v0, %v530_v58  ;;  %v400_v24 = vpack.c.bf16 %v308_v13, %v307_v12 }
  0xc4   : > { %8607 = vmatmul.msk.bf16.gmra.mxu2 %vm547_vm1, %v427_v54  ;;  %v478_v54 = vld [vmem:[#allocation2 + $0x128] sm:$0xff]  ;;  %v439_v61 = vpack.c.bf16 %v386_v51, %v385_v27  ;;  %v338_v8 = vld [vmem:[%s9141_s26 + $0x1b8] sm:$0xff]  ;;  %v309_v51 = vld [vmem:[%s9141_s26 + $0xd0] sm:$0xff]  ;;  %v1299_v58 = vpack.c.bf16 %v1195_v47, %v1194_v46 }
  0xc5   : > { %1095 = vst.msk [vmem:[#allocation2 + $0x30] sm:$0xff] %vm176_vm2, %v990_v42  ;;  %8579 = vmatmul.msk.bf16.gmra.mxu0 %vm547_vm1, %v399_v43  ;;  %v508_v43 = vld [vmem:[#allocation2 + $0x218] sm:$0xff]  ;;  %v2105_v27 = vld [vmem:[%s9141_s26 + $0xa] sm:$0xff] }
  0xc6   : > { %8619 = vmatmul.msk.bf16.gmra.mxu3 %vm547_vm1, %v439_v61  ;;  %1178 = vst.msk [vmem:[#allocation2 + $0x2c8] sm:$0xff] %vm176_vm2, %v1073_v2  ;;  %v2209_v61 = vpack.c.bf16 %v2105_v27, %v2104_v48  ;;  %v3014_v2 = vld [vmem:[%s9141_s26 + $0x1e] sm:$0xff] }
  0xc7   : > { %v875_v5 = vpop.f32.mrf.mxu2  ;;  %v512_v48 = vld [vmem:[#allocation2 + $0x238] sm:$0xff]  ;;  %v1198_v27 = vld [vmem:[%s9141_s26 + $0x21] sm:$0xff] }
  0xc8   : > { %v807_v10 = vpop.f32.mrf.mxu1  ;;  %v1046_v18 = vadd.f32 %v875_v5, %v503_v7  ;;  %v479_v5 = vld [vmem:[#allocation2 + $0x130] sm:$0xff] }
  0xc9   : > { %v1019_v20 = vadd.f32 %v807_v10, %v476_v9  ;;  %v337_v7 = vld [vmem:[%s9141_s26 + $0x1b0] sm:$0xff] }
  0xca   : > { %1151 = vst.msk [vmem:[#allocation2 + $0x1f0] sm:$0xff] %vm176_vm2, %v1046_v18  ;;  %v737_v60 = vpop.f32.mrf.mxu0  ;;  %v365_v9 = vld [vmem:[%s9141_s26 + $0x290] sm:$0xff]  ;;  %v945_v25 = vpop.f32.mrf.mxu3 }
  0xcb   : > { %1124 = vst.msk [vmem:[#allocation2 + $0x118] sm:$0xff] %vm176_vm2, %v1019_v20  ;;  %v991_v63 = vadd.f32 %v737_v60, %v448_v55  ;;  %v415_v20 = vpack.c.bf16 %v338_v8, %v337_v7  ;;  %v1074_v26 = vadd.f32 %v945_v25, %v531_v17  ;;  %v533_v55 = vld [vmem:[#allocation2 + $0x2e0] sm:$0xff]  ;;  %v534_v8 = vld [vmem:[#allocation2 + $0x2e8] sm:$0xff] }
  0xcc   : > { %v2107_v25 = vld [vmem:[%s9141_s26 + $0x1a] sm:$0xff] }
  0xcd   : > { %1096 = vst.msk [vmem:[#allocation2 + $0x38] sm:$0xff] %vm176_vm2, %v991_v63 }
  0xce   : > { %1179 = vst.msk [vmem:[#allocation2 + $0x2d0] sm:$0xff] %vm176_vm2, %v1074_v26  ;;  %v3924_v26 = vld [vmem:[%s9141_s26 + $0x1f] sm:$0xff] }
  0xcf   : > { %v877_v31 = vpop.f32.mrf.mxu2 }
  0xd0   : > { %v1047_v35 = vadd.f32 %v877_v31, %v504_v21  ;;  %v810_v37 = vpop.f32.mrf.mxu1  ;;  %v7079_v31 = vsel %vm707_vm0, %v8945_v29, 0 }
  0xd1   : > { %v1020_v41 = vadd.f32 %v810_v37, %v477_v23  ;;  %v429_v23 = vpack.c.bf16 %v366_v11, %v365_v9  ;;  %7088 = vmatpush.bf16.msra.mxu3 %v7079_v31  ;;  %v3119_v11 = vpack.c.bf16 %v3015_v3, %v3014_v2  ;;  %v3018_v2 = vld [vmem:[%s9141_s26 + $0x3e] sm:$0xff]  ;;  %v3019_v3 = vld [vmem:[%s9141_s26 + $0x46] sm:$0xff] }
  0xd2   : > { %1152 = vst.msk [vmem:[#allocation2 + $0x1f8] sm:$0xff] %vm176_vm2, %v1047_v35  ;;  %v740_v19 = vpop.f32.mrf.mxu0 }
  0xd3   : > { %1125 = vst.msk [vmem:[#allocation2 + $0x120] sm:$0xff] %vm176_vm2, %v1020_v41  ;;  %8594 = vmatmul.msk.bf16.gmra.mxu1 %vm547_vm1, %v414_v39  ;;  %v992_v22 = vadd.f32 %v740_v19, %v449_v6  ;;  %v440_v39 = vpack.c.bf16 %v387_v30, %v387_v30  ;;  %v947_v41 = vpop.f32.mrf.mxu3  ;;  %v452_v6 = vld [vmem:[#allocation2 + $0x58] sm:$0xff]  ;;  %v483_v19 = vld [vmem:[#allocation2 + $0x150] sm:$0xff] }
  0xd4   : > { %8608 = vmatmul.msk.bf16.gmra.mxu2 %vm547_vm1, %v428_v40  ;;  %v1075_v42 = vadd.f32 %v947_v41, %v532_v36  ;;  %v454_v41 = vld [vmem:[#allocation2 + $0x68] sm:$0xff] }
  0xd5   : > { %1097 = vst.msk [vmem:[#allocation2 + $0x40] sm:$0xff] %vm176_vm2, %v992_v22  ;;  %8580 = vmatmul.msk.bf16.gmra.mxu0 %vm547_vm1, %v400_v24  ;;  %v1197_v22 = vld [vmem:[%s9141_s26 + $0x19] sm:$0xff] }
  0xd6   : > { %8620 = vmatmul.msk.bf16.gmra.mxu3 %vm547_vm1, %v440_v39  ;;  %1180 = vst.msk [vmem:[#allocation2 + $0x2d8] sm:$0xff] %vm176_vm2, %v1075_v42  ;;  %v3017_v39 = vld [vmem:[%s9141_s26 + $0x36] sm:$0xff] }
  0xd7   : > { %v880_v53 = vpop.f32.mrf.mxu2 }
  0xd8   : > { %v1048_v57 = vadd.f32 %v880_v53, %v505_v49  ;;  %v812_v59 = vpop.f32.mrf.mxu1  ;;  %v8999_v49 = vld [vmem:[%s11800_s1 + $0x20] sm:$0xf] }
  0xd9   : > { %v1021_v62 = vadd.f32 %v812_v59, %v478_v54  ;;  %v7989_v53 = vsel %vm707_vm0, %v8999_v49, 0  ;;  %v485_v49 = vld [vmem:[#allocation2 + $0x160] sm:$0xff] }
  0xda   : > { %1153 = vst.msk [vmem:[#allocation2 + $0x200] sm:$0xff] %vm176_vm2, %v1048_v57  ;;  %v742_v38 = vpop.f32.mrf.mxu0  ;;  %7998 = vmatpush.bf16.msra.mxu0 %v7989_v53 }
  0xdb   : > { %1126 = vst.msk [vmem:[#allocation2 + $0x128] sm:$0xff] %vm176_vm2, %v1021_v62  ;;  %v993_v15 = vadd.f32 %v742_v38, %v450_v34  ;;  %v401_v62 = vpack.c.bf16 %v310_v52, %v309_v51  ;;  %v950_v63 = vpop.f32.mrf.mxu3  ;;  %v3016_v38 = vld [vmem:[%s9141_s26 + $0x2e] sm:$0xff]  ;;  %v2108_v52 = vld [vmem:[%s9141_s26 + $0x22] sm:$0xff] }
  0xdc   : > { %v1076_v0 = vadd.f32 %v950_v63, %v533_v55  ;;  %v1199_v51 = vld [vmem:[%s9141_s26 + $0x29] sm:$0xff] }
  0xdd   : > { %1098 = vst.msk [vmem:[#allocation2 + $0x48] sm:$0xff] %vm176_vm2, %v993_v15  ;;  %v484_v15 = vld [vmem:[#allocation2 + $0x158] sm:$0xff]  ;;  %v3926_v55 = vld [vmem:[%s9141_s26 + $0x2f] sm:$0xff] }
  0xde   : > { %1181 = vst.msk [vmem:[#allocation2 + $0x2e0] sm:$0xff] %vm176_vm2, %v1076_v0 }
  0xdf   : > { %v882_v10 = vpop.f32.mrf.mxu2 }
  0xe0   : > { %v1049_v16 = vadd.f32 %v882_v10, %v506_v4  ;;  %v815_v18 = vpop.f32.mrf.mxu1 }
  0xe1   : > { %v1022_v21 = vadd.f32 %v815_v18, %v479_v5  ;;  %v482_v5 = vld [vmem:[#allocation2 + $0x148] sm:$0xff] }
  0xe2   : > { %1154 = vst.msk [vmem:[#allocation2 + $0x208] sm:$0xff] %vm176_vm2, %v1049_v16  ;;  %v745_v57 = vpop.f32.mrf.mxu0  ;;  %v510_v18 = vld [vmem:[#allocation2 + $0x228] sm:$0xff] }
  0xe3   : > { %1127 = vst.msk [vmem:[#allocation2 + $0x130] sm:$0xff] %vm176_vm2, %v1022_v21  ;;  %8595 = vmatmul.msk.bf16.gmra.mxu1 %vm547_vm1, %v415_v20  ;;  %v994_v60 = vadd.f32 %v745_v57, %v451_v45  ;;  %v952_v16 = vpop.f32.mrf.mxu3  ;;  %v453_v20 = vld [vmem:[#allocation2 + $0x60] sm:$0xff]  ;;  %v1196_v21 = vld [vmem:[%s9141_s26 + $0x11] sm:$0xff]  ;;  %v3120_v45 = vpack.c.bf16 %v3017_v39, %v3016_v38 }
  0xe4   : > { %8609 = vmatmul.msk.bf16.gmra.mxu2 %vm547_vm1, %v429_v23  ;;  %v1077_v17 = vadd.f32 %v952_v16, %v534_v8  ;;  %v2106_v23 = vld [vmem:[%s9141_s26 + $0x12] sm:$0xff]  ;;  %v514_v16 = vld [vmem:[#allocation2 + $0x248] sm:$0xff] }
  0xe5   : > { %1099 = vst.msk [vmem:[#allocation2 + $0x50] sm:$0xff] %vm176_vm2, %v994_v60  ;;  %8581 = vmatmul.msk.bf16.gmra.mxu0 %vm547_vm1, %v401_v62  ;;  %v1301_v60 = vpack.c.bf16 %v1199_v51, %v1198_v27  ;;  %v3020_v38 = vld [vmem:[%s9141_s26 + $0x4e] sm:$0xff]  ;;  %v3021_v39 = vld [vmem:[%s9141_s26 + $0x56] sm:$0xff]  ;;  %v537_v27 = vld [vmem:[#allocation2 + $0x300] sm:$0xff] }
  0xe6   : > { %8730 = vmatmul.msk.bf16.vlgmr.msrb.gmra.mxu3 %vm547_vm1, %v3119_v11  ;;  %1182 = vst.msk [vmem:[#allocation2 + $0x2e8] sm:$0xff] %vm176_vm2, %v1077_v17  ;;  %v1200_v17 = vld [vmem:[%s9141_s26 + $0x31] sm:$0xff] }
  0xe7   : > { %v885_v32 = vpop.f32.mrf.mxu2  ;;  %v516_v51 = vld [vmem:[#allocation2 + $0x258] sm:$0xff] }
  0xe8   : > { %v1050_v35 = vadd.f32 %v885_v32, %v507_v28  ;;  %v817_v37 = vpop.f32.mrf.mxu1  ;;  %v3925_v28 = vld [vmem:[%s9141_s26 + $0x27] sm:$0xff]  ;;  %v1300_v32 = vpack.c.bf16 %v1197_v22, %v1196_v21  ;;  %v2111_v21 = vld [vmem:[%s9141_s26 + $0x3a] sm:$0xff] }
  0xe9   : > { %v1023_v40 = vadd.f32 %v817_v37, %v480_v33  ;;  %v4029_v36 = vpack.c.bf16 %v3925_v28, %v3924_v26  ;;  %v511_v37 = vld [vmem:[#allocation2 + $0x230] sm:$0xff]  ;;  %v3928_v22 = vld [vmem:[%s9141_s26 + $0x3f] sm:$0xff] }
  0xea   : > { %1155 = vst.msk [vmem:[#allocation2 + $0x210] sm:$0xff] %vm176_vm2, %v1050_v35  ;;  %v747_v10 = vpop.f32.mrf.mxu0  ;;  %v2210_v35 = vpack.c.bf16 %v2107_v25, %v2106_v23  ;;  %v3929_v23 = vld [vmem:[%s9141_s26 + $0x47] sm:$0xff]  ;;  %v487_v26 = vld [vmem:[#allocation2 + $0x170] sm:$0xff] }
  0xeb   : > { %1128 = vst.msk [vmem:[#allocation2 + $0x138] sm:$0xff] %vm176_vm2, %v1023_v40  ;;  %v995_v13 = vadd.f32 %v747_v10, %v452_v6  ;;  %v456_v6 = vld [vmem:[#allocation2 + $0x78] sm:$0xff]  ;;  %v3121_v10 = vpack.c.bf16 %v3019_v3, %v3018_v2 }
  0xed   : > { %1100 = vst.msk [vmem:[#allocation2 + $0x58] sm:$0xff] %vm176_vm2, %v995_v13  ;;  %v535_v13 = vld [vmem:[#allocation2 + $0x2f0] sm:$0xff] }
  0xef   : > { %v887_v50 = vpop.f32.mrf.mxu2 }
  0xf0   : > { %v1051_v54 = vadd.f32 %v887_v50, %v508_v43  ;;  %v820_v56 = vpop.f32.mrf.mxu1  ;;  %v455_v50 = vld [vmem:[#allocation2 + $0x70] sm:$0xff] }
  0xf1   : > { %v1024_v59 = vadd.f32 %v820_v56, %v481_v44  ;;  %v3927_v56 = vld [vmem:[%s9141_s26 + $0x37] sm:$0xff] }
  0xf2   : > { %1156 = vst.msk [vmem:[#allocation2 + $0x218] sm:$0xff] %vm176_vm2, %v1051_v54  ;;  %v750_v31 = vpop.f32.mrf.mxu0  ;;  %v2109_v54 = vld [vmem:[%s9141_s26 + $0x2a] sm:$0xff]  ;;  %v4030_v0 = vpack.c.bf16 %v3927_v56, %v3926_v55 }
  0xf3   : > { %1129 = vst.msk [vmem:[#allocation2 + $0x140] sm:$0xff] %vm176_vm2, %v1024_v59  ;;  %8622 = vmatmul.msk.bf16.vlgmr.msrb.gmra.mxu1 %vm547_vm1, %v1299_v58  ;;  %v996_v34 = vadd.f32 %v750_v31, %v453_v20  ;;  %v2211_v63 = vpack.c.bf16 %v2109_v54, %v2108_v52  ;;  %v1202_v52 = vld [vmem:[%s9141_s26 + $0x41] sm:$0xff]  ;;  %v2113_v55 = vld [vmem:[%s9141_s26 + $0x4a] sm:$0xff] }
  0xf4   : > { %8676 = vmatmul.msk.bf16.vlgmr.msrb.gmra.mxu2 %vm547_vm1, %v2209_v61  ;;  %v2112_v54 = vld [vmem:[%s9141_s26 + $0x42] sm:$0xff]  ;;  %v3930_v56 = vld [vmem:[%s9141_s26 + $0x4f] sm:$0xff] }
  0xf5   : > { %1101 = vst.msk [vmem:[#allocation2 + $0x60] sm:$0xff] %vm176_vm2, %v996_v34  ;;  %8784 = vmatmul.msk.bf16.vlgmr.msrb.gmra.mxu0 %vm547_vm1, %v4029_v36  ;;  %v2213_v2 = vpack.c.bf16 %v2113_v55, %v2112_v54 }
  0xf6   : > { %8731 = vmatmul.msk.bf16.gmra.mxu3 %vm547_vm1, %v3120_v45  ;;  %v3122_v45 = vpack.c.bf16 %v3021_v39, %v3020_v38 }
  0xf7   : > { %v890_v4 = vpop.f32.mrf.mxu2 }
  0xf8   : > { %v1052_v7 = vadd.f32 %v890_v4, %v509_v1  ;;  %v822_v9 = vpop.f32.mrf.mxu1  ;;  %v513_v1 = vld [vmem:[#allocation2 + $0x240] sm:$0xff] }
  0xf9   : > { %v1025_v12 = vadd.f32 %v822_v9, %v482_v5  ;;  %v486_v5 = vld [vmem:[#allocation2 + $0x168] sm:$0xff] }
  0xfa   : > { %1157 = vst.msk [vmem:[#allocation2 + $0x220] sm:$0xff] %vm176_vm2, %v1052_v7  ;;  %v752_v44 = vpop.f32.mrf.mxu0 }
  0xfb   : > { %1130 = vst.msk [vmem:[#allocation2 + $0x148] sm:$0xff] %vm176_vm2, %v1025_v12  ;;  %v997_v47 = vadd.f32 %v752_v44, %v454_v41  ;;  %v488_v41 = vld [vmem:[#allocation2 + $0x178] sm:$0xff]  ;;  %v458_v44 = vld [vmem:[#allocation2 + $0x88] sm:$0xff] }
  0xfd   : > { %1102 = vst.msk [vmem:[#allocation2 + $0x68] sm:$0xff] %vm176_vm2, %v997_v47 }
  0xff   : > { %v892_v24 = vpop.f32.mrf.mxu2 }
 0x100   : > { %v1053_v29 = vadd.f32 %v892_v24, %v510_v18  ;;  %v825_v30 = vpop.f32.mrf.mxu1  ;;  %v1201_v18 = vld [vmem:[%s9141_s26 + $0x39] sm:$0xff]  ;;  %v955_v24 = vpop.f32.mrf.mxu3 }
 0x101   : > { %v1026_v33 = vadd.f32 %v825_v30, %v483_v19  ;;  %v2110_v19 = vld [vmem:[%s9141_s26 + $0x32] sm:$0xff]  ;;  %v1078_v28 = vadd.f32 %v955_v24, %v535_v13  ;;  %v1302_v30 = vpack.c.bf16 %v1201_v18, %v1200_v17 }
 0x102   : > { %1158 = vst.msk [vmem:[#allocation2 + $0x228] sm:$0xff] %vm176_vm2, %v1053_v29  ;;  %v755_v59 = vpop.f32.mrf.mxu0  ;;  %v457_v29 = vld [vmem:[#allocation2 + $0x80] sm:$0xff]  ;;  %v460_v17 = vld [vmem:[#allocation2 + $0x98] sm:$0xff]  ;;  %v539_v24 = vld [vmem:[#allocation2 + $0x310] sm:$0xff] }
 0x103   : > { %1131 = vst.msk [vmem:[#allocation2 + $0x150] sm:$0xff] %vm176_vm2, %v1026_v33  ;;  %8623 = vmatmul.msk.bf16.gmra.mxu1 %vm547_vm1, %v1300_v32  ;;  %v998_v62 = vadd.f32 %v755_v59, %v455_v50  ;;  %v2212_v32 = vpack.c.bf16 %v2111_v21, %v2110_v19  ;;  %v4031_v33 = vpack.c.bf16 %v3929_v23, %v3928_v22  ;;  %v489_v59 = vld [vmem:[#allocation2 + $0x180] sm:$0xff] }
 0x104   : > { %8677 = vmatmul.msk.bf16.gmra.mxu2 %vm547_vm1, %v2210_v35  ;;  %1183 = vst.msk [vmem:[#allocation2 + $0x2f0] sm:$0xff] %vm176_vm2, %v1078_v28  ;;  %v1205_v28 = vld [vmem:[%s9141_s26 + $0x59] sm:$0xff] }
 0x105   : > { %1103 = vst.msk [vmem:[#allocation2 + $0x70] sm:$0xff] %vm176_vm2, %v998_v62  ;;  %8785 = vmatmul.msk.bf16.gmra.mxu0 %vm547_vm1, %v4030_v0  ;;  %v459_v62 = vld [vmem:[#allocation2 + $0x90] sm:$0xff] }
 0x106   : > { %8732 = vmatmul.msk.bf16.gmra.mxu3 %vm547_vm1, %v3121_v10  ;;  %v517_v10 = vld [vmem:[#allocation2 + $0x260] sm:$0xff] }
 0x107   : > { %v895_v40 = vpop.f32.mrf.mxu2 }
 0x108   : > { %v1054_v42 = vadd.f32 %v895_v40, %v511_v37  ;;  %v827_v43 = vpop.f32.mrf.mxu1  ;;  %v536_v37 = vld [vmem:[#allocation2 + $0x2f8] sm:$0xff]  ;;  %v515_v40 = vld [vmem:[#allocation2 + $0x250] sm:$0xff] }
 0x109   : > { %v1027_v46 = vadd.f32 %v827_v43, %v484_v15  ;;  %v957_v15 = vpop.f32.mrf.mxu3 }
 0x10a   : > { %1159 = vst.msk [vmem:[#allocation2 + $0x230] sm:$0xff] %vm176_vm2, %v1054_v42  ;;  %v757_v9 = vpop.f32.mrf.mxu0  ;;  %v1079_v42 = vadd.f32 %v957_v15, %v536_v37  ;;  %v461_v37 = vld [vmem:[#allocation2 + $0xa0] sm:$0xff] }
 0x10b   : > { %1132 = vst.msk [vmem:[#allocation2 + $0x158] sm:$0xff] %vm176_vm2, %v1027_v46  ;;  %v999_v12 = vadd.f32 %v757_v9, %v456_v6  ;;  %v3023_v9 = vld [vmem:[%s9141_s26 + $0x66] sm:$0xff] }
 0x10c   : > { %1184 = vst.msk [vmem:[#allocation2 + $0x2f8] sm:$0xff] %vm176_vm2, %v1079_v42 }
 0x10d   : > { %1104 = vst.msk [vmem:[#allocation2 + $0x78] sm:$0xff] %vm176_vm2, %v999_v12  ;;  %v490_v12 = vld [vmem:[#allocation2 + $0x188] sm:$0xff] }
 0x10f   : > { %v897_v53 = vpop.f32.mrf.mxu2 }
 0x110   : > { %v1055_v57 = vadd.f32 %v897_v53, %v512_v48  ;;  %v830_v58 = vpop.f32.mrf.mxu1  ;;  %v1203_v53 = vld [vmem:[%s9141_s26 + $0x49] sm:$0xff] }
 0x111   : > { %v1028_v61 = vadd.f32 %v830_v58, %v485_v49  ;;  %v960_v58 = vpop.f32.mrf.mxu3 }
 0x112   : > { %1160 = vst.msk [vmem:[#allocation2 + $0x238] sm:$0xff] %vm176_vm2, %v1055_v57  ;;  %v760_v35 = vpop.f32.mrf.mxu0  ;;  %v3931_v57 = vld [vmem:[%s9141_s26 + $0x57] sm:$0xff] }
 0x113   : > { %1133 = vst.msk [vmem:[#allocation2 + $0x160] sm:$0xff] %vm176_vm2, %v1028_v61  ;;  %8624 = vmatmul.msk.bf16.gmra.mxu1 %vm547_vm1, %v1301_v60  ;;  %v1000_v36 = vadd.f32 %v760_v35, %v457_v29  ;;  %v1080_v60 = vadd.f32 %v960_v58, %v537_v27  ;;  %v4032_v3 = vpack.c.bf16 %v3931_v57, %v3930_v56  ;;  %v2114_v29 = vld [vmem:[%s9141_s26 + $0x52] sm:$0xff] }
 0x114   : > { %8678 = vmatmul.msk.bf16.gmra.mxu2 %vm547_vm1, %v2211_v63  ;;  %v1303_v63 = vpack.c.bf16 %v1203_v53, %v1202_v52  ;;  %v462_v52 = vld [vmem:[#allocation2 + $0xa8] sm:$0xff] }
 0x115   : > { %1105 = vst.msk [vmem:[#allocation2 + $0x80] sm:$0xff] %vm176_vm2, %v1000_v36  ;;  %8786 = vmatmul.msk.bf16.gmra.mxu0 %vm547_vm1, %v4031_v33 }
 0x116   : > { %8733 = vmatmul.msk.bf16.gmra.mxu3 %vm547_vm1, %v3122_v45  ;;  %1185 = vst.msk [vmem:[#allocation2 + $0x300] sm:$0xff] %vm176_vm2, %v1080_v60  ;;  %v540_v45 = vld [vmem:[#allocation2 + $0x318] sm:$0xff] }
 0x117   : > { %v900_v4 = vpop.f32.mrf.mxu2  ;;  %v520_v60 = vld [vmem:[#allocation2 + $0x278] sm:$0xff] }
 0x118   : > { %v1056_v7 = vadd.f32 %v900_v4, %v513_v1  ;;  %v832_v8 = vpop.f32.mrf.mxu1 }
 0x119   : > { %v1029_v11 = vadd.f32 %v832_v8, %v486_v5  ;;  %v3022_v8 = vld [vmem:[%s9141_s26 + $0x5e] sm:$0xff] }
 0x11a   : > { %1161 = vst.msk [vmem:[#allocation2 + $0x240] sm:$0xff] %vm176_vm2, %v1056_v7  ;;  %v762_v49 = vpop.f32.mrf.mxu0  ;;  %v538_v7 = vld [vmem:[#allocation2 + $0x308] sm:$0xff]  ;;  %v3123_v18 = vpack.c.bf16 %v3023_v9, %v3022_v8 }
 0x11b   : > { %1134 = vst.msk [vmem:[#allocation2 + $0x168] sm:$0xff] %vm176_vm2, %v1029_v11  ;;  %v1001_v50 = vadd.f32 %v762_v49, %v458_v44  ;;  %v962_v11 = vpop.f32.mrf.mxu3 }
 0x11c   : > { %v1081_v13 = vadd.f32 %v962_v11, %v538_v7  ;;  %v463_v7 = vld [vmem:[#allocation2 + $0xb0] sm:$0xff] }
 0x11d   : > { %1106 = vst.msk [vmem:[#allocation2 + $0x88] sm:$0xff] %vm176_vm2, %v1001_v50  ;;  %v492_v50 = vld [vmem:[#allocation2 + $0x198] sm:$0xff] }
 0x11e   : > { %1186 = vst.msk [vmem:[#allocation2 + $0x308] sm:$0xff] %vm176_vm2, %v1081_v13 }
 0x11f   : > { %v902_v20 = vpop.f32.mrf.mxu2 }
 0x120   : > { %v1057_v25 = vadd.f32 %v902_v20, %v514_v16  ;;  %v835_v31 = vpop.f32.mrf.mxu1 }
 0x121   : > { %v1030_v34 = vadd.f32 %v835_v31, %v487_v26  ;;  %v1204_v26 = vld [vmem:[%s9141_s26 + $0x51] sm:$0xff]  ;;  %v3932_v31 = vld [vmem:[%s9141_s26 + $0x5f] sm:$0xff] }
 0x122   : > { %1162 = vst.msk [vmem:[#allocation2 + $0x248] sm:$0xff] %vm176_vm2, %v1057_v25  ;;  %v765_v5 = vpop.f32.mrf.mxu0  ;;  %v518_v25 = vld [vmem:[#allocation2 + $0x268] sm:$0xff]  ;;  %v1304_v38 = vpack.c.bf16 %v1205_v28, %v1204_v26 }
 0x123   : > { %1135 = vst.msk [vmem:[#allocation2 + $0x170] sm:$0xff] %vm176_vm2, %v1030_v34  ;;  %8625 = vmatmul.msk.bf16.gmra.mxu1 %vm547_vm1, %v1302_v30  ;;  %v1002_v6 = vadd.f32 %v765_v5, %v459_v62  ;;  %v2115_v30 = vld [vmem:[%s9141_s26 + $0x5a] sm:$0xff]  ;;  %v965_v33 = vpop.f32.mrf.mxu3  ;;  %v491_v34 = vld [vmem:[#allocation2 + $0x190] sm:$0xff] }
 0x124   : > { %8679 = vmatmul.msk.bf16.gmra.mxu2 %vm547_vm1, %v2212_v32  ;;  %v3933_v32 = vld [vmem:[%s9141_s26 + $0x67] sm:$0xff]  ;;  %v1082_v35 = vadd.f32 %v965_v33, %v539_v24  ;;  %v2214_v15 = vpack.c.bf16 %v2115_v30, %v2114_v29  ;;  %v543_v33 = vld [vmem:[#allocation2 + $0x330] sm:$0xff] }
 0x125   : > { %1107 = vst.msk [vmem:[#allocation2 + $0x90] sm:$0xff] %vm176_vm2, %v1002_v6  ;;  %8787 = vmatmul.msk.bf16.gmra.mxu0 %vm547_vm1, %v4032_v3  ;;  %v1207_v62 = vld [vmem:[%s9141_s26 + $0x69] sm:$0xff] }
 0x126   : > { %8734 = vmatmul.msk.bf16.gmra.mxu3 %vm547_vm1, %v3123_v18  ;;  %1187 = vst.msk [vmem:[#allocation2 + $0x310] sm:$0xff] %vm176_vm2, %v1082_v35  ;;  %v3026_v18 = vld [vmem:[%s9141_s26 + $0x7e] sm:$0xff]  ;;  %v1208_v35 = vld [vmem:[%s9141_s26 + $0x71] sm:$0xff] }
 0x127   : > { %v905_v43 = vpop.f32.mrf.mxu2 }
 0x128   : > { %v1058_v46 = vadd.f32 %v905_v43, %v515_v40  ;;  %v837_v47 = vpop.f32.mrf.mxu1 }
 0x129   : > { %v1031_v48 = vadd.f32 %v837_v47, %v488_v41  ;;  %v4033_v41 = vpack.c.bf16 %v3933_v32, %v3932_v31  ;;  %v3025_v47 = vld [vmem:[%s9141_s26 + $0x76] sm:$0xff] }
 0x12a   : > { %1163 = vst.msk [vmem:[#allocation2 + $0x250] sm:$0xff] %vm176_vm2, %v1058_v46  ;;  %v767_v22 = vpop.f32.mrf.mxu0  ;;  %v3024_v46 = vld [vmem:[%s9141_s26 + $0x6e] sm:$0xff] }
 0x12b   : > { %1136 = vst.msk [vmem:[#allocation2 + $0x178] sm:$0xff] %vm176_vm2, %v1031_v48  ;;  %v1003_v23 = vadd.f32 %v767_v22, %v460_v17  ;;  %v519_v48 = vld [vmem:[#allocation2 + $0x270] sm:$0xff]  ;;  %v967_v49 = vpop.f32.mrf.mxu3  ;;  %v3124_v53 = vpack.c.bf16 %v3025_v47, %v3024_v46  ;;  %v494_v22 = vld [vmem:[#allocation2 + $0x1a8] sm:$0xff] }
 0x12c   : > { %v1083_v27 = vadd.f32 %v967_v49, %v540_v45 }
 0x12d   : > { %1108 = vst.msk [vmem:[#allocation2 + $0x98] sm:$0xff] %vm176_vm2, %v1003_v23 }
 0x12e   : > { %1188 = vst.msk [vmem:[#allocation2 + $0x318] sm:$0xff] %vm176_vm2, %v1083_v27 }
 0x12f   : > { %v907_v61 = vpop.f32.mrf.mxu2 }
 0x130   : > { %v1059_v0 = vadd.f32 %v907_v61, %v516_v51  ;;  %v840_v1 = vpop.f32.mrf.mxu1  ;;  %v1206_v61 = vld [vmem:[%s9141_s26 + $0x61] sm:$0xff] }
 0x131   : > { %v1032_v4 = vadd.f32 %v840_v1, %v489_v59  ;;  %v541_v59 = vld [vmem:[#allocation2 + $0x320] sm:$0xff]  ;;  %v3934_v1 = vld [vmem:[%s9141_s26 + $0x6f] sm:$0xff]  ;;  %v1305_v8 = vpack.c.bf16 %v1207_v62, %v1206_v61 }
 0x132   : > { %1164 = vst.msk [vmem:[#allocation2 + $0x258] sm:$0xff] %vm176_vm2, %v1059_v0  ;;  %v770_v43 = vpop.f32.mrf.mxu0  ;;  %v2117_v0 = vld [vmem:[%s9141_s26 + $0x6a] sm:$0xff] }
 0x133   : > { %1137 = vst.msk [vmem:[#allocation2 + $0x180] sm:$0xff] %vm176_vm2, %v1032_v4  ;;  %8626 = vmatmul.msk.bf16.gmra.mxu1 %vm547_vm1, %v1303_v63  ;;  %v1004_v44 = vadd.f32 %v770_v43, %v461_v37  ;;  %v2116_v63 = vld [vmem:[%s9141_s26 + $0x62] sm:$0xff]  ;;  %v2118_v37 = vld [vmem:[%s9141_s26 + $0x72] sm:$0xff] }
 0x134   : > { %8680 = vmatmul.msk.bf16.gmra.mxu2 %vm547_vm1, %v2213_v2  ;;  %v3935_v2 = vld [vmem:[%s9141_s26 + $0x77] sm:$0xff]  ;;  %v493_v4 = vld [vmem:[#allocation2 + $0x1a0] sm:$0xff]  ;;  %v2215_v11 = vpack.c.bf16 %v2117_v0, %v2116_v63 }
 0x135   : > { %1109 = vst.msk [vmem:[#allocation2 + $0xa0] sm:$0xff] %vm176_vm2, %v1004_v44  ;;  %8788 = vmatmul.msk.bf16.gmra.mxu0 %vm547_vm1, %v4033_v41  ;;  %v495_v41 = vld [vmem:[#allocation2 + $0x1b0] sm:$0xff]  ;;  %v465_v44 = vld [vmem:[#allocation2 + $0xc0] sm:$0xff] }
 0x136   : > { %8735 = vmatmul.msk.bf16.gmra.mxu3 %vm547_vm1, %v3124_v53  ;;  %v3028_v53 = vld [vmem:[%s9141_s26 + $0x8e] sm:$0xff] }
 0x137   : > { %v910_v16 = vpop.f32.mrf.mxu2 }
 0x138   : > { %v1060_v19 = vadd.f32 %v910_v16, %v517_v10  ;;  %v842_v20 = vpop.f32.mrf.mxu1 }
 0x139   : > { %v1033_v21 = vadd.f32 %v842_v20, %v490_v12  ;;  %v970_v3 = vpop.f32.mrf.mxu3  ;;  %v4034_v12 = vpack.c.bf16 %v3935_v2, %v3934_v1  ;;  %v521_v20 = vld [vmem:[#allocation2 + $0x280] sm:$0xff] }
 0x13a   : > { %1165 = vst.msk [vmem:[#allocation2 + $0x260] sm:$0xff] %vm176_vm2, %v1060_v19  ;;  %v772_v57 = vpop.f32.mrf.mxu0  ;;  %v1084_v5 = vadd.f32 %v970_v3, %v541_v59  ;;  %v3027_v19 = vld [vmem:[%s9141_s26 + $0x86] sm:$0xff]  ;;  %v545_v3 = vld [vmem:[#allocation2 + $0x340] sm:$0x3f] }
 0x13b   : > { %1138 = vst.msk [vmem:[#allocation2 + $0x188] sm:$0xff] %vm176_vm2, %v1033_v21  ;;  %v1005_v58 = vadd.f32 %v772_v57, %v462_v52  ;;  %v3125_v26 = vpack.c.bf16 %v3027_v19, %v3026_v18  ;;  %v544_v52 = vld [vmem:[#allocation2 + $0x338] sm:$0xff]  ;;  %v1352_v18 = vld [vmem:[#allocation2] sm:$0xff] }
 0x13c   : > { %1189 = vst.msk [vmem:[#allocation2 + $0x320] sm:$0xff] %vm176_vm2, %v1084_v5  ;;  %v496_v57 = vld [vmem:[#allocation2 + $0x1b8] sm:$0xff]  ;;  %v1210_v5 = vld [vmem:[%s9141_s26 + $0x81] sm:$0xff] }
 0x13d   : > { %1110 = vst.msk [vmem:[#allocation2 + $0xa8] sm:$0xff] %vm176_vm2, %v1005_v58 }
 0x13f   : > { %v912_v36 = vpop.f32.mrf.mxu2 }
 0x140   : > { %v1061_v39 = vadd.f32 %v912_v36, %v518_v25  ;;  %v845_v40 = vpop.f32.mrf.mxu1  ;;  %v464_v25 = vld [vmem:[#allocation2 + $0xb8] sm:$0xff] }
 0x141   : > { %v1034_v42 = vadd.f32 %v845_v40, %v491_v34  ;;  %v972_v21 = vpop.f32.mrf.mxu3  ;;  %v522_v34 = vld [vmem:[#allocation2 + $0x288] sm:$0xff]  ;;  %v1209_v36 = vld [vmem:[%s9141_s26 + $0x79] sm:$0xff] }
 0x142   : > { %1166 = vst.msk [vmem:[#allocation2 + $0x268] sm:$0xff] %vm176_vm2, %v1061_v39  ;;  %v775_v16 = vpop.f32.mrf.mxu0  ;;  %v1085_v23 = vadd.f32 %v972_v21, %v542_v14  ;;  %v3936_v39 = vld [vmem:[%s9141_s26 + $0x7f] sm:$0xff]  ;;  %v3937_v40 = vld [vmem:[%s9141_s26 + $0x87] sm:$0xff]  ;;  %v1306_v45 = vpack.c.bf16 %v1209_v36, %v1208_v35 }
 0x143   : > { %1139 = vst.msk [vmem:[#allocation2 + $0x190] sm:$0xff] %vm176_vm2, %v1034_v42  ;;  %8627 = vmatmul.msk.bf16.gmra.mxu1 %vm547_vm1, %v1304_v38  ;;  %v1006_v17 = vadd.f32 %v775_v16, %v463_v7  ;;  %v2119_v38 = vld [vmem:[%s9141_s26 + $0x7a] sm:$0xff]  ;;  %v4035_v49 = vpack.c.bf16 %v3937_v40, %v3936_v39  ;;  %v2120_v7 = vld [vmem:[%s9141_s26 + $0x82] sm:$0xff]  ;;  %v467_v16 = vld [vmem:[#allocation2 + $0xd0] sm:$0xff] }
 0x144   : > { %8681 = vmatmul.msk.bf16.gmra.mxu2 %vm547_vm1, %v2214_v15  ;;  %1190 = vst.msk [vmem:[#allocation2 + $0x328] sm:$0xff] %vm176_vm2, %v1085_v23  ;;  %v1212_v39 = vld [vmem:[%s9141_s26 + $0x91] sm:$0xff]  ;;  %v1213_v40 = vld [vmem:[%s9141_s26 + $0x99] sm:$0xff] }
 0x145   : > { %1111 = vst.msk [vmem:[#allocation2 + $0xb0] sm:$0xff] %vm176_vm2, %v1006_v17  ;;  %8789 = vmatmul.msk.bf16.gmra.mxu0 %vm547_vm1, %v4034_v12 }
 0x146   : > { %8736 = vmatmul.msk.bf16.gmra.mxu3 %vm547_vm1, %v3125_v26  ;;  %v3031_v26 = vld [vmem:[%s9141_s26 + $0xa6] sm:$0xff] }
 0x147   : > { %v915_v51 = vpop.f32.mrf.mxu2 }
 0x148   : > { %v1062_v54 = vadd.f32 %v915_v51, %v519_v48  ;;  %v847_v55 = vpop.f32.mrf.mxu1  ;;  %v2216_v48 = vpack.c.bf16 %v2119_v38, %v2118_v37 }
 0x149   : > { %v1035_v56 = vadd.f32 %v847_v55, %v492_v50  ;;  %v975_v15 = vpop.f32.mrf.mxu3  ;;  %v523_v55 = vld [vmem:[#allocation2 + $0x290] sm:$0xff] }
 0x14a   : > { %1167 = vst.msk [vmem:[#allocation2 + $0x270] sm:$0xff] %vm176_vm2, %v1062_v54  ;;  %v777_v31 = vpop.f32.mrf.mxu0  ;;  %v1086_v42 = vadd.f32 %v975_v15, %v543_v33  ;;  %v3029_v54 = vld [vmem:[%s9141_s26 + $0x96] sm:$0xff] }
 0x14b   : > { %1140 = vst.msk [vmem:[#allocation2 + $0x198] sm:$0xff] %vm176_vm2, %v1035_v56  ;;  %v1007_v32 = vadd.f32 %v777_v31, %v464_v25  ;;  %v3126_v61 = vpack.c.bf16 %v3029_v54, %v3028_v53  ;;  %v3030_v25 = vld [vmem:[%s9141_s26 + $0x9e] sm:$0xff]  ;;  %v2122_v15 = vld [vmem:[%s9141_s26 + $0x92] sm:$0xff] }
 0x14c   : > { %1191 = vst.msk [vmem:[#allocation2 + $0x330] sm:$0xff] %vm176_vm2, %v1086_v42  ;;  %v3127_v31 = vpack.c.bf16 %v3031_v26, %v3030_v25  ;;  %v3940_v42 = vld [vmem:[%s9141_s26 + $0x9f] sm:$0xff] }
 0x14d   : > { %1112 = vst.msk [vmem:[#allocation2 + $0xb8] sm:$0xff] %vm176_vm2, %v1007_v32  ;;  %v1353_v32 = vld [vmem:[#allocation2 + $0x8] sm:$0xff]  ;;  %v3034_v26 = vld [vmem:[%s9141_s26 + $0xbe] sm:$0xff] }
 0x14f   : > { %v917_v6 = vpop.f32.mrf.mxu2 }
 0x150   : > { %v1063_v9 = vadd.f32 %v917_v6, %v520_v60  ;;  %v850_v10 = vpop.f32.mrf.mxu1  ;;  %v466_v60 = vld [vmem:[#allocation2 + $0xc8] sm:$0xff] }
 0x151   : > { %v1036_v13 = vadd.f32 %v850_v10, %v493_v4  ;;  %v977_v56 = vpop.f32.mrf.mxu3  ;;  %v524_v4 = vld [vmem:[#allocation2 + $0x298] sm:$0xff]  ;;  %v1211_v6 = vld [vmem:[%s9141_s26 + $0x89] sm:$0xff] }
 0x152   : > { %1168 = vst.msk [vmem:[#allocation2 + $0x278] sm:$0xff] %vm176_vm2, %v1063_v9  ;;  %v780_v27 = vpop.f32.mrf.mxu0  ;;  %v1087_v58 = vadd.f32 %v977_v56, %v544_v52  ;;  %v3938_v9 = vld [vmem:[%s9141_s26 + $0x8f] sm:$0xff]  ;;  %v3939_v10 = vld [vmem:[%s9141_s26 + $0x97] sm:$0xff]  ;;  %v1307_v17 = vpack.c.bf16 %v1211_v6, %v1210_v5  ;;  %v2124_v6 = vld [vmem:[%s9141_s26 + $0xa2] sm:$0xff] }
 0x153   : > { %1141 = vst.msk [vmem:[#allocation2 + $0x1a0] sm:$0xff] %vm176_vm2, %v1036_v13  ;;  %8628 = vmatmul.msk.bf16.gmra.mxu1 %vm547_vm1, %v1305_v8  ;;  %v1008_v51 = vadd.f32 %v780_v27, %v465_v44  ;;  %v2121_v8 = vld [vmem:[%s9141_s26 + $0x8a] sm:$0xff]  ;;  %v4036_v21 = vpack.c.bf16 %v3939_v10, %v3938_v9  ;;  %v3033_v56 = vld [vmem:[%s9141_s26 + $0xb6] sm:$0xff] }
 0x154   : > { %8682 = vmatmul.msk.bf16.gmra.mxu2 %vm547_vm1, %v2215_v11  ;;  %1192 = vst.msk [vmem:[#allocation2 + $0x338] sm:$0xff] %vm176_vm2, %v1087_v58  ;;  %v1215_v5 = vld [vmem:[%s9141_s26 + $0xa9] sm:$0xff]  ;;  %v3943_v10 = vld [vmem:[%s9141_s26 + $0xb7] sm:$0xff] }
 0x155   : > { %1113 = vst.msk [vmem:[#allocation2 + $0xc0] sm:$0xff] %vm176_vm2, %v1008_v51  ;;  %8790 = vmatmul.msk.bf16.gmra.mxu0 %vm547_vm1, %v4035_v49  ;;  %v3942_v9 = vld [vmem:[%s9141_s26 + $0xaf] sm:$0xff] }
 0x156   : > { %8737 = vmatmul.msk.bf16.gmra.mxu3 %vm547_vm1, %v3126_v61  ;;  %v1355_v61 = vld [vmem:[#allocation2 + $0x18] sm:$0xff] }
 0x157   : > { %v920_v24 = vpop.f32.mrf.mxu2 }
 0x158   : > { %v1064_v28 = vadd.f32 %v920_v24, %v521_v20  ;;  %v852_v29 = vpop.f32.mrf.mxu1  ;;  %v2217_v20 = vpack.c.bf16 %v2121_v8, %v2120_v7  ;;  %v2125_v8 = vld [vmem:[%s9141_s26 + $0xaa] sm:$0xff] }
 0x159   : > { %v1037_v30 = vadd.f32 %v852_v29, %v494_v22  ;;  %v980_v11 = vpop.f32.mrf.mxu3 }
 0x15a   : > { %1169 = vst.msk [vmem:[#allocation2 + $0x280] sm:$0xff] %vm176_vm2, %v1064_v28  ;;  %v782_v1 = vpop.f32.mrf.mxu0  ;;  %v1088_v12 = vadd.f32 %v980_v11, %v545_v3  ;;  %v1214_v3 = vld [vmem:[%s9141_s26 + $0xa1] sm:$0xff] }
 0x15b   : > { %1142 = vst.msk [vmem:[#allocation2 + $0x1a8] sm:$0xff] %vm176_vm2, %v1037_v30  ;;  %v1009_v2 = vadd.f32 %v782_v1, %v466_v60  ;;  %v468_v30 = vld [vmem:[#allocation2 + $0xd8] sm:$0xff] }
 0x15c   : > { %1193 = vst.msk [vmem:[#allocation2 + $0x340] sm:$0x3f] %vm281_vm3, %v1088_v12 }
 0x15d   : > { %1114 = vst.msk [vmem:[#allocation2 + $0xc8] sm:$0xff] %vm176_vm2, %v1009_v2 }
 0x15f   : > { %v922_v43 = vpop.f32.mrf.mxu2 }
 0x160   : > { %v1065_v46 = vadd.f32 %v922_v43, %v522_v34  ;;  %v855_v47 = vpop.f32.mrf.mxu1  ;;  %v3941_v43 = vld [vmem:[%s9141_s26 + $0xa7] sm:$0xff] }
 0x161   : > { %v1038_v50 = vadd.f32 %v855_v47, %v495_v41  ;;  %v982_v28 = vpop.f32.mrf.mxu3  ;;  %v2123_v41 = vld [vmem:[%s9141_s26 + $0x9a] sm:$0xff]  ;;  %v1354_v47 = vld [vmem:[#allocation2 + $0x10] sm:$0xff] }
 0x162   : > { %1170 = vst.msk [vmem:[#allocation2 + $0x288] sm:$0xff] %vm176_vm2, %v1065_v46  ;;  %v785_v23 = vpop.f32.mrf.mxu0  ;;  %v1308_v46 = vpack.c.bf16 %v1213_v40, %v1212_v39  ;;  %v2218_v49 = vpack.c.bf16 %v2123_v41, %v2122_v15  ;;  %v3035_v28 = vld [vmem:[%s9141_s26 + $0xc6] sm:$0xff]  ;;  %v1216_v15 = vld [vmem:[%s9141_s26 + $0xb1] sm:$0xff] }
 0x163   : > { %1143 = vst.msk [vmem:[#allocation2 + $0x1b0] sm:$0xff] %vm176_vm2, %v1038_v50  ;;  %8629 = vmatmul.msk.bf16.gmra.mxu1 %vm547_vm1, %v1306_v45  ;;  %v1010_v24 = vadd.f32 %v785_v23, %v467_v16  ;;  %v4037_v50 = vpack.c.bf16 %v3941_v43, %v3940_v42  ;;  %v1217_v42 = vld [vmem:[%s9141_s26 + $0xb9] sm:$0xff] }
 0x164   : > { %8683 = vmatmul.msk.bf16.gmra.mxu2 %vm547_vm1, %v2216_v48  ;;  %v2126_v43 = vld [vmem:[%s9141_s26 + $0xb2] sm:$0xff] }
 0x165   : > { %1115 = vst.msk [vmem:[#allocation2 + $0xd0] sm:$0xff] %vm176_vm2, %v1010_v24  ;;  %8791 = vmatmul.msk.bf16.gmra.mxu0 %vm547_vm1, %v4036_v21 }
 0x166   : > { %8738 = vmatmul.msk.bf16.gmra.mxu3 %vm547_vm1, %v3127_v31 }
 0x167   : > { %v925_v59 = vpop.f32.mrf.mxu2 }
 0x168   : > { %v1066_v62 = vadd.f32 %v925_v59, %v523_v55  ;;  %v857_v63 = vpop.f32.mrf.mxu1  ;;  %v3032_v55 = vld [vmem:[%s9141_s26 + $0xae] sm:$0xff] }
 0x169   : > { %v1039_v0 = vadd.f32 %v857_v63, %v496_v57  ;;  %v3450_v44 = vpop.f32.mrf.mxu3  ;;  %v3128_v60 = vpack.c.bf16 %v3033_v56, %v3032_v55 }
 0x16a   : > { %1171 = vst.msk [vmem:[#allocation2 + $0x290] sm:$0xff] %vm176_vm2, %v1066_v62  ;;  %v787_v35 = vpop.f32.mrf.mxu0 }
 0x16b   : > { %1144 = vst.msk [vmem:[#allocation2 + $0x1b8] sm:$0xff] %vm176_vm2, %v1039_v0  ;;  %v1011_v37 = vadd.f32 %v787_v35, %v468_v30  ;;  %v1357_v35 = vld [vmem:[#allocation2 + $0x28] sm:$0xff] }
 0x16d   : > { %1116 = vst.msk [vmem:[#allocation2 + $0xd8] sm:$0xff] %vm176_vm2, %v1011_v37 }
 0x16f   : > { %v927_v13 = vpop.f32.mrf.mxu2 }
 0x170   : > { %v1067_v14 = vadd.f32 %v927_v13, %v524_v4  ;;  %v1630_v19 = vpop.f32.mrf.mxu1 }
 0x171   : > { %v1894_v22 = vadd.f32 %v1630_v19, %v1352_v18  ;;  %v3452_v58 = vpop.f32.mrf.mxu3  ;;  %v2219_v19 = vpack.c.bf16 %v2125_v8, %v2124_v6 }
 0x172   : > { %1172 = vst.msk [vmem:[#allocation2 + $0x298] sm:$0xff] %vm176_vm2, %v1067_v14  ;;  %v4360_v51 = vpop.f32.mrf.mxu0  ;;  %v1356_v14 = vld [vmem:[#allocation2 + $0x20] sm:$0xff] }
 0x173   : > { %1999 = vst.msk [vmem:[#allocation2] sm:$0xff] %vm176_vm2, %v1894_v22  ;;  %8630 = vmatmul.msk.bf16.gmra.mxu1 %vm547_vm1, %v1307_v17  ;;  %v1309_v17 = vpack.c.bf16 %v1215_v5, %v1214_v3  ;;  %v1359_v5 = vld [vmem:[#allocation2 + $0x38] sm:$0xff] }
 0x174   : > { %8684 = vmatmul.msk.bf16.gmra.mxu2 %vm547_vm1, %v2217_v20  ;;  %v4038_v20 = vpack.c.bf16 %v3943_v10, %v3942_v9 }
 0x175   : > { %8792 = vmatmul.msk.bf16.gmra.mxu0 %vm547_vm1, %v4037_v50 }
 0x176   : > { %8739 = vmatmul.msk.bf16.gmra.mxu3 %vm547_vm1, %v3128_v60 }
 0x177   : > { %v2540_v29 = vpop.f32.mrf.mxu2 }
 0x178   : > { %v1632_v33 = vpop.f32.mrf.mxu1 }
 0x179   : > { %v1895_v34 = vadd.f32 %v1632_v33, %v1353_v32  ;;  %v3455_v12 = vpop.f32.mrf.mxu3 }
 0x17a   : > { %v2262_v36 = vld [vmem:[#allocation2] sm:$0xff]  ;;  %v4362_v0 = vpop.f32.mrf.mxu0 }
 0x17b   : > { %v2804_v38 = vadd.f32 %v2540_v29, %v2262_v36  ;;  %2000 = vst.msk [vmem:[#allocation2 + $0x8] sm:$0xff] %vm176_vm2, %v1895_v34  ;;  %v3129_v34 = vpack.c.bf16 %v3035_v28, %v3034_v26 }
 0x17d   : > { %2909 = vst.msk [vmem:[#allocation2] sm:$0xff] %vm176_vm2, %v2804_v38 }
 0x17f   : > { %v2542_v45 = vpop.f32.mrf.mxu2 }
 0x180   : > { %v1635_v48 = vpop.f32.mrf.mxu1 }
 0x181   : > { %v1896_v27 = vadd.f32 %v1635_v48, %v1354_v47  ;;  %v3457_v31 = vpop.f32.mrf.mxu3  ;;  %v3945_v47 = vld [vmem:[%s9141_s26 + $0xc7] sm:$0xff] }
 0x182   : > { %v2263_v52 = vld [vmem:[#allocation2 + $0x8] sm:$0xff]  ;;  %v4365_v22 = vpop.f32.mrf.mxu0 }
 0x183   : > { %v2805_v53 = vadd.f32 %v2542_v45, %v2263_v52  ;;  %2001 = vst.msk [vmem:[#allocation2 + $0x10] sm:$0xff] %vm176_vm2, %v1896_v27  ;;  %8631 = vmatmul.msk.bf16.gmra.mxu1 %vm547_vm1, %v1308_v46  ;;  %v2127_v45 = vld [vmem:[%s9141_s26 + $0xba] sm:$0xff]  ;;  %v1358_v52 = vld [vmem:[#allocation2 + $0x30] sm:$0xff] }
 0x184   : > { %v3172_v54 = vld [vmem:[#allocation2] sm:$0xff]  ;;  %8685 = vmatmul.msk.bf16.gmra.mxu2 %vm547_vm1, %v2218_v49 }
 0x185   : > { %v3714_v57 = vadd.f32 %v3450_v44, %v3172_v54  ;;  %2910 = vst.msk [vmem:[#allocation2 + $0x8] sm:$0xff] %vm176_vm2, %v2805_v53  ;;  %8793 = vmatmul.msk.bf16.gmra.mxu0 %vm547_vm1, %v4038_v20  ;;  %v3944_v46 = vld [vmem:[%s9141_s26 + $0xbf] sm:$0xff]  ;;  %v2220_v54 = vpack.c.bf16 %v2127_v45, %v2126_v43 }
 0x186   : > { %8740 = vmatmul.msk.bf16.gmra.mxu3 %vm547_vm1, %v3129_v34  ;;  %v4039_v55 = vpack.c.bf16 %v3945_v47, %v3944_v46 }
 0x187   : > { %3819 = vst.msk [vmem:[#allocation2] sm:$0xff] %vm176_vm2, %v3714_v57  ;;  %v2545_v59 = vpop.f32.mrf.mxu2 }
 0x188   : > { %v1637_v62 = vpop.f32.mrf.mxu1 }
 0x189   : > { %v1897_v63 = vadd.f32 %v1637_v62, %v1355_v61  ;;  %v3460_v49 = vpop.f32.mrf.mxu3  ;;  %v3036_v61 = vld [vmem:[%s9141_s26 + $0xce] sm:$0xff]  ;;  %v3037_v62 = vld [vmem:[%s9141_s26 + $0xd6] sm:$0xff] }
 0x18a   : > { %v2264_v1 = vld [vmem:[#allocation2 + $0x10] sm:$0xff]  ;;  %v4367_v38 = vpop.f32.mrf.mxu0 }
 0x18b   : > { %v2806_v2 = vadd.f32 %v2545_v59, %v2264_v1  ;;  %2002 = vst.msk [vmem:[#allocation2 + $0x18] sm:$0xff] %vm176_vm2, %v1897_v63 }
 0x18c   : > { %v3173_v4 = vld [vmem:[#allocation2 + $0x8] sm:$0xff] }
 0x18d   : > { %v3715_v7 = vadd.f32 %v3452_v58, %v3173_v4  ;;  %2911 = vst.msk [vmem:[#allocation2 + $0x10] sm:$0xff] %vm176_vm2, %v2806_v2  ;;  %v3130_v4 = vpack.c.bf16 %v3037_v62, %v3036_v61 }
 0x18e   : > { %v4082_v11 = vld [vmem:[#allocation2] sm:$0xff] }
 0x18f   : > { %v4624_v13 = vadd.f32 %v4360_v51, %v4082_v11  ;;  %3820 = vst.msk [vmem:[#allocation2 + $0x8] sm:$0xff] %vm176_vm2, %v3715_v7  ;;  %v2547_v16 = vpop.f32.mrf.mxu2  ;;  %v1310_v51 = vpack.c.bf16 %v1217_v42, %v1216_v15  ;;  %v1218_v11 = vld [vmem:[%s9141_s26 + $0xc1] sm:$0xff] }
 0x190   : > { %v1640_v18 = vpop.f32.mrf.mxu1  ;;  %v1361_v42 = vld [vmem:[#allocation2 + $0x48] sm:$0xff] }
 0x191   : > { %4729 = vst.msk [vmem:[#allocation2] sm:$0xff] %vm176_vm2, %v4624_v13  ;;  %v1898_v21 = vadd.f32 %v1640_v18, %v1356_v14  ;;  %v3462_v1 = vpop.f32.mrf.mxu3  ;;  %v1219_v13 = vld [vmem:[%s9141_s26 + $0xc9] sm:$0xff] }
 0x192   : > { %v2265_v23 = vld [vmem:[#allocation2 + $0x18] sm:$0xff]  ;;  %v4370_v57 = vpop.f32.mrf.mxu0  ;;  %v2129_v14 = vld [vmem:[%s9141_s26 + $0xca] sm:$0xff] }
 0x193   : > { %v2807_v24 = vadd.f32 %v2547_v16, %v2265_v23  ;;  %2003 = vst.msk [vmem:[#allocation2 + $0x20] sm:$0xff] %vm176_vm2, %v1898_v21  ;;  %8632 = vmatmul.msk.bf16.gmra.mxu1 %vm547_vm1, %v1309_v17  ;;  %v2128_v16 = vld [vmem:[%s9141_s26 + $0xc2] sm:$0xff]  ;;  %v3946_v18 = vld [vmem:[%s9141_s26 + $0xcf] sm:$0xff] }
 0x194   : > { %v3174_v25 = vld [vmem:[#allocation2 + $0x10] sm:$0xff]  ;;  %8686 = vmatmul.msk.bf16.gmra.mxu2 %vm547_vm1, %v2219_v19  ;;  %v2221_v28 = vpack.c.bf16 %v2129_v14, %v2128_v16 }
 0x195   : > { %v3716_v29 = vadd.f32 %v3455_v12, %v3174_v25  ;;  %2912 = vst.msk [vmem:[#allocation2 + $0x18] sm:$0xff] %vm176_vm2, %v2807_v24  ;;  %8794 = vmatmul.msk.bf16.gmra.mxu0 %vm547_vm1, %v4039_v55  ;;  %v3947_v19 = vld [vmem:[%s9141_s26 + $0xd7] sm:$0xff]  ;;  %v1311_v24 = vpack.c.bf16 %v1219_v13, %v1218_v11  ;;  %v1360_v25 = vld [vmem:[#allocation2 + $0x40] sm:$0xff] }
 0x196   : > { %v4083_v30 = vld [vmem:[#allocation2 + $0x8] sm:$0xff]  ;;  %8741 = vmatmul.msk.bf16.gmra.mxu3 %vm547_vm1, %v3130_v4  ;;  %v1363_v13 = vld [vmem:[#allocation2 + $0x58] sm:$0xff] }
 0x197   : > { %v4625_v32 = vadd.f32 %v4362_v0, %v4083_v30  ;;  %3821 = vst.msk [vmem:[#allocation2 + $0x10] sm:$0xff] %vm176_vm2, %v3716_v29  ;;  %v2550_v33 = vpop.f32.mrf.mxu2  ;;  %v4040_v29 = vpack.c.bf16 %v3947_v19, %v3946_v18 }
 0x198   : > { %v1642_v36 = vpop.f32.mrf.mxu1 }
 0x199   : > { %4730 = vst.msk [vmem:[#allocation2 + $0x8] sm:$0xff] %vm176_vm2, %v4625_v32  ;;  %v1899_v37 = vadd.f32 %v1642_v36, %v1357_v35  ;;  %v3465_v21 = vpop.f32.mrf.mxu3  ;;  %v3038_v35 = vld [vmem:[%s9141_s26 + $0xde] sm:$0xff]  ;;  %v3039_v36 = vld [vmem:[%s9141_s26 + $0xe6] sm:$0xff] }
 0x19a   : > { %v2266_v39 = vld [vmem:[#allocation2 + $0x20] sm:$0xff]  ;;  %v4372_v8 = vpop.f32.mrf.mxu0 }
 0x19b   : > { %v2808_v40 = vadd.f32 %v2550_v33, %v2266_v39  ;;  %2004 = vst.msk [vmem:[#allocation2 + $0x28] sm:$0xff] %vm176_vm2, %v1899_v37 }
 0x19c   : > { %v3175_v41 = vld [vmem:[#allocation2 + $0x18] sm:$0xff] }
 0x19d   : > { %v3717_v44 = vadd.f32 %v3457_v31, %v3175_v41  ;;  %2913 = vst.msk [vmem:[#allocation2 + $0x20] sm:$0xff] %vm176_vm2, %v2808_v40  ;;  %v3131_v41 = vpack.c.bf16 %v3039_v36, %v3038_v35 }
 0x19e   : > { %v4084_v48 = vld [vmem:[#allocation2 + $0x10] sm:$0xff] }
 0x19f   : > { %v4626_v50 = vadd.f32 %v4365_v22, %v4084_v48  ;;  %3822 = vst.msk [vmem:[#allocation2 + $0x18] sm:$0xff] %vm176_vm2, %v3717_v44  ;;  %v2552_v27 = vpop.f32.mrf.mxu2  ;;  %v1220_v48 = vld [vmem:[%s9141_s26 + $0xd1] sm:$0xff] }
 0x1a0   : > { %v1645_v53 = vpop.f32.mrf.mxu1 }
 0x1a1   : > { %4731 = vst.msk [vmem:[#allocation2 + $0x10] sm:$0xff] %vm176_vm2, %v4626_v50  ;;  %v1900_v56 = vadd.f32 %v1645_v53, %v1358_v52  ;;  %v3467_v39 = vpop.f32.mrf.mxu3  ;;  %v1221_v50 = vld [vmem:[%s9141_s26 + $0xd9] sm:$0xff] }
 0x1a2   : > { %v2267_v58 = vld [vmem:[#allocation2 + $0x28] sm:$0xff]  ;;  %v4375_v31 = vpop.f32.mrf.mxu0  ;;  %v2131_v52 = vld [vmem:[%s9141_s26 + $0xda] sm:$0xff] }
 0x1a3   : > { %v2809_v59 = vadd.f32 %v2552_v27, %v2267_v58  ;;  %2005 = vst.msk [vmem:[#allocation2 + $0x30] sm:$0xff] %vm176_vm2, %v1900_v56  ;;  %8633 = vmatmul.msk.bf16.gmra.mxu1 %vm547_vm1, %v1310_v51  ;;  %v2130_v27 = vld [vmem:[%s9141_s26 + $0xd2] sm:$0xff]  ;;  %v3948_v53 = vld [vmem:[%s9141_s26 + $0xdf] sm:$0xff] }
 0x1a4   : > { %v3176_v60 = vld [vmem:[#allocation2 + $0x20] sm:$0xff]  ;;  %8687 = vmatmul.msk.bf16.gmra.mxu2 %vm547_vm1, %v2220_v54  ;;  %v2222_v62 = vpack.c.bf16 %v2131_v52, %v2130_v27 }
 0x1a5   : > { %v3718_v63 = vadd.f32 %v3460_v49, %v3176_v60  ;;  %2914 = vst.msk [vmem:[#allocation2 + $0x28] sm:$0xff] %vm176_vm2, %v2809_v59  ;;  %8795 = vmatmul.msk.bf16.gmra.mxu0 %vm547_vm1, %v4040_v29  ;;  %v3949_v54 = vld [vmem:[%s9141_s26 + $0xe7] sm:$0xff]  ;;  %v1312_v59 = vpack.c.bf16 %v1221_v50, %v1220_v48  ;;  %v1362_v60 = vld [vmem:[#allocation2 + $0x50] sm:$0xff] }
 0x1a6   : > { %v4085_v0 = vld [vmem:[#allocation2 + $0x18] sm:$0xff]  ;;  %8742 = vmatmul.msk.bf16.gmra.mxu3 %vm547_vm1, %v3131_v41  ;;  %v1365_v50 = vld [vmem:[#allocation2 + $0x68] sm:$0xff] }
 0x1a7   : > { %v4627_v2 = vadd.f32 %v4367_v38, %v4085_v0  ;;  %3823 = vst.msk [vmem:[#allocation2 + $0x20] sm:$0xff] %vm176_vm2, %v3718_v63  ;;  %v2555_v3 = vpop.f32.mrf.mxu2  ;;  %v4041_v63 = vpack.c.bf16 %v3949_v54, %v3948_v53 }
 0x1a8   : > { %v1647_v6 = vpop.f32.mrf.mxu1 }
 0x1a9   : > { %4732 = vst.msk [vmem:[#allocation2 + $0x18] sm:$0xff] %vm176_vm2, %v4627_v2  ;;  %v1901_v7 = vadd.f32 %v1647_v6, %v1359_v5  ;;  %v3470_v56 = vpop.f32.mrf.mxu3  ;;  %v3040_v5 = vld [vmem:[%s9141_s26 + $0xee] sm:$0xff]  ;;  %v3041_v6 = vld [vmem:[%s9141_s26 + $0xf6] sm:$0xff] }
 0x1aa   : > { %v2268_v9 = vld [vmem:[#allocation2 + $0x30] sm:$0xff]  ;;  %v4377_v45 = vpop.f32.mrf.mxu0 }
 0x1ab   : > { %v2810_v10 = vadd.f32 %v2555_v3, %v2268_v9  ;;  %2006 = vst.msk [vmem:[#allocation2 + $0x38] sm:$0xff] %vm176_vm2, %v1901_v7 }
 0x1ac   : > { %v3177_v12 = vld [vmem:[#allocation2 + $0x28] sm:$0xff] }
 0x1ad   : > { %v3719_v17 = vadd.f32 %v3462_v1, %v3177_v12  ;;  %2915 = vst.msk [vmem:[#allocation2 + $0x30] sm:$0xff] %vm176_vm2, %v2810_v10  ;;  %v3132_v12 = vpack.c.bf16 %v3041_v6, %v3040_v5 }
 0x1ae   : > { %v4086_v20 = vld [vmem:[#allocation2 + $0x20] sm:$0xff] }
 0x1af   : > { %v4628_v22 = vadd.f32 %v4370_v57, %v4086_v20  ;;  %3824 = vst.msk [vmem:[#allocation2 + $0x28] sm:$0xff] %vm176_vm2, %v3719_v17  ;;  %v2557_v23 = vpop.f32.mrf.mxu2  ;;  %v1222_v20 = vld [vmem:[%s9141_s26 + $0xe1] sm:$0xff] }
 0x1b0   : > { %v1650_v26 = vpop.f32.mrf.mxu1 }
 0x1b1   : > { %4733 = vst.msk [vmem:[#allocation2 + $0x20] sm:$0xff] %vm176_vm2, %v4628_v22  ;;  %v1902_v30 = vadd.f32 %v1650_v26, %v1360_v25  ;;  %v3472_v9 = vpop.f32.mrf.mxu3  ;;  %v1223_v22 = vld [vmem:[%s9141_s26 + $0xe9] sm:$0xff] }
 0x1b2   : > { %v2269_v32 = vld [vmem:[#allocation2 + $0x38] sm:$0xff]  ;;  %v4380_v1 = vpop.f32.mrf.mxu0  ;;  %v2133_v25 = vld [vmem:[%s9141_s26 + $0xea] sm:$0xff] }
 0x1b3   : > { %v2811_v33 = vadd.f32 %v2557_v23, %v2269_v32  ;;  %2007 = vst.msk [vmem:[#allocation2 + $0x40] sm:$0xff] %vm176_vm2, %v1902_v30  ;;  %8634 = vmatmul.msk.bf16.gmra.mxu1 %vm547_vm1, %v1311_v24  ;;  %v2132_v23 = vld [vmem:[%s9141_s26 + $0xe2] sm:$0xff]  ;;  %v3950_v26 = vld [vmem:[%s9141_s26 + $0xef] sm:$0xff] }
 0x1b4   : > { %v3178_v34 = vld [vmem:[#allocation2 + $0x30] sm:$0xff]  ;;  %8688 = vmatmul.msk.bf16.gmra.mxu2 %vm547_vm1, %v2221_v28  ;;  %v2223_v36 = vpack.c.bf16 %v2133_v25, %v2132_v23 }
 0x1b5   : > { %v3720_v37 = vadd.f32 %v3465_v21, %v3178_v34  ;;  %2916 = vst.msk [vmem:[#allocation2 + $0x38] sm:$0xff] %vm176_vm2, %v2811_v33  ;;  %8796 = vmatmul.msk.bf16.gmra.mxu0 %vm547_vm1, %v4041_v63  ;;  %v3951_v28 = vld [vmem:[%s9141_s26 + $0xf7] sm:$0xff]  ;;  %v1313_v33 = vpack.c.bf16 %v1223_v22, %v1222_v20  ;;  %v1364_v34 = vld [vmem:[#allocation2 + $0x60] sm:$0xff] }
 0x1b6   : > { %v4087_v38 = vld [vmem:[#allocation2 + $0x28] sm:$0xff]  ;;  %8743 = vmatmul.msk.bf16.gmra.mxu3 %vm547_vm1, %v3132_v12  ;;  %v1367_v22 = vld [vmem:[#allocation2 + $0x78] sm:$0xff] }
 0x1b7   : > { %v4629_v40 = vadd.f32 %v4372_v8, %v4087_v38  ;;  %3825 = vst.msk [vmem:[#allocation2 + $0x30] sm:$0xff] %vm176_vm2, %v3720_v37  ;;  %v2560_v15 = vpop.f32.mrf.mxu2  ;;  %v4042_v37 = vpack.c.bf16 %v3951_v28, %v3950_v26 }
 0x1b8   : > { %v1652_v43 = vpop.f32.mrf.mxu1 }
 0x1b9   : > { %4734 = vst.msk [vmem:[#allocation2 + $0x28] sm:$0xff] %vm176_vm2, %v4629_v40  ;;  %v1903_v44 = vadd.f32 %v1652_v43, %v1361_v42  ;;  %v3475_v30 = vpop.f32.mrf.mxu3  ;;  %v3042_v42 = vld [vmem:[%s9141_s26 + $0xfe] sm:$0xff]  ;;  %v3043_v43 = vld [vmem:[%s9141_s26 + $0x106] sm:$0xff] }
 0x1ba   : > { %v2270_v46 = vld [vmem:[#allocation2 + $0x40] sm:$0xff]  ;;  %v4382_v14 = vpop.f32.mrf.mxu0 }
 0x1bb   : > { %v2812_v47 = vadd.f32 %v2560_v15, %v2270_v46  ;;  %2008 = vst.msk [vmem:[#allocation2 + $0x48] sm:$0xff] %vm176_vm2, %v1903_v44 }
 0x1bc   : > { %v3179_v49 = vld [vmem:[#allocation2 + $0x38] sm:$0xff] }
 0x1bd   : > { %v3721_v51 = vadd.f32 %v3467_v39, %v3179_v49  ;;  %2917 = vst.msk [vmem:[#allocation2 + $0x40] sm:$0xff] %vm176_vm2, %v2812_v47  ;;  %v3133_v49 = vpack.c.bf16 %v3043_v43, %v3042_v42 }
 0x1be   : > { %v4088_v55 = vld [vmem:[#allocation2 + $0x30] sm:$0xff] }
 0x1bf   : > { %v4630_v57 = vadd.f32 %v4375_v31, %v4088_v55  ;;  %3826 = vst.msk [vmem:[#allocation2 + $0x38] sm:$0xff] %vm176_vm2, %v3721_v51  ;;  %v2562_v58 = vpop.f32.mrf.mxu2  ;;  %v1224_v55 = vld [vmem:[%s9141_s26 + $0xf1] sm:$0xff] }
 0x1c0   : > { %v1655_v61 = vpop.f32.mrf.mxu1 }
 0x1c1   : > { %4735 = vst.msk [vmem:[#allocation2 + $0x30] sm:$0xff] %vm176_vm2, %v4630_v57  ;;  %v1904_v0 = vadd.f32 %v1655_v61, %v1362_v60  ;;  %v3477_v46 = vpop.f32.mrf.mxu3  ;;  %v1225_v57 = vld [vmem:[%s9141_s26 + $0xf9] sm:$0xff] }
 0x1c2   : > { %v2271_v2 = vld [vmem:[#allocation2 + $0x48] sm:$0xff]  ;;  %v4385_v39 = vpop.f32.mrf.mxu0  ;;  %v2135_v60 = vld [vmem:[%s9141_s26 + $0xfa] sm:$0xff] }
 0x1c3   : > { %v2813_v3 = vadd.f32 %v2562_v58, %v2271_v2  ;;  %2009 = vst.msk [vmem:[#allocation2 + $0x50] sm:$0xff] %vm176_vm2, %v1904_v0  ;;  %8635 = vmatmul.msk.bf16.gmra.mxu1 %vm547_vm1, %v1312_v59  ;;  %v2134_v58 = vld [vmem:[%s9141_s26 + $0xf2] sm:$0xff]  ;;  %v3952_v61 = vld [vmem:[%s9141_s26 + $0xff] sm:$0xff] }
 0x1c4   : > { %v3180_v4 = vld [vmem:[#allocation2 + $0x40] sm:$0xff]  ;;  %8689 = vmatmul.msk.bf16.gmra.mxu2 %vm547_vm1, %v2222_v62  ;;  %v2224_v6 = vpack.c.bf16 %v2135_v60, %v2134_v58 }
 0x1c5   : > { %v3722_v7 = vadd.f32 %v3470_v56, %v3180_v4  ;;  %2918 = vst.msk [vmem:[#allocation2 + $0x48] sm:$0xff] %vm176_vm2, %v2813_v3  ;;  %8797 = vmatmul.msk.bf16.gmra.mxu0 %vm547_vm1, %v4042_v37  ;;  %v3953_v62 = vld [vmem:[%s9141_s26 + $0x107] sm:$0xff]  ;;  %v1314_v3 = vpack.c.bf16 %v1225_v57, %v1224_v55  ;;  %v1366_v4 = vld [vmem:[#allocation2 + $0x70] sm:$0xff] }
 0x1c6   : > { %v4089_v8 = vld [vmem:[#allocation2 + $0x38] sm:$0xff]  ;;  %8744 = vmatmul.msk.bf16.gmra.mxu3 %vm547_vm1, %v3133_v49  ;;  %v1369_v57 = vld [vmem:[#allocation2 + $0x88] sm:$0xff] }
 0x1c7   : > { %v4631_v10 = vadd.f32 %v4377_v45, %v4089_v8  ;;  %3827 = vst.msk [vmem:[#allocation2 + $0x40] sm:$0xff] %vm176_vm2, %v3722_v7  ;;  %v2565_v11 = vpop.f32.mrf.mxu2  ;;  %v4043_v7 = vpack.c.bf16 %v3953_v62, %v3952_v61 }
 0x1c8   : > { %v1657_v16 = vpop.f32.mrf.mxu1 }
 0x1c9   : > { %4736 = vst.msk [vmem:[#allocation2 + $0x38] sm:$0xff] %vm176_vm2, %v4631_v10  ;;  %v1905_v17 = vadd.f32 %v1657_v16, %v1363_v13  ;;  %v3480_v0 = vpop.f32.mrf.mxu3  ;;  %v3044_v13 = vld [vmem:[%s9141_s26 + $0x10e] sm:$0xff]  ;;  %v3045_v16 = vld [vmem:[%s9141_s26 + $0x116] sm:$0xff] }
 0x1ca   : > { %v2272_v18 = vld [vmem:[#allocation2 + $0x50] sm:$0xff]  ;;  %v4387_v52 = vpop.f32.mrf.mxu0 }
 0x1cb   : > { %v2814_v19 = vadd.f32 %v2565_v11, %v2272_v18  ;;  %2010 = vst.msk [vmem:[#allocation2 + $0x58] sm:$0xff] %vm176_vm2, %v1905_v17 }
 0x1cc   : > { %v3181_v21 = vld [vmem:[#allocation2 + $0x48] sm:$0xff] }
 0x1cd   : > { %v3723_v24 = vadd.f32 %v3472_v9, %v3181_v21  ;;  %2919 = vst.msk [vmem:[#allocation2 + $0x50] sm:$0xff] %vm176_vm2, %v2814_v19  ;;  %v3134_v21 = vpack.c.bf16 %v3045_v16, %v3044_v13 }
 0x1ce   : > { %v4090_v29 = vld [vmem:[#allocation2 + $0x40] sm:$0xff] }
 0x1cf   : > { %v4632_v31 = vadd.f32 %v4380_v1, %v4090_v29  ;;  %3828 = vst.msk [vmem:[#allocation2 + $0x48] sm:$0xff] %vm176_vm2, %v3723_v24  ;;  %v2567_v32 = vpop.f32.mrf.mxu2  ;;  %v1226_v29 = vld [vmem:[%s9141_s26 + $0x101] sm:$0xff] }
 0x1d0   : > { %v1660_v35 = vpop.f32.mrf.mxu1 }
 0x1d1   : > { %4737 = vst.msk [vmem:[#allocation2 + $0x40] sm:$0xff] %vm176_vm2, %v4632_v31  ;;  %v1906_v38 = vadd.f32 %v1660_v35, %v1364_v34  ;;  %v3482_v18 = vpop.f32.mrf.mxu3  ;;  %v1227_v31 = vld [vmem:[%s9141_s26 + $0x109] sm:$0xff] }
 0x1d2   : > { %v2273_v40 = vld [vmem:[#allocation2 + $0x58] sm:$0xff]  ;;  %v4390_v9 = vpop.f32.mrf.mxu0  ;;  %v2137_v34 = vld [vmem:[%s9141_s26 + $0x10a] sm:$0xff] }
 0x1d3   : > { %v2815_v15 = vadd.f32 %v2567_v32, %v2273_v40  ;;  %2011 = vst.msk [vmem:[#allocation2 + $0x60] sm:$0xff] %vm176_vm2, %v1906_v38  ;;  %8636 = vmatmul.msk.bf16.gmra.mxu1 %vm547_vm1, %v1313_v33  ;;  %v2136_v32 = vld [vmem:[%s9141_s26 + $0x102] sm:$0xff]  ;;  %v3954_v35 = vld [vmem:[%s9141_s26 + $0x10f] sm:$0xff] }
 0x1d4   : > { %v3182_v41 = vld [vmem:[#allocation2 + $0x50] sm:$0xff]  ;;  %8690 = vmatmul.msk.bf16.gmra.mxu2 %vm547_vm1, %v2223_v36  ;;  %v2225_v43 = vpack.c.bf16 %v2137_v34, %v2136_v32 }
 0x1d5   : > { %v3724_v44 = vadd.f32 %v3475_v30, %v3182_v41  ;;  %2920 = vst.msk [vmem:[#allocation2 + $0x58] sm:$0xff] %vm176_vm2, %v2815_v15  ;;  %8798 = vmatmul.msk.bf16.gmra.mxu0 %vm547_vm1, %v4043_v7  ;;  %v3955_v36 = vld [vmem:[%s9141_s26 + $0x117] sm:$0xff]  ;;  %v1315_v15 = vpack.c.bf16 %v1227_v31, %v1226_v29  ;;  %v1368_v41 = vld [vmem:[#allocation2 + $0x80] sm:$0xff] }
 0x1d6   : > { %v4091_v45 = vld [vmem:[#allocation2 + $0x48] sm:$0xff]  ;;  %8745 = vmatmul.msk.bf16.gmra.mxu3 %vm547_vm1, %v3134_v21  ;;  %v1371_v31 = vld [vmem:[#allocation2 + $0x98] sm:$0xff] }
 0x1d7   : > { %v4633_v47 = vadd.f32 %v4382_v14, %v4091_v45  ;;  %3829 = vst.msk [vmem:[#allocation2 + $0x50] sm:$0xff] %vm176_vm2, %v3724_v44  ;;  %v2570_v48 = vpop.f32.mrf.mxu2  ;;  %v4044_v44 = vpack.c.bf16 %v3955_v36, %v3954_v35 }
 0x1d8   : > { %v1662_v27 = vpop.f32.mrf.mxu1 }
 0x1d9   : > { %4738 = vst.msk [vmem:[#allocation2 + $0x48] sm:$0xff] %vm176_vm2, %v4633_v47  ;;  %v1907_v51 = vadd.f32 %v1662_v27, %v1365_v50  ;;  %v3485_v38 = vpop.f32.mrf.mxu3  ;;  %v3046_v50 = vld [vmem:[%s9141_s26 + $0x11e] sm:$0xff]  ;;  %v3047_v27 = vld [vmem:[%s9141_s26 + $0x126] sm:$0xff] }
 0x1da   : > { %v2274_v53 = vld [vmem:[#allocation2 + $0x60] sm:$0xff]  ;;  %v4392_v25 = vpop.f32.mrf.mxu0 }
 0x1db   : > { %v2816_v54 = vadd.f32 %v2570_v48, %v2274_v53  ;;  %2012 = vst.msk [vmem:[#allocation2 + $0x68] sm:$0xff] %vm176_vm2, %v1907_v51 }
 0x1dc   : > { %v3183_v56 = vld [vmem:[#allocation2 + $0x58] sm:$0xff] }
 0x1dd   : > { %v3725_v59 = vadd.f32 %v3477_v46, %v3183_v56  ;;  %2921 = vst.msk [vmem:[#allocation2 + $0x60] sm:$0xff] %vm176_vm2, %v2816_v54  ;;  %v3135_v56 = vpack.c.bf16 %v3047_v27, %v3046_v50 }
 0x1de   : > { %v4092_v63 = vld [vmem:[#allocation2 + $0x50] sm:$0xff] }
 0x1df   : > { %v4634_v1 = vadd.f32 %v4385_v39, %v4092_v63  ;;  %3830 = vst.msk [vmem:[#allocation2 + $0x58] sm:$0xff] %vm176_vm2, %v3725_v59  ;;  %v2572_v2 = vpop.f32.mrf.mxu2  ;;  %v1228_v63 = vld [vmem:[%s9141_s26 + $0x111] sm:$0xff] }
 0x1e0   : > { %v1665_v5 = vpop.f32.mrf.mxu1 }
 0x1e1   : > { %4739 = vst.msk [vmem:[#allocation2 + $0x50] sm:$0xff] %vm176_vm2, %v4634_v1  ;;  %v1908_v8 = vadd.f32 %v1665_v5, %v1366_v4  ;;  %v3487_v53 = vpop.f32.mrf.mxu3  ;;  %v1229_v1 = vld [vmem:[%s9141_s26 + $0x119] sm:$0xff] }
 0x1e2   : > { %v2275_v10 = vld [vmem:[#allocation2 + $0x68] sm:$0xff]  ;;  %v4395_v46 = vpop.f32.mrf.mxu0  ;;  %v2139_v4 = vld [vmem:[%s9141_s26 + $0x11a] sm:$0xff] }
 0x1e3   : > { %v2817_v11 = vadd.f32 %v2572_v2, %v2275_v10  ;;  %2013 = vst.msk [vmem:[#allocation2 + $0x70] sm:$0xff] %vm176_vm2, %v1908_v8  ;;  %8637 = vmatmul.msk.bf16.gmra.mxu1 %vm547_vm1, %v1314_v3  ;;  %v2138_v2 = vld [vmem:[%s9141_s26 + $0x112] sm:$0xff]  ;;  %v3956_v5 = vld [vmem:[%s9141_s26 + $0x11f] sm:$0xff] }
 0x1e4   : > { %v3184_v12 = vld [vmem:[#allocation2 + $0x60] sm:$0xff]  ;;  %8691 = vmatmul.msk.bf16.gmra.mxu2 %vm547_vm1, %v2224_v6  ;;  %v2226_v16 = vpack.c.bf16 %v2139_v4, %v2138_v2 }
 0x1e5   : > { %v3726_v17 = vadd.f32 %v3480_v0, %v3184_v12  ;;  %2922 = vst.msk [vmem:[#allocation2 + $0x68] sm:$0xff] %vm176_vm2, %v2817_v11  ;;  %8799 = vmatmul.msk.bf16.gmra.mxu0 %vm547_vm1, %v4044_v44  ;;  %v3957_v6 = vld [vmem:[%s9141_s26 + $0x127] sm:$0xff]  ;;  %v1316_v11 = vpack.c.bf16 %v1229_v1, %v1228_v63  ;;  %v1370_v12 = vld [vmem:[#allocation2 + $0x90] sm:$0xff] }
 0x1e6   : > { %v4093_v14 = vld [vmem:[#allocation2 + $0x58] sm:$0xff]  ;;  %8746 = vmatmul.msk.bf16.gmra.mxu3 %vm547_vm1, %v3135_v56  ;;  %v1373_v1 = vld [vmem:[#allocation2 + $0xa8] sm:$0xff] }
 0x1e7   : > { %v4635_v19 = vadd.f32 %v4387_v52, %v4093_v14  ;;  %3831 = vst.msk [vmem:[#allocation2 + $0x60] sm:$0xff] %vm176_vm2, %v3726_v17  ;;  %v2575_v20 = vpop.f32.mrf.mxu2  ;;  %v4045_v17 = vpack.c.bf16 %v3957_v6, %v3956_v5 }
 0x1e8   : > { %v1667_v23 = vpop.f32.mrf.mxu1 }
 0x1e9   : > { %4740 = vst.msk [vmem:[#allocation2 + $0x58] sm:$0xff] %vm176_vm2, %v4635_v19  ;;  %v1909_v24 = vadd.f32 %v1667_v23, %v1367_v22  ;;  %v3490_v8 = vpop.f32.mrf.mxu3  ;;  %v3048_v22 = vld [vmem:[%s9141_s26 + $0x12e] sm:$0xff]  ;;  %v3049_v23 = vld [vmem:[%s9141_s26 + $0x136] sm:$0xff] }
 0x1ea   : > { %v2276_v26 = vld [vmem:[#allocation2 + $0x70] sm:$0xff]  ;;  %v4397_v60 = vpop.f32.mrf.mxu0 }
 0x1eb   : > { %v2818_v28 = vadd.f32 %v2575_v20, %v2276_v26  ;;  %2014 = vst.msk [vmem:[#allocation2 + $0x78] sm:$0xff] %vm176_vm2, %v1909_v24 }
 0x1ec   : > { %v3185_v30 = vld [vmem:[#allocation2 + $0x68] sm:$0xff] }
 0x1ed   : > { %v3727_v33 = vadd.f32 %v3482_v18, %v3185_v30  ;;  %2923 = vst.msk [vmem:[#allocation2 + $0x70] sm:$0xff] %vm176_vm2, %v2818_v28  ;;  %v3136_v30 = vpack.c.bf16 %v3049_v23, %v3048_v22 }
 0x1ee   : > { %v4094_v37 = vld [vmem:[#allocation2 + $0x60] sm:$0xff] }
 0x1ef   : > { %v4636_v39 = vadd.f32 %v4390_v9, %v4094_v37  ;;  %3832 = vst.msk [vmem:[#allocation2 + $0x68] sm:$0xff] %vm176_vm2, %v3727_v33  ;;  %v2577_v40 = vpop.f32.mrf.mxu2  ;;  %v1230_v37 = vld [vmem:[%s9141_s26 + $0x121] sm:$0xff] }
 0x1f0   : > { %v1670_v42 = vpop.f32.mrf.mxu1 }
 0x1f1   : > { %4741 = vst.msk [vmem:[#allocation2 + $0x60] sm:$0xff] %vm176_vm2, %v4636_v39  ;;  %v1910_v45 = vadd.f32 %v1670_v42, %v1368_v41  ;;  %v3492_v26 = vpop.f32.mrf.mxu3  ;;  %v1231_v39 = vld [vmem:[%s9141_s26 + $0x129] sm:$0xff] }
 0x1f2   : > { %v2277_v47 = vld [vmem:[#allocation2 + $0x78] sm:$0xff]  ;;  %v4400_v18 = vpop.f32.mrf.mxu0  ;;  %v2141_v41 = vld [vmem:[%s9141_s26 + $0x12a] sm:$0xff] }
 0x1f3   : > { %v2819_v48 = vadd.f32 %v2577_v40, %v2277_v47  ;;  %2015 = vst.msk [vmem:[#allocation2 + $0x80] sm:$0xff] %vm176_vm2, %v1910_v45  ;;  %8638 = vmatmul.msk.bf16.gmra.mxu1 %vm547_vm1, %v1315_v15  ;;  %v2140_v40 = vld [vmem:[%s9141_s26 + $0x122] sm:$0xff]  ;;  %v3958_v42 = vld [vmem:[%s9141_s26 + $0x12f] sm:$0xff] }
 0x1f4   : > { %v3186_v49 = vld [vmem:[#allocation2 + $0x70] sm:$0xff]  ;;  %8692 = vmatmul.msk.bf16.gmra.mxu2 %vm547_vm1, %v2225_v43  ;;  %v2227_v27 = vpack.c.bf16 %v2141_v41, %v2140_v40 }
 0x1f5   : > { %v3728_v51 = vadd.f32 %v3485_v38, %v3186_v49  ;;  %2924 = vst.msk [vmem:[#allocation2 + $0x78] sm:$0xff] %vm176_vm2, %v2819_v48  ;;  %8800 = vmatmul.msk.bf16.gmra.mxu0 %vm547_vm1, %v4045_v17  ;;  %v3959_v43 = vld [vmem:[%s9141_s26 + $0x137] sm:$0xff]  ;;  %v1317_v48 = vpack.c.bf16 %v1231_v39, %v1230_v37  ;;  %v1372_v49 = vld [vmem:[#allocation2 + $0xa0] sm:$0xff] }
 0x1f6   : > { %v4095_v52 = vld [vmem:[#allocation2 + $0x68] sm:$0xff]  ;;  %8747 = vmatmul.msk.bf16.gmra.mxu3 %vm547_vm1, %v3136_v30  ;;  %v1375_v39 = vld [vmem:[#allocation2 + $0xb8] sm:$0xff] }
 0x1f7   : > { %v4637_v54 = vadd.f32 %v4392_v25, %v4095_v52  ;;  %3833 = vst.msk [vmem:[#allocation2 + $0x70] sm:$0xff] %vm176_vm2, %v3728_v51  ;;  %v2580_v55 = vpop.f32.mrf.mxu2  ;;  %v4046_v51 = vpack.c.bf16 %v3959_v43, %v3958_v42 }
 0x1f8   : > { %v1672_v58 = vpop.f32.mrf.mxu1 }
 0x1f9   : > { %4742 = vst.msk [vmem:[#allocation2 + $0x68] sm:$0xff] %vm176_vm2, %v4637_v54  ;;  %v1911_v59 = vadd.f32 %v1672_v58, %v1369_v57  ;;  %v3495_v45 = vpop.f32.mrf.mxu3  ;;  %v3050_v57 = vld [vmem:[%s9141_s26 + $0x13e] sm:$0xff]  ;;  %v3051_v58 = vld [vmem:[%s9141_s26 + $0x146] sm:$0xff] }
 0x1fa   : > { %v2278_v61 = vld [vmem:[#allocation2 + $0x80] sm:$0xff]  ;;  %v4402_v34 = vpop.f32.mrf.mxu0 }
 0x1fb   : > { %v2820_v62 = vadd.f32 %v2580_v55, %v2278_v61  ;;  %2016 = vst.msk [vmem:[#allocation2 + $0x88] sm:$0xff] %vm176_vm2, %v1911_v59 }
 0x1fc   : > { %v3187_v0 = vld [vmem:[#allocation2 + $0x78] sm:$0xff] }
 0x1fd   : > { %v3729_v3 = vadd.f32 %v3487_v53, %v3187_v0  ;;  %2925 = vst.msk [vmem:[#allocation2 + $0x80] sm:$0xff] %vm176_vm2, %v2820_v62  ;;  %v3137_v0 = vpack.c.bf16 %v3051_v58, %v3050_v57 }
 0x1fe   : > { %v4096_v7 = vld [vmem:[#allocation2 + $0x70] sm:$0xff] }
 0x1ff   : > { %v4638_v9 = vadd.f32 %v4395_v46, %v4096_v7  ;;  %3834 = vst.msk [vmem:[#allocation2 + $0x78] sm:$0xff] %vm176_vm2, %v3729_v3  ;;  %v2582_v10 = vpop.f32.mrf.mxu2  ;;  %v1232_v7 = vld [vmem:[%s9141_s26 + $0x131] sm:$0xff] }
 0x200   : > { %v1675_v13 = vpop.f32.mrf.mxu1 }
 0x201   : > { %4743 = vst.msk [vmem:[#allocation2 + $0x70] sm:$0xff] %vm176_vm2, %v4638_v9  ;;  %v1912_v14 = vadd.f32 %v1675_v13, %v1370_v12  ;;  %v3497_v61 = vpop.f32.mrf.mxu3  ;;  %v1233_v9 = vld [vmem:[%s9141_s26 + $0x139] sm:$0xff] }
 0x202   : > { %v2279_v19 = vld [vmem:[#allocation2 + $0x88] sm:$0xff]  ;;  %v4405_v53 = vpop.f32.mrf.mxu0  ;;  %v2143_v12 = vld [vmem:[%s9141_s26 + $0x13a] sm:$0xff] }
 0x203   : > { %v2821_v20 = vadd.f32 %v2582_v10, %v2279_v19  ;;  %2017 = vst.msk [vmem:[#allocation2 + $0x90] sm:$0xff] %vm176_vm2, %v1912_v14  ;;  %8639 = vmatmul.msk.bf16.gmra.mxu1 %vm547_vm1, %v1316_v11  ;;  %v2142_v10 = vld [vmem:[%s9141_s26 + $0x132] sm:$0xff]  ;;  %v3960_v13 = vld [vmem:[%s9141_s26 + $0x13f] sm:$0xff] }
 0x204   : > { %v3188_v21 = vld [vmem:[#allocation2 + $0x80] sm:$0xff]  ;;  %8693 = vmatmul.msk.bf16.gmra.mxu2 %vm547_vm1, %v2226_v16  ;;  %v2228_v23 = vpack.c.bf16 %v2143_v12, %v2142_v10 }
 0x205   : > { %v3730_v24 = vadd.f32 %v3490_v8, %v3188_v21  ;;  %2926 = vst.msk [vmem:[#allocation2 + $0x88] sm:$0xff] %vm176_vm2, %v2821_v20  ;;  %8801 = vmatmul.msk.bf16.gmra.mxu0 %vm547_vm1, %v4046_v51  ;;  %v3961_v16 = vld [vmem:[%s9141_s26 + $0x147] sm:$0xff]  ;;  %v1318_v20 = vpack.c.bf16 %v1233_v9, %v1232_v7  ;;  %v1374_v21 = vld [vmem:[#allocation2 + $0xb0] sm:$0xff] }
 0x206   : > { %v4097_v25 = vld [vmem:[#allocation2 + $0x78] sm:$0xff]  ;;  %8748 = vmatmul.msk.bf16.gmra.mxu3 %vm547_vm1, %v3137_v0  ;;  %v1377_v9 = vld [vmem:[#allocation2 + $0xc8] sm:$0xff] }
 0x207   : > { %v4639_v28 = vadd.f32 %v4397_v60, %v4097_v25  ;;  %3835 = vst.msk [vmem:[#allocation2 + $0x80] sm:$0xff] %vm176_vm2, %v3730_v24  ;;  %v2585_v29 = vpop.f32.mrf.mxu2  ;;  %v4047_v24 = vpack.c.bf16 %v3961_v16, %v3960_v13 }
 0x208   : > { %v1677_v32 = vpop.f32.mrf.mxu1 }
 0x209   : > { %4744 = vst.msk [vmem:[#allocation2 + $0x78] sm:$0xff] %vm176_vm2, %v4639_v28  ;;  %v1913_v33 = vadd.f32 %v1677_v32, %v1371_v31  ;;  %v3500_v14 = vpop.f32.mrf.mxu3  ;;  %v3052_v31 = vld [vmem:[%s9141_s26 + $0x14e] sm:$0xff]  ;;  %v3053_v32 = vld [vmem:[%s9141_s26 + $0x156] sm:$0xff] }
 0x20a   : > { %v2280_v35 = vld [vmem:[#allocation2 + $0x90] sm:$0xff]  ;;  %v4407_v4 = vpop.f32.mrf.mxu0 }
 0x20b   : > { %v2822_v36 = vadd.f32 %v2585_v29, %v2280_v35  ;;  %2018 = vst.msk [vmem:[#allocation2 + $0x98] sm:$0xff] %vm176_vm2, %v1913_v33 }
 0x20c   : > { %v3189_v38 = vld [vmem:[#allocation2 + $0x88] sm:$0xff] }
 0x20d   : > { %v3731_v15 = vadd.f32 %v3492_v26, %v3189_v38  ;;  %2927 = vst.msk [vmem:[#allocation2 + $0x90] sm:$0xff] %vm176_vm2, %v2822_v36  ;;  %v3138_v38 = vpack.c.bf16 %v3053_v32, %v3052_v31 }
 0x20e   : > { %v4098_v44 = vld [vmem:[#allocation2 + $0x80] sm:$0xff] }
 0x20f   : > { %v4640_v46 = vadd.f32 %v4400_v18, %v4098_v44  ;;  %3836 = vst.msk [vmem:[#allocation2 + $0x88] sm:$0xff] %vm176_vm2, %v3731_v15  ;;  %v2587_v47 = vpop.f32.mrf.mxu2  ;;  %v1234_v44 = vld [vmem:[%s9141_s26 + $0x141] sm:$0xff] }
 0x210   : > { %v1680_v50 = vpop.f32.mrf.mxu1 }
 0x211   : > { %4745 = vst.msk [vmem:[#allocation2 + $0x80] sm:$0xff] %vm176_vm2, %v4640_v46  ;;  %v1914_v52 = vadd.f32 %v1680_v50, %v1372_v49  ;;  %v3502_v35 = vpop.f32.mrf.mxu3  ;;  %v1235_v46 = vld [vmem:[%s9141_s26 + $0x149] sm:$0xff] }
 0x212   : > { %v2281_v54 = vld [vmem:[#allocation2 + $0x98] sm:$0xff]  ;;  %v4410_v26 = vpop.f32.mrf.mxu0  ;;  %v2145_v49 = vld [vmem:[%s9141_s26 + $0x14a] sm:$0xff] }
 0x213   : > { %v2823_v55 = vadd.f32 %v2587_v47, %v2281_v54  ;;  %2019 = vst.msk [vmem:[#allocation2 + $0xa0] sm:$0xff] %vm176_vm2, %v1914_v52  ;;  %8640 = vmatmul.msk.bf16.gmra.mxu1 %vm547_vm1, %v1317_v48  ;;  %v2144_v47 = vld [vmem:[%s9141_s26 + $0x142] sm:$0xff]  ;;  %v3962_v50 = vld [vmem:[%s9141_s26 + $0x14f] sm:$0xff] }
 0x214   : > { %v3190_v56 = vld [vmem:[#allocation2 + $0x90] sm:$0xff]  ;;  %8694 = vmatmul.msk.bf16.gmra.mxu2 %vm547_vm1, %v2227_v27  ;;  %v2229_v58 = vpack.c.bf16 %v2145_v49, %v2144_v47 }
 0x215   : > { %v3732_v59 = vadd.f32 %v3495_v45, %v3190_v56  ;;  %2928 = vst.msk [vmem:[#allocation2 + $0x98] sm:$0xff] %vm176_vm2, %v2823_v55  ;;  %8802 = vmatmul.msk.bf16.gmra.mxu0 %vm547_vm1, %v4047_v24  ;;  %v3963_v27 = vld [vmem:[%s9141_s26 + $0x157] sm:$0xff]  ;;  %v1319_v55 = vpack.c.bf16 %v1235_v46, %v1234_v44  ;;  %v1376_v56 = vld [vmem:[#allocation2 + $0xc0] sm:$0xff] }
 0x216   : > { %v4099_v60 = vld [vmem:[#allocation2 + $0x88] sm:$0xff]  ;;  %8749 = vmatmul.msk.bf16.gmra.mxu3 %vm547_vm1, %v3138_v38  ;;  %v1379_v46 = vld [vmem:[#allocation2 + $0xd8] sm:$0xff] }
 0x217   : > { %v4641_v62 = vadd.f32 %v4402_v34, %v4099_v60  ;;  %3837 = vst.msk [vmem:[#allocation2 + $0x90] sm:$0xff] %vm176_vm2, %v3732_v59  ;;  %v2590_v63 = vpop.f32.mrf.mxu2  ;;  %v4048_v59 = vpack.c.bf16 %v3963_v27, %v3962_v50 }
 0x218   : > { %v1682_v2 = vpop.f32.mrf.mxu1 }
 0x219   : > { %4746 = vst.msk [vmem:[#allocation2 + $0x88] sm:$0xff] %vm176_vm2, %v4641_v62  ;;  %v1915_v3 = vadd.f32 %v1682_v2, %v1373_v1  ;;  %v3505_v52 = vpop.f32.mrf.mxu3  ;;  %v3054_v1 = vld [vmem:[%s9141_s26 + $0x15e] sm:$0xff]  ;;  %v3055_v2 = vld [vmem:[%s9141_s26 + $0x166] sm:$0xff] }
 0x21a   : > { %v2282_v5 = vld [vmem:[#allocation2 + $0xa0] sm:$0xff]  ;;  %v4412_v41 = vpop.f32.mrf.mxu0 }
 0x21b   : > { %v2824_v6 = vadd.f32 %v2590_v63, %v2282_v5  ;;  %2020 = vst.msk [vmem:[#allocation2 + $0xa8] sm:$0xff] %vm176_vm2, %v1915_v3 }
 0x21c   : > { %v3191_v8 = vld [vmem:[#allocation2 + $0x98] sm:$0xff] }
 0x21d   : > { %v3733_v11 = vadd.f32 %v3497_v61, %v3191_v8  ;;  %2929 = vst.msk [vmem:[#allocation2 + $0xa0] sm:$0xff] %vm176_vm2, %v2824_v6  ;;  %v3139_v8 = vpack.c.bf16 %v3055_v2, %v3054_v1 }
 0x21e   : > { %v4100_v17 = vld [vmem:[#allocation2 + $0x90] sm:$0xff] }
 0x21f   : > { %v4642_v18 = vadd.f32 %v4405_v53, %v4100_v17  ;;  %3838 = vst.msk [vmem:[#allocation2 + $0x98] sm:$0xff] %vm176_vm2, %v3733_v11  ;;  %v2592_v19 = vpop.f32.mrf.mxu2  ;;  %v1236_v17 = vld [vmem:[%s9141_s26 + $0x151] sm:$0xff] }
 0x220   : > { %v1685_v22 = vpop.f32.mrf.mxu1 }
 0x221   : > { %4747 = vst.msk [vmem:[#allocation2 + $0x90] sm:$0xff] %vm176_vm2, %v4642_v18  ;;  %v1916_v25 = vadd.f32 %v1685_v22, %v1374_v21  ;;  %v3507_v5 = vpop.f32.mrf.mxu3  ;;  %v1237_v18 = vld [vmem:[%s9141_s26 + $0x159] sm:$0xff] }
 0x222   : > { %v2283_v28 = vld [vmem:[#allocation2 + $0xa8] sm:$0xff]  ;;  %v4415_v61 = vpop.f32.mrf.mxu0  ;;  %v2147_v21 = vld [vmem:[%s9141_s26 + $0x15a] sm:$0xff] }
 0x223   : > { %v2825_v29 = vadd.f32 %v2592_v19, %v2283_v28  ;;  %2021 = vst.msk [vmem:[#allocation2 + $0xb0] sm:$0xff] %vm176_vm2, %v1916_v25  ;;  %8641 = vmatmul.msk.bf16.gmra.mxu1 %vm547_vm1, %v1318_v20  ;;  %v2146_v19 = vld [vmem:[%s9141_s26 + $0x152] sm:$0xff]  ;;  %v3964_v22 = vld [vmem:[%s9141_s26 + $0x15f] sm:$0xff] }
 0x224   : > { %v3192_v30 = vld [vmem:[#allocation2 + $0xa0] sm:$0xff]  ;;  %8695 = vmatmul.msk.bf16.gmra.mxu2 %vm547_vm1, %v2228_v23  ;;  %v2230_v32 = vpack.c.bf16 %v2147_v21, %v2146_v19 }
 0x225   : > { %v3734_v33 = vadd.f32 %v3500_v14, %v3192_v30  ;;  %2930 = vst.msk [vmem:[#allocation2 + $0xa8] sm:$0xff] %vm176_vm2, %v2825_v29  ;;  %8803 = vmatmul.msk.bf16.gmra.mxu0 %vm547_vm1, %v4048_v59  ;;  %v3965_v23 = vld [vmem:[%s9141_s26 + $0x167] sm:$0xff]  ;;  %v1320_v29 = vpack.c.bf16 %v1237_v18, %v1236_v17  ;;  %v1378_v30 = vld [vmem:[#allocation2 + $0xd0] sm:$0xff] }
 0x226   : > { %v4101_v34 = vld [vmem:[#allocation2 + $0x98] sm:$0xff]  ;;  %8750 = vmatmul.msk.bf16.gmra.mxu3 %vm547_vm1, %v3139_v8  ;;  %v1381_v18 = vld [vmem:[#allocation2 + $0xe8] sm:$0xff] }
 0x227   : > { %v4643_v36 = vadd.f32 %v4407_v4, %v4101_v34  ;;  %3839 = vst.msk [vmem:[#allocation2 + $0xa0] sm:$0xff] %vm176_vm2, %v3734_v33  ;;  %v2595_v37 = vpop.f32.mrf.mxu2  ;;  %v4049_v33 = vpack.c.bf16 %v3965_v23, %v3964_v22 }
 0x228   : > { %v1687_v40 = vpop.f32.mrf.mxu1 }
 0x229   : > { %4748 = vst.msk [vmem:[#allocation2 + $0x98] sm:$0xff] %vm176_vm2, %v4643_v36  ;;  %v1917_v15 = vadd.f32 %v1687_v40, %v1375_v39  ;;  %v3510_v25 = vpop.f32.mrf.mxu3  ;;  %v3056_v39 = vld [vmem:[%s9141_s26 + $0x16e] sm:$0xff]  ;;  %v3057_v40 = vld [vmem:[%s9141_s26 + $0x176] sm:$0xff] }
 0x22a   : > { %v2284_v42 = vld [vmem:[#allocation2 + $0xb0] sm:$0xff]  ;;  %v4417_v12 = vpop.f32.mrf.mxu0 }
 0x22b   : > { %v2826_v43 = vadd.f32 %v2595_v37, %v2284_v42  ;;  %2022 = vst.msk [vmem:[#allocation2 + $0xb8] sm:$0xff] %vm176_vm2, %v1917_v15 }
 0x22c   : > { %v3193_v45 = vld [vmem:[#allocation2 + $0xa8] sm:$0xff] }
 0x22d   : > { %v3735_v48 = vadd.f32 %v3502_v35, %v3193_v45  ;;  %2931 = vst.msk [vmem:[#allocation2 + $0xb0] sm:$0xff] %vm176_vm2, %v2826_v43  ;;  %v3140_v45 = vpack.c.bf16 %v3057_v40, %v3056_v39 }
 0x22e   : > { %v4102_v51 = vld [vmem:[#allocation2 + $0xa0] sm:$0xff] }
 0x22f   : > { %v4644_v53 = vadd.f32 %v4410_v26, %v4102_v51  ;;  %3840 = vst.msk [vmem:[#allocation2 + $0xa8] sm:$0xff] %vm176_vm2, %v3735_v48  ;;  %v2597_v54 = vpop.f32.mrf.mxu2  ;;  %v1238_v51 = vld [vmem:[%s9141_s26 + $0x161] sm:$0xff] }
 0x230   : > { %v1690_v57 = vpop.f32.mrf.mxu1 }
 0x231   : > { %4749 = vst.msk [vmem:[#allocation2 + $0xa0] sm:$0xff] %vm176_vm2, %v4644_v53  ;;  %v1918_v60 = vadd.f32 %v1690_v57, %v1376_v56  ;;  %v3512_v42 = vpop.f32.mrf.mxu3  ;;  %v1239_v53 = vld [vmem:[%s9141_s26 + $0x169] sm:$0xff] }
 0x232   : > { %v2285_v62 = vld [vmem:[#allocation2 + $0xb8] sm:$0xff]  ;;  %v4420_v35 = vpop.f32.mrf.mxu0  ;;  %v2149_v56 = vld [vmem:[%s9141_s26 + $0x16a] sm:$0xff] }
 0x233   : > { %v2827_v63 = vadd.f32 %v2597_v54, %v2285_v62  ;;  %2023 = vst.msk [vmem:[#allocation2 + $0xc0] sm:$0xff] %vm176_vm2, %v1918_v60  ;;  %8642 = vmatmul.msk.bf16.gmra.mxu1 %vm547_vm1, %v1319_v55  ;;  %v2148_v54 = vld [vmem:[%s9141_s26 + $0x162] sm:$0xff]  ;;  %v3966_v57 = vld [vmem:[%s9141_s26 + $0x16f] sm:$0xff] }
 0x234   : > { %v3194_v0 = vld [vmem:[#allocation2 + $0xb0] sm:$0xff]  ;;  %8696 = vmatmul.msk.bf16.gmra.mxu2 %vm547_vm1, %v2229_v58  ;;  %v2231_v2 = vpack.c.bf16 %v2149_v56, %v2148_v54 }
 0x235   : > { %v3736_v3 = vadd.f32 %v3505_v52, %v3194_v0  ;;  %2932 = vst.msk [vmem:[#allocation2 + $0xb8] sm:$0xff] %vm176_vm2, %v2827_v63  ;;  %8804 = vmatmul.msk.bf16.gmra.mxu0 %vm547_vm1, %v4049_v33  ;;  %v3967_v58 = vld [vmem:[%s9141_s26 + $0x177] sm:$0xff]  ;;  %v1321_v63 = vpack.c.bf16 %v1239_v53, %v1238_v51  ;;  %v1380_v0 = vld [vmem:[#allocation2 + $0xe0] sm:$0xff] }
 0x236   : > { %v4103_v4 = vld [vmem:[#allocation2 + $0xa8] sm:$0xff]  ;;  %8751 = vmatmul.msk.bf16.gmra.mxu3 %vm547_vm1, %v3140_v45  ;;  %v1383_v53 = vld [vmem:[#allocation2 + $0xf8] sm:$0xff] }
 0x237   : > { %v4645_v6 = vadd.f32 %v4412_v41, %v4103_v4  ;;  %3841 = vst.msk [vmem:[#allocation2 + $0xb0] sm:$0xff] %vm176_vm2, %v3736_v3  ;;  %v2600_v7 = vpop.f32.mrf.mxu2  ;;  %v4050_v3 = vpack.c.bf16 %v3967_v58, %v3966_v57 }
 0x238   : > { %v1692_v10 = vpop.f32.mrf.mxu1 }
 0x239   : > { %4750 = vst.msk [vmem:[#allocation2 + $0xa8] sm:$0xff] %vm176_vm2, %v4645_v6  ;;  %v1919_v11 = vadd.f32 %v1692_v10, %v1377_v9  ;;  %v3515_v60 = vpop.f32.mrf.mxu3  ;;  %v3058_v9 = vld [vmem:[%s9141_s26 + $0x17e] sm:$0xff]  ;;  %v3059_v10 = vld [vmem:[%s9141_s26 + $0x186] sm:$0xff] }
 0x23a   : > { %v2286_v13 = vld [vmem:[#allocation2 + $0xc0] sm:$0xff]  ;;  %v4422_v49 = vpop.f32.mrf.mxu0 }
 0x23b   : > { %v2828_v16 = vadd.f32 %v2600_v7, %v2286_v13  ;;  %2024 = vst.msk [vmem:[#allocation2 + $0xc8] sm:$0xff] %vm176_vm2, %v1919_v11 }
 0x23c   : > { %v3195_v14 = vld [vmem:[#allocation2 + $0xb8] sm:$0xff] }
 0x23d   : > { %v3737_v20 = vadd.f32 %v3507_v5, %v3195_v14  ;;  %2933 = vst.msk [vmem:[#allocation2 + $0xc0] sm:$0xff] %vm176_vm2, %v2828_v16  ;;  %v3141_v14 = vpack.c.bf16 %v3059_v10, %v3058_v9 }
 0x23e   : > { %v4104_v24 = vld [vmem:[#allocation2 + $0xb0] sm:$0xff] }
 0x23f   : > { %v4646_v26 = vadd.f32 %v4415_v61, %v4104_v24  ;;  %3842 = vst.msk [vmem:[#allocation2 + $0xb8] sm:$0xff] %vm176_vm2, %v3737_v20  ;;  %v2602_v28 = vpop.f32.mrf.mxu2  ;;  %v1240_v24 = vld [vmem:[%s9141_s26 + $0x171] sm:$0xff] }
 0x240   : > { %v1695_v31 = vpop.f32.mrf.mxu1 }
 0x241   : > { %4751 = vst.msk [vmem:[#allocation2 + $0xb0] sm:$0xff] %vm176_vm2, %v4646_v26  ;;  %v1920_v34 = vadd.f32 %v1695_v31, %v1378_v30  ;;  %v3517_v13 = vpop.f32.mrf.mxu3  ;;  %v1241_v26 = vld [vmem:[%s9141_s26 + $0x179] sm:$0xff] }
 0x242   : > { %v2287_v36 = vld [vmem:[#allocation2 + $0xc8] sm:$0xff]  ;;  %v4425_v5 = vpop.f32.mrf.mxu0  ;;  %v2151_v30 = vld [vmem:[%s9141_s26 + $0x17a] sm:$0xff] }
 0x243   : > { %v2829_v37 = vadd.f32 %v2602_v28, %v2287_v36  ;;  %2025 = vst.msk [vmem:[#allocation2 + $0xd0] sm:$0xff] %vm176_vm2, %v1920_v34  ;;  %8643 = vmatmul.msk.bf16.gmra.mxu1 %vm547_vm1, %v1320_v29  ;;  %v2150_v28 = vld [vmem:[%s9141_s26 + $0x172] sm:$0xff]  ;;  %v3968_v31 = vld [vmem:[%s9141_s26 + $0x17f] sm:$0xff] }
 0x244   : > { %v3196_v38 = vld [vmem:[#allocation2 + $0xc0] sm:$0xff]  ;;  %8697 = vmatmul.msk.bf16.gmra.mxu2 %vm547_vm1, %v2230_v32  ;;  %v2232_v40 = vpack.c.bf16 %v2151_v30, %v2150_v28 }
 0x245   : > { %v3738_v15 = vadd.f32 %v3510_v25, %v3196_v38  ;;  %2934 = vst.msk [vmem:[#allocation2 + $0xc8] sm:$0xff] %vm176_vm2, %v2829_v37  ;;  %8805 = vmatmul.msk.bf16.gmra.mxu0 %vm547_vm1, %v4050_v3  ;;  %v3969_v32 = vld [vmem:[%s9141_s26 + $0x187] sm:$0xff]  ;;  %v1322_v37 = vpack.c.bf16 %v1241_v26, %v1240_v24  ;;  %v1382_v38 = vld [vmem:[#allocation2 + $0xf0] sm:$0xff] }
 0x246   : > { %v4105_v41 = vld [vmem:[#allocation2 + $0xb8] sm:$0xff]  ;;  %8752 = vmatmul.msk.bf16.gmra.mxu3 %vm547_vm1, %v3141_v14  ;;  %v1385_v26 = vld [vmem:[#allocation2 + $0x108] sm:$0xff] }
 0x247   : > { %v4647_v43 = vadd.f32 %v4417_v12, %v4105_v41  ;;  %3843 = vst.msk [vmem:[#allocation2 + $0xc0] sm:$0xff] %vm176_vm2, %v3738_v15  ;;  %v2605_v44 = vpop.f32.mrf.mxu2  ;;  %v4051_v15 = vpack.c.bf16 %v3969_v32, %v3968_v31 }
 0x248   : > { %v1697_v47 = vpop.f32.mrf.mxu1 }
 0x249   : > { %4752 = vst.msk [vmem:[#allocation2 + $0xb8] sm:$0xff] %vm176_vm2, %v4647_v43  ;;  %v1921_v48 = vadd.f32 %v1697_v47, %v1379_v46  ;;  %v3520_v34 = vpop.f32.mrf.mxu3  ;;  %v3060_v46 = vld [vmem:[%s9141_s26 + $0x18e] sm:$0xff]  ;;  %v3061_v47 = vld [vmem:[%s9141_s26 + $0x196] sm:$0xff] }
 0x24a   : > { %v2288_v50 = vld [vmem:[#allocation2 + $0xd0] sm:$0xff]  ;;  %v4427_v21 = vpop.f32.mrf.mxu0 }
 0x24b   : > { %v2830_v27 = vadd.f32 %v2605_v44, %v2288_v50  ;;  %2026 = vst.msk [vmem:[#allocation2 + $0xd8] sm:$0xff] %vm176_vm2, %v1921_v48 }
 0x24c   : > { %v3197_v52 = vld [vmem:[#allocation2 + $0xc8] sm:$0xff] }
 0x24d   : > { %v3739_v55 = vadd.f32 %v3512_v42, %v3197_v52  ;;  %2935 = vst.msk [vmem:[#allocation2 + $0xd0] sm:$0xff] %vm176_vm2, %v2830_v27  ;;  %v3142_v52 = vpack.c.bf16 %v3061_v47, %v3060_v46 }
 0x24e   : > { %v4106_v59 = vld [vmem:[#allocation2 + $0xc0] sm:$0xff] }
 0x24f   : > { %v4648_v61 = vadd.f32 %v4420_v35, %v4106_v59  ;;  %3844 = vst.msk [vmem:[#allocation2 + $0xc8] sm:$0xff] %vm176_vm2, %v3739_v55  ;;  %v2607_v62 = vpop.f32.mrf.mxu2  ;;  %v1242_v59 = vld [vmem:[%s9141_s26 + $0x181] sm:$0xff] }
 0x250   : > { %v1700_v1 = vpop.f32.mrf.mxu1 }
 0x251   : > { %4753 = vst.msk [vmem:[#allocation2 + $0xc0] sm:$0xff] %vm176_vm2, %v4648_v61  ;;  %v1922_v4 = vadd.f32 %v1700_v1, %v1380_v0  ;;  %v3522_v50 = vpop.f32.mrf.mxu3  ;;  %v1243_v61 = vld [vmem:[%s9141_s26 + $0x189] sm:$0xff] }
 0x252   : > { %v2289_v6 = vld [vmem:[#allocation2 + $0xd8] sm:$0xff]  ;;  %v4430_v42 = vpop.f32.mrf.mxu0  ;;  %v2153_v0 = vld [vmem:[%s9141_s26 + $0x18a] sm:$0xff] }
 0x253   : > { %v2831_v7 = vadd.f32 %v2607_v62, %v2289_v6  ;;  %2027 = vst.msk [vmem:[#allocation2 + $0xe0] sm:$0xff] %vm176_vm2, %v1922_v4  ;;  %8644 = vmatmul.msk.bf16.gmra.mxu1 %vm547_vm1, %v1321_v63  ;;  %v2152_v62 = vld [vmem:[%s9141_s26 + $0x182] sm:$0xff]  ;;  %v3970_v1 = vld [vmem:[%s9141_s26 + $0x18f] sm:$0xff] }
 0x254   : > { %v3198_v8 = vld [vmem:[#allocation2 + $0xd0] sm:$0xff]  ;;  %8698 = vmatmul.msk.bf16.gmra.mxu2 %vm547_vm1, %v2231_v2  ;;  %v2233_v10 = vpack.c.bf16 %v2153_v0, %v2152_v62 }
 0x255   : > { %v3740_v11 = vadd.f32 %v3515_v60, %v3198_v8  ;;  %2936 = vst.msk [vmem:[#allocation2 + $0xd8] sm:$0xff] %vm176_vm2, %v2831_v7  ;;  %8806 = vmatmul.msk.bf16.gmra.mxu0 %vm547_vm1, %v4051_v15  ;;  %v3971_v2 = vld [vmem:[%s9141_s26 + $0x197] sm:$0xff]  ;;  %v1323_v7 = vpack.c.bf16 %v1243_v61, %v1242_v59  ;;  %v1384_v8 = vld [vmem:[#allocation2 + $0x100] sm:$0xff] }
 0x256   : > { %v4107_v12 = vld [vmem:[#allocation2 + $0xc8] sm:$0xff]  ;;  %8753 = vmatmul.msk.bf16.gmra.mxu3 %vm547_vm1, %v3142_v52  ;;  %v1387_v61 = vld [vmem:[#allocation2 + $0x118] sm:$0xff] }
 0x257   : > { %v4649_v16 = vadd.f32 %v4422_v49, %v4107_v12  ;;  %3845 = vst.msk [vmem:[#allocation2 + $0xd0] sm:$0xff] %vm176_vm2, %v3740_v11  ;;  %v2610_v17 = vpop.f32.mrf.mxu2  ;;  %v4052_v11 = vpack.c.bf16 %v3971_v2, %v3970_v1 }
 0x258   : > { %v1702_v19 = vpop.f32.mrf.mxu1 }
 0x259   : > { %4754 = vst.msk [vmem:[#allocation2 + $0xc8] sm:$0xff] %vm176_vm2, %v4649_v16  ;;  %v1923_v20 = vadd.f32 %v1702_v19, %v1381_v18  ;;  %v3525_v4 = vpop.f32.mrf.mxu3  ;;  %v3062_v18 = vld [vmem:[%s9141_s26 + $0x19e] sm:$0xff]  ;;  %v3063_v19 = vld [vmem:[%s9141_s26 + $0x1a6] sm:$0xff] }
 0x25a   : > { %v2290_v22 = vld [vmem:[#allocation2 + $0xe0] sm:$0xff]  ;;  %v4432_v56 = vpop.f32.mrf.mxu0 }
 0x25b   : > { %v2832_v23 = vadd.f32 %v2610_v17, %v2290_v22  ;;  %2028 = vst.msk [vmem:[#allocation2 + $0xe8] sm:$0xff] %vm176_vm2, %v1923_v20 }
 0x25c   : > { %v3199_v25 = vld [vmem:[#allocation2 + $0xd8] sm:$0xff] }
 0x25d   : > { %v3741_v29 = vadd.f32 %v3517_v13, %v3199_v25  ;;  %2937 = vst.msk [vmem:[#allocation2 + $0xe0] sm:$0xff] %vm176_vm2, %v2832_v23  ;;  %v3143_v25 = vpack.c.bf16 %v3063_v19, %v3062_v18 }
 0x25e   : > { %v4108_v33 = vld [vmem:[#allocation2 + $0xd0] sm:$0xff] }
 0x25f   : > { %v4650_v35 = vadd.f32 %v4425_v5, %v4108_v33  ;;  %3846 = vst.msk [vmem:[#allocation2 + $0xd8] sm:$0xff] %vm176_vm2, %v3741_v29  ;;  %v2612_v36 = vpop.f32.mrf.mxu2  ;;  %v1244_v33 = vld [vmem:[%s9141_s26 + $0x191] sm:$0xff] }
 0x260   : > { %v1705_v39 = vpop.f32.mrf.mxu1 }
 0x261   : > { %4755 = vst.msk [vmem:[#allocation2 + $0xd0] sm:$0xff] %vm176_vm2, %v4650_v35  ;;  %v1924_v41 = vadd.f32 %v1705_v39, %v1382_v38  ;;  %v3527_v22 = vpop.f32.mrf.mxu3  ;;  %v1245_v35 = vld [vmem:[%s9141_s26 + $0x199] sm:$0xff] }
 0x262   : > { %v2291_v43 = vld [vmem:[#allocation2 + $0xe8] sm:$0xff]  ;;  %v4435_v13 = vpop.f32.mrf.mxu0  ;;  %v2155_v38 = vld [vmem:[%s9141_s26 + $0x19a] sm:$0xff] }
 0x263   : > { %v2833_v44 = vadd.f32 %v2612_v36, %v2291_v43  ;;  %2029 = vst.msk [vmem:[#allocation2 + $0xf0] sm:$0xff] %vm176_vm2, %v1924_v41  ;;  %8645 = vmatmul.msk.bf16.gmra.mxu1 %vm547_vm1, %v1322_v37  ;;  %v2154_v36 = vld [vmem:[%s9141_s26 + $0x192] sm:$0xff]  ;;  %v3972_v39 = vld [vmem:[%s9141_s26 + $0x19f] sm:$0xff] }
 0x264   : > { %v3200_v45 = vld [vmem:[#allocation2 + $0xe0] sm:$0xff]  ;;  %8699 = vmatmul.msk.bf16.gmra.mxu2 %vm547_vm1, %v2232_v40  ;;  %v2234_v47 = vpack.c.bf16 %v2155_v38, %v2154_v36 }
 0x265   : > { %v3742_v48 = vadd.f32 %v3520_v34, %v3200_v45  ;;  %2938 = vst.msk [vmem:[#allocation2 + $0xe8] sm:$0xff] %vm176_vm2, %v2833_v44  ;;  %8807 = vmatmul.msk.bf16.gmra.mxu0 %vm547_vm1, %v4052_v11  ;;  %v3973_v40 = vld [vmem:[%s9141_s26 + $0x1a7] sm:$0xff]  ;;  %v1324_v44 = vpack.c.bf16 %v1245_v35, %v1244_v33  ;;  %v1386_v45 = vld [vmem:[#allocation2 + $0x110] sm:$0xff] }
 0x266   : > { %v4109_v49 = vld [vmem:[#allocation2 + $0xd8] sm:$0xff]  ;;  %8754 = vmatmul.msk.bf16.gmra.mxu3 %vm547_vm1, %v3143_v25  ;;  %v1389_v35 = vld [vmem:[#allocation2 + $0x128] sm:$0xff] }
 0x267   : > { %v4651_v27 = vadd.f32 %v4427_v21, %v4109_v49  ;;  %3847 = vst.msk [vmem:[#allocation2 + $0xe0] sm:$0xff] %vm176_vm2, %v3742_v48  ;;  %v2615_v51 = vpop.f32.mrf.mxu2  ;;  %v4053_v48 = vpack.c.bf16 %v3973_v40, %v3972_v39 }
 0x268   : > { %v1707_v54 = vpop.f32.mrf.mxu1 }
 0x269   : > { %4756 = vst.msk [vmem:[#allocation2 + $0xd8] sm:$0xff] %vm176_vm2, %v4651_v27  ;;  %v1925_v55 = vadd.f32 %v1707_v54, %v1383_v53  ;;  %v3530_v41 = vpop.f32.mrf.mxu3  ;;  %v3064_v53 = vld [vmem:[%s9141_s26 + $0x1ae] sm:$0xff]  ;;  %v3065_v54 = vld [vmem:[%s9141_s26 + $0x1b6] sm:$0xff] }
 0x26a   : > { %v2292_v57 = vld [vmem:[#allocation2 + $0xf0] sm:$0xff]  ;;  %v4437_v30 = vpop.f32.mrf.mxu0 }
 0x26b   : > { %v2834_v58 = vadd.f32 %v2615_v51, %v2292_v57  ;;  %2030 = vst.msk [vmem:[#allocation2 + $0xf8] sm:$0xff] %vm176_vm2, %v1925_v55 }
 0x26c   : > { %v3201_v60 = vld [vmem:[#allocation2 + $0xe8] sm:$0xff] }
 0x26d   : > { %v3743_v63 = vadd.f32 %v3522_v50, %v3201_v60  ;;  %2939 = vst.msk [vmem:[#allocation2 + $0xf0] sm:$0xff] %vm176_vm2, %v2834_v58  ;;  %v3144_v60 = vpack.c.bf16 %v3065_v54, %v3064_v53 }
 0x26e   : > { %v4110_v3 = vld [vmem:[#allocation2 + $0xe0] sm:$0xff] }
 0x26f   : > { %v4652_v5 = vadd.f32 %v4430_v42, %v4110_v3  ;;  %3848 = vst.msk [vmem:[#allocation2 + $0xe8] sm:$0xff] %vm176_vm2, %v3743_v63  ;;  %v2617_v6 = vpop.f32.mrf.mxu2  ;;  %v1246_v3 = vld [vmem:[%s9141_s26 + $0x1a1] sm:$0xff] }
 0x270   : > { %v1710_v9 = vpop.f32.mrf.mxu1 }
 0x271   : > { %4757 = vst.msk [vmem:[#allocation2 + $0xe0] sm:$0xff] %vm176_vm2, %v4652_v5  ;;  %v1926_v12 = vadd.f32 %v1710_v9, %v1384_v8  ;;  %v3532_v57 = vpop.f32.mrf.mxu3  ;;  %v1247_v5 = vld [vmem:[%s9141_s26 + $0x1a9] sm:$0xff] }
 0x272   : > { %v2293_v16 = vld [vmem:[#allocation2 + $0xf8] sm:$0xff]  ;;  %v4440_v50 = vpop.f32.mrf.mxu0  ;;  %v2157_v8 = vld [vmem:[%s9141_s26 + $0x1aa] sm:$0xff] }
 0x273   : > { %v2835_v17 = vadd.f32 %v2617_v6, %v2293_v16  ;;  %2031 = vst.msk [vmem:[#allocation2 + $0x100] sm:$0xff] %vm176_vm2, %v1926_v12  ;;  %8646 = vmatmul.msk.bf16.gmra.mxu1 %vm547_vm1, %v1323_v7  ;;  %v2156_v6 = vld [vmem:[%s9141_s26 + $0x1a2] sm:$0xff]  ;;  %v3974_v9 = vld [vmem:[%s9141_s26 + $0x1af] sm:$0xff] }
 0x274   : > { %v3202_v14 = vld [vmem:[#allocation2 + $0xf0] sm:$0xff]  ;;  %8700 = vmatmul.msk.bf16.gmra.mxu2 %vm547_vm1, %v2233_v10  ;;  %v2235_v19 = vpack.c.bf16 %v2157_v8, %v2156_v6 }
 0x275   : > { %v3744_v20 = vadd.f32 %v3525_v4, %v3202_v14  ;;  %2940 = vst.msk [vmem:[#allocation2 + $0xf8] sm:$0xff] %vm176_vm2, %v2835_v17  ;;  %8808 = vmatmul.msk.bf16.gmra.mxu0 %vm547_vm1, %v4053_v48  ;;  %v3975_v10 = vld [vmem:[%s9141_s26 + $0x1b7] sm:$0xff]  ;;  %v1325_v17 = vpack.c.bf16 %v1247_v5, %v1246_v3  ;;  %v1388_v14 = vld [vmem:[#allocation2 + $0x120] sm:$0xff] }
 0x276   : > { %v4111_v21 = vld [vmem:[#allocation2 + $0xe8] sm:$0xff]  ;;  %8755 = vmatmul.msk.bf16.gmra.mxu3 %vm547_vm1, %v3144_v60  ;;  %v1391_v5 = vld [vmem:[#allocation2 + $0x138] sm:$0xff] }
 0x277   : > { %v4653_v23 = vadd.f32 %v4432_v56, %v4111_v21  ;;  %3849 = vst.msk [vmem:[#allocation2 + $0xf0] sm:$0xff] %vm176_vm2, %v3744_v20  ;;  %v2620_v24 = vpop.f32.mrf.mxu2  ;;  %v4054_v20 = vpack.c.bf16 %v3975_v10, %v3974_v9 }
 0x278   : > { %v1712_v28 = vpop.f32.mrf.mxu1 }
 0x279   : > { %4758 = vst.msk [vmem:[#allocation2 + $0xe8] sm:$0xff] %vm176_vm2, %v4653_v23  ;;  %v1927_v29 = vadd.f32 %v1712_v28, %v1385_v26  ;;  %v3535_v12 = vpop.f32.mrf.mxu3  ;;  %v3066_v26 = vld [vmem:[%s9141_s26 + $0x1be] sm:$0xff]  ;;  %v3067_v28 = vld [vmem:[%s9141_s26 + $0x1c6] sm:$0xff] }
 0x27a   : > { %v2294_v31 = vld [vmem:[#allocation2 + $0x100] sm:$0xff]  ;;  %v4442_v0 = vpop.f32.mrf.mxu0 }
 0x27b   : > { %v2836_v32 = vadd.f32 %v2620_v24, %v2294_v31  ;;  %2032 = vst.msk [vmem:[#allocation2 + $0x108] sm:$0xff] %vm176_vm2, %v1927_v29 }
 0x27c   : > { %v3203_v34 = vld [vmem:[#allocation2 + $0xf8] sm:$0xff] }
 0x27d   : > { %v3745_v37 = vadd.f32 %v3527_v22, %v3203_v34  ;;  %2941 = vst.msk [vmem:[#allocation2 + $0x100] sm:$0xff] %vm176_vm2, %v2836_v32  ;;  %v3145_v34 = vpack.c.bf16 %v3067_v28, %v3066_v26 }
 0x27e   : > { %v4112_v15 = vld [vmem:[#allocation2 + $0xf0] sm:$0xff] }
 0x27f   : > { %v4654_v42 = vadd.f32 %v4435_v13, %v4112_v15  ;;  %3850 = vst.msk [vmem:[#allocation2 + $0xf8] sm:$0xff] %vm176_vm2, %v3745_v37  ;;  %v2622_v43 = vpop.f32.mrf.mxu2  ;;  %v1248_v15 = vld [vmem:[%s9141_s26 + $0x1b1] sm:$0xff] }
 0x280   : > { %v1715_v46 = vpop.f32.mrf.mxu1 }
 0x281   : > { %4759 = vst.msk [vmem:[#allocation2 + $0xf0] sm:$0xff] %vm176_vm2, %v4654_v42  ;;  %v1928_v49 = vadd.f32 %v1715_v46, %v1386_v45  ;;  %v3537_v31 = vpop.f32.mrf.mxu3  ;;  %v1249_v42 = vld [vmem:[%s9141_s26 + $0x1b9] sm:$0xff] }
 0x282   : > { %v2295_v27 = vld [vmem:[#allocation2 + $0x108] sm:$0xff]  ;;  %v4445_v22 = vpop.f32.mrf.mxu0  ;;  %v2159_v45 = vld [vmem:[%s9141_s26 + $0x1ba] sm:$0xff] }
 0x283   : > { %v2837_v51 = vadd.f32 %v2622_v43, %v2295_v27  ;;  %2033 = vst.msk [vmem:[#allocation2 + $0x110] sm:$0xff] %vm176_vm2, %v1928_v49  ;;  %8647 = vmatmul.msk.bf16.gmra.mxu1 %vm547_vm1, %v1324_v44  ;;  %v2158_v43 = vld [vmem:[%s9141_s26 + $0x1b2] sm:$0xff]  ;;  %v3976_v46 = vld [vmem:[%s9141_s26 + $0x1bf] sm:$0xff] }
 0x284   : > { %v3204_v52 = vld [vmem:[#allocation2 + $0x100] sm:$0xff]  ;;  %8701 = vmatmul.msk.bf16.gmra.mxu2 %vm547_vm1, %v2234_v47  ;;  %v2236_v54 = vpack.c.bf16 %v2159_v45, %v2158_v43 }
 0x285   : > { %v3746_v55 = vadd.f32 %v3530_v41, %v3204_v52  ;;  %2942 = vst.msk [vmem:[#allocation2 + $0x108] sm:$0xff] %vm176_vm2, %v2837_v51  ;;  %8809 = vmatmul.msk.bf16.gmra.mxu0 %vm547_vm1, %v4054_v20  ;;  %v3977_v47 = vld [vmem:[%s9141_s26 + $0x1c7] sm:$0xff]  ;;  %v1326_v51 = vpack.c.bf16 %v1249_v42, %v1248_v15  ;;  %v1390_v52 = vld [vmem:[#allocation2 + $0x130] sm:$0xff] }
 0x286   : > { %v4113_v56 = vld [vmem:[#allocation2 + $0xf8] sm:$0xff]  ;;  %8756 = vmatmul.msk.bf16.gmra.mxu3 %vm547_vm1, %v3145_v34  ;;  %v1393_v42 = vld [vmem:[#allocation2 + $0x148] sm:$0xff] }
 0x287   : > { %v4655_v58 = vadd.f32 %v4437_v30, %v4113_v56  ;;  %3851 = vst.msk [vmem:[#allocation2 + $0x100] sm:$0xff] %vm176_vm2, %v3746_v55  ;;  %v2625_v59 = vpop.f32.mrf.mxu2  ;;  %v4055_v55 = vpack.c.bf16 %v3977_v47, %v3976_v46 }
 0x288   : > { %v1717_v62 = vpop.f32.mrf.mxu1 }
 0x289   : > { %4760 = vst.msk [vmem:[#allocation2 + $0xf8] sm:$0xff] %vm176_vm2, %v4655_v58  ;;  %v1929_v63 = vadd.f32 %v1717_v62, %v1387_v61  ;;  %v3540_v49 = vpop.f32.mrf.mxu3  ;;  %v3068_v61 = vld [vmem:[%s9141_s26 + $0x1ce] sm:$0xff]  ;;  %v3069_v62 = vld [vmem:[%s9141_s26 + $0x1d6] sm:$0xff] }
 0x28a   : > { %v2296_v1 = vld [vmem:[#allocation2 + $0x110] sm:$0xff]  ;;  %v4447_v38 = vpop.f32.mrf.mxu0 }
 0x28b   : > { %v2838_v2 = vadd.f32 %v2625_v59, %v2296_v1  ;;  %2034 = vst.msk [vmem:[#allocation2 + $0x118] sm:$0xff] %vm176_vm2, %v1929_v63 }
 0x28c   : > { %v3205_v4 = vld [vmem:[#allocation2 + $0x108] sm:$0xff] }
 0x28d   : > { %v3747_v7 = vadd.f32 %v3532_v57, %v3205_v4  ;;  %2943 = vst.msk [vmem:[#allocation2 + $0x110] sm:$0xff] %vm176_vm2, %v2838_v2  ;;  %v3146_v4 = vpack.c.bf16 %v3069_v62, %v3068_v61 }
 0x28e   : > { %v4114_v11 = vld [vmem:[#allocation2 + $0x100] sm:$0xff] }
 0x28f   : > { %v4656_v13 = vadd.f32 %v4440_v50, %v4114_v11  ;;  %3852 = vst.msk [vmem:[#allocation2 + $0x108] sm:$0xff] %vm176_vm2, %v3747_v7  ;;  %v2627_v16 = vpop.f32.mrf.mxu2  ;;  %v1250_v11 = vld [vmem:[%s9141_s26 + $0x1c1] sm:$0xff] }
 0x290   : > { %v1720_v18 = vpop.f32.mrf.mxu1 }
 0x291   : > { %4761 = vst.msk [vmem:[#allocation2 + $0x100] sm:$0xff] %vm176_vm2, %v4656_v13  ;;  %v1930_v21 = vadd.f32 %v1720_v18, %v1388_v14  ;;  %v3542_v1 = vpop.f32.mrf.mxu3  ;;  %v1251_v13 = vld [vmem:[%s9141_s26 + $0x1c9] sm:$0xff] }
 0x292   : > { %v2297_v23 = vld [vmem:[#allocation2 + $0x118] sm:$0xff]  ;;  %v4450_v57 = vpop.f32.mrf.mxu0  ;;  %v2161_v14 = vld [vmem:[%s9141_s26 + $0x1ca] sm:$0xff] }
 0x293   : > { %v2839_v24 = vadd.f32 %v2627_v16, %v2297_v23  ;;  %2035 = vst.msk [vmem:[#allocation2 + $0x120] sm:$0xff] %vm176_vm2, %v1930_v21  ;;  %8648 = vmatmul.msk.bf16.gmra.mxu1 %vm547_vm1, %v1325_v17  ;;  %v2160_v16 = vld [vmem:[%s9141_s26 + $0x1c2] sm:$0xff]  ;;  %v3978_v18 = vld [vmem:[%s9141_s26 + $0x1cf] sm:$0xff] }
 0x294   : > { %v3206_v25 = vld [vmem:[#allocation2 + $0x110] sm:$0xff]  ;;  %8702 = vmatmul.msk.bf16.gmra.mxu2 %vm547_vm1, %v2235_v19  ;;  %v2237_v28 = vpack.c.bf16 %v2161_v14, %v2160_v16 }
 0x295   : > { %v3748_v29 = vadd.f32 %v3535_v12, %v3206_v25  ;;  %2944 = vst.msk [vmem:[#allocation2 + $0x118] sm:$0xff] %vm176_vm2, %v2839_v24  ;;  %8810 = vmatmul.msk.bf16.gmra.mxu0 %vm547_vm1, %v4055_v55  ;;  %v3979_v19 = vld [vmem:[%s9141_s26 + $0x1d7] sm:$0xff]  ;;  %v1327_v24 = vpack.c.bf16 %v1251_v13, %v1250_v11  ;;  %v1392_v25 = vld [vmem:[#allocation2 + $0x140] sm:$0xff] }
 0x296   : > { %v4115_v30 = vld [vmem:[#allocation2 + $0x108] sm:$0xff]  ;;  %8757 = vmatmul.msk.bf16.gmra.mxu3 %vm547_vm1, %v3146_v4  ;;  %v1395_v13 = vld [vmem:[#allocation2 + $0x158] sm:$0xff] }
 0x297   : > { %v4657_v32 = vadd.f32 %v4442_v0, %v4115_v30  ;;  %3853 = vst.msk [vmem:[#allocation2 + $0x110] sm:$0xff] %vm176_vm2, %v3748_v29  ;;  %v2630_v33 = vpop.f32.mrf.mxu2  ;;  %v4056_v29 = vpack.c.bf16 %v3979_v19, %v3978_v18 }
 0x298   : > { %v1722_v36 = vpop.f32.mrf.mxu1 }
 0x299   : > { %4762 = vst.msk [vmem:[#allocation2 + $0x108] sm:$0xff] %vm176_vm2, %v4657_v32  ;;  %v1931_v37 = vadd.f32 %v1722_v36, %v1389_v35  ;;  %v3545_v21 = vpop.f32.mrf.mxu3  ;;  %v3070_v35 = vld [vmem:[%s9141_s26 + $0x1de] sm:$0xff]  ;;  %v3071_v36 = vld [vmem:[%s9141_s26 + $0x1e6] sm:$0xff] }
 0x29a   : > { %v2298_v39 = vld [vmem:[#allocation2 + $0x120] sm:$0xff]  ;;  %v4452_v8 = vpop.f32.mrf.mxu0 }
 0x29b   : > { %v2840_v40 = vadd.f32 %v2630_v33, %v2298_v39  ;;  %2036 = vst.msk [vmem:[#allocation2 + $0x128] sm:$0xff] %vm176_vm2, %v1931_v37 }
 0x29c   : > { %v3207_v41 = vld [vmem:[#allocation2 + $0x118] sm:$0xff] }
 0x29d   : > { %v3749_v44 = vadd.f32 %v3537_v31, %v3207_v41  ;;  %2945 = vst.msk [vmem:[#allocation2 + $0x120] sm:$0xff] %vm176_vm2, %v2840_v40  ;;  %v3147_v41 = vpack.c.bf16 %v3071_v36, %v3070_v35 }
 0x29e   : > { %v4116_v48 = vld [vmem:[#allocation2 + $0x110] sm:$0xff] }
 0x29f   : > { %v4658_v50 = vadd.f32 %v4445_v22, %v4116_v48  ;;  %3854 = vst.msk [vmem:[#allocation2 + $0x118] sm:$0xff] %vm176_vm2, %v3749_v44  ;;  %v2632_v27 = vpop.f32.mrf.mxu2  ;;  %v1252_v48 = vld [vmem:[%s9141_s26 + $0x1d1] sm:$0xff] }
 0x2a0   : > { %v1725_v53 = vpop.f32.mrf.mxu1 }
 0x2a1   : > { %4763 = vst.msk [vmem:[#allocation2 + $0x110] sm:$0xff] %vm176_vm2, %v4658_v50  ;;  %v1932_v56 = vadd.f32 %v1725_v53, %v1390_v52  ;;  %v3547_v39 = vpop.f32.mrf.mxu3  ;;  %v1253_v50 = vld [vmem:[%s9141_s26 + $0x1d9] sm:$0xff] }
 0x2a2   : > { %v2299_v58 = vld [vmem:[#allocation2 + $0x128] sm:$0xff]  ;;  %v4455_v31 = vpop.f32.mrf.mxu0  ;;  %v2163_v52 = vld [vmem:[%s9141_s26 + $0x1da] sm:$0xff] }
 0x2a3   : > { %v2841_v59 = vadd.f32 %v2632_v27, %v2299_v58  ;;  %2037 = vst.msk [vmem:[#allocation2 + $0x130] sm:$0xff] %vm176_vm2, %v1932_v56  ;;  %8649 = vmatmul.msk.bf16.gmra.mxu1 %vm547_vm1, %v1326_v51  ;;  %v2162_v27 = vld [vmem:[%s9141_s26 + $0x1d2] sm:$0xff]  ;;  %v3980_v53 = vld [vmem:[%s9141_s26 + $0x1df] sm:$0xff] }
 0x2a4   : > { %v3208_v60 = vld [vmem:[#allocation2 + $0x120] sm:$0xff]  ;;  %8703 = vmatmul.msk.bf16.gmra.mxu2 %vm547_vm1, %v2236_v54  ;;  %v2238_v62 = vpack.c.bf16 %v2163_v52, %v2162_v27 }
 0x2a5   : > { %v3750_v63 = vadd.f32 %v3540_v49, %v3208_v60  ;;  %2946 = vst.msk [vmem:[#allocation2 + $0x128] sm:$0xff] %vm176_vm2, %v2841_v59  ;;  %8811 = vmatmul.msk.bf16.gmra.mxu0 %vm547_vm1, %v4056_v29  ;;  %v3981_v54 = vld [vmem:[%s9141_s26 + $0x1e7] sm:$0xff]  ;;  %v1328_v59 = vpack.c.bf16 %v1253_v50, %v1252_v48  ;;  %v1394_v60 = vld [vmem:[#allocation2 + $0x150] sm:$0xff] }
 0x2a6   : > { %v4117_v0 = vld [vmem:[#allocation2 + $0x118] sm:$0xff]  ;;  %8758 = vmatmul.msk.bf16.gmra.mxu3 %vm547_vm1, %v3147_v41  ;;  %v1397_v50 = vld [vmem:[#allocation2 + $0x168] sm:$0xff] }
 0x2a7   : > { %v4659_v2 = vadd.f32 %v4447_v38, %v4117_v0  ;;  %3855 = vst.msk [vmem:[#allocation2 + $0x120] sm:$0xff] %vm176_vm2, %v3750_v63  ;;  %v2635_v3 = vpop.f32.mrf.mxu2  ;;  %v4057_v63 = vpack.c.bf16 %v3981_v54, %v3980_v53 }
 0x2a8   : > { %v1727_v6 = vpop.f32.mrf.mxu1 }
 0x2a9   : > { %4764 = vst.msk [vmem:[#allocation2 + $0x118] sm:$0xff] %vm176_vm2, %v4659_v2  ;;  %v1933_v7 = vadd.f32 %v1727_v6, %v1391_v5  ;;  %v3550_v56 = vpop.f32.mrf.mxu3  ;;  %v3072_v5 = vld [vmem:[%s9141_s26 + $0x1ee] sm:$0xff]  ;;  %v3073_v6 = vld [vmem:[%s9141_s26 + $0x1f6] sm:$0xff] }
 0x2aa   : > { %v2300_v9 = vld [vmem:[#allocation2 + $0x130] sm:$0xff]  ;;  %v4457_v45 = vpop.f32.mrf.mxu0 }
 0x2ab   : > { %v2842_v10 = vadd.f32 %v2635_v3, %v2300_v9  ;;  %2038 = vst.msk [vmem:[#allocation2 + $0x138] sm:$0xff] %vm176_vm2, %v1933_v7 }
 0x2ac   : > { %v3209_v12 = vld [vmem:[#allocation2 + $0x128] sm:$0xff] }
 0x2ad   : > { %v3751_v17 = vadd.f32 %v3542_v1, %v3209_v12  ;;  %2947 = vst.msk [vmem:[#allocation2 + $0x130] sm:$0xff] %vm176_vm2, %v2842_v10  ;;  %v3148_v12 = vpack.c.bf16 %v3073_v6, %v3072_v5 }
 0x2ae   : > { %v4118_v20 = vld [vmem:[#allocation2 + $0x120] sm:$0xff] }
 0x2af   : > { %v4660_v22 = vadd.f32 %v4450_v57, %v4118_v20  ;;  %3856 = vst.msk [vmem:[#allocation2 + $0x128] sm:$0xff] %vm176_vm2, %v3751_v17  ;;  %v2637_v23 = vpop.f32.mrf.mxu2  ;;  %v1254_v20 = vld [vmem:[%s9141_s26 + $0x1e1] sm:$0xff] }
 0x2b0   : > { %v1730_v26 = vpop.f32.mrf.mxu1 }
 0x2b1   : > { %4765 = vst.msk [vmem:[#allocation2 + $0x120] sm:$0xff] %vm176_vm2, %v4660_v22  ;;  %v1934_v30 = vadd.f32 %v1730_v26, %v1392_v25  ;;  %v3552_v9 = vpop.f32.mrf.mxu3  ;;  %v1255_v22 = vld [vmem:[%s9141_s26 + $0x1e9] sm:$0xff] }
 0x2b2   : > { %v2301_v32 = vld [vmem:[#allocation2 + $0x138] sm:$0xff]  ;;  %v4460_v1 = vpop.f32.mrf.mxu0  ;;  %v2165_v25 = vld [vmem:[%s9141_s26 + $0x1ea] sm:$0xff] }
 0x2b3   : > { %v2843_v33 = vadd.f32 %v2637_v23, %v2301_v32  ;;  %2039 = vst.msk [vmem:[#allocation2 + $0x140] sm:$0xff] %vm176_vm2, %v1934_v30  ;;  %8650 = vmatmul.msk.bf16.gmra.mxu1 %vm547_vm1, %v1327_v24  ;;  %v2164_v23 = vld [vmem:[%s9141_s26 + $0x1e2] sm:$0xff]  ;;  %v3982_v26 = vld [vmem:[%s9141_s26 + $0x1ef] sm:$0xff] }
 0x2b4   : > { %v3210_v34 = vld [vmem:[#allocation2 + $0x130] sm:$0xff]  ;;  %8704 = vmatmul.msk.bf16.gmra.mxu2 %vm547_vm1, %v2237_v28  ;;  %v2239_v36 = vpack.c.bf16 %v2165_v25, %v2164_v23 }
 0x2b5   : > { %v3752_v37 = vadd.f32 %v3545_v21, %v3210_v34  ;;  %2948 = vst.msk [vmem:[#allocation2 + $0x138] sm:$0xff] %vm176_vm2, %v2843_v33  ;;  %8812 = vmatmul.msk.bf16.gmra.mxu0 %vm547_vm1, %v4057_v63  ;;  %v3983_v28 = vld [vmem:[%s9141_s26 + $0x1f7] sm:$0xff]  ;;  %v1329_v33 = vpack.c.bf16 %v1255_v22, %v1254_v20  ;;  %v1396_v34 = vld [vmem:[#allocation2 + $0x160] sm:$0xff] }
 0x2b6   : > { %v4119_v38 = vld [vmem:[#allocation2 + $0x128] sm:$0xff]  ;;  %8759 = vmatmul.msk.bf16.gmra.mxu3 %vm547_vm1, %v3148_v12  ;;  %v1399_v22 = vld [vmem:[#allocation2 + $0x178] sm:$0xff] }
 0x2b7   : > { %v4661_v40 = vadd.f32 %v4452_v8, %v4119_v38  ;;  %3857 = vst.msk [vmem:[#allocation2 + $0x130] sm:$0xff] %vm176_vm2, %v3752_v37  ;;  %v2640_v15 = vpop.f32.mrf.mxu2  ;;  %v4058_v37 = vpack.c.bf16 %v3983_v28, %v3982_v26 }
 0x2b8   : > { %v1732_v43 = vpop.f32.mrf.mxu1 }
 0x2b9   : > { %4766 = vst.msk [vmem:[#allocation2 + $0x128] sm:$0xff] %vm176_vm2, %v4661_v40  ;;  %v1935_v44 = vadd.f32 %v1732_v43, %v1393_v42  ;;  %v3555_v30 = vpop.f32.mrf.mxu3  ;;  %v3074_v42 = vld [vmem:[%s9141_s26 + $0x1fe] sm:$0xff]  ;;  %v3075_v43 = vld [vmem:[%s9141_s26 + $0x206] sm:$0xff] }
 0x2ba   : > { %v2302_v46 = vld [vmem:[#allocation2 + $0x140] sm:$0xff]  ;;  %v4462_v14 = vpop.f32.mrf.mxu0 }
 0x2bb   : > { %v2844_v47 = vadd.f32 %v2640_v15, %v2302_v46  ;;  %2040 = vst.msk [vmem:[#allocation2 + $0x148] sm:$0xff] %vm176_vm2, %v1935_v44 }
 0x2bc   : > { %v3211_v49 = vld [vmem:[#allocation2 + $0x138] sm:$0xff] }
 0x2bd   : > { %v3753_v51 = vadd.f32 %v3547_v39, %v3211_v49  ;;  %2949 = vst.msk [vmem:[#allocation2 + $0x140] sm:$0xff] %vm176_vm2, %v2844_v47  ;;  %v3149_v49 = vpack.c.bf16 %v3075_v43, %v3074_v42 }
 0x2be   : > { %v4120_v55 = vld [vmem:[#allocation2 + $0x130] sm:$0xff] }
 0x2bf   : > { %v4662_v57 = vadd.f32 %v4455_v31, %v4120_v55  ;;  %3858 = vst.msk [vmem:[#allocation2 + $0x138] sm:$0xff] %vm176_vm2, %v3753_v51  ;;  %v2642_v58 = vpop.f32.mrf.mxu2  ;;  %v1256_v55 = vld [vmem:[%s9141_s26 + $0x1f1] sm:$0xff] }
 0x2c0   : > { %v1735_v61 = vpop.f32.mrf.mxu1 }
 0x2c1   : > { %4767 = vst.msk [vmem:[#allocation2 + $0x130] sm:$0xff] %vm176_vm2, %v4662_v57  ;;  %v1936_v0 = vadd.f32 %v1735_v61, %v1394_v60  ;;  %v3557_v46 = vpop.f32.mrf.mxu3  ;;  %v1257_v57 = vld [vmem:[%s9141_s26 + $0x1f9] sm:$0xff] }
 0x2c2   : > { %v2303_v2 = vld [vmem:[#allocation2 + $0x148] sm:$0xff]  ;;  %v4465_v39 = vpop.f32.mrf.mxu0  ;;  %v2167_v60 = vld [vmem:[%s9141_s26 + $0x1fa] sm:$0xff] }
 0x2c3   : > { %v2845_v3 = vadd.f32 %v2642_v58, %v2303_v2  ;;  %2041 = vst.msk [vmem:[#allocation2 + $0x150] sm:$0xff] %vm176_vm2, %v1936_v0  ;;  %8651 = vmatmul.msk.bf16.gmra.mxu1 %vm547_vm1, %v1328_v59  ;;  %v2166_v58 = vld [vmem:[%s9141_s26 + $0x1f2] sm:$0xff]  ;;  %v3984_v61 = vld [vmem:[%s9141_s26 + $0x1ff] sm:$0xff] }
 0x2c4   : > { %v3212_v4 = vld [vmem:[#allocation2 + $0x140] sm:$0xff]  ;;  %8705 = vmatmul.msk.bf16.gmra.mxu2 %vm547_vm1, %v2238_v62  ;;  %v2240_v6 = vpack.c.bf16 %v2167_v60, %v2166_v58 }
 0x2c5   : > { %v3754_v7 = vadd.f32 %v3550_v56, %v3212_v4  ;;  %2950 = vst.msk [vmem:[#allocation2 + $0x148] sm:$0xff] %vm176_vm2, %v2845_v3  ;;  %8813 = vmatmul.msk.bf16.gmra.mxu0 %vm547_vm1, %v4058_v37  ;;  %v3985_v62 = vld [vmem:[%s9141_s26 + $0x207] sm:$0xff]  ;;  %v1330_v3 = vpack.c.bf16 %v1257_v57, %v1256_v55  ;;  %v1398_v4 = vld [vmem:[#allocation2 + $0x170] sm:$0xff] }
 0x2c6   : > { %v4121_v8 = vld [vmem:[#allocation2 + $0x138] sm:$0xff]  ;;  %8760 = vmatmul.msk.bf16.gmra.mxu3 %vm547_vm1, %v3149_v49  ;;  %v1401_v57 = vld [vmem:[#allocation2 + $0x188] sm:$0xff] }
 0x2c7   : > { %v4663_v10 = vadd.f32 %v4457_v45, %v4121_v8  ;;  %3859 = vst.msk [vmem:[#allocation2 + $0x140] sm:$0xff] %vm176_vm2, %v3754_v7  ;;  %v2645_v11 = vpop.f32.mrf.mxu2  ;;  %v4059_v7 = vpack.c.bf16 %v3985_v62, %v3984_v61 }
 0x2c8   : > { %v1737_v16 = vpop.f32.mrf.mxu1 }
 0x2c9   : > { %4768 = vst.msk [vmem:[#allocation2 + $0x138] sm:$0xff] %vm176_vm2, %v4663_v10  ;;  %v1937_v17 = vadd.f32 %v1737_v16, %v1395_v13  ;;  %v3560_v0 = vpop.f32.mrf.mxu3  ;;  %v3076_v13 = vld [vmem:[%s9141_s26 + $0x20e] sm:$0xff]  ;;  %v3077_v16 = vld [vmem:[%s9141_s26 + $0x216] sm:$0xff] }
 0x2ca   : > { %v2304_v18 = vld [vmem:[#allocation2 + $0x150] sm:$0xff]  ;;  %v4467_v52 = vpop.f32.mrf.mxu0 }
 0x2cb   : > { %v2846_v19 = vadd.f32 %v2645_v11, %v2304_v18  ;;  %2042 = vst.msk [vmem:[#allocation2 + $0x158] sm:$0xff] %vm176_vm2, %v1937_v17 }
 0x2cc   : > { %v3213_v21 = vld [vmem:[#allocation2 + $0x148] sm:$0xff] }
 0x2cd   : > { %v3755_v24 = vadd.f32 %v3552_v9, %v3213_v21  ;;  %2951 = vst.msk [vmem:[#allocation2 + $0x150] sm:$0xff] %vm176_vm2, %v2846_v19  ;;  %v3150_v21 = vpack.c.bf16 %v3077_v16, %v3076_v13 }
 0x2ce   : > { %v4122_v29 = vld [vmem:[#allocation2 + $0x140] sm:$0xff] }
 0x2cf   : > { %v4664_v31 = vadd.f32 %v4460_v1, %v4122_v29  ;;  %3860 = vst.msk [vmem:[#allocation2 + $0x148] sm:$0xff] %vm176_vm2, %v3755_v24  ;;  %v2647_v32 = vpop.f32.mrf.mxu2  ;;  %v1258_v29 = vld [vmem:[%s9141_s26 + $0x201] sm:$0xff] }
 0x2d0   : > { %v1740_v35 = vpop.f32.mrf.mxu1 }
 0x2d1   : > { %4769 = vst.msk [vmem:[#allocation2 + $0x140] sm:$0xff] %vm176_vm2, %v4664_v31  ;;  %v1938_v38 = vadd.f32 %v1740_v35, %v1396_v34  ;;  %v3562_v18 = vpop.f32.mrf.mxu3  ;;  %v1259_v31 = vld [vmem:[%s9141_s26 + $0x209] sm:$0xff] }
 0x2d2   : > { %v2305_v40 = vld [vmem:[#allocation2 + $0x158] sm:$0xff]  ;;  %v4470_v9 = vpop.f32.mrf.mxu0  ;;  %v2169_v34 = vld [vmem:[%s9141_s26 + $0x20a] sm:$0xff] }
 0x2d3   : > { %v2847_v15 = vadd.f32 %v2647_v32, %v2305_v40  ;;  %2043 = vst.msk [vmem:[#allocation2 + $0x160] sm:$0xff] %vm176_vm2, %v1938_v38  ;;  %8652 = vmatmul.msk.bf16.gmra.mxu1 %vm547_vm1, %v1329_v33  ;;  %v2168_v32 = vld [vmem:[%s9141_s26 + $0x202] sm:$0xff]  ;;  %v3986_v35 = vld [vmem:[%s9141_s26 + $0x20f] sm:$0xff] }
 0x2d4   : > { %v3214_v41 = vld [vmem:[#allocation2 + $0x150] sm:$0xff]  ;;  %8706 = vmatmul.msk.bf16.gmra.mxu2 %vm547_vm1, %v2239_v36  ;;  %v2241_v43 = vpack.c.bf16 %v2169_v34, %v2168_v32 }
 0x2d5   : > { %v3756_v44 = vadd.f32 %v3555_v30, %v3214_v41  ;;  %2952 = vst.msk [vmem:[#allocation2 + $0x158] sm:$0xff] %vm176_vm2, %v2847_v15  ;;  %8814 = vmatmul.msk.bf16.gmra.mxu0 %vm547_vm1, %v4059_v7  ;;  %v3987_v36 = vld [vmem:[%s9141_s26 + $0x217] sm:$0xff]  ;;  %v1331_v15 = vpack.c.bf16 %v1259_v31, %v1258_v29  ;;  %v1400_v41 = vld [vmem:[#allocation2 + $0x180] sm:$0xff] }
 0x2d6   : > { %v4123_v45 = vld [vmem:[#allocation2 + $0x148] sm:$0xff]  ;;  %8761 = vmatmul.msk.bf16.gmra.mxu3 %vm547_vm1, %v3150_v21  ;;  %v1403_v31 = vld [vmem:[#allocation2 + $0x198] sm:$0xff] }
 0x2d7   : > { %v4665_v47 = vadd.f32 %v4462_v14, %v4123_v45  ;;  %3861 = vst.msk [vmem:[#allocation2 + $0x150] sm:$0xff] %vm176_vm2, %v3756_v44  ;;  %v2650_v48 = vpop.f32.mrf.mxu2  ;;  %v4060_v44 = vpack.c.bf16 %v3987_v36, %v3986_v35 }
 0x2d8   : > { %v1742_v27 = vpop.f32.mrf.mxu1 }
 0x2d9   : > { %4770 = vst.msk [vmem:[#allocation2 + $0x148] sm:$0xff] %vm176_vm2, %v4665_v47  ;;  %v1939_v51 = vadd.f32 %v1742_v27, %v1397_v50  ;;  %v3565_v38 = vpop.f32.mrf.mxu3  ;;  %v3078_v50 = vld [vmem:[%s9141_s26 + $0x21e] sm:$0xff]  ;;  %v3079_v27 = vld [vmem:[%s9141_s26 + $0x226] sm:$0xff] }
 0x2da   : > { %v2306_v53 = vld [vmem:[#allocation2 + $0x160] sm:$0xff]  ;;  %v4472_v25 = vpop.f32.mrf.mxu0 }
 0x2db   : > { %v2848_v54 = vadd.f32 %v2650_v48, %v2306_v53  ;;  %2044 = vst.msk [vmem:[#allocation2 + $0x168] sm:$0xff] %vm176_vm2, %v1939_v51 }
 0x2dc   : > { %v3215_v56 = vld [vmem:[#allocation2 + $0x158] sm:$0xff] }
 0x2dd   : > { %v3757_v59 = vadd.f32 %v3557_v46, %v3215_v56  ;;  %2953 = vst.msk [vmem:[#allocation2 + $0x160] sm:$0xff] %vm176_vm2, %v2848_v54  ;;  %v3151_v56 = vpack.c.bf16 %v3079_v27, %v3078_v50 }
 0x2de   : > { %v4124_v63 = vld [vmem:[#allocation2 + $0x150] sm:$0xff] }
 0x2df   : > { %v4666_v1 = vadd.f32 %v4465_v39, %v4124_v63  ;;  %3862 = vst.msk [vmem:[#allocation2 + $0x158] sm:$0xff] %vm176_vm2, %v3757_v59  ;;  %v2652_v2 = vpop.f32.mrf.mxu2  ;;  %v1260_v63 = vld [vmem:[%s9141_s26 + $0x211] sm:$0xff] }
 0x2e0   : > { %v1745_v5 = vpop.f32.mrf.mxu1 }
 0x2e1   : > { %4771 = vst.msk [vmem:[#allocation2 + $0x150] sm:$0xff] %vm176_vm2, %v4666_v1  ;;  %v1940_v8 = vadd.f32 %v1745_v5, %v1398_v4  ;;  %v3567_v53 = vpop.f32.mrf.mxu3  ;;  %v1261_v1 = vld [vmem:[%s9141_s26 + $0x219] sm:$0xff] }
 0x2e2   : > { %v2307_v10 = vld [vmem:[#allocation2 + $0x168] sm:$0xff]  ;;  %v4475_v46 = vpop.f32.mrf.mxu0  ;;  %v2171_v4 = vld [vmem:[%s9141_s26 + $0x21a] sm:$0xff] }
 0x2e3   : > { %v2849_v11 = vadd.f32 %v2652_v2, %v2307_v10  ;;  %2045 = vst.msk [vmem:[#allocation2 + $0x170] sm:$0xff] %vm176_vm2, %v1940_v8  ;;  %8653 = vmatmul.msk.bf16.gmra.mxu1 %vm547_vm1, %v1330_v3  ;;  %v2170_v2 = vld [vmem:[%s9141_s26 + $0x212] sm:$0xff]  ;;  %v3988_v5 = vld [vmem:[%s9141_s26 + $0x21f] sm:$0xff] }
 0x2e4   : > { %v3216_v12 = vld [vmem:[#allocation2 + $0x160] sm:$0xff]  ;;  %8707 = vmatmul.msk.bf16.gmra.mxu2 %vm547_vm1, %v2240_v6  ;;  %v2242_v16 = vpack.c.bf16 %v2171_v4, %v2170_v2 }
 0x2e5   : > { %v3758_v17 = vadd.f32 %v3560_v0, %v3216_v12  ;;  %2954 = vst.msk [vmem:[#allocation2 + $0x168] sm:$0xff] %vm176_vm2, %v2849_v11  ;;  %8815 = vmatmul.msk.bf16.gmra.mxu0 %vm547_vm1, %v4060_v44  ;;  %v3989_v6 = vld [vmem:[%s9141_s26 + $0x227] sm:$0xff]  ;;  %v1332_v11 = vpack.c.bf16 %v1261_v1, %v1260_v63  ;;  %v1402_v12 = vld [vmem:[#allocation2 + $0x190] sm:$0xff] }
 0x2e6   : > { %v4125_v14 = vld [vmem:[#allocation2 + $0x158] sm:$0xff]  ;;  %8762 = vmatmul.msk.bf16.gmra.mxu3 %vm547_vm1, %v3151_v56  ;;  %v1405_v1 = vld [vmem:[#allocation2 + $0x1a8] sm:$0xff] }
 0x2e7   : > { %v4667_v19 = vadd.f32 %v4467_v52, %v4125_v14  ;;  %3863 = vst.msk [vmem:[#allocation2 + $0x160] sm:$0xff] %vm176_vm2, %v3758_v17  ;;  %v2655_v20 = vpop.f32.mrf.mxu2  ;;  %v4061_v17 = vpack.c.bf16 %v3989_v6, %v3988_v5 }
 0x2e8   : > { %v1747_v23 = vpop.f32.mrf.mxu1 }
 0x2e9   : > { %4772 = vst.msk [vmem:[#allocation2 + $0x158] sm:$0xff] %vm176_vm2, %v4667_v19  ;;  %v1941_v24 = vadd.f32 %v1747_v23, %v1399_v22  ;;  %v3570_v8 = vpop.f32.mrf.mxu3  ;;  %v3080_v22 = vld [vmem:[%s9141_s26 + $0x22e] sm:$0xff]  ;;  %v3081_v23 = vld [vmem:[%s9141_s26 + $0x236] sm:$0xff] }
 0x2ea   : > { %v2308_v26 = vld [vmem:[#allocation2 + $0x170] sm:$0xff]  ;;  %v4477_v60 = vpop.f32.mrf.mxu0 }
 0x2eb   : > { %v2850_v28 = vadd.f32 %v2655_v20, %v2308_v26  ;;  %2046 = vst.msk [vmem:[#allocation2 + $0x178] sm:$0xff] %vm176_vm2, %v1941_v24 }
 0x2ec   : > { %v3217_v30 = vld [vmem:[#allocation2 + $0x168] sm:$0xff] }
 0x2ed   : > { %v3759_v33 = vadd.f32 %v3562_v18, %v3217_v30  ;;  %2955 = vst.msk [vmem:[#allocation2 + $0x170] sm:$0xff] %vm176_vm2, %v2850_v28  ;;  %v3152_v30 = vpack.c.bf16 %v3081_v23, %v3080_v22 }
 0x2ee   : > { %v4126_v37 = vld [vmem:[#allocation2 + $0x160] sm:$0xff] }
 0x2ef   : > { %v4668_v39 = vadd.f32 %v4470_v9, %v4126_v37  ;;  %3864 = vst.msk [vmem:[#allocation2 + $0x168] sm:$0xff] %vm176_vm2, %v3759_v33  ;;  %v2657_v40 = vpop.f32.mrf.mxu2  ;;  %v1262_v37 = vld [vmem:[%s9141_s26 + $0x221] sm:$0xff] }
 0x2f0   : > { %v1750_v42 = vpop.f32.mrf.mxu1 }
 0x2f1   : > { %4773 = vst.msk [vmem:[#allocation2 + $0x160] sm:$0xff] %vm176_vm2, %v4668_v39  ;;  %v1942_v45 = vadd.f32 %v1750_v42, %v1400_v41  ;;  %v3572_v26 = vpop.f32.mrf.mxu3  ;;  %v1263_v39 = vld [vmem:[%s9141_s26 + $0x229] sm:$0xff] }
 0x2f2   : > { %v2309_v47 = vld [vmem:[#allocation2 + $0x178] sm:$0xff]  ;;  %v4480_v18 = vpop.f32.mrf.mxu0  ;;  %v2173_v41 = vld [vmem:[%s9141_s26 + $0x22a] sm:$0xff] }
 0x2f3   : > { %v2851_v48 = vadd.f32 %v2657_v40, %v2309_v47  ;;  %2047 = vst.msk [vmem:[#allocation2 + $0x180] sm:$0xff] %vm176_vm2, %v1942_v45  ;;  %8654 = vmatmul.msk.bf16.gmra.mxu1 %vm547_vm1, %v1331_v15  ;;  %v2172_v40 = vld [vmem:[%s9141_s26 + $0x222] sm:$0xff]  ;;  %v3990_v42 = vld [vmem:[%s9141_s26 + $0x22f] sm:$0xff] }
 0x2f4   : > { %v3218_v49 = vld [vmem:[#allocation2 + $0x170] sm:$0xff]  ;;  %8708 = vmatmul.msk.bf16.gmra.mxu2 %vm547_vm1, %v2241_v43  ;;  %v2243_v27 = vpack.c.bf16 %v2173_v41, %v2172_v40 }
 0x2f5   : > { %v3760_v51 = vadd.f32 %v3565_v38, %v3218_v49  ;;  %2956 = vst.msk [vmem:[#allocation2 + $0x178] sm:$0xff] %vm176_vm2, %v2851_v48  ;;  %8816 = vmatmul.msk.bf16.gmra.mxu0 %vm547_vm1, %v4061_v17  ;;  %v3991_v43 = vld [vmem:[%s9141_s26 + $0x237] sm:$0xff]  ;;  %v1333_v48 = vpack.c.bf16 %v1263_v39, %v1262_v37  ;;  %v1404_v49 = vld [vmem:[#allocation2 + $0x1a0] sm:$0xff] }
 0x2f6   : > { %v4127_v52 = vld [vmem:[#allocation2 + $0x168] sm:$0xff]  ;;  %8763 = vmatmul.msk.bf16.gmra.mxu3 %vm547_vm1, %v3152_v30  ;;  %v1407_v39 = vld [vmem:[#allocation2 + $0x1b8] sm:$0xff] }
 0x2f7   : > { %v4669_v54 = vadd.f32 %v4472_v25, %v4127_v52  ;;  %3865 = vst.msk [vmem:[#allocation2 + $0x170] sm:$0xff] %vm176_vm2, %v3760_v51  ;;  %v2660_v55 = vpop.f32.mrf.mxu2  ;;  %v4062_v51 = vpack.c.bf16 %v3991_v43, %v3990_v42 }
 0x2f8   : > { %v1752_v58 = vpop.f32.mrf.mxu1 }
 0x2f9   : > { %4774 = vst.msk [vmem:[#allocation2 + $0x168] sm:$0xff] %vm176_vm2, %v4669_v54  ;;  %v1943_v59 = vadd.f32 %v1752_v58, %v1401_v57  ;;  %v3575_v45 = vpop.f32.mrf.mxu3  ;;  %v3082_v57 = vld [vmem:[%s9141_s26 + $0x23e] sm:$0xff]  ;;  %v3083_v58 = vld [vmem:[%s9141_s26 + $0x246] sm:$0xff] }
 0x2fa   : > { %v2310_v61 = vld [vmem:[#allocation2 + $0x180] sm:$0xff]  ;;  %v4482_v34 = vpop.f32.mrf.mxu0 }
 0x2fb   : > { %v2852_v62 = vadd.f32 %v2660_v55, %v2310_v61  ;;  %2048 = vst.msk [vmem:[#allocation2 + $0x188] sm:$0xff] %vm176_vm2, %v1943_v59 }
 0x2fc   : > { %v3219_v0 = vld [vmem:[#allocation2 + $0x178] sm:$0xff] }
 0x2fd   : > { %v3761_v3 = vadd.f32 %v3567_v53, %v3219_v0  ;;  %2957 = vst.msk [vmem:[#allocation2 + $0x180] sm:$0xff] %vm176_vm2, %v2852_v62  ;;  %v3153_v0 = vpack.c.bf16 %v3083_v58, %v3082_v57 }
 0x2fe   : > { %v4128_v7 = vld [vmem:[#allocation2 + $0x170] sm:$0xff] }
 0x2ff   : > { %v4670_v9 = vadd.f32 %v4475_v46, %v4128_v7  ;;  %3866 = vst.msk [vmem:[#allocation2 + $0x178] sm:$0xff] %vm176_vm2, %v3761_v3  ;;  %v2662_v10 = vpop.f32.mrf.mxu2  ;;  %v1264_v7 = vld [vmem:[%s9141_s26 + $0x231] sm:$0xff] }
 0x300   : > { %v1755_v13 = vpop.f32.mrf.mxu1 }
 0x301   : > { %4775 = vst.msk [vmem:[#allocation2 + $0x170] sm:$0xff] %vm176_vm2, %v4670_v9  ;;  %v1944_v14 = vadd.f32 %v1755_v13, %v1402_v12  ;;  %v3577_v61 = vpop.f32.mrf.mxu3  ;;  %v1265_v9 = vld [vmem:[%s9141_s26 + $0x239] sm:$0xff] }
 0x302   : > { %v2311_v19 = vld [vmem:[#allocation2 + $0x188] sm:$0xff]  ;;  %v4485_v53 = vpop.f32.mrf.mxu0  ;;  %v2175_v12 = vld [vmem:[%s9141_s26 + $0x23a] sm:$0xff] }
 0x303   : > { %v2853_v20 = vadd.f32 %v2662_v10, %v2311_v19  ;;  %2049 = vst.msk [vmem:[#allocation2 + $0x190] sm:$0xff] %vm176_vm2, %v1944_v14  ;;  %8655 = vmatmul.msk.bf16.gmra.mxu1 %vm547_vm1, %v1332_v11  ;;  %v2174_v10 = vld [vmem:[%s9141_s26 + $0x232] sm:$0xff]  ;;  %v3992_v13 = vld [vmem:[%s9141_s26 + $0x23f] sm:$0xff] }
 0x304   : > { %v3220_v21 = vld [vmem:[#allocation2 + $0x180] sm:$0xff]  ;;  %8709 = vmatmul.msk.bf16.gmra.mxu2 %vm547_vm1, %v2242_v16  ;;  %v2244_v23 = vpack.c.bf16 %v2175_v12, %v2174_v10 }
 0x305   : > { %v3762_v24 = vadd.f32 %v3570_v8, %v3220_v21  ;;  %2958 = vst.msk [vmem:[#allocation2 + $0x188] sm:$0xff] %vm176_vm2, %v2853_v20  ;;  %8817 = vmatmul.msk.bf16.gmra.mxu0 %vm547_vm1, %v4062_v51  ;;  %v3993_v16 = vld [vmem:[%s9141_s26 + $0x247] sm:$0xff]  ;;  %v1334_v20 = vpack.c.bf16 %v1265_v9, %v1264_v7  ;;  %v1406_v21 = vld [vmem:[#allocation2 + $0x1b0] sm:$0xff] }
 0x306   : > { %v4129_v25 = vld [vmem:[#allocation2 + $0x178] sm:$0xff]  ;;  %8764 = vmatmul.msk.bf16.gmra.mxu3 %vm547_vm1, %v3153_v0  ;;  %v1409_v9 = vld [vmem:[#allocation2 + $0x1c8] sm:$0xff] }
 0x307   : > { %v4671_v28 = vadd.f32 %v4477_v60, %v4129_v25  ;;  %3867 = vst.msk [vmem:[#allocation2 + $0x180] sm:$0xff] %vm176_vm2, %v3762_v24  ;;  %v2665_v29 = vpop.f32.mrf.mxu2  ;;  %v4063_v24 = vpack.c.bf16 %v3993_v16, %v3992_v13 }
 0x308   : > { %v1757_v32 = vpop.f32.mrf.mxu1 }
 0x309   : > { %4776 = vst.msk [vmem:[#allocation2 + $0x178] sm:$0xff] %vm176_vm2, %v4671_v28  ;;  %v1945_v33 = vadd.f32 %v1757_v32, %v1403_v31  ;;  %v3580_v14 = vpop.f32.mrf.mxu3  ;;  %v3084_v31 = vld [vmem:[%s9141_s26 + $0x24e] sm:$0xff]  ;;  %v3085_v32 = vld [vmem:[%s9141_s26 + $0x256] sm:$0xff] }
 0x30a   : > { %v2312_v35 = vld [vmem:[#allocation2 + $0x190] sm:$0xff]  ;;  %v4487_v4 = vpop.f32.mrf.mxu0 }
 0x30b   : > { %v2854_v36 = vadd.f32 %v2665_v29, %v2312_v35  ;;  %2050 = vst.msk [vmem:[#allocation2 + $0x198] sm:$0xff] %vm176_vm2, %v1945_v33 }
 0x30c   : > { %v3221_v38 = vld [vmem:[#allocation2 + $0x188] sm:$0xff] }
 0x30d   : > { %v3763_v15 = vadd.f32 %v3572_v26, %v3221_v38  ;;  %2959 = vst.msk [vmem:[#allocation2 + $0x190] sm:$0xff] %vm176_vm2, %v2854_v36  ;;  %v3154_v38 = vpack.c.bf16 %v3085_v32, %v3084_v31 }
 0x30e   : > { %v4130_v44 = vld [vmem:[#allocation2 + $0x180] sm:$0xff] }
 0x30f   : > { %v4672_v46 = vadd.f32 %v4480_v18, %v4130_v44  ;;  %3868 = vst.msk [vmem:[#allocation2 + $0x188] sm:$0xff] %vm176_vm2, %v3763_v15  ;;  %v2667_v47 = vpop.f32.mrf.mxu2  ;;  %v1266_v44 = vld [vmem:[%s9141_s26 + $0x241] sm:$0xff] }
 0x310   : > { %v1760_v50 = vpop.f32.mrf.mxu1 }
 0x311   : > { %4777 = vst.msk [vmem:[#allocation2 + $0x180] sm:$0xff] %vm176_vm2, %v4672_v46  ;;  %v1946_v52 = vadd.f32 %v1760_v50, %v1404_v49  ;;  %v3582_v35 = vpop.f32.mrf.mxu3  ;;  %v1267_v46 = vld [vmem:[%s9141_s26 + $0x249] sm:$0xff] }
 0x312   : > { %v2313_v54 = vld [vmem:[#allocation2 + $0x198] sm:$0xff]  ;;  %v4490_v26 = vpop.f32.mrf.mxu0  ;;  %v2177_v49 = vld [vmem:[%s9141_s26 + $0x24a] sm:$0xff] }
 0x313   : > { %v2855_v55 = vadd.f32 %v2667_v47, %v2313_v54  ;;  %2051 = vst.msk [vmem:[#allocation2 + $0x1a0] sm:$0xff] %vm176_vm2, %v1946_v52  ;;  %8656 = vmatmul.msk.bf16.gmra.mxu1 %vm547_vm1, %v1333_v48  ;;  %v2176_v47 = vld [vmem:[%s9141_s26 + $0x242] sm:$0xff]  ;;  %v3994_v50 = vld [vmem:[%s9141_s26 + $0x24f] sm:$0xff] }
 0x314   : > { %v3222_v56 = vld [vmem:[#allocation2 + $0x190] sm:$0xff]  ;;  %8710 = vmatmul.msk.bf16.gmra.mxu2 %vm547_vm1, %v2243_v27  ;;  %v2245_v58 = vpack.c.bf16 %v2177_v49, %v2176_v47 }
 0x315   : > { %v3764_v59 = vadd.f32 %v3575_v45, %v3222_v56  ;;  %2960 = vst.msk [vmem:[#allocation2 + $0x198] sm:$0xff] %vm176_vm2, %v2855_v55  ;;  %8818 = vmatmul.msk.bf16.gmra.mxu0 %vm547_vm1, %v4063_v24  ;;  %v3995_v27 = vld [vmem:[%s9141_s26 + $0x257] sm:$0xff]  ;;  %v1335_v55 = vpack.c.bf16 %v1267_v46, %v1266_v44  ;;  %v1408_v56 = vld [vmem:[#allocation2 + $0x1c0] sm:$0xff] }
 0x316   : > { %v4131_v60 = vld [vmem:[#allocation2 + $0x188] sm:$0xff]  ;;  %8765 = vmatmul.msk.bf16.gmra.mxu3 %vm547_vm1, %v3154_v38  ;;  %v1411_v46 = vld [vmem:[#allocation2 + $0x1d8] sm:$0xff] }
 0x317   : > { %v4673_v62 = vadd.f32 %v4482_v34, %v4131_v60  ;;  %3869 = vst.msk [vmem:[#allocation2 + $0x190] sm:$0xff] %vm176_vm2, %v3764_v59  ;;  %v2670_v63 = vpop.f32.mrf.mxu2  ;;  %v4064_v59 = vpack.c.bf16 %v3995_v27, %v3994_v50 }
 0x318   : > { %v1762_v2 = vpop.f32.mrf.mxu1 }
 0x319   : > { %4778 = vst.msk [vmem:[#allocation2 + $0x188] sm:$0xff] %vm176_vm2, %v4673_v62  ;;  %v1947_v3 = vadd.f32 %v1762_v2, %v1405_v1  ;;  %v3585_v52 = vpop.f32.mrf.mxu3  ;;  %v3086_v1 = vld [vmem:[%s9141_s26 + $0x25e] sm:$0xff]  ;;  %v3087_v2 = vld [vmem:[%s9141_s26 + $0x266] sm:$0xff] }
 0x31a   : > { %v2314_v5 = vld [vmem:[#allocation2 + $0x1a0] sm:$0xff]  ;;  %v4492_v41 = vpop.f32.mrf.mxu0 }
 0x31b   : > { %v2856_v6 = vadd.f32 %v2670_v63, %v2314_v5  ;;  %2052 = vst.msk [vmem:[#allocation2 + $0x1a8] sm:$0xff] %vm176_vm2, %v1947_v3 }
 0x31c   : > { %v3223_v8 = vld [vmem:[#allocation2 + $0x198] sm:$0xff] }
 0x31d   : > { %v3765_v11 = vadd.f32 %v3577_v61, %v3223_v8  ;;  %2961 = vst.msk [vmem:[#allocation2 + $0x1a0] sm:$0xff] %vm176_vm2, %v2856_v6  ;;  %v3155_v8 = vpack.c.bf16 %v3087_v2, %v3086_v1 }
 0x31e   : > { %v4132_v17 = vld [vmem:[#allocation2 + $0x190] sm:$0xff] }
 0x31f   : > { %v4674_v18 = vadd.f32 %v4485_v53, %v4132_v17  ;;  %3870 = vst.msk [vmem:[#allocation2 + $0x198] sm:$0xff] %vm176_vm2, %v3765_v11  ;;  %v2672_v19 = vpop.f32.mrf.mxu2  ;;  %v1268_v17 = vld [vmem:[%s9141_s26 + $0x251] sm:$0xff] }
 0x320   : > { %v1765_v22 = vpop.f32.mrf.mxu1 }
 0x321   : > { %4779 = vst.msk [vmem:[#allocation2 + $0x190] sm:$0xff] %vm176_vm2, %v4674_v18  ;;  %v1948_v25 = vadd.f32 %v1765_v22, %v1406_v21  ;;  %v3587_v5 = vpop.f32.mrf.mxu3  ;;  %v1269_v18 = vld [vmem:[%s9141_s26 + $0x259] sm:$0xff] }
 0x322   : > { %v2315_v28 = vld [vmem:[#allocation2 + $0x1a8] sm:$0xff]  ;;  %v4495_v61 = vpop.f32.mrf.mxu0  ;;  %v2179_v21 = vld [vmem:[%s9141_s26 + $0x25a] sm:$0xff] }
 0x323   : > { %v2857_v29 = vadd.f32 %v2672_v19, %v2315_v28  ;;  %2053 = vst.msk [vmem:[#allocation2 + $0x1b0] sm:$0xff] %vm176_vm2, %v1948_v25  ;;  %8657 = vmatmul.msk.bf16.gmra.mxu1 %vm547_vm1, %v1334_v20  ;;  %v2178_v19 = vld [vmem:[%s9141_s26 + $0x252] sm:$0xff]  ;;  %v3996_v22 = vld [vmem:[%s9141_s26 + $0x25f] sm:$0xff] }
 0x324   : > { %v3224_v30 = vld [vmem:[#allocation2 + $0x1a0] sm:$0xff]  ;;  %8711 = vmatmul.msk.bf16.gmra.mxu2 %vm547_vm1, %v2244_v23  ;;  %v2246_v32 = vpack.c.bf16 %v2179_v21, %v2178_v19 }
 0x325   : > { %v3766_v33 = vadd.f32 %v3580_v14, %v3224_v30  ;;  %2962 = vst.msk [vmem:[#allocation2 + $0x1a8] sm:$0xff] %vm176_vm2, %v2857_v29  ;;  %8819 = vmatmul.msk.bf16.gmra.mxu0 %vm547_vm1, %v4064_v59  ;;  %v3997_v23 = vld [vmem:[%s9141_s26 + $0x267] sm:$0xff]  ;;  %v1336_v29 = vpack.c.bf16 %v1269_v18, %v1268_v17  ;;  %v1410_v30 = vld [vmem:[#allocation2 + $0x1d0] sm:$0xff] }
 0x326   : > { %v4133_v34 = vld [vmem:[#allocation2 + $0x198] sm:$0xff]  ;;  %8766 = vmatmul.msk.bf16.gmra.mxu3 %vm547_vm1, %v3155_v8  ;;  %v1413_v18 = vld [vmem:[#allocation2 + $0x1e8] sm:$0xff] }
 0x327   : > { %v4675_v36 = vadd.f32 %v4487_v4, %v4133_v34  ;;  %3871 = vst.msk [vmem:[#allocation2 + $0x1a0] sm:$0xff] %vm176_vm2, %v3766_v33  ;;  %v2675_v37 = vpop.f32.mrf.mxu2  ;;  %v4065_v33 = vpack.c.bf16 %v3997_v23, %v3996_v22 }
 0x328   : > { %v1767_v40 = vpop.f32.mrf.mxu1 }
 0x329   : > { %4780 = vst.msk [vmem:[#allocation2 + $0x198] sm:$0xff] %vm176_vm2, %v4675_v36  ;;  %v1949_v15 = vadd.f32 %v1767_v40, %v1407_v39  ;;  %v3590_v25 = vpop.f32.mrf.mxu3  ;;  %v3088_v39 = vld [vmem:[%s9141_s26 + $0x26e] sm:$0xff]  ;;  %v3089_v40 = vld [vmem:[%s9141_s26 + $0x276] sm:$0xff] }
 0x32a   : > { %v2316_v42 = vld [vmem:[#allocation2 + $0x1b0] sm:$0xff]  ;;  %v4497_v12 = vpop.f32.mrf.mxu0 }
 0x32b   : > { %v2858_v43 = vadd.f32 %v2675_v37, %v2316_v42  ;;  %2054 = vst.msk [vmem:[#allocation2 + $0x1b8] sm:$0xff] %vm176_vm2, %v1949_v15 }
 0x32c   : > { %v3225_v45 = vld [vmem:[#allocation2 + $0x1a8] sm:$0xff] }
 0x32d   : > { %v3767_v48 = vadd.f32 %v3582_v35, %v3225_v45  ;;  %2963 = vst.msk [vmem:[#allocation2 + $0x1b0] sm:$0xff] %vm176_vm2, %v2858_v43  ;;  %v3156_v45 = vpack.c.bf16 %v3089_v40, %v3088_v39 }
 0x32e   : > { %v4134_v51 = vld [vmem:[#allocation2 + $0x1a0] sm:$0xff] }
 0x32f   : > { %v4676_v53 = vadd.f32 %v4490_v26, %v4134_v51  ;;  %3872 = vst.msk [vmem:[#allocation2 + $0x1a8] sm:$0xff] %vm176_vm2, %v3767_v48  ;;  %v2677_v54 = vpop.f32.mrf.mxu2  ;;  %v1270_v51 = vld [vmem:[%s9141_s26 + $0x261] sm:$0xff] }
 0x330   : > { %v1770_v57 = vpop.f32.mrf.mxu1 }
 0x331   : > { %4781 = vst.msk [vmem:[#allocation2 + $0x1a0] sm:$0xff] %vm176_vm2, %v4676_v53  ;;  %v1950_v60 = vadd.f32 %v1770_v57, %v1408_v56  ;;  %v3592_v42 = vpop.f32.mrf.mxu3  ;;  %v1271_v53 = vld [vmem:[%s9141_s26 + $0x269] sm:$0xff] }
 0x332   : > { %v2317_v62 = vld [vmem:[#allocation2 + $0x1b8] sm:$0xff]  ;;  %v4500_v35 = vpop.f32.mrf.mxu0  ;;  %v2181_v56 = vld [vmem:[%s9141_s26 + $0x26a] sm:$0xff] }
 0x333   : > { %v2859_v63 = vadd.f32 %v2677_v54, %v2317_v62  ;;  %2055 = vst.msk [vmem:[#allocation2 + $0x1c0] sm:$0xff] %vm176_vm2, %v1950_v60  ;;  %8658 = vmatmul.msk.bf16.gmra.mxu1 %vm547_vm1, %v1335_v55  ;;  %v2180_v54 = vld [vmem:[%s9141_s26 + $0x262] sm:$0xff]  ;;  %v3998_v57 = vld [vmem:[%s9141_s26 + $0x26f] sm:$0xff] }
 0x334   : > { %v3226_v0 = vld [vmem:[#allocation2 + $0x1b0] sm:$0xff]  ;;  %8712 = vmatmul.msk.bf16.gmra.mxu2 %vm547_vm1, %v2245_v58  ;;  %v2247_v2 = vpack.c.bf16 %v2181_v56, %v2180_v54 }
 0x335   : > { %v3768_v3 = vadd.f32 %v3585_v52, %v3226_v0  ;;  %2964 = vst.msk [vmem:[#allocation2 + $0x1b8] sm:$0xff] %vm176_vm2, %v2859_v63  ;;  %8820 = vmatmul.msk.bf16.gmra.mxu0 %vm547_vm1, %v4065_v33  ;;  %v3999_v58 = vld [vmem:[%s9141_s26 + $0x277] sm:$0xff]  ;;  %v1337_v63 = vpack.c.bf16 %v1271_v53, %v1270_v51  ;;  %v1412_v0 = vld [vmem:[#allocation2 + $0x1e0] sm:$0xff] }
 0x336   : > { %v4135_v4 = vld [vmem:[#allocation2 + $0x1a8] sm:$0xff]  ;;  %8767 = vmatmul.msk.bf16.gmra.mxu3 %vm547_vm1, %v3156_v45  ;;  %v1415_v53 = vld [vmem:[#allocation2 + $0x1f8] sm:$0xff] }
 0x337   : > { %v4677_v6 = vadd.f32 %v4492_v41, %v4135_v4  ;;  %3873 = vst.msk [vmem:[#allocation2 + $0x1b0] sm:$0xff] %vm176_vm2, %v3768_v3  ;;  %v2680_v7 = vpop.f32.mrf.mxu2  ;;  %v4066_v3 = vpack.c.bf16 %v3999_v58, %v3998_v57 }
 0x338   : > { %v1772_v10 = vpop.f32.mrf.mxu1 }
 0x339   : > { %4782 = vst.msk [vmem:[#allocation2 + $0x1a8] sm:$0xff] %vm176_vm2, %v4677_v6  ;;  %v1951_v11 = vadd.f32 %v1772_v10, %v1409_v9  ;;  %v3595_v60 = vpop.f32.mrf.mxu3  ;;  %v3090_v9 = vld [vmem:[%s9141_s26 + $0x27e] sm:$0xff]  ;;  %v3091_v10 = vld [vmem:[%s9141_s26 + $0x286] sm:$0xff] }
 0x33a   : > { %v2318_v13 = vld [vmem:[#allocation2 + $0x1c0] sm:$0xff]  ;;  %v4502_v49 = vpop.f32.mrf.mxu0 }
 0x33b   : > { %v2860_v16 = vadd.f32 %v2680_v7, %v2318_v13  ;;  %2056 = vst.msk [vmem:[#allocation2 + $0x1c8] sm:$0xff] %vm176_vm2, %v1951_v11 }
 0x33c   : > { %v3227_v14 = vld [vmem:[#allocation2 + $0x1b8] sm:$0xff] }
 0x33d   : > { %v3769_v20 = vadd.f32 %v3587_v5, %v3227_v14  ;;  %2965 = vst.msk [vmem:[#allocation2 + $0x1c0] sm:$0xff] %vm176_vm2, %v2860_v16  ;;  %v3157_v14 = vpack.c.bf16 %v3091_v10, %v3090_v9 }
 0x33e   : > { %v4136_v24 = vld [vmem:[#allocation2 + $0x1b0] sm:$0xff] }
 0x33f   : > { %v4678_v26 = vadd.f32 %v4495_v61, %v4136_v24  ;;  %3874 = vst.msk [vmem:[#allocation2 + $0x1b8] sm:$0xff] %vm176_vm2, %v3769_v20  ;;  %v2682_v28 = vpop.f32.mrf.mxu2  ;;  %v1272_v24 = vld [vmem:[%s9141_s26 + $0x271] sm:$0xff] }
 0x340   : > { %v1775_v31 = vpop.f32.mrf.mxu1 }
 0x341   : > { %4783 = vst.msk [vmem:[#allocation2 + $0x1b0] sm:$0xff] %vm176_vm2, %v4678_v26  ;;  %v1952_v34 = vadd.f32 %v1775_v31, %v1410_v30  ;;  %v3597_v13 = vpop.f32.mrf.mxu3  ;;  %v1273_v26 = vld [vmem:[%s9141_s26 + $0x279] sm:$0xff] }
 0x342   : > { %v2319_v36 = vld [vmem:[#allocation2 + $0x1c8] sm:$0xff]  ;;  %v4505_v5 = vpop.f32.mrf.mxu0  ;;  %v2183_v30 = vld [vmem:[%s9141_s26 + $0x27a] sm:$0xff] }
 0x343   : > { %v2861_v37 = vadd.f32 %v2682_v28, %v2319_v36  ;;  %2057 = vst.msk [vmem:[#allocation2 + $0x1d0] sm:$0xff] %vm176_vm2, %v1952_v34  ;;  %8659 = vmatmul.msk.bf16.gmra.mxu1 %vm547_vm1, %v1336_v29  ;;  %v2182_v28 = vld [vmem:[%s9141_s26 + $0x272] sm:$0xff]  ;;  %v4000_v31 = vld [vmem:[%s9141_s26 + $0x27f] sm:$0xff] }
 0x344   : > { %v3228_v38 = vld [vmem:[#allocation2 + $0x1c0] sm:$0xff]  ;;  %8713 = vmatmul.msk.bf16.gmra.mxu2 %vm547_vm1, %v2246_v32  ;;  %v2248_v40 = vpack.c.bf16 %v2183_v30, %v2182_v28 }
 0x345   : > { %v3770_v15 = vadd.f32 %v3590_v25, %v3228_v38  ;;  %2966 = vst.msk [vmem:[#allocation2 + $0x1c8] sm:$0xff] %vm176_vm2, %v2861_v37  ;;  %8821 = vmatmul.msk.bf16.gmra.mxu0 %vm547_vm1, %v4066_v3  ;;  %v4001_v32 = vld [vmem:[%s9141_s26 + $0x287] sm:$0xff]  ;;  %v1338_v37 = vpack.c.bf16 %v1273_v26, %v1272_v24  ;;  %v1414_v38 = vld [vmem:[#allocation2 + $0x1f0] sm:$0xff] }
 0x346   : > { %v4137_v41 = vld [vmem:[#allocation2 + $0x1b8] sm:$0xff]  ;;  %8768 = vmatmul.msk.bf16.gmra.mxu3 %vm547_vm1, %v3157_v14  ;;  %v1417_v26 = vld [vmem:[#allocation2 + $0x208] sm:$0xff] }
 0x347   : > { %v4679_v43 = vadd.f32 %v4497_v12, %v4137_v41  ;;  %3875 = vst.msk [vmem:[#allocation2 + $0x1c0] sm:$0xff] %vm176_vm2, %v3770_v15  ;;  %v2685_v44 = vpop.f32.mrf.mxu2  ;;  %v4067_v15 = vpack.c.bf16 %v4001_v32, %v4000_v31 }
 0x348   : > { %v1777_v47 = vpop.f32.mrf.mxu1 }
 0x349   : > { %4784 = vst.msk [vmem:[#allocation2 + $0x1b8] sm:$0xff] %vm176_vm2, %v4679_v43  ;;  %v1953_v48 = vadd.f32 %v1777_v47, %v1411_v46  ;;  %v3600_v34 = vpop.f32.mrf.mxu3  ;;  %v3092_v46 = vld [vmem:[%s9141_s26 + $0x28e] sm:$0xff]  ;;  %v3093_v47 = vld [vmem:[%s9141_s26 + $0x296] sm:$0xff] }
 0x34a   : > { %v2320_v50 = vld [vmem:[#allocation2 + $0x1d0] sm:$0xff]  ;;  %v4507_v21 = vpop.f32.mrf.mxu0 }
 0x34b   : > { %v2862_v27 = vadd.f32 %v2685_v44, %v2320_v50  ;;  %2058 = vst.msk [vmem:[#allocation2 + $0x1d8] sm:$0xff] %vm176_vm2, %v1953_v48 }
 0x34c   : > { %v3229_v52 = vld [vmem:[#allocation2 + $0x1c8] sm:$0xff] }
 0x34d   : > { %v3771_v55 = vadd.f32 %v3592_v42, %v3229_v52  ;;  %2967 = vst.msk [vmem:[#allocation2 + $0x1d0] sm:$0xff] %vm176_vm2, %v2862_v27  ;;  %v3158_v52 = vpack.c.bf16 %v3093_v47, %v3092_v46 }
 0x34e   : > { %v4138_v59 = vld [vmem:[#allocation2 + $0x1c0] sm:$0xff] }
 0x34f   : > { %v4680_v61 = vadd.f32 %v4500_v35, %v4138_v59  ;;  %3876 = vst.msk [vmem:[#allocation2 + $0x1c8] sm:$0xff] %vm176_vm2, %v3771_v55  ;;  %v2687_v62 = vpop.f32.mrf.mxu2  ;;  %v1274_v59 = vld [vmem:[%s9141_s26 + $0x281] sm:$0xff] }
 0x350   : > { %v1780_v1 = vpop.f32.mrf.mxu1 }
 0x351   : > { %4785 = vst.msk [vmem:[#allocation2 + $0x1c0] sm:$0xff] %vm176_vm2, %v4680_v61  ;;  %v1954_v4 = vadd.f32 %v1780_v1, %v1412_v0  ;;  %v3602_v50 = vpop.f32.mrf.mxu3  ;;  %v1275_v61 = vld [vmem:[%s9141_s26 + $0x289] sm:$0xff] }
 0x352   : > { %v2321_v6 = vld [vmem:[#allocation2 + $0x1d8] sm:$0xff]  ;;  %v4510_v42 = vpop.f32.mrf.mxu0  ;;  %v2185_v0 = vld [vmem:[%s9141_s26 + $0x28a] sm:$0xff] }
 0x353   : > { %v2863_v7 = vadd.f32 %v2687_v62, %v2321_v6  ;;  %2059 = vst.msk [vmem:[#allocation2 + $0x1e0] sm:$0xff] %vm176_vm2, %v1954_v4  ;;  %8660 = vmatmul.msk.bf16.gmra.mxu1 %vm547_vm1, %v1337_v63  ;;  %v2184_v62 = vld [vmem:[%s9141_s26 + $0x282] sm:$0xff]  ;;  %v4002_v1 = vld [vmem:[%s9141_s26 + $0x28f] sm:$0xff] }
 0x354   : > { %v3230_v8 = vld [vmem:[#allocation2 + $0x1d0] sm:$0xff]  ;;  %8714 = vmatmul.msk.bf16.gmra.mxu2 %vm547_vm1, %v2247_v2  ;;  %v2249_v10 = vpack.c.bf16 %v2185_v0, %v2184_v62 }
 0x355   : > { %v3772_v11 = vadd.f32 %v3595_v60, %v3230_v8  ;;  %2968 = vst.msk [vmem:[#allocation2 + $0x1d8] sm:$0xff] %vm176_vm2, %v2863_v7  ;;  %8822 = vmatmul.msk.bf16.gmra.mxu0 %vm547_vm1, %v4067_v15  ;;  %v4003_v2 = vld [vmem:[%s9141_s26 + $0x297] sm:$0xff]  ;;  %v1339_v7 = vpack.c.bf16 %v1275_v61, %v1274_v59  ;;  %v1416_v8 = vld [vmem:[#allocation2 + $0x200] sm:$0xff] }
 0x356   : > { %v4139_v12 = vld [vmem:[#allocation2 + $0x1c8] sm:$0xff]  ;;  %8769 = vmatmul.msk.bf16.gmra.mxu3 %vm547_vm1, %v3158_v52  ;;  %v1419_v61 = vld [vmem:[#allocation2 + $0x218] sm:$0xff] }
 0x357   : > { %v4681_v16 = vadd.f32 %v4502_v49, %v4139_v12  ;;  %3877 = vst.msk [vmem:[#allocation2 + $0x1d0] sm:$0xff] %vm176_vm2, %v3772_v11  ;;  %v2690_v17 = vpop.f32.mrf.mxu2  ;;  %v4068_v11 = vpack.c.bf16 %v4003_v2, %v4002_v1 }
 0x358   : > { %v1782_v19 = vpop.f32.mrf.mxu1 }
 0x359   : > { %4786 = vst.msk [vmem:[#allocation2 + $0x1c8] sm:$0xff] %vm176_vm2, %v4681_v16  ;;  %v1955_v20 = vadd.f32 %v1782_v19, %v1413_v18  ;;  %v3605_v4 = vpop.f32.mrf.mxu3  ;;  %v3094_v18 = vld [vmem:[%s9141_s26 + $0x29e] sm:$0xff]  ;;  %v3095_v19 = vld [vmem:[%s9141_s26 + $0x2a6] sm:$0xff] }
 0x35a   : > { %v2322_v22 = vld [vmem:[#allocation2 + $0x1e0] sm:$0xff]  ;;  %v4512_v56 = vpop.f32.mrf.mxu0 }
 0x35b   : > { %v2864_v23 = vadd.f32 %v2690_v17, %v2322_v22  ;;  %2060 = vst.msk [vmem:[#allocation2 + $0x1e8] sm:$0xff] %vm176_vm2, %v1955_v20 }
 0x35c   : > { %v3231_v25 = vld [vmem:[#allocation2 + $0x1d8] sm:$0xff] }
 0x35d   : > { %v3773_v29 = vadd.f32 %v3597_v13, %v3231_v25  ;;  %2969 = vst.msk [vmem:[#allocation2 + $0x1e0] sm:$0xff] %vm176_vm2, %v2864_v23  ;;  %v3159_v25 = vpack.c.bf16 %v3095_v19, %v3094_v18 }
 0x35e   : > { %v4140_v33 = vld [vmem:[#allocation2 + $0x1d0] sm:$0xff] }
 0x35f   : > { %v4682_v35 = vadd.f32 %v4505_v5, %v4140_v33  ;;  %3878 = vst.msk [vmem:[#allocation2 + $0x1d8] sm:$0xff] %vm176_vm2, %v3773_v29  ;;  %v2692_v36 = vpop.f32.mrf.mxu2  ;;  %v1276_v33 = vld [vmem:[%s9141_s26 + $0x291] sm:$0xff] }
 0x360   : > { %v1785_v39 = vpop.f32.mrf.mxu1 }
 0x361   : > { %4787 = vst.msk [vmem:[#allocation2 + $0x1d0] sm:$0xff] %vm176_vm2, %v4682_v35  ;;  %v1956_v41 = vadd.f32 %v1785_v39, %v1414_v38  ;;  %v3607_v22 = vpop.f32.mrf.mxu3  ;;  %v1277_v35 = vld [vmem:[%s9141_s26 + $0x299] sm:$0xff] }
 0x362   : > { %v2323_v43 = vld [vmem:[#allocation2 + $0x1e8] sm:$0xff]  ;;  %v4515_v13 = vpop.f32.mrf.mxu0  ;;  %v2187_v38 = vld [vmem:[%s9141_s26 + $0x29a] sm:$0xff] }
 0x363   : > { %v2865_v44 = vadd.f32 %v2692_v36, %v2323_v43  ;;  %2061 = vst.msk [vmem:[#allocation2 + $0x1f0] sm:$0xff] %vm176_vm2, %v1956_v41  ;;  %8661 = vmatmul.msk.bf16.gmra.mxu1 %vm547_vm1, %v1338_v37  ;;  %v2186_v36 = vld [vmem:[%s9141_s26 + $0x292] sm:$0xff]  ;;  %v4004_v39 = vld [vmem:[%s9141_s26 + $0x29f] sm:$0xff] }
 0x364   : > { %v3232_v45 = vld [vmem:[#allocation2 + $0x1e0] sm:$0xff]  ;;  %8715 = vmatmul.msk.bf16.gmra.mxu2 %vm547_vm1, %v2248_v40  ;;  %v2250_v47 = vpack.c.bf16 %v2187_v38, %v2186_v36 }
 0x365   : > { %v3774_v48 = vadd.f32 %v3600_v34, %v3232_v45  ;;  %2970 = vst.msk [vmem:[#allocation2 + $0x1e8] sm:$0xff] %vm176_vm2, %v2865_v44  ;;  %8823 = vmatmul.msk.bf16.gmra.mxu0 %vm547_vm1, %v4068_v11  ;;  %v4005_v40 = vld [vmem:[%s9141_s26 + $0x2a7] sm:$0xff]  ;;  %v1340_v44 = vpack.c.bf16 %v1277_v35, %v1276_v33  ;;  %v1418_v45 = vld [vmem:[#allocation2 + $0x210] sm:$0xff] }
 0x366   : > { %v4141_v49 = vld [vmem:[#allocation2 + $0x1d8] sm:$0xff]  ;;  %8770 = vmatmul.msk.bf16.gmra.mxu3 %vm547_vm1, %v3159_v25  ;;  %v1421_v35 = vld [vmem:[#allocation2 + $0x228] sm:$0xff] }
 0x367   : > { %v4683_v27 = vadd.f32 %v4507_v21, %v4141_v49  ;;  %3879 = vst.msk [vmem:[#allocation2 + $0x1e0] sm:$0xff] %vm176_vm2, %v3774_v48  ;;  %v2695_v51 = vpop.f32.mrf.mxu2  ;;  %v4069_v48 = vpack.c.bf16 %v4005_v40, %v4004_v39 }
 0x368   : > { %v1787_v54 = vpop.f32.mrf.mxu1 }
 0x369   : > { %4788 = vst.msk [vmem:[#allocation2 + $0x1d8] sm:$0xff] %vm176_vm2, %v4683_v27  ;;  %v1957_v55 = vadd.f32 %v1787_v54, %v1415_v53  ;;  %v3610_v41 = vpop.f32.mrf.mxu3  ;;  %v3096_v53 = vld [vmem:[%s9141_s26 + $0x2ae] sm:$0xff]  ;;  %v3097_v54 = vld [vmem:[%s9141_s26 + $0x2b6] sm:$0xff] }
 0x36a   : > { %v2324_v57 = vld [vmem:[#allocation2 + $0x1f0] sm:$0xff]  ;;  %v4517_v30 = vpop.f32.mrf.mxu0 }
 0x36b   : > { %v2866_v58 = vadd.f32 %v2695_v51, %v2324_v57  ;;  %2062 = vst.msk [vmem:[#allocation2 + $0x1f8] sm:$0xff] %vm176_vm2, %v1957_v55 }
 0x36c   : > { %v3233_v60 = vld [vmem:[#allocation2 + $0x1e8] sm:$0xff] }
 0x36d   : > { %v3775_v63 = vadd.f32 %v3602_v50, %v3233_v60  ;;  %2971 = vst.msk [vmem:[#allocation2 + $0x1f0] sm:$0xff] %vm176_vm2, %v2866_v58  ;;  %v3160_v60 = vpack.c.bf16 %v3097_v54, %v3096_v53 }
 0x36e   : > { %v4142_v3 = vld [vmem:[#allocation2 + $0x1e0] sm:$0xff] }
 0x36f   : > { %v4684_v5 = vadd.f32 %v4510_v42, %v4142_v3  ;;  %3880 = vst.msk [vmem:[#allocation2 + $0x1e8] sm:$0xff] %vm176_vm2, %v3775_v63  ;;  %v2697_v6 = vpop.f32.mrf.mxu2  ;;  %v1278_v3 = vld [vmem:[%s9141_s26 + $0x2a1] sm:$0xff] }
 0x370   : > { %v1790_v9 = vpop.f32.mrf.mxu1 }
 0x371   : > { %4789 = vst.msk [vmem:[#allocation2 + $0x1e0] sm:$0xff] %vm176_vm2, %v4684_v5  ;;  %v1958_v12 = vadd.f32 %v1790_v9, %v1416_v8  ;;  %v3612_v57 = vpop.f32.mrf.mxu3  ;;  %v1279_v5 = vld [vmem:[%s9141_s26 + $0x2a9] sm:$0xff] }
 0x372   : > { %v2325_v16 = vld [vmem:[#allocation2 + $0x1f8] sm:$0xff]  ;;  %v4520_v50 = vpop.f32.mrf.mxu0  ;;  %v2189_v8 = vld [vmem:[%s9141_s26 + $0x2aa] sm:$0xff] }
 0x373   : > { %v2867_v17 = vadd.f32 %v2697_v6, %v2325_v16  ;;  %2063 = vst.msk [vmem:[#allocation2 + $0x200] sm:$0xff] %vm176_vm2, %v1958_v12  ;;  %8662 = vmatmul.msk.bf16.gmra.mxu1 %vm547_vm1, %v1339_v7  ;;  %v2188_v6 = vld [vmem:[%s9141_s26 + $0x2a2] sm:$0xff]  ;;  %v4006_v9 = vld [vmem:[%s9141_s26 + $0x2af] sm:$0xff] }
 0x374   : > { %v3234_v14 = vld [vmem:[#allocation2 + $0x1f0] sm:$0xff]  ;;  %8716 = vmatmul.msk.bf16.gmra.mxu2 %vm547_vm1, %v2249_v10  ;;  %v2251_v19 = vpack.c.bf16 %v2189_v8, %v2188_v6 }
 0x375   : > { %v3776_v20 = vadd.f32 %v3605_v4, %v3234_v14  ;;  %2972 = vst.msk [vmem:[#allocation2 + $0x1f8] sm:$0xff] %vm176_vm2, %v2867_v17  ;;  %8824 = vmatmul.msk.bf16.gmra.mxu0 %vm547_vm1, %v4069_v48  ;;  %v4007_v10 = vld [vmem:[%s9141_s26 + $0x2b7] sm:$0xff]  ;;  %v1341_v17 = vpack.c.bf16 %v1279_v5, %v1278_v3  ;;  %v1420_v14 = vld [vmem:[#allocation2 + $0x220] sm:$0xff] }
 0x376   : > { %v4143_v21 = vld [vmem:[#allocation2 + $0x1e8] sm:$0xff]  ;;  %8771 = vmatmul.msk.bf16.gmra.mxu3 %vm547_vm1, %v3160_v60  ;;  %v1423_v5 = vld [vmem:[#allocation2 + $0x238] sm:$0xff] }
 0x377   : > { %v4685_v23 = vadd.f32 %v4512_v56, %v4143_v21  ;;  %3881 = vst.msk [vmem:[#allocation2 + $0x1f0] sm:$0xff] %vm176_vm2, %v3776_v20  ;;  %v2700_v24 = vpop.f32.mrf.mxu2  ;;  %v4070_v20 = vpack.c.bf16 %v4007_v10, %v4006_v9 }
 0x378   : > { %v1792_v28 = vpop.f32.mrf.mxu1 }
 0x379   : > { %4790 = vst.msk [vmem:[#allocation2 + $0x1e8] sm:$0xff] %vm176_vm2, %v4685_v23  ;;  %v1959_v29 = vadd.f32 %v1792_v28, %v1417_v26  ;;  %v3615_v12 = vpop.f32.mrf.mxu3  ;;  %v3098_v26 = vld [vmem:[%s9141_s26 + $0x2be] sm:$0xff]  ;;  %v3099_v28 = vld [vmem:[%s9141_s26 + $0x2c6] sm:$0xff] }
 0x37a   : > { %v2326_v31 = vld [vmem:[#allocation2 + $0x200] sm:$0xff]  ;;  %v4522_v0 = vpop.f32.mrf.mxu0 }
 0x37b   : > { %v2868_v32 = vadd.f32 %v2700_v24, %v2326_v31  ;;  %2064 = vst.msk [vmem:[#allocation2 + $0x208] sm:$0xff] %vm176_vm2, %v1959_v29 }
 0x37c   : > { %v3235_v34 = vld [vmem:[#allocation2 + $0x1f8] sm:$0xff] }
 0x37d   : > { %v3777_v37 = vadd.f32 %v3607_v22, %v3235_v34  ;;  %2973 = vst.msk [vmem:[#allocation2 + $0x200] sm:$0xff] %vm176_vm2, %v2868_v32  ;;  %v3161_v34 = vpack.c.bf16 %v3099_v28, %v3098_v26 }
 0x37e   : > { %v4144_v15 = vld [vmem:[#allocation2 + $0x1f0] sm:$0xff] }
 0x37f   : > { %v4686_v42 = vadd.f32 %v4515_v13, %v4144_v15  ;;  %3882 = vst.msk [vmem:[#allocation2 + $0x1f8] sm:$0xff] %vm176_vm2, %v3777_v37  ;;  %v2702_v43 = vpop.f32.mrf.mxu2  ;;  %v1280_v15 = vld [vmem:[%s9141_s26 + $0x2b1] sm:$0xff] }
 0x380   : > { %v1795_v46 = vpop.f32.mrf.mxu1 }
 0x381   : > { %4791 = vst.msk [vmem:[#allocation2 + $0x1f0] sm:$0xff] %vm176_vm2, %v4686_v42  ;;  %v1960_v49 = vadd.f32 %v1795_v46, %v1418_v45  ;;  %v3617_v31 = vpop.f32.mrf.mxu3  ;;  %v1281_v42 = vld [vmem:[%s9141_s26 + $0x2b9] sm:$0xff] }
 0x382   : > { %v2327_v27 = vld [vmem:[#allocation2 + $0x208] sm:$0xff]  ;;  %v4525_v22 = vpop.f32.mrf.mxu0  ;;  %v2191_v45 = vld [vmem:[%s9141_s26 + $0x2ba] sm:$0xff] }
 0x383   : > { %v2869_v51 = vadd.f32 %v2702_v43, %v2327_v27  ;;  %2065 = vst.msk [vmem:[#allocation2 + $0x210] sm:$0xff] %vm176_vm2, %v1960_v49  ;;  %8663 = vmatmul.msk.bf16.gmra.mxu1 %vm547_vm1, %v1340_v44  ;;  %v2190_v43 = vld [vmem:[%s9141_s26 + $0x2b2] sm:$0xff]  ;;  %v4008_v46 = vld [vmem:[%s9141_s26 + $0x2bf] sm:$0xff] }
 0x384   : > { %v3236_v52 = vld [vmem:[#allocation2 + $0x200] sm:$0xff]  ;;  %8717 = vmatmul.msk.bf16.gmra.mxu2 %vm547_vm1, %v2250_v47  ;;  %v2252_v54 = vpack.c.bf16 %v2191_v45, %v2190_v43 }
 0x385   : > { %v3778_v55 = vadd.f32 %v3610_v41, %v3236_v52  ;;  %2974 = vst.msk [vmem:[#allocation2 + $0x208] sm:$0xff] %vm176_vm2, %v2869_v51  ;;  %8825 = vmatmul.msk.bf16.gmra.mxu0 %vm547_vm1, %v4070_v20  ;;  %v4009_v47 = vld [vmem:[%s9141_s26 + $0x2c7] sm:$0xff]  ;;  %v1342_v51 = vpack.c.bf16 %v1281_v42, %v1280_v15  ;;  %v1422_v52 = vld [vmem:[#allocation2 + $0x230] sm:$0xff] }
 0x386   : > { %v4145_v56 = vld [vmem:[#allocation2 + $0x1f8] sm:$0xff]  ;;  %8772 = vmatmul.msk.bf16.gmra.mxu3 %vm547_vm1, %v3161_v34  ;;  %v1425_v42 = vld [vmem:[#allocation2 + $0x248] sm:$0xff] }
 0x387   : > { %v4687_v58 = vadd.f32 %v4517_v30, %v4145_v56  ;;  %3883 = vst.msk [vmem:[#allocation2 + $0x200] sm:$0xff] %vm176_vm2, %v3778_v55  ;;  %v2705_v59 = vpop.f32.mrf.mxu2  ;;  %v4071_v55 = vpack.c.bf16 %v4009_v47, %v4008_v46 }
 0x388   : > { %v1797_v62 = vpop.f32.mrf.mxu1 }
 0x389   : > { %4792 = vst.msk [vmem:[#allocation2 + $0x1f8] sm:$0xff] %vm176_vm2, %v4687_v58  ;;  %v1961_v63 = vadd.f32 %v1797_v62, %v1419_v61  ;;  %v3620_v49 = vpop.f32.mrf.mxu3  ;;  %v3100_v61 = vld [vmem:[%s9141_s26 + $0x2ce] sm:$0xff]  ;;  %v3101_v62 = vld [vmem:[%s9141_s26 + $0x2d6] sm:$0xff] }
 0x38a   : > { %v2328_v1 = vld [vmem:[#allocation2 + $0x210] sm:$0xff]  ;;  %v4527_v38 = vpop.f32.mrf.mxu0 }
 0x38b   : > { %v2870_v2 = vadd.f32 %v2705_v59, %v2328_v1  ;;  %2066 = vst.msk [vmem:[#allocation2 + $0x218] sm:$0xff] %vm176_vm2, %v1961_v63 }
 0x38c   : > { %v3237_v4 = vld [vmem:[#allocation2 + $0x208] sm:$0xff] }
 0x38d   : > { %v3779_v7 = vadd.f32 %v3612_v57, %v3237_v4  ;;  %2975 = vst.msk [vmem:[#allocation2 + $0x210] sm:$0xff] %vm176_vm2, %v2870_v2  ;;  %v3162_v4 = vpack.c.bf16 %v3101_v62, %v3100_v61 }
 0x38e   : > { %v4146_v11 = vld [vmem:[#allocation2 + $0x200] sm:$0xff] }
 0x38f   : > { %v4688_v13 = vadd.f32 %v4520_v50, %v4146_v11  ;;  %3884 = vst.msk [vmem:[#allocation2 + $0x208] sm:$0xff] %vm176_vm2, %v3779_v7  ;;  %v2707_v16 = vpop.f32.mrf.mxu2  ;;  %v1282_v11 = vld [vmem:[%s9141_s26 + $0x2c1] sm:$0xff] }
 0x390   : > { %v1800_v18 = vpop.f32.mrf.mxu1 }
 0x391   : > { %4793 = vst.msk [vmem:[#allocation2 + $0x200] sm:$0xff] %vm176_vm2, %v4688_v13  ;;  %v1962_v21 = vadd.f32 %v1800_v18, %v1420_v14  ;;  %v3622_v1 = vpop.f32.mrf.mxu3  ;;  %v1283_v13 = vld [vmem:[%s9141_s26 + $0x2c9] sm:$0xff] }
 0x392   : > { %v2329_v23 = vld [vmem:[#allocation2 + $0x218] sm:$0xff]  ;;  %v4530_v57 = vpop.f32.mrf.mxu0  ;;  %v2193_v14 = vld [vmem:[%s9141_s26 + $0x2ca] sm:$0xff] }
 0x393   : > { %v2871_v24 = vadd.f32 %v2707_v16, %v2329_v23  ;;  %2067 = vst.msk [vmem:[#allocation2 + $0x220] sm:$0xff] %vm176_vm2, %v1962_v21  ;;  %8664 = vmatmul.msk.bf16.gmra.mxu1 %vm547_vm1, %v1341_v17  ;;  %v2192_v16 = vld [vmem:[%s9141_s26 + $0x2c2] sm:$0xff]  ;;  %v4010_v18 = vld [vmem:[%s9141_s26 + $0x2cf] sm:$0xff] }
 0x394   : > { %v3238_v25 = vld [vmem:[#allocation2 + $0x210] sm:$0xff]  ;;  %8718 = vmatmul.msk.bf16.gmra.mxu2 %vm547_vm1, %v2251_v19  ;;  %v2253_v28 = vpack.c.bf16 %v2193_v14, %v2192_v16 }
 0x395   : > { %v3780_v29 = vadd.f32 %v3615_v12, %v3238_v25  ;;  %2976 = vst.msk [vmem:[#allocation2 + $0x218] sm:$0xff] %vm176_vm2, %v2871_v24  ;;  %8826 = vmatmul.msk.bf16.gmra.mxu0 %vm547_vm1, %v4071_v55  ;;  %v4011_v19 = vld [vmem:[%s9141_s26 + $0x2d7] sm:$0xff]  ;;  %v1343_v24 = vpack.c.bf16 %v1283_v13, %v1282_v11  ;;  %v1424_v25 = vld [vmem:[#allocation2 + $0x240] sm:$0xff] }
 0x396   : > { %v4147_v30 = vld [vmem:[#allocation2 + $0x208] sm:$0xff]  ;;  %8773 = vmatmul.msk.bf16.gmra.mxu3 %vm547_vm1, %v3162_v4  ;;  %v1427_v13 = vld [vmem:[#allocation2 + $0x258] sm:$0xff] }
 0x397   : > { %v4689_v32 = vadd.f32 %v4522_v0, %v4147_v30  ;;  %3885 = vst.msk [vmem:[#allocation2 + $0x210] sm:$0xff] %vm176_vm2, %v3780_v29  ;;  %v2710_v33 = vpop.f32.mrf.mxu2  ;;  %v4072_v29 = vpack.c.bf16 %v4011_v19, %v4010_v18 }
 0x398   : > { %v1802_v36 = vpop.f32.mrf.mxu1 }
 0x399   : > { %4794 = vst.msk [vmem:[#allocation2 + $0x208] sm:$0xff] %vm176_vm2, %v4689_v32  ;;  %v1963_v37 = vadd.f32 %v1802_v36, %v1421_v35  ;;  %v3625_v21 = vpop.f32.mrf.mxu3  ;;  %v3102_v35 = vld [vmem:[%s9141_s26 + $0x2de] sm:$0xff]  ;;  %v3103_v36 = vld [vmem:[%s9141_s26 + $0x2e6] sm:$0xff] }
 0x39a   : > { %v2330_v39 = vld [vmem:[#allocation2 + $0x220] sm:$0xff]  ;;  %v4532_v8 = vpop.f32.mrf.mxu0 }
 0x39b   : > { %v2872_v40 = vadd.f32 %v2710_v33, %v2330_v39  ;;  %2068 = vst.msk [vmem:[#allocation2 + $0x228] sm:$0xff] %vm176_vm2, %v1963_v37 }
 0x39c   : > { %v3239_v41 = vld [vmem:[#allocation2 + $0x218] sm:$0xff] }
 0x39d   : > { %v3781_v44 = vadd.f32 %v3617_v31, %v3239_v41  ;;  %2977 = vst.msk [vmem:[#allocation2 + $0x220] sm:$0xff] %vm176_vm2, %v2872_v40  ;;  %v3163_v41 = vpack.c.bf16 %v3103_v36, %v3102_v35 }
 0x39e   : > { %v4148_v48 = vld [vmem:[#allocation2 + $0x210] sm:$0xff] }
 0x39f   : > { %v4690_v50 = vadd.f32 %v4525_v22, %v4148_v48  ;;  %3886 = vst.msk [vmem:[#allocation2 + $0x218] sm:$0xff] %vm176_vm2, %v3781_v44  ;;  %v2712_v27 = vpop.f32.mrf.mxu2  ;;  %v1284_v48 = vld [vmem:[%s9141_s26 + $0x2d1] sm:$0xff] }
 0x3a0   : > { %v1805_v53 = vpop.f32.mrf.mxu1 }
 0x3a1   : > { %4795 = vst.msk [vmem:[#allocation2 + $0x210] sm:$0xff] %vm176_vm2, %v4690_v50  ;;  %v1964_v56 = vadd.f32 %v1805_v53, %v1422_v52  ;;  %v3627_v39 = vpop.f32.mrf.mxu3  ;;  %v1285_v50 = vld [vmem:[%s9141_s26 + $0x2d9] sm:$0xff] }
 0x3a2   : > { %v2331_v58 = vld [vmem:[#allocation2 + $0x228] sm:$0xff]  ;;  %v4535_v31 = vpop.f32.mrf.mxu0  ;;  %v2195_v52 = vld [vmem:[%s9141_s26 + $0x2da] sm:$0xff] }
 0x3a3   : > { %v2873_v59 = vadd.f32 %v2712_v27, %v2331_v58  ;;  %2069 = vst.msk [vmem:[#allocation2 + $0x230] sm:$0xff] %vm176_vm2, %v1964_v56  ;;  %8665 = vmatmul.msk.bf16.gmra.mxu1 %vm547_vm1, %v1342_v51  ;;  %v2194_v27 = vld [vmem:[%s9141_s26 + $0x2d2] sm:$0xff]  ;;  %v4012_v53 = vld [vmem:[%s9141_s26 + $0x2df] sm:$0xff] }
 0x3a4   : > { %v3240_v60 = vld [vmem:[#allocation2 + $0x220] sm:$0xff]  ;;  %8719 = vmatmul.msk.bf16.gmra.mxu2 %vm547_vm1, %v2252_v54  ;;  %v2254_v62 = vpack.c.bf16 %v2195_v52, %v2194_v27 }
 0x3a5   : > { %v3782_v63 = vadd.f32 %v3620_v49, %v3240_v60  ;;  %2978 = vst.msk [vmem:[#allocation2 + $0x228] sm:$0xff] %vm176_vm2, %v2873_v59  ;;  %8827 = vmatmul.msk.bf16.gmra.mxu0 %vm547_vm1, %v4072_v29  ;;  %v4013_v54 = vld [vmem:[%s9141_s26 + $0x2e7] sm:$0xff]  ;;  %v1344_v59 = vpack.c.bf16 %v1285_v50, %v1284_v48  ;;  %v1426_v60 = vld [vmem:[#allocation2 + $0x250] sm:$0xff] }
 0x3a6   : > { %v4149_v0 = vld [vmem:[#allocation2 + $0x218] sm:$0xff]  ;;  %8774 = vmatmul.msk.bf16.gmra.mxu3 %vm547_vm1, %v3163_v41  ;;  %v1429_v50 = vld [vmem:[#allocation2 + $0x268] sm:$0xff] }
 0x3a7   : > { %v4691_v2 = vadd.f32 %v4527_v38, %v4149_v0  ;;  %3887 = vst.msk [vmem:[#allocation2 + $0x220] sm:$0xff] %vm176_vm2, %v3782_v63  ;;  %v2715_v3 = vpop.f32.mrf.mxu2  ;;  %v4073_v63 = vpack.c.bf16 %v4013_v54, %v4012_v53 }
 0x3a8   : > { %v1807_v6 = vpop.f32.mrf.mxu1 }
 0x3a9   : > { %4796 = vst.msk [vmem:[#allocation2 + $0x218] sm:$0xff] %vm176_vm2, %v4691_v2  ;;  %v1965_v7 = vadd.f32 %v1807_v6, %v1423_v5  ;;  %v3630_v56 = vpop.f32.mrf.mxu3  ;;  %v3104_v5 = vld [vmem:[%s9141_s26 + $0x2ee] sm:$0xff]  ;;  %v3105_v6 = vld [vmem:[%s9141_s26 + $0x2f6] sm:$0xff] }
 0x3aa   : > { %v2332_v9 = vld [vmem:[#allocation2 + $0x230] sm:$0xff]  ;;  %v4537_v45 = vpop.f32.mrf.mxu0 }
 0x3ab   : > { %v2874_v10 = vadd.f32 %v2715_v3, %v2332_v9  ;;  %2070 = vst.msk [vmem:[#allocation2 + $0x238] sm:$0xff] %vm176_vm2, %v1965_v7 }
 0x3ac   : > { %v3241_v12 = vld [vmem:[#allocation2 + $0x228] sm:$0xff] }
 0x3ad   : > { %v3783_v17 = vadd.f32 %v3622_v1, %v3241_v12  ;;  %2979 = vst.msk [vmem:[#allocation2 + $0x230] sm:$0xff] %vm176_vm2, %v2874_v10  ;;  %v3164_v12 = vpack.c.bf16 %v3105_v6, %v3104_v5 }
 0x3ae   : > { %v4150_v20 = vld [vmem:[#allocation2 + $0x220] sm:$0xff] }
 0x3af   : > { %v4692_v22 = vadd.f32 %v4530_v57, %v4150_v20  ;;  %3888 = vst.msk [vmem:[#allocation2 + $0x228] sm:$0xff] %vm176_vm2, %v3783_v17  ;;  %v2717_v23 = vpop.f32.mrf.mxu2  ;;  %v1286_v20 = vld [vmem:[%s9141_s26 + $0x2e1] sm:$0xff] }
 0x3b0   : > { %v1810_v26 = vpop.f32.mrf.mxu1 }
 0x3b1   : > { %4797 = vst.msk [vmem:[#allocation2 + $0x220] sm:$0xff] %vm176_vm2, %v4692_v22  ;;  %v1966_v30 = vadd.f32 %v1810_v26, %v1424_v25  ;;  %v3632_v9 = vpop.f32.mrf.mxu3  ;;  %v1287_v22 = vld [vmem:[%s9141_s26 + $0x2e9] sm:$0xff] }
 0x3b2   : > { %v2333_v32 = vld [vmem:[#allocation2 + $0x238] sm:$0xff]  ;;  %v4540_v1 = vpop.f32.mrf.mxu0  ;;  %v2197_v25 = vld [vmem:[%s9141_s26 + $0x2ea] sm:$0xff] }
 0x3b3   : > { %v2875_v33 = vadd.f32 %v2717_v23, %v2333_v32  ;;  %2071 = vst.msk [vmem:[#allocation2 + $0x240] sm:$0xff] %vm176_vm2, %v1966_v30  ;;  %8666 = vmatmul.msk.bf16.gmra.mxu1 %vm547_vm1, %v1343_v24  ;;  %v2196_v23 = vld [vmem:[%s9141_s26 + $0x2e2] sm:$0xff]  ;;  %v4014_v26 = vld [vmem:[%s9141_s26 + $0x2ef] sm:$0xff] }
 0x3b4   : > { %v3242_v34 = vld [vmem:[#allocation2 + $0x230] sm:$0xff]  ;;  %8720 = vmatmul.msk.bf16.gmra.mxu2 %vm547_vm1, %v2253_v28  ;;  %v2255_v36 = vpack.c.bf16 %v2197_v25, %v2196_v23 }
 0x3b5   : > { %v3784_v37 = vadd.f32 %v3625_v21, %v3242_v34  ;;  %2980 = vst.msk [vmem:[#allocation2 + $0x238] sm:$0xff] %vm176_vm2, %v2875_v33  ;;  %8828 = vmatmul.msk.bf16.gmra.mxu0 %vm547_vm1, %v4073_v63  ;;  %v4015_v28 = vld [vmem:[%s9141_s26 + $0x2f7] sm:$0xff]  ;;  %v1345_v33 = vpack.c.bf16 %v1287_v22, %v1286_v20  ;;  %v1428_v34 = vld [vmem:[#allocation2 + $0x260] sm:$0xff] }
 0x3b6   : > { %v4151_v38 = vld [vmem:[#allocation2 + $0x228] sm:$0xff]  ;;  %8775 = vmatmul.msk.bf16.gmra.mxu3 %vm547_vm1, %v3164_v12  ;;  %v1431_v22 = vld [vmem:[#allocation2 + $0x278] sm:$0xff] }
 0x3b7   : > { %v4693_v40 = vadd.f32 %v4532_v8, %v4151_v38  ;;  %3889 = vst.msk [vmem:[#allocation2 + $0x230] sm:$0xff] %vm176_vm2, %v3784_v37  ;;  %v2720_v15 = vpop.f32.mrf.mxu2  ;;  %v4074_v37 = vpack.c.bf16 %v4015_v28, %v4014_v26 }
 0x3b8   : > { %v1812_v43 = vpop.f32.mrf.mxu1 }
 0x3b9   : > { %4798 = vst.msk [vmem:[#allocation2 + $0x228] sm:$0xff] %vm176_vm2, %v4693_v40  ;;  %v1967_v44 = vadd.f32 %v1812_v43, %v1425_v42  ;;  %v3635_v30 = vpop.f32.mrf.mxu3  ;;  %v3106_v42 = vld [vmem:[%s9141_s26 + $0x2fe] sm:$0xff]  ;;  %v3107_v43 = vld [vmem:[%s9141_s26 + $0x306] sm:$0xff] }
 0x3ba   : > { %v2334_v46 = vld [vmem:[#allocation2 + $0x240] sm:$0xff]  ;;  %v4542_v14 = vpop.f32.mrf.mxu0 }
 0x3bb   : > { %v2876_v47 = vadd.f32 %v2720_v15, %v2334_v46  ;;  %2072 = vst.msk [vmem:[#allocation2 + $0x248] sm:$0xff] %vm176_vm2, %v1967_v44 }
 0x3bc   : > { %v3243_v49 = vld [vmem:[#allocation2 + $0x238] sm:$0xff] }
 0x3bd   : > { %v3785_v51 = vadd.f32 %v3627_v39, %v3243_v49  ;;  %2981 = vst.msk [vmem:[#allocation2 + $0x240] sm:$0xff] %vm176_vm2, %v2876_v47  ;;  %v3165_v49 = vpack.c.bf16 %v3107_v43, %v3106_v42 }
 0x3be   : > { %v4152_v55 = vld [vmem:[#allocation2 + $0x230] sm:$0xff] }
 0x3bf   : > { %v4694_v57 = vadd.f32 %v4535_v31, %v4152_v55  ;;  %3890 = vst.msk [vmem:[#allocation2 + $0x238] sm:$0xff] %vm176_vm2, %v3785_v51  ;;  %v2722_v58 = vpop.f32.mrf.mxu2  ;;  %v1288_v55 = vld [vmem:[%s9141_s26 + $0x2f1] sm:$0xff] }
 0x3c0   : > { %v1815_v61 = vpop.f32.mrf.mxu1 }
 0x3c1   : > { %4799 = vst.msk [vmem:[#allocation2 + $0x230] sm:$0xff] %vm176_vm2, %v4694_v57  ;;  %v1968_v0 = vadd.f32 %v1815_v61, %v1426_v60  ;;  %v3637_v46 = vpop.f32.mrf.mxu3  ;;  %v1289_v57 = vld [vmem:[%s9141_s26 + $0x2f9] sm:$0xff] }
 0x3c2   : > { %v2335_v2 = vld [vmem:[#allocation2 + $0x248] sm:$0xff]  ;;  %v4545_v39 = vpop.f32.mrf.mxu0  ;;  %v2199_v60 = vld [vmem:[%s9141_s26 + $0x2fa] sm:$0xff] }
 0x3c3   : > { %v2877_v3 = vadd.f32 %v2722_v58, %v2335_v2  ;;  %2073 = vst.msk [vmem:[#allocation2 + $0x250] sm:$0xff] %vm176_vm2, %v1968_v0  ;;  %8667 = vmatmul.msk.bf16.gmra.mxu1 %vm547_vm1, %v1344_v59  ;;  %v2198_v58 = vld [vmem:[%s9141_s26 + $0x2f2] sm:$0xff]  ;;  %v4016_v61 = vld [vmem:[%s9141_s26 + $0x2ff] sm:$0xff] }
 0x3c4   : > { %v3244_v4 = vld [vmem:[#allocation2 + $0x240] sm:$0xff]  ;;  %8721 = vmatmul.msk.bf16.gmra.mxu2 %vm547_vm1, %v2254_v62  ;;  %v2256_v6 = vpack.c.bf16 %v2199_v60, %v2198_v58 }
 0x3c5   : > { %v3786_v7 = vadd.f32 %v3630_v56, %v3244_v4  ;;  %2982 = vst.msk [vmem:[#allocation2 + $0x248] sm:$0xff] %vm176_vm2, %v2877_v3  ;;  %8829 = vmatmul.msk.bf16.gmra.mxu0 %vm547_vm1, %v4074_v37  ;;  %v4017_v62 = vld [vmem:[%s9141_s26 + $0x307] sm:$0xff]  ;;  %v1346_v3 = vpack.c.bf16 %v1289_v57, %v1288_v55  ;;  %v1430_v4 = vld [vmem:[#allocation2 + $0x270] sm:$0xff] }
 0x3c6   : > { %v4153_v8 = vld [vmem:[#allocation2 + $0x238] sm:$0xff]  ;;  %8776 = vmatmul.msk.bf16.gmra.mxu3 %vm547_vm1, %v3165_v49  ;;  %v1433_v57 = vld [vmem:[#allocation2 + $0x288] sm:$0xff] }
 0x3c7   : > { %v4695_v10 = vadd.f32 %v4537_v45, %v4153_v8  ;;  %3891 = vst.msk [vmem:[#allocation2 + $0x240] sm:$0xff] %vm176_vm2, %v3786_v7  ;;  %v2725_v11 = vpop.f32.mrf.mxu2  ;;  %v4075_v7 = vpack.c.bf16 %v4017_v62, %v4016_v61 }
 0x3c8   : > { %v1817_v16 = vpop.f32.mrf.mxu1 }
 0x3c9   : > { %4800 = vst.msk [vmem:[#allocation2 + $0x238] sm:$0xff] %vm176_vm2, %v4695_v10  ;;  %v1969_v17 = vadd.f32 %v1817_v16, %v1427_v13  ;;  %v3640_v0 = vpop.f32.mrf.mxu3  ;;  %v3108_v13 = vld [vmem:[%s9141_s26 + $0x30e] sm:$0xff]  ;;  %v3109_v16 = vld [vmem:[%s9141_s26 + $0x316] sm:$0xff] }
 0x3ca   : > { %v2336_v18 = vld [vmem:[#allocation2 + $0x250] sm:$0xff]  ;;  %v4547_v52 = vpop.f32.mrf.mxu0 }
 0x3cb   : > { %v2878_v19 = vadd.f32 %v2725_v11, %v2336_v18  ;;  %2074 = vst.msk [vmem:[#allocation2 + $0x258] sm:$0xff] %vm176_vm2, %v1969_v17 }
 0x3cc   : > { %v3245_v21 = vld [vmem:[#allocation2 + $0x248] sm:$0xff] }
 0x3cd   : > { %v3787_v24 = vadd.f32 %v3632_v9, %v3245_v21  ;;  %2983 = vst.msk [vmem:[#allocation2 + $0x250] sm:$0xff] %vm176_vm2, %v2878_v19  ;;  %v3166_v21 = vpack.c.bf16 %v3109_v16, %v3108_v13 }
 0x3ce   : > { %v4154_v29 = vld [vmem:[#allocation2 + $0x240] sm:$0xff] }
 0x3cf   : > { %v4696_v31 = vadd.f32 %v4540_v1, %v4154_v29  ;;  %3892 = vst.msk [vmem:[#allocation2 + $0x248] sm:$0xff] %vm176_vm2, %v3787_v24  ;;  %v2727_v32 = vpop.f32.mrf.mxu2  ;;  %v1290_v29 = vld [vmem:[%s9141_s26 + $0x301] sm:$0xff] }
 0x3d0   : > { %v1820_v35 = vpop.f32.mrf.mxu1 }
 0x3d1   : > { %4801 = vst.msk [vmem:[#allocation2 + $0x240] sm:$0xff] %vm176_vm2, %v4696_v31  ;;  %v1970_v38 = vadd.f32 %v1820_v35, %v1428_v34  ;;  %v3642_v18 = vpop.f32.mrf.mxu3  ;;  %v1291_v31 = vld [vmem:[%s9141_s26 + $0x309] sm:$0xff] }
 0x3d2   : > { %v2337_v40 = vld [vmem:[#allocation2 + $0x258] sm:$0xff]  ;;  %v4550_v9 = vpop.f32.mrf.mxu0  ;;  %v2201_v34 = vld [vmem:[%s9141_s26 + $0x30a] sm:$0xff] }
 0x3d3   : > { %v2879_v15 = vadd.f32 %v2727_v32, %v2337_v40  ;;  %2075 = vst.msk [vmem:[#allocation2 + $0x260] sm:$0xff] %vm176_vm2, %v1970_v38  ;;  %8668 = vmatmul.msk.bf16.gmra.mxu1 %vm547_vm1, %v1345_v33  ;;  %v2200_v32 = vld [vmem:[%s9141_s26 + $0x302] sm:$0xff]  ;;  %v4018_v35 = vld [vmem:[%s9141_s26 + $0x30f] sm:$0xff] }
 0x3d4   : > { %v3246_v41 = vld [vmem:[#allocation2 + $0x250] sm:$0xff]  ;;  %8722 = vmatmul.msk.bf16.gmra.mxu2 %vm547_vm1, %v2255_v36  ;;  %v2257_v43 = vpack.c.bf16 %v2201_v34, %v2200_v32 }
 0x3d5   : > { %v3788_v44 = vadd.f32 %v3635_v30, %v3246_v41  ;;  %2984 = vst.msk [vmem:[#allocation2 + $0x258] sm:$0xff] %vm176_vm2, %v2879_v15  ;;  %8830 = vmatmul.msk.bf16.gmra.mxu0 %vm547_vm1, %v4075_v7  ;;  %v4019_v36 = vld [vmem:[%s9141_s26 + $0x317] sm:$0xff]  ;;  %v1347_v15 = vpack.c.bf16 %v1291_v31, %v1290_v29  ;;  %v1432_v41 = vld [vmem:[#allocation2 + $0x280] sm:$0xff] }
 0x3d6   : > { %v4155_v45 = vld [vmem:[#allocation2 + $0x248] sm:$0xff]  ;;  %8777 = vmatmul.msk.bf16.gmra.mxu3 %vm547_vm1, %v3166_v21  ;;  %v1435_v31 = vld [vmem:[#allocation2 + $0x298] sm:$0xff] }
 0x3d7   : > { %v4697_v47 = vadd.f32 %v4542_v14, %v4155_v45  ;;  %3893 = vst.msk [vmem:[#allocation2 + $0x250] sm:$0xff] %vm176_vm2, %v3788_v44  ;;  %v2730_v48 = vpop.f32.mrf.mxu2  ;;  %v4076_v44 = vpack.c.bf16 %v4019_v36, %v4018_v35 }
 0x3d8   : > { %v1822_v27 = vpop.f32.mrf.mxu1 }
 0x3d9   : > { %4802 = vst.msk [vmem:[#allocation2 + $0x248] sm:$0xff] %vm176_vm2, %v4697_v47  ;;  %v1971_v51 = vadd.f32 %v1822_v27, %v1429_v50  ;;  %v3645_v38 = vpop.f32.mrf.mxu3  ;;  %v3110_v50 = vld [vmem:[%s9141_s26 + $0x31e] sm:$0xff]  ;;  %v3111_v27 = vld [vmem:[%s9141_s26 + $0x326] sm:$0xff] }
 0x3da   : > { %v2338_v53 = vld [vmem:[#allocation2 + $0x260] sm:$0xff]  ;;  %v4552_v25 = vpop.f32.mrf.mxu0 }
 0x3db   : > { %v2880_v54 = vadd.f32 %v2730_v48, %v2338_v53  ;;  %2076 = vst.msk [vmem:[#allocation2 + $0x268] sm:$0xff] %vm176_vm2, %v1971_v51 }
 0x3dc   : > { %v3247_v56 = vld [vmem:[#allocation2 + $0x258] sm:$0xff] }
 0x3dd   : > { %v3789_v59 = vadd.f32 %v3637_v46, %v3247_v56  ;;  %2985 = vst.msk [vmem:[#allocation2 + $0x260] sm:$0xff] %vm176_vm2, %v2880_v54  ;;  %v3167_v56 = vpack.c.bf16 %v3111_v27, %v3110_v50 }
 0x3de   : > { %v4156_v63 = vld [vmem:[#allocation2 + $0x250] sm:$0xff] }
 0x3df   : > { %v4698_v1 = vadd.f32 %v4545_v39, %v4156_v63  ;;  %3894 = vst.msk [vmem:[#allocation2 + $0x258] sm:$0xff] %vm176_vm2, %v3789_v59  ;;  %v2732_v2 = vpop.f32.mrf.mxu2  ;;  %v1292_v63 = vld [vmem:[%s9141_s26 + $0x311] sm:$0xff] }
 0x3e0   : > { %v1825_v5 = vpop.f32.mrf.mxu1 }
 0x3e1   : > { %4803 = vst.msk [vmem:[#allocation2 + $0x250] sm:$0xff] %vm176_vm2, %v4698_v1  ;;  %v1972_v8 = vadd.f32 %v1825_v5, %v1430_v4  ;;  %v3647_v53 = vpop.f32.mrf.mxu3  ;;  %v1293_v1 = vld [vmem:[%s9141_s26 + $0x319] sm:$0xff] }
 0x3e2   : > { %v2339_v10 = vld [vmem:[#allocation2 + $0x268] sm:$0xff]  ;;  %v4555_v46 = vpop.f32.mrf.mxu0  ;;  %v2203_v4 = vld [vmem:[%s9141_s26 + $0x31a] sm:$0xff] }
 0x3e3   : > { %v2881_v11 = vadd.f32 %v2732_v2, %v2339_v10  ;;  %2077 = vst.msk [vmem:[#allocation2 + $0x270] sm:$0xff] %vm176_vm2, %v1972_v8  ;;  %8669 = vmatmul.msk.bf16.gmra.mxu1 %vm547_vm1, %v1346_v3  ;;  %v2202_v2 = vld [vmem:[%s9141_s26 + $0x312] sm:$0xff]  ;;  %v4020_v5 = vld [vmem:[%s9141_s26 + $0x31f] sm:$0xff] }
 0x3e4   : > { %v3248_v12 = vld [vmem:[#allocation2 + $0x260] sm:$0xff]  ;;  %8723 = vmatmul.msk.bf16.gmra.mxu2 %vm547_vm1, %v2256_v6  ;;  %v2258_v16 = vpack.c.bf16 %v2203_v4, %v2202_v2 }
 0x3e5   : > { %v3790_v17 = vadd.f32 %v3640_v0, %v3248_v12  ;;  %2986 = vst.msk [vmem:[#allocation2 + $0x268] sm:$0xff] %vm176_vm2, %v2881_v11  ;;  %8831 = vmatmul.msk.bf16.gmra.mxu0 %vm547_vm1, %v4076_v44  ;;  %v4021_v6 = vld [vmem:[%s9141_s26 + $0x327] sm:$0xff]  ;;  %v1348_v11 = vpack.c.bf16 %v1293_v1, %v1292_v63  ;;  %v1434_v12 = vld [vmem:[#allocation2 + $0x290] sm:$0xff] }
 0x3e6   : > { %v4157_v14 = vld [vmem:[#allocation2 + $0x258] sm:$0xff]  ;;  %8778 = vmatmul.msk.bf16.gmra.mxu3 %vm547_vm1, %v3167_v56  ;;  %v1437_v1 = vld [vmem:[#allocation2 + $0x2a8] sm:$0xff] }
 0x3e7   : > { %v4699_v19 = vadd.f32 %v4547_v52, %v4157_v14  ;;  %3895 = vst.msk [vmem:[#allocation2 + $0x260] sm:$0xff] %vm176_vm2, %v3790_v17  ;;  %v2735_v20 = vpop.f32.mrf.mxu2  ;;  %v4077_v17 = vpack.c.bf16 %v4021_v6, %v4020_v5 }
 0x3e8   : > { %v1827_v23 = vpop.f32.mrf.mxu1 }
 0x3e9   : > { %4804 = vst.msk [vmem:[#allocation2 + $0x258] sm:$0xff] %vm176_vm2, %v4699_v19  ;;  %v1973_v24 = vadd.f32 %v1827_v23, %v1431_v22  ;;  %v3650_v8 = vpop.f32.mrf.mxu3  ;;  %v3112_v22 = vld [vmem:[%s9141_s26 + $0x32e] sm:$0xff]  ;;  %v3113_v23 = vld [vmem:[%s9141_s26 + $0x336] sm:$0xff] }
 0x3ea   : > { %v2340_v26 = vld [vmem:[#allocation2 + $0x270] sm:$0xff]  ;;  %v4557_v60 = vpop.f32.mrf.mxu0 }
 0x3eb   : > { %v2882_v28 = vadd.f32 %v2735_v20, %v2340_v26  ;;  %2078 = vst.msk [vmem:[#allocation2 + $0x278] sm:$0xff] %vm176_vm2, %v1973_v24 }
 0x3ec   : > { %v3249_v30 = vld [vmem:[#allocation2 + $0x268] sm:$0xff] }
 0x3ed   : > { %v3791_v33 = vadd.f32 %v3642_v18, %v3249_v30  ;;  %2987 = vst.msk [vmem:[#allocation2 + $0x270] sm:$0xff] %vm176_vm2, %v2882_v28  ;;  %v3168_v30 = vpack.c.bf16 %v3113_v23, %v3112_v22 }
 0x3ee   : > { %v4158_v37 = vld [vmem:[#allocation2 + $0x260] sm:$0xff] }
 0x3ef   : > { %v4700_v39 = vadd.f32 %v4550_v9, %v4158_v37  ;;  %3896 = vst.msk [vmem:[#allocation2 + $0x268] sm:$0xff] %vm176_vm2, %v3791_v33  ;;  %v2737_v40 = vpop.f32.mrf.mxu2  ;;  %v1294_v37 = vld [vmem:[%s9141_s26 + $0x321] sm:$0xff] }
 0x3f0   : > { %v1830_v42 = vpop.f32.mrf.mxu1 }
 0x3f1   : > { %4805 = vst.msk [vmem:[#allocation2 + $0x260] sm:$0xff] %vm176_vm2, %v4700_v39  ;;  %v1974_v45 = vadd.f32 %v1830_v42, %v1432_v41  ;;  %v3652_v26 = vpop.f32.mrf.mxu3  ;;  %v1295_v39 = vld [vmem:[%s9141_s26 + $0x329] sm:$0xff] }
 0x3f2   : > { %v2341_v47 = vld [vmem:[#allocation2 + $0x278] sm:$0xff]  ;;  %v4560_v18 = vpop.f32.mrf.mxu0  ;;  %v2205_v41 = vld [vmem:[%s9141_s26 + $0x32a] sm:$0xff] }
 0x3f3   : > { %v2883_v48 = vadd.f32 %v2737_v40, %v2341_v47  ;;  %2079 = vst.msk [vmem:[#allocation2 + $0x280] sm:$0xff] %vm176_vm2, %v1974_v45  ;;  %8670 = vmatmul.msk.bf16.gmra.mxu1 %vm547_vm1, %v1347_v15  ;;  %v2204_v40 = vld [vmem:[%s9141_s26 + $0x322] sm:$0xff]  ;;  %v4022_v42 = vld [vmem:[%s9141_s26 + $0x32f] sm:$0xff] }
 0x3f4   : > { %v3250_v49 = vld [vmem:[#allocation2 + $0x270] sm:$0xff]  ;;  %8724 = vmatmul.msk.bf16.gmra.mxu2 %vm547_vm1, %v2257_v43  ;;  %v2259_v27 = vpack.c.bf16 %v2205_v41, %v2204_v40 }
 0x3f5   : > { %v3792_v51 = vadd.f32 %v3645_v38, %v3250_v49  ;;  %2988 = vst.msk [vmem:[#allocation2 + $0x278] sm:$0xff] %vm176_vm2, %v2883_v48  ;;  %8832 = vmatmul.msk.bf16.gmra.mxu0 %vm547_vm1, %v4077_v17  ;;  %v4023_v43 = vld [vmem:[%s9141_s26 + $0x337] sm:$0xff]  ;;  %v1349_v48 = vpack.c.bf16 %v1295_v39, %v1294_v37  ;;  %v1436_v49 = vld [vmem:[#allocation2 + $0x2a0] sm:$0xff] }
 0x3f6   : > { %v4159_v52 = vld [vmem:[#allocation2 + $0x268] sm:$0xff]  ;;  %8779 = vmatmul.msk.bf16.gmra.mxu3 %vm547_vm1, %v3168_v30  ;;  %v1439_v39 = vld [vmem:[#allocation2 + $0x2b8] sm:$0xff] }
 0x3f7   : > { %v4701_v54 = vadd.f32 %v4552_v25, %v4159_v52  ;;  %3897 = vst.msk [vmem:[#allocation2 + $0x270] sm:$0xff] %vm176_vm2, %v3792_v51  ;;  %v2740_v55 = vpop.f32.mrf.mxu2  ;;  %v4078_v51 = vpack.c.bf16 %v4023_v43, %v4022_v42 }
 0x3f8   : > { %v1832_v58 = vpop.f32.mrf.mxu1 }
 0x3f9   : > { %4806 = vst.msk [vmem:[#allocation2 + $0x268] sm:$0xff] %vm176_vm2, %v4701_v54  ;;  %v1975_v59 = vadd.f32 %v1832_v58, %v1433_v57  ;;  %v3655_v45 = vpop.f32.mrf.mxu3  ;;  %v3114_v57 = vld [vmem:[%s9141_s26 + $0x33e] sm:$0xff]  ;;  %v3115_v58 = vld [vmem:[%s9141_s26 + $0x346] sm:$0xff] }
 0x3fa   : > { %v2342_v61 = vld [vmem:[#allocation2 + $0x280] sm:$0xff]  ;;  %v4562_v34 = vpop.f32.mrf.mxu0 }
 0x3fb   : > { %v2884_v62 = vadd.f32 %v2740_v55, %v2342_v61  ;;  %2080 = vst.msk [vmem:[#allocation2 + $0x288] sm:$0xff] %vm176_vm2, %v1975_v59 }
 0x3fc   : > { %v3251_v0 = vld [vmem:[#allocation2 + $0x278] sm:$0xff] }
 0x3fd   : > { %v3793_v3 = vadd.f32 %v3647_v53, %v3251_v0  ;;  %2989 = vst.msk [vmem:[#allocation2 + $0x280] sm:$0xff] %vm176_vm2, %v2884_v62  ;;  %v3169_v0 = vpack.c.bf16 %v3115_v58, %v3114_v57 }
 0x3fe   : > { %v4160_v7 = vld [vmem:[#allocation2 + $0x270] sm:$0xff] }
 0x3ff   : > { %v4702_v9 = vadd.f32 %v4555_v46, %v4160_v7  ;;  %3898 = vst.msk [vmem:[#allocation2 + $0x278] sm:$0xff] %vm176_vm2, %v3793_v3  ;;  %v2742_v10 = vpop.f32.mrf.mxu2  ;;  %v1296_v7 = vld [vmem:[%s9141_s26 + $0x331] sm:$0xff] }
 0x400   : > { %v1835_v13 = vpop.f32.mrf.mxu1 }
 0x401   : > { %4807 = vst.msk [vmem:[#allocation2 + $0x270] sm:$0xff] %vm176_vm2, %v4702_v9  ;;  %v1976_v14 = vadd.f32 %v1835_v13, %v1434_v12  ;;  %v3657_v61 = vpop.f32.mrf.mxu3  ;;  %v1297_v9 = vld [vmem:[%s9141_s26 + $0x339] sm:$0xff] }
 0x402   : > { %v2343_v19 = vld [vmem:[#allocation2 + $0x288] sm:$0xff]  ;;  %v4565_v53 = vpop.f32.mrf.mxu0  ;;  %v2207_v12 = vld [vmem:[%s9141_s26 + $0x33a] sm:$0xff] }
 0x403   : > { %v2885_v20 = vadd.f32 %v2742_v10, %v2343_v19  ;;  %2081 = vst.msk [vmem:[#allocation2 + $0x290] sm:$0xff] %vm176_vm2, %v1976_v14  ;;  %8671 = vmatmul.msk.bf16.gmra.mxu1 %vm547_vm1, %v1348_v11  ;;  %v2206_v10 = vld [vmem:[%s9141_s26 + $0x332] sm:$0xff]  ;;  %v4024_v13 = vld [vmem:[%s9141_s26 + $0x33f] sm:$0xff] }
 0x404   : > { %v3252_v21 = vld [vmem:[#allocation2 + $0x280] sm:$0xff]  ;;  %8725 = vmatmul.msk.bf16.gmra.mxu2 %vm547_vm1, %v2258_v16  ;;  %v2260_v23 = vpack.c.bf16 %v2207_v12, %v2206_v10 }
 0x405   : > { %v3794_v24 = vadd.f32 %v3650_v8, %v3252_v21  ;;  %2990 = vst.msk [vmem:[#allocation2 + $0x288] sm:$0xff] %vm176_vm2, %v2885_v20  ;;  %8833 = vmatmul.msk.bf16.gmra.mxu0 %vm547_vm1, %v4078_v51  ;;  %v4025_v16 = vld [vmem:[%s9141_s26 + $0x347] sm:$0xff]  ;;  %v1350_v20 = vpack.c.bf16 %v1297_v9, %v1296_v7  ;;  %v1438_v21 = vld [vmem:[#allocation2 + $0x2b0] sm:$0xff] }
 0x406   : > { %v4161_v25 = vld [vmem:[#allocation2 + $0x278] sm:$0xff]  ;;  %8780 = vmatmul.msk.bf16.gmra.mxu3 %vm547_vm1, %v3169_v0 }
 0x407   : > { %v4703_v28 = vadd.f32 %v4557_v60, %v4161_v25  ;;  %3899 = vst.msk [vmem:[#allocation2 + $0x280] sm:$0xff] %vm176_vm2, %v3794_v24  ;;  %v2745_v29 = vpop.f32.mrf.mxu2  ;;  %v4079_v24 = vpack.c.bf16 %v4025_v16, %v4024_v13  ;;  %v4834_v13 = vld [vmem:[%s9141_s26 + $0x20] sm:$0xff]  ;;  %v4835_v16 = vld [vmem:[%s9141_s26 + $0x28] sm:$0xff] }
 0x408   : > { %v1837_v32 = vpop.f32.mrf.mxu1 }
 0x409   : > { %4808 = vst.msk [vmem:[#allocation2 + $0x278] sm:$0xff] %vm176_vm2, %v4703_v28  ;;  %v1977_v33 = vadd.f32 %v1837_v32, %v1435_v31  ;;  %v3660_v14 = vpop.f32.mrf.mxu3  ;;  %v3116_v31 = vld [vmem:[%s9141_s26 + $0x34e] sm:$0xff]  ;;  %v3117_v32 = vld [vmem:[%s9141_s26 + $0x356] sm:$0xff] }
 0x40a   : > { %v2344_v35 = vld [vmem:[#allocation2 + $0x290] sm:$0xff]  ;;  %v4567_v4 = vpop.f32.mrf.mxu0 }
 0x40b   : > { %v2886_v36 = vadd.f32 %v2745_v29, %v2344_v35  ;;  %2082 = vst.msk [vmem:[#allocation2 + $0x298] sm:$0xff] %vm176_vm2, %v1977_v33 }
 0x40c   : > { %v3253_v38 = vld [vmem:[#allocation2 + $0x288] sm:$0xff] }
 0x40d   : > { %v3795_v15 = vadd.f32 %v3652_v26, %v3253_v38  ;;  %2991 = vst.msk [vmem:[#allocation2 + $0x290] sm:$0xff] %vm176_vm2, %v2886_v36  ;;  %v3170_v38 = vpack.c.bf16 %v3117_v32, %v3116_v31 }
 0x40e   : > { %v4162_v44 = vld [vmem:[#allocation2 + $0x280] sm:$0xff] }
 0x40f   : > { %v4704_v46 = vadd.f32 %v4560_v18, %v4162_v44  ;;  %3900 = vst.msk [vmem:[#allocation2 + $0x288] sm:$0xff] %vm176_vm2, %v3795_v15  ;;  %v2747_v47 = vpop.f32.mrf.mxu2 }
 0x410   : > { %v1840_v50 = vpop.f32.mrf.mxu1 }
 0x411   : > { %4809 = vst.msk [vmem:[#allocation2 + $0x280] sm:$0xff] %vm176_vm2, %v4704_v46  ;;  %v1978_v52 = vadd.f32 %v1840_v50, %v1436_v49  ;;  %v3662_v35 = vpop.f32.mrf.mxu3  ;;  %v4027_v49 = vld [vmem:[%s9141_s26 + $0x357] sm:$0xff] }
 0x412   : > { %v2345_v54 = vld [vmem:[#allocation2 + $0x298] sm:$0xff]  ;;  %v4570_v26 = vpop.f32.mrf.mxu0 }
 0x413   : > { %v2887_v55 = vadd.f32 %v2747_v47, %v2345_v54  ;;  %2083 = vst.msk [vmem:[#allocation2 + $0x2a0] sm:$0xff] %vm176_vm2, %v1978_v52  ;;  %8672 = vmatmul.msk.bf16.gmra.mxu1 %vm547_vm1, %v1349_v48  ;;  %v2208_v47 = vld [vmem:[%s9141_s26 + $0x342] sm:$0x3f]  ;;  %v4026_v48 = vld [vmem:[%s9141_s26 + $0x34f] sm:$0xff] }
 0x414   : > { %v3254_v56 = vld [vmem:[#allocation2 + $0x290] sm:$0xff]  ;;  %8726 = vmatmul.msk.bf16.gmra.mxu2 %vm547_vm1, %v2259_v27  ;;  %v1440_v54 = vld [vmem:[#allocation2 + $0x2c0] sm:$0xff]  ;;  %v4080_v57 = vpack.c.bf16 %v4027_v49, %v4026_v48 }
 0x415   : > { %v3796_v59 = vadd.f32 %v3655_v45, %v3254_v56  ;;  %2992 = vst.msk [vmem:[#allocation2 + $0x298] sm:$0xff] %vm176_vm2, %v2887_v55  ;;  %8834 = vmatmul.msk.bf16.gmra.mxu0 %vm547_vm1, %v4079_v24  ;;  %v1298_v45 = vld [vmem:[%s9141_s26 + $0x341] sm:$0x3f]  ;;  %v2261_v56 = vpack.c.bf16 %v2208_v47, %v2208_v47  ;;  %v4939_v24 = vpack.c.bf16 %v4835_v16, %v4834_v13  ;;  %v4836_v48 = vld [vmem:[%s9141_s26 + $0x30] sm:$0xff]  ;;  %v1445_v13 = vld [vmem:[#allocation2 + $0x2e8] sm:$0xff] }
 0x416   : > { %v4163_v60 = vld [vmem:[#allocation2 + $0x288] sm:$0xff]  ;;  %8781 = vmatmul.msk.bf16.gmra.mxu3 %vm547_vm1, %v3170_v38 }
 0x417   : > { %v4705_v62 = vadd.f32 %v4562_v34, %v4163_v60  ;;  %3901 = vst.msk [vmem:[#allocation2 + $0x290] sm:$0xff] %vm176_vm2, %v3796_v59  ;;  %v2750_v63 = vpop.f32.mrf.mxu2 }
 0x418   : > { %v1842_v2 = vpop.f32.mrf.mxu1 }
 0x419   : > { %4810 = vst.msk [vmem:[#allocation2 + $0x288] sm:$0xff] %vm176_vm2, %v4705_v62  ;;  %v1979_v3 = vadd.f32 %v1842_v2, %v1437_v1  ;;  %v3665_v27 = vpop.f32.mrf.mxu3 }
 0x41a   : > { %v2346_v5 = vld [vmem:[#allocation2 + $0x2a0] sm:$0xff]  ;;  %v4572_v41 = vpop.f32.mrf.mxu0 }
 0x41b   : > { %v2888_v6 = vadd.f32 %v2750_v63, %v2346_v5  ;;  %2084 = vst.msk [vmem:[#allocation2 + $0x2a8] sm:$0xff] %vm176_vm2, %v1979_v3  ;;  %v3118_v63 = vld [vmem:[%s9141_s26 + $0x35e] sm:$0x3f] }
 0x41c   : > { %v3255_v8 = vld [vmem:[#allocation2 + $0x298] sm:$0xff]  ;;  %v3171_v5 = vpack.c.bf16 %v3118_v63, %v3118_v63 }
 0x41d   : > { %v3797_v11 = vadd.f32 %v3657_v61, %v3255_v8  ;;  %2993 = vst.msk [vmem:[#allocation2 + $0x2a0] sm:$0xff] %vm176_vm2, %v2888_v6  ;;  %v1441_v6 = vld [vmem:[#allocation2 + $0x2c8] sm:$0xff] }
 0x41e   : > { %v4164_v17 = vld [vmem:[#allocation2 + $0x290] sm:$0xff] }
 0x41f   : > { %v4706_v18 = vadd.f32 %v4565_v53, %v4164_v17  ;;  %3902 = vst.msk [vmem:[#allocation2 + $0x298] sm:$0xff] %vm176_vm2, %v3797_v11  ;;  %v2752_v19 = vpop.f32.mrf.mxu2  ;;  %v1351_v53 = vpack.c.bf16 %v1298_v45, %v1298_v45 }
 0x420   : > { %v1845_v22 = vpop.f32.mrf.mxu1 }
 0x421   : > { %4811 = vst.msk [vmem:[#allocation2 + $0x290] sm:$0xff] %vm176_vm2, %v4706_v18  ;;  %v1980_v25 = vadd.f32 %v1845_v22, %v1438_v21  ;;  %v3667_v2 = vpop.f32.mrf.mxu3  ;;  %v5745_v18 = vld [vmem:[%s9141_s26 + $0x44] sm:$0xff] }
 0x422   : > { %v2347_v28 = vld [vmem:[#allocation2 + $0x2a8] sm:$0xff]  ;;  %v4575_v59 = vpop.f32.mrf.mxu0 }
 0x423   : > { %v2889_v29 = vadd.f32 %v2752_v19, %v2347_v28  ;;  %2085 = vst.msk [vmem:[#allocation2 + $0x2b0] sm:$0xff] %vm176_vm2, %v1980_v25  ;;  %8673 = vmatmul.msk.bf16.gmra.mxu1 %vm547_vm1, %v1350_v20  ;;  %v4028_v19 = vld [vmem:[%s9141_s26 + $0x35f] sm:$0x3f]  ;;  %v1442_v25 = vld [vmem:[#allocation2 + $0x2d0] sm:$0xff] }
 0x424   : > { %v3256_v30 = vld [vmem:[#allocation2 + $0x2a0] sm:$0xff]  ;;  %8727 = vmatmul.msk.bf16.gmra.mxu2 %vm547_vm1, %v2260_v23 }
 0x425   : > { %v3798_v33 = vadd.f32 %v3660_v14, %v3256_v30  ;;  %2994 = vst.msk [vmem:[#allocation2 + $0x2a8] sm:$0xff] %vm176_vm2, %v2889_v29  ;;  %8835 = vmatmul.msk.bf16.gmra.mxu0 %vm547_vm1, %v4080_v57  ;;  %v5744_v14 = vld [vmem:[%s9141_s26 + $0x3c] sm:$0xff]  ;;  %v4081_v29 = vpack.c.bf16 %v4028_v19, %v4028_v19 }
 0x426   : > { %v4165_v34 = vld [vmem:[#allocation2 + $0x298] sm:$0xff]  ;;  %8782 = vmatmul.msk.bf16.gmra.mxu3 %vm547_vm1, %v3171_v5  ;;  %v5849_v28 = vpack.c.bf16 %v5745_v18, %v5744_v14  ;;  %v6656_v5 = vld [vmem:[%s9141_s26 + $0x4d] sm:$0xff] }
 0x427   : > { %v4707_v36 = vadd.f32 %v4567_v4, %v4165_v34  ;;  %3903 = vst.msk [vmem:[#allocation2 + $0x2a0] sm:$0xff] %vm176_vm2, %v3798_v33  ;;  %v2755_v37 = vpop.f32.mrf.mxu2 }
 0x428   : > { %v1847_v40 = vpop.f32.mrf.mxu1 }
 0x429   : > { %4812 = vst.msk [vmem:[#allocation2 + $0x298] sm:$0xff] %vm176_vm2, %v4707_v36  ;;  %v1981_v15 = vadd.f32 %v1847_v40, %v1439_v39  ;;  %v3670_v21 = vpop.f32.mrf.mxu3  ;;  %v6655_v36 = vld [vmem:[%s9141_s26 + $0x45] sm:$0xff] }
 0x42a   : > { %v2348_v42 = vld [vmem:[#allocation2 + $0x2b0] sm:$0xff]  ;;  %v4577_v9 = vpop.f32.mrf.mxu0 }
 0x42b   : > { %v2890_v43 = vadd.f32 %v2755_v37, %v2348_v42  ;;  %2086 = vst.msk [vmem:[#allocation2 + $0x2b8] sm:$0xff] %vm176_vm2, %v1981_v15  ;;  %v1443_v42 = vld [vmem:[#allocation2 + $0x2d8] sm:$0xff] }
 0x42c   : > { %v3257_v44 = vld [vmem:[#allocation2 + $0x2a8] sm:$0xff] }
 0x42d   : > { %v3799_v46 = vadd.f32 %v3662_v35, %v3257_v44  ;;  %2995 = vst.msk [vmem:[#allocation2 + $0x2b0] sm:$0xff] %vm176_vm2, %v2890_v43  ;;  %v6654_v35 = vld [vmem:[%s9141_s26 + $0x3d] sm:$0xff] }
 0x42e   : > { %v4166_v50 = vld [vmem:[#allocation2 + $0x2a0] sm:$0xff] }
 0x42f   : > { %v4708_v51 = vadd.f32 %v4570_v26, %v4166_v50  ;;  %3904 = vst.msk [vmem:[#allocation2 + $0x2a8] sm:$0xff] %vm176_vm2, %v3799_v46  ;;  %v2757_v52 = vpop.f32.mrf.mxu2  ;;  %v4837_v50 = vld [vmem:[%s9141_s26 + $0x38] sm:$0xff] }
 0x430   : > { %v1850_v55 = vpop.f32.mrf.mxu1 }
 0x431   : > { %4813 = vst.msk [vmem:[#allocation2 + $0x2a0] sm:$0xff] %vm176_vm2, %v4708_v51  ;;  %v1982_v58 = vadd.f32 %v1850_v55, %v1440_v54  ;;  %v3672_v39 = vpop.f32.mrf.mxu3  ;;  %v7565_v54 = vld [vmem:[%s9141_s26 + $0x46] sm:$0xff] }
 0x432   : > { %v2349_v60 = vld [vmem:[#allocation2 + $0x2b8] sm:$0xff]  ;;  %v4580_v31 = vpop.f32.mrf.mxu0 }
 0x433   : > { %v2891_v61 = vadd.f32 %v2757_v52, %v2349_v60  ;;  %2087 = vst.msk [vmem:[#allocation2 + $0x2c0] sm:$0xff] %vm176_vm2, %v1982_v58  ;;  %8674 = vmatmul.msk.bf16.gmra.mxu1 %vm547_vm1, %v1351_v53  ;;  %v5747_v52 = vld [vmem:[%s9141_s26 + $0x54] sm:$0xff]  ;;  %v7564_v53 = vld [vmem:[%s9141_s26 + $0x3e] sm:$0xff] }
 0x434   : > { %v3258_v62 = vld [vmem:[#allocation2 + $0x2b0] sm:$0xff]  ;;  %8728 = vmatmul.msk.bf16.gmra.mxu2 %vm547_vm1, %v2261_v56  ;;  %v1444_v60 = vld [vmem:[#allocation2 + $0x2e0] sm:$0xff]  ;;  %v7669_v63 = vpack.c.bf16 %v7565_v54, %v7564_v53 }
 0x435   : > { %v3800_v0 = vadd.f32 %v3665_v27, %v3258_v62  ;;  %2996 = vst.msk [vmem:[#allocation2 + $0x2b8] sm:$0xff] %vm176_vm2, %v2891_v61  ;;  %8836 = vmatmul.msk.bf16.gmra.mxu0 %vm547_vm1, %v4081_v29  ;;  %v5746_v27 = vld [vmem:[%s9141_s26 + $0x4c] sm:$0xff] }
 0x436   : > { %v4167_v1 = vld [vmem:[#allocation2 + $0x2a8] sm:$0xff]  ;;  %v5850_v62 = vpack.c.bf16 %v5747_v52, %v5746_v27 }
 0x437   : > { %v4709_v3 = vadd.f32 %v4572_v41, %v4167_v1  ;;  %3905 = vst.msk [vmem:[#allocation2 + $0x2b0] sm:$0xff] %vm176_vm2, %v3800_v0  ;;  %v2760_v4 = vpop.f32.mrf.mxu2  ;;  %v6759_v41 = vpack.c.bf16 %v6655_v36, %v6654_v35 }
 0x438   : > { %v1852_v7 = vpop.f32.mrf.mxu1 }
 0x439   : > { %4814 = vst.msk [vmem:[#allocation2 + $0x2a8] sm:$0xff] %vm176_vm2, %v4709_v3  ;;  %v1983_v8 = vadd.f32 %v1852_v7, %v1441_v6  ;;  %8946 = vmatmul.msk.bf16.vlgmr.msra.gmra.mxu3 %vm547_vm1, %v6759_v41  ;;  %v3675_v56 = vpop.f32.mrf.mxu3  ;;  %v6657_v6 = vld [vmem:[%s9141_s26 + $0x55] sm:$0xff] }
 0x43a   : > { %v2350_v10 = vld [vmem:[#allocation2 + $0x2c0] sm:$0xff]  ;;  %v4582_v45 = vpop.f32.mrf.mxu0 }
 0x43b   : > { %v2892_v11 = vadd.f32 %v2760_v4, %v2350_v10  ;;  %2088 = vst.msk [vmem:[#allocation2 + $0x2c8] sm:$0xff] %vm176_vm2, %v1983_v8 }
 0x43c   : > { %v3259_v12 = vld [vmem:[#allocation2 + $0x2b8] sm:$0xff] }
 0x43d   : > { %v3801_v17 = vadd.f32 %v3667_v2, %v3259_v12  ;;  %2997 = vst.msk [vmem:[#allocation2 + $0x2c0] sm:$0xff] %vm176_vm2, %v2892_v11  ;;  %v6760_v12 = vpack.c.bf16 %v6657_v6, %v6656_v5 }
 0x43e   : > { %v4168_v20 = vld [vmem:[#allocation2 + $0x2b0] sm:$0xff] }
 0x43f   : > { %v4710_v22 = vadd.f32 %v4575_v59, %v4168_v20  ;;  %3906 = vst.msk [vmem:[#allocation2 + $0x2b8] sm:$0xff] %vm176_vm2, %v3801_v17  ;;  %v2762_v23 = vpop.f32.mrf.mxu2  ;;  %v4940_v59 = vpack.c.bf16 %v4837_v50, %v4836_v48  ;;  %v4838_v20 = vld [vmem:[%s9141_s26 + $0x40] sm:$0xff]  ;;  %v1447_v50 = vld [vmem:[#allocation2 + $0x2f8] sm:$0xff] }
 0x440   : > { %v1855_v26 = vpop.f32.mrf.mxu1 }
 0x441   : > { %4815 = vst.msk [vmem:[#allocation2 + $0x2b0] sm:$0xff] %vm176_vm2, %v4710_v22  ;;  %v1984_v30 = vadd.f32 %v1855_v26, %v1442_v25  ;;  %v4839_v22 = vld [vmem:[%s9141_s26 + $0x48] sm:$0xff] }
 0x442   : > { %v2351_v32 = vld [vmem:[#allocation2 + $0x2c8] sm:$0xff]  ;;  %v4585_v1 = vpop.f32.mrf.mxu0 }
 0x443   : > { %v2893_v33 = vadd.f32 %v2762_v23, %v2351_v32  ;;  %2089 = vst.msk [vmem:[#allocation2 + $0x2d0] sm:$0xff] %vm176_vm2, %v1984_v30  ;;  %8838 = vmatmul.msk.bf16.vlgmr.msra.gmra.mxu1 %vm547_vm1, %v4939_v24  ;;  %v5748_v23 = vld [vmem:[%s9141_s26 + $0x5c] sm:$0xff]  ;;  %v5749_v25 = vld [vmem:[%s9141_s26 + $0x64] sm:$0xff]  ;;  %v7566_v26 = vld [vmem:[%s9141_s26 + $0x4e] sm:$0xff] }
 0x444   : > { %v3260_v34 = vld [vmem:[#allocation2 + $0x2c0] sm:$0xff]  ;;  %8892 = vmatmul.msk.bf16.vlgmr.msra.gmra.mxu2 %vm547_vm1, %v5849_v28  ;;  %v7567_v28 = vld [vmem:[%s9141_s26 + $0x56] sm:$0xff]  ;;  %v5851_v36 = vpack.c.bf16 %v5749_v25, %v5748_v23 }
 0x445   : > { %v3802_v37 = vadd.f32 %v3670_v21, %v3260_v34  ;;  %2998 = vst.msk [vmem:[#allocation2 + $0x2c8] sm:$0xff] %vm176_vm2, %v2893_v33  ;;  %9000 = vmatmul.msk.bf16.vlgmr.msra.gmra.mxu0 %vm547_vm1, %v7669_v63  ;;  %v4941_v33 = vpack.c.bf16 %v4839_v22, %v4838_v20  ;;  %v1446_v34 = vld [vmem:[#allocation2 + $0x2f0] sm:$0xff]  ;;  %v1449_v22 = vld [vmem:[#allocation2 + $0x308] sm:$0xff] }
 0x446   : > { %v4169_v38 = vld [vmem:[#allocation2 + $0x2b8] sm:$0xff] }
 0x447   : > { %v4711_v40 = vadd.f32 %v4577_v9, %v4169_v38  ;;  %3907 = vst.msk [vmem:[#allocation2 + $0x2c0] sm:$0xff] %vm176_vm2, %v3802_v37  ;;  %v2765_v15 = vpop.f32.mrf.mxu2  ;;  %v3677_v9 = vpop.f32.mrf.mxu3  ;;  %v7670_v37 = vpack.c.bf16 %v7567_v28, %v7566_v26 }
 0x448   : > { %v1857_v43 = vpop.f32.mrf.mxu1 }
 0x449   : > { %4816 = vst.msk [vmem:[#allocation2 + $0x2b8] sm:$0xff] %vm176_vm2, %v4711_v40  ;;  %v1985_v44 = vadd.f32 %v1857_v43, %v1443_v42  ;;  %8947 = vmatmul.msk.bf16.gmra.mxu3 %vm547_vm1, %v6760_v12  ;;  %v6658_v42 = vld [vmem:[%s9141_s26 + $0x5d] sm:$0xff]  ;;  %v6659_v43 = vld [vmem:[%s9141_s26 + $0x65] sm:$0xff] }
 0x44a   : > { %v2352_v46 = vld [vmem:[#allocation2 + $0x2d0] sm:$0xff]  ;;  %v4587_v14 = vpop.f32.mrf.mxu0 }
 0x44b   : > { %v2894_v47 = vadd.f32 %v2765_v15, %v2352_v46  ;;  %2090 = vst.msk [vmem:[#allocation2 + $0x2d8] sm:$0xff] %vm176_vm2, %v1985_v44 }
 0x44c   : > { %v3261_v49 = vld [vmem:[#allocation2 + $0x2c8] sm:$0xff] }
 0x44d   : > { %v3803_v51 = vadd.f32 %v3672_v39, %v3261_v49  ;;  %2999 = vst.msk [vmem:[#allocation2 + $0x2d0] sm:$0xff] %vm176_vm2, %v2894_v47  ;;  %v6761_v49 = vpack.c.bf16 %v6659_v43, %v6658_v42 }
 0x44e   : > { %v4170_v55 = vld [vmem:[#allocation2 + $0x2c0] sm:$0xff] }
 0x44f   : > { %v4712_v57 = vadd.f32 %v4580_v31, %v4170_v55  ;;  %3908 = vst.msk [vmem:[#allocation2 + $0x2c8] sm:$0xff] %vm176_vm2, %v3803_v51  ;;  %v2767_v58 = vpop.f32.mrf.mxu2  ;;  %v3680_v30 = vpop.f32.mrf.mxu3  ;;  %v4840_v55 = vld [vmem:[%s9141_s26 + $0x50] sm:$0xff] }
 0x450   : > { %v1860_v61 = vpop.f32.mrf.mxu1 }
 0x451   : > { %4817 = vst.msk [vmem:[#allocation2 + $0x2c0] sm:$0xff] %vm176_vm2, %v4712_v57  ;;  %v1986_v0 = vadd.f32 %v1860_v61, %v1444_v60  ;;  %v4841_v57 = vld [vmem:[%s9141_s26 + $0x58] sm:$0xff] }
 0x452   : > { %v2353_v2 = vld [vmem:[#allocation2 + $0x2d8] sm:$0xff]  ;;  %v4590_v39 = vpop.f32.mrf.mxu0 }
 0x453   : > { %v2895_v3 = vadd.f32 %v2767_v58, %v2353_v2  ;;  %2091 = vst.msk [vmem:[#allocation2 + $0x2e0] sm:$0xff] %vm176_vm2, %v1986_v0  ;;  %8839 = vmatmul.msk.bf16.gmra.mxu1 %vm547_vm1, %v4940_v59  ;;  %v5750_v58 = vld [vmem:[%s9141_s26 + $0x6c] sm:$0xff]  ;;  %v5751_v60 = vld [vmem:[%s9141_s26 + $0x74] sm:$0xff]  ;;  %v7568_v61 = vld [vmem:[%s9141_s26 + $0x5e] sm:$0xff] }
 0x454   : > { %v3262_v4 = vld [vmem:[#allocation2 + $0x2d0] sm:$0xff]  ;;  %8893 = vmatmul.msk.bf16.gmra.mxu2 %vm547_vm1, %v5850_v62  ;;  %v7569_v62 = vld [vmem:[%s9141_s26 + $0x66] sm:$0xff]  ;;  %v5852_v6 = vpack.c.bf16 %v5751_v60, %v5750_v58 }
 0x455   : > { %v3804_v7 = vadd.f32 %v3675_v56, %v3262_v4  ;;  %3000 = vst.msk [vmem:[#allocation2 + $0x2d8] sm:$0xff] %vm176_vm2, %v2895_v3  ;;  %9001 = vmatmul.msk.bf16.gmra.mxu0 %vm547_vm1, %v7670_v37  ;;  %v4942_v3 = vpack.c.bf16 %v4841_v57, %v4840_v55  ;;  %v1448_v4 = vld [vmem:[#allocation2 + $0x300] sm:$0xff]  ;;  %v1451_v57 = vld [vmem:[#allocation2 + $0x318] sm:$0xff] }
 0x456   : > { %v4171_v8 = vld [vmem:[#allocation2 + $0x2c8] sm:$0xff] }
 0x457   : > { %v4713_v10 = vadd.f32 %v4582_v45, %v4171_v8  ;;  %3909 = vst.msk [vmem:[#allocation2 + $0x2d0] sm:$0xff] %vm176_vm2, %v3804_v7  ;;  %v2770_v11 = vpop.f32.mrf.mxu2  ;;  %v3682_v46 = vpop.f32.mrf.mxu3  ;;  %v7671_v7 = vpack.c.bf16 %v7569_v62, %v7568_v61 }
 0x458   : > { %v1862_v16 = vpop.f32.mrf.mxu1 }
 0x459   : > { %4818 = vst.msk [vmem:[#allocation2 + $0x2c8] sm:$0xff] %vm176_vm2, %v4713_v10  ;;  %v1987_v17 = vadd.f32 %v1862_v16, %v1445_v13  ;;  %8948 = vmatmul.msk.bf16.gmra.mxu3 %vm547_vm1, %v6761_v49  ;;  %v6660_v13 = vld [vmem:[%s9141_s26 + $0x6d] sm:$0xff]  ;;  %v6661_v16 = vld [vmem:[%s9141_s26 + $0x75] sm:$0xff] }
 0x45a   : > { %v2354_v18 = vld [vmem:[#allocation2 + $0x2e0] sm:$0xff]  ;;  %v4592_v52 = vpop.f32.mrf.mxu0 }
 0x45b   : > { %v2896_v19 = vadd.f32 %v2770_v11, %v2354_v18  ;;  %2092 = vst.msk [vmem:[#allocation2 + $0x2e8] sm:$0xff] %vm176_vm2, %v1987_v17 }
 0x45c   : > { %v3263_v21 = vld [vmem:[#allocation2 + $0x2d8] sm:$0xff] }
 0x45d   : > { %v3805_v24 = vadd.f32 %v3677_v9, %v3263_v21  ;;  %3001 = vst.msk [vmem:[#allocation2 + $0x2e0] sm:$0xff] %vm176_vm2, %v2896_v19  ;;  %v6762_v21 = vpack.c.bf16 %v6661_v16, %v6660_v13 }
 0x45e   : > { %v4172_v29 = vld [vmem:[#allocation2 + $0x2d0] sm:$0xff] }
 0x45f   : > { %v4714_v31 = vadd.f32 %v4585_v1, %v4172_v29  ;;  %3910 = vst.msk [vmem:[#allocation2 + $0x2d8] sm:$0xff] %vm176_vm2, %v3805_v24  ;;  %v2772_v32 = vpop.f32.mrf.mxu2  ;;  %v3685_v0 = vpop.f32.mrf.mxu3  ;;  %v4842_v29 = vld [vmem:[%s9141_s26 + $0x60] sm:$0xff] }
 0x460   : > { %v1865_v35 = vpop.f32.mrf.mxu1 }
 0x461   : > { %4819 = vst.msk [vmem:[#allocation2 + $0x2d0] sm:$0xff] %vm176_vm2, %v4714_v31  ;;  %v1988_v38 = vadd.f32 %v1865_v35, %v1446_v34  ;;  %v4843_v31 = vld [vmem:[%s9141_s26 + $0x68] sm:$0xff] }
 0x462   : > { %v2355_v40 = vld [vmem:[#allocation2 + $0x2e8] sm:$0xff]  ;;  %v4595_v9 = vpop.f32.mrf.mxu0 }
 0x463   : > { %v2897_v15 = vadd.f32 %v2772_v32, %v2355_v40  ;;  %2093 = vst.msk [vmem:[#allocation2 + $0x2f0] sm:$0xff] %vm176_vm2, %v1988_v38  ;;  %8840 = vmatmul.msk.bf16.gmra.mxu1 %vm547_vm1, %v4941_v33  ;;  %v5752_v32 = vld [vmem:[%s9141_s26 + $0x7c] sm:$0xff]  ;;  %v5753_v34 = vld [vmem:[%s9141_s26 + $0x84] sm:$0xff]  ;;  %v7570_v35 = vld [vmem:[%s9141_s26 + $0x6e] sm:$0xff] }
 0x464   : > { %v3264_v41 = vld [vmem:[#allocation2 + $0x2e0] sm:$0xff]  ;;  %8894 = vmatmul.msk.bf16.gmra.mxu2 %vm547_vm1, %v5851_v36  ;;  %v7571_v36 = vld [vmem:[%s9141_s26 + $0x76] sm:$0xff]  ;;  %v5853_v43 = vpack.c.bf16 %v5753_v34, %v5752_v32 }
 0x465   : > { %v3806_v44 = vadd.f32 %v3680_v30, %v3264_v41  ;;  %3002 = vst.msk [vmem:[#allocation2 + $0x2e8] sm:$0xff] %vm176_vm2, %v2897_v15  ;;  %9002 = vmatmul.msk.bf16.gmra.mxu0 %vm547_vm1, %v7671_v7  ;;  %v4943_v15 = vpack.c.bf16 %v4843_v31, %v4842_v29  ;;  %v1450_v41 = vld [vmem:[#allocation2 + $0x310] sm:$0xff]  ;;  %v1453_v31 = vld [vmem:[#allocation2 + $0x328] sm:$0xff] }
 0x466   : > { %v4173_v45 = vld [vmem:[#allocation2 + $0x2d8] sm:$0xff] }
 0x467   : > { %v4715_v47 = vadd.f32 %v4587_v14, %v4173_v45  ;;  %3911 = vst.msk [vmem:[#allocation2 + $0x2e0] sm:$0xff] %vm176_vm2, %v3806_v44  ;;  %v2775_v48 = vpop.f32.mrf.mxu2  ;;  %v3687_v18 = vpop.f32.mrf.mxu3  ;;  %v7672_v44 = vpack.c.bf16 %v7571_v36, %v7570_v35 }
 0x468   : > { %v1867_v27 = vpop.f32.mrf.mxu1 }
 0x469   : > { %4820 = vst.msk [vmem:[#allocation2 + $0x2d8] sm:$0xff] %vm176_vm2, %v4715_v47  ;;  %v1989_v51 = vadd.f32 %v1867_v27, %v1447_v50  ;;  %8949 = vmatmul.msk.bf16.gmra.mxu3 %vm547_vm1, %v6762_v21  ;;  %v6662_v50 = vld [vmem:[%s9141_s26 + $0x7d] sm:$0xff]  ;;  %v6663_v27 = vld [vmem:[%s9141_s26 + $0x85] sm:$0xff] }
 0x46a   : > { %v2356_v53 = vld [vmem:[#allocation2 + $0x2f0] sm:$0xff]  ;;  %v4597_v25 = vpop.f32.mrf.mxu0 }
 0x46b   : > { %v2898_v54 = vadd.f32 %v2775_v48, %v2356_v53  ;;  %2094 = vst.msk [vmem:[#allocation2 + $0x2f8] sm:$0xff] %vm176_vm2, %v1989_v51 }
 0x46c   : > { %v3265_v56 = vld [vmem:[#allocation2 + $0x2e8] sm:$0xff] }
 0x46d   : > { %v3807_v59 = vadd.f32 %v3682_v46, %v3265_v56  ;;  %3003 = vst.msk [vmem:[#allocation2 + $0x2f0] sm:$0xff] %vm176_vm2, %v2898_v54  ;;  %v6763_v56 = vpack.c.bf16 %v6663_v27, %v6662_v50 }
 0x46e   : > { %v4174_v63 = vld [vmem:[#allocation2 + $0x2e0] sm:$0xff] }
 0x46f   : > { %v4716_v1 = vadd.f32 %v4590_v39, %v4174_v63  ;;  %3912 = vst.msk [vmem:[#allocation2 + $0x2e8] sm:$0xff] %vm176_vm2, %v3807_v59  ;;  %v2777_v2 = vpop.f32.mrf.mxu2  ;;  %v3690_v38 = vpop.f32.mrf.mxu3  ;;  %v4844_v63 = vld [vmem:[%s9141_s26 + $0x70] sm:$0xff] }
 0x470   : > { %v1870_v5 = vpop.f32.mrf.mxu1 }
 0x471   : > { %4821 = vst.msk [vmem:[#allocation2 + $0x2e0] sm:$0xff] %vm176_vm2, %v4716_v1  ;;  %v1990_v8 = vadd.f32 %v1870_v5, %v1448_v4  ;;  %v4845_v1 = vld [vmem:[%s9141_s26 + $0x78] sm:$0xff] }
 0x472   : > { %v2357_v10 = vld [vmem:[#allocation2 + $0x2f8] sm:$0xff]  ;;  %v4600_v46 = vpop.f32.mrf.mxu0 }
 0x473   : > { %v2899_v11 = vadd.f32 %v2777_v2, %v2357_v10  ;;  %2095 = vst.msk [vmem:[#allocation2 + $0x300] sm:$0xff] %vm176_vm2, %v1990_v8  ;;  %8841 = vmatmul.msk.bf16.gmra.mxu1 %vm547_vm1, %v4942_v3  ;;  %v5754_v2 = vld [vmem:[%s9141_s26 + $0x8c] sm:$0xff]  ;;  %v5755_v4 = vld [vmem:[%s9141_s26 + $0x94] sm:$0xff]  ;;  %v7572_v5 = vld [vmem:[%s9141_s26 + $0x7e] sm:$0xff] }
 0x474   : > { %v3266_v12 = vld [vmem:[#allocation2 + $0x2f0] sm:$0xff]  ;;  %8895 = vmatmul.msk.bf16.gmra.mxu2 %vm547_vm1, %v5852_v6  ;;  %v7573_v6 = vld [vmem:[%s9141_s26 + $0x86] sm:$0xff]  ;;  %v5854_v16 = vpack.c.bf16 %v5755_v4, %v5754_v2 }
 0x475   : > { %v3808_v17 = vadd.f32 %v3685_v0, %v3266_v12  ;;  %3004 = vst.msk [vmem:[#allocation2 + $0x2f8] sm:$0xff] %vm176_vm2, %v2899_v11  ;;  %9003 = vmatmul.msk.bf16.gmra.mxu0 %vm547_vm1, %v7672_v44  ;;  %v4944_v11 = vpack.c.bf16 %v4845_v1, %v4844_v63  ;;  %v1452_v12 = vld [vmem:[#allocation2 + $0x320] sm:$0xff]  ;;  %v1455_v1 = vld [vmem:[#allocation2 + $0x338] sm:$0xff] }
 0x476   : > { %v4175_v14 = vld [vmem:[#allocation2 + $0x2e8] sm:$0xff] }
 0x477   : > { %v4717_v19 = vadd.f32 %v4592_v52, %v4175_v14  ;;  %3913 = vst.msk [vmem:[#allocation2 + $0x2f0] sm:$0xff] %vm176_vm2, %v3808_v17  ;;  %v2780_v20 = vpop.f32.mrf.mxu2  ;;  %v3692_v53 = vpop.f32.mrf.mxu3  ;;  %v7673_v17 = vpack.c.bf16 %v7573_v6, %v7572_v5 }
 0x478   : > { %v1872_v23 = vpop.f32.mrf.mxu1 }
 0x479   : > { %4822 = vst.msk [vmem:[#allocation2 + $0x2e8] sm:$0xff] %vm176_vm2, %v4717_v19  ;;  %v1991_v24 = vadd.f32 %v1872_v23, %v1449_v22  ;;  %8950 = vmatmul.msk.bf16.gmra.mxu3 %vm547_vm1, %v6763_v56  ;;  %v6664_v22 = vld [vmem:[%s9141_s26 + $0x8d] sm:$0xff]  ;;  %v6665_v23 = vld [vmem:[%s9141_s26 + $0x95] sm:$0xff] }
 0x47a   : > { %v2358_v26 = vld [vmem:[#allocation2 + $0x300] sm:$0xff]  ;;  %v4602_v60 = vpop.f32.mrf.mxu0 }
 0x47b   : > { %v2900_v28 = vadd.f32 %v2780_v20, %v2358_v26  ;;  %2096 = vst.msk [vmem:[#allocation2 + $0x308] sm:$0xff] %vm176_vm2, %v1991_v24 }
 0x47c   : > { %v3267_v30 = vld [vmem:[#allocation2 + $0x2f8] sm:$0xff] }
 0x47d   : > { %v3809_v33 = vadd.f32 %v3687_v18, %v3267_v30  ;;  %3005 = vst.msk [vmem:[#allocation2 + $0x300] sm:$0xff] %vm176_vm2, %v2900_v28  ;;  %v6764_v30 = vpack.c.bf16 %v6665_v23, %v6664_v22 }
 0x47e   : > { %v4176_v37 = vld [vmem:[#allocation2 + $0x2f0] sm:$0xff] }
 0x47f   : > { %v4718_v39 = vadd.f32 %v4595_v9, %v4176_v37  ;;  %3914 = vst.msk [vmem:[#allocation2 + $0x2f8] sm:$0xff] %vm176_vm2, %v3809_v33  ;;  %v2782_v40 = vpop.f32.mrf.mxu2  ;;  %v3695_v8 = vpop.f32.mrf.mxu3  ;;  %v4846_v37 = vld [vmem:[%s9141_s26 + $0x80] sm:$0xff] }
 0x480   : > { %v1875_v42 = vpop.f32.mrf.mxu1 }
 0x481   : > { %4823 = vst.msk [vmem:[#allocation2 + $0x2f0] sm:$0xff] %vm176_vm2, %v4718_v39  ;;  %v1992_v45 = vadd.f32 %v1875_v42, %v1450_v41  ;;  %v4847_v39 = vld [vmem:[%s9141_s26 + $0x88] sm:$0xff] }
 0x482   : > { %v2359_v47 = vld [vmem:[#allocation2 + $0x308] sm:$0xff]  ;;  %v4605_v18 = vpop.f32.mrf.mxu0 }
 0x483   : > { %v2901_v48 = vadd.f32 %v2782_v40, %v2359_v47  ;;  %2097 = vst.msk [vmem:[#allocation2 + $0x310] sm:$0xff] %vm176_vm2, %v1992_v45  ;;  %8842 = vmatmul.msk.bf16.gmra.mxu1 %vm547_vm1, %v4943_v15  ;;  %v5756_v40 = vld [vmem:[%s9141_s26 + $0x9c] sm:$0xff]  ;;  %v5757_v41 = vld [vmem:[%s9141_s26 + $0xa4] sm:$0xff]  ;;  %v7574_v42 = vld [vmem:[%s9141_s26 + $0x8e] sm:$0xff] }
 0x484   : > { %v3268_v49 = vld [vmem:[#allocation2 + $0x300] sm:$0xff]  ;;  %8896 = vmatmul.msk.bf16.gmra.mxu2 %vm547_vm1, %v5853_v43  ;;  %v7575_v43 = vld [vmem:[%s9141_s26 + $0x96] sm:$0xff]  ;;  %v5855_v27 = vpack.c.bf16 %v5757_v41, %v5756_v40 }
 0x485   : > { %v3810_v51 = vadd.f32 %v3690_v38, %v3268_v49  ;;  %3006 = vst.msk [vmem:[#allocation2 + $0x308] sm:$0xff] %vm176_vm2, %v2901_v48  ;;  %9004 = vmatmul.msk.bf16.gmra.mxu0 %vm547_vm1, %v7673_v17  ;;  %v4945_v48 = vpack.c.bf16 %v4847_v39, %v4846_v37  ;;  %v1454_v49 = vld [vmem:[#allocation2 + $0x330] sm:$0xff] }
 0x486   : > { %v4177_v52 = vld [vmem:[#allocation2 + $0x2f8] sm:$0xff] }
 0x487   : > { %v4719_v54 = vadd.f32 %v4597_v25, %v4177_v52  ;;  %3915 = vst.msk [vmem:[#allocation2 + $0x300] sm:$0xff] %vm176_vm2, %v3810_v51  ;;  %v2785_v55 = vpop.f32.mrf.mxu2  ;;  %v3697_v26 = vpop.f32.mrf.mxu3  ;;  %v7674_v51 = vpack.c.bf16 %v7575_v43, %v7574_v42  ;;  %v4850_v42 = vld [vmem:[%s9141_s26 + $0xa0] sm:$0xff] }
 0x488   : > { %v1877_v58 = vpop.f32.mrf.mxu1 }
 0x489   : > { %4824 = vst.msk [vmem:[#allocation2 + $0x2f8] sm:$0xff] %vm176_vm2, %v4719_v54  ;;  %v1993_v59 = vadd.f32 %v1877_v58, %v1451_v57  ;;  %8951 = vmatmul.msk.bf16.gmra.mxu3 %vm547_vm1, %v6764_v30  ;;  %v6666_v57 = vld [vmem:[%s9141_s26 + $0x9d] sm:$0xff]  ;;  %v6667_v58 = vld [vmem:[%s9141_s26 + $0xa5] sm:$0xff] }
 0x48a   : > { %v2360_v61 = vld [vmem:[#allocation2 + $0x310] sm:$0xff]  ;;  %v4607_v34 = vpop.f32.mrf.mxu0 }
 0x48b   : > { %v2902_v62 = vadd.f32 %v2785_v55, %v2360_v61  ;;  %2098 = vst.msk [vmem:[#allocation2 + $0x318] sm:$0xff] %vm176_vm2, %v1993_v59 }
 0x48c   : > { %v3269_v0 = vld [vmem:[#allocation2 + $0x308] sm:$0xff] }
 0x48d   : > { %v3811_v3 = vadd.f32 %v3692_v53, %v3269_v0  ;;  %3007 = vst.msk [vmem:[#allocation2 + $0x310] sm:$0xff] %vm176_vm2, %v2902_v62  ;;  %v6765_v0 = vpack.c.bf16 %v6667_v58, %v6666_v57 }
 0x48e   : > { %v4178_v7 = vld [vmem:[#allocation2 + $0x300] sm:$0xff] }
 0x48f   : > { %v4720_v9 = vadd.f32 %v4600_v46, %v4178_v7  ;;  %3916 = vst.msk [vmem:[#allocation2 + $0x308] sm:$0xff] %vm176_vm2, %v3811_v3  ;;  %v2787_v10 = vpop.f32.mrf.mxu2  ;;  %v3700_v45 = vpop.f32.mrf.mxu3  ;;  %v4848_v7 = vld [vmem:[%s9141_s26 + $0x90] sm:$0xff] }
 0x490   : > { %v1880_v13 = vpop.f32.mrf.mxu1 }
 0x491   : > { %4825 = vst.msk [vmem:[#allocation2 + $0x300] sm:$0xff] %vm176_vm2, %v4720_v9  ;;  %v1994_v14 = vadd.f32 %v1880_v13, %v1452_v12  ;;  %v4849_v9 = vld [vmem:[%s9141_s26 + $0x98] sm:$0xff] }
 0x492   : > { %v2361_v19 = vld [vmem:[#allocation2 + $0x318] sm:$0xff]  ;;  %v4610_v53 = vpop.f32.mrf.mxu0 }
 0x493   : > { %v2903_v20 = vadd.f32 %v2787_v10, %v2361_v19  ;;  %2099 = vst.msk [vmem:[#allocation2 + $0x320] sm:$0xff] %vm176_vm2, %v1994_v14  ;;  %8843 = vmatmul.msk.bf16.gmra.mxu1 %vm547_vm1, %v4944_v11  ;;  %v5758_v10 = vld [vmem:[%s9141_s26 + $0xac] sm:$0xff]  ;;  %v5759_v12 = vld [vmem:[%s9141_s26 + $0xb4] sm:$0xff]  ;;  %v7576_v13 = vld [vmem:[%s9141_s26 + $0x9e] sm:$0xff] }
 0x494   : > { %v3270_v21 = vld [vmem:[#allocation2 + $0x310] sm:$0xff]  ;;  %8897 = vmatmul.msk.bf16.gmra.mxu2 %vm547_vm1, %v5854_v16  ;;  %v7577_v16 = vld [vmem:[%s9141_s26 + $0xa6] sm:$0xff]  ;;  %v5856_v23 = vpack.c.bf16 %v5759_v12, %v5758_v10  ;;  %v4853_v12 = vld [vmem:[%s9141_s26 + $0xb8] sm:$0xff] }
 0x495   : > { %v3812_v24 = vadd.f32 %v3695_v8, %v3270_v21  ;;  %3008 = vst.msk [vmem:[#allocation2 + $0x318] sm:$0xff] %vm176_vm2, %v2903_v20  ;;  %9005 = vmatmul.msk.bf16.gmra.mxu0 %vm547_vm1, %v7674_v51  ;;  %v4946_v20 = vpack.c.bf16 %v4849_v9, %v4848_v7  ;;  %v1456_v21 = vld [vmem:[#allocation2 + $0x340] sm:$0x3f] }
 0x496   : > { %v4179_v25 = vld [vmem:[#allocation2 + $0x308] sm:$0xff] }
 0x497   : > { %v4721_v28 = vadd.f32 %v4602_v60, %v4179_v25  ;;  %3917 = vst.msk [vmem:[#allocation2 + $0x310] sm:$0xff] %vm176_vm2, %v3812_v24  ;;  %v2790_v29 = vpop.f32.mrf.mxu2  ;;  %v3702_v61 = vpop.f32.mrf.mxu3  ;;  %v7675_v24 = vpack.c.bf16 %v7577_v16, %v7576_v13  ;;  %v5762_v13 = vld [vmem:[%s9141_s26 + $0xcc] sm:$0xff]  ;;  %v5763_v16 = vld [vmem:[%s9141_s26 + $0xd4] sm:$0xff] }
 0x498   : > { %v1882_v32 = vpop.f32.mrf.mxu1 }
 0x499   : > { %4826 = vst.msk [vmem:[#allocation2 + $0x308] sm:$0xff] %vm176_vm2, %v4721_v28  ;;  %v1995_v33 = vadd.f32 %v1882_v32, %v1453_v31  ;;  %8952 = vmatmul.msk.bf16.gmra.mxu3 %vm547_vm1, %v6765_v0  ;;  %v6668_v31 = vld [vmem:[%s9141_s26 + $0xad] sm:$0xff]  ;;  %v6669_v32 = vld [vmem:[%s9141_s26 + $0xb5] sm:$0xff] }
 0x49a   : > { %v2362_v35 = vld [vmem:[#allocation2 + $0x320] sm:$0xff]  ;;  %v4612_v4 = vpop.f32.mrf.mxu0 }
 0x49b   : > { %v2904_v36 = vadd.f32 %v2790_v29, %v2362_v35  ;;  %2100 = vst.msk [vmem:[#allocation2 + $0x328] sm:$0xff] %vm176_vm2, %v1995_v33 }
 0x49c   : > { %v3271_v38 = vld [vmem:[#allocation2 + $0x318] sm:$0xff] }
 0x49d   : > { %v3813_v15 = vadd.f32 %v3697_v26, %v3271_v38  ;;  %3009 = vst.msk [vmem:[#allocation2 + $0x320] sm:$0xff] %vm176_vm2, %v2904_v36  ;;  %v6766_v38 = vpack.c.bf16 %v6669_v32, %v6668_v31 }
 0x49e   : > { %v4180_v44 = vld [vmem:[#allocation2 + $0x310] sm:$0xff] }
 0x49f   : > { %v4722_v46 = vadd.f32 %v4605_v18, %v4180_v44  ;;  %3918 = vst.msk [vmem:[#allocation2 + $0x318] sm:$0xff] %vm176_vm2, %v3813_v15  ;;  %v2792_v47 = vpop.f32.mrf.mxu2  ;;  %v3705_v14 = vpop.f32.mrf.mxu3  ;;  %v4851_v44 = vld [vmem:[%s9141_s26 + $0xa8] sm:$0xff] }
 0x4a0   : > { %v1885_v50 = vpop.f32.mrf.mxu1 }
 0x4a1   : > { %4827 = vst.msk [vmem:[#allocation2 + $0x310] sm:$0xff] %vm176_vm2, %v4722_v46  ;;  %v1996_v52 = vadd.f32 %v1885_v50, %v1454_v49  ;;  %v7579_v49 = vld [vmem:[%s9141_s26 + $0xb6] sm:$0xff] }
 0x4a2   : > { %v2363_v54 = vld [vmem:[#allocation2 + $0x328] sm:$0xff]  ;;  %v4615_v26 = vpop.f32.mrf.mxu0 }
 0x4a3   : > { %v2905_v55 = vadd.f32 %v2792_v47, %v2363_v54  ;;  %2101 = vst.msk [vmem:[#allocation2 + $0x330] sm:$0xff] %vm176_vm2, %v1996_v52  ;;  %8844 = vmatmul.msk.bf16.gmra.mxu1 %vm547_vm1, %v4945_v48  ;;  %v5761_v47 = vld [vmem:[%s9141_s26 + $0xc4] sm:$0xff]  ;;  %v7578_v48 = vld [vmem:[%s9141_s26 + $0xae] sm:$0xff] }
 0x4a4   : > { %v3272_v56 = vld [vmem:[#allocation2 + $0x320] sm:$0xff]  ;;  %8898 = vmatmul.msk.bf16.gmra.mxu2 %vm547_vm1, %v5855_v27  ;;  %v7676_v57 = vpack.c.bf16 %v7579_v49, %v7578_v48 }
 0x4a5   : > { %v3814_v59 = vadd.f32 %v3700_v45, %v3272_v56  ;;  %3010 = vst.msk [vmem:[#allocation2 + $0x328] sm:$0xff] %vm176_vm2, %v2905_v55  ;;  %9006 = vmatmul.msk.bf16.gmra.mxu0 %vm547_vm1, %v7675_v24  ;;  %v5760_v45 = vld [vmem:[%s9141_s26 + $0xbc] sm:$0xff]  ;;  %v5765_v49 = vld [vmem:[%s9141_s26 + $0xe4] sm:$0xff] }
 0x4a6   : > { %v4181_v60 = vld [vmem:[#allocation2 + $0x318] sm:$0xff]  ;;  %v4992_v54 = vld [vmem:[#allocation2] sm:$0xff]  ;;  %v5857_v56 = vpack.c.bf16 %v5761_v47, %v5760_v45 }
 0x4a7   : > { %v4723_v62 = vadd.f32 %v4607_v34, %v4181_v60  ;;  %3919 = vst.msk [vmem:[#allocation2 + $0x320] sm:$0xff] %vm176_vm2, %v3814_v59  ;;  %v2795_v63 = vpop.f32.mrf.mxu2  ;;  %v3707_v35 = vpop.f32.mrf.mxu3  ;;  %v5764_v47 = vld [vmem:[%s9141_s26 + $0xdc] sm:$0xff] }
 0x4a8   : > { %v1887_v2 = vpop.f32.mrf.mxu1 }
 0x4a9   : > { %4828 = vst.msk [vmem:[#allocation2 + $0x318] sm:$0xff] %vm176_vm2, %v4723_v62  ;;  %v1997_v3 = vadd.f32 %v1887_v2, %v1455_v1  ;;  %8953 = vmatmul.msk.bf16.gmra.mxu3 %vm547_vm1, %v6766_v38  ;;  %v6671_v62 = vld [vmem:[%s9141_s26 + $0xc5] sm:$0xff] }
 0x4aa   : > { %v2364_v5 = vld [vmem:[#allocation2 + $0x330] sm:$0xff]  ;;  %v4617_v40 = vpop.f32.mrf.mxu0 }
 0x4ab   : > { %v2906_v6 = vadd.f32 %v2795_v63, %v2364_v5  ;;  %2102 = vst.msk [vmem:[#allocation2 + $0x338] sm:$0xff] %vm176_vm2, %v1997_v3  ;;  %v4993_v5 = vld [vmem:[#allocation2 + $0x8] sm:$0xff] }
 0x4ac   : > { %v3273_v8 = vld [vmem:[#allocation2 + $0x328] sm:$0xff] }
 0x4ad   : > { %v3815_v11 = vadd.f32 %v3702_v61, %v3273_v8  ;;  %3011 = vst.msk [vmem:[#allocation2 + $0x330] sm:$0xff] %vm176_vm2, %v2906_v6  ;;  %v6670_v61 = vld [vmem:[%s9141_s26 + $0xbd] sm:$0xff] }
 0x4ae   : > { %v4182_v17 = vld [vmem:[#allocation2 + $0x320] sm:$0xff] }
 0x4af   : > { %v4724_v18 = vadd.f32 %v4610_v53, %v4182_v17  ;;  %3920 = vst.msk [vmem:[#allocation2 + $0x328] sm:$0xff] %vm176_vm2, %v3815_v11  ;;  %v2797_v19 = vpop.f32.mrf.mxu2  ;;  %v3710_v27 = vpop.f32.mrf.mxu3  ;;  %v4947_v53 = vpack.c.bf16 %v4851_v44, %v4850_v42  ;;  %v4852_v11 = vld [vmem:[%s9141_s26 + $0xb0] sm:$0xff]  ;;  %v7580_v17 = vld [vmem:[%s9141_s26 + $0xbe] sm:$0xff] }
 0x4b0   : > { %v1890_v22 = vpop.f32.mrf.mxu1  ;;  %v4854_v44 = vld [vmem:[%s9141_s26 + $0xc0] sm:$0xff] }
 0x4b1   : > { %4829 = vst.msk [vmem:[#allocation2 + $0x320] sm:$0xff] %vm176_vm2, %v4724_v18  ;;  %v1998_v25 = vadd.f32 %v1890_v22, %v1456_v21  ;;  %v4948_v22 = vpack.c.bf16 %v4853_v12, %v4852_v11 }
 0x4b2   : > { %v2365_v28 = vld [vmem:[#allocation2 + $0x338] sm:$0xff]  ;;  %v4620_v59 = vpop.f32.mrf.mxu0 }
 0x4b3   : > { %v2907_v29 = vadd.f32 %v2797_v19, %v2365_v28  ;;  %2103 = vst.msk [vmem:[#allocation2 + $0x340] sm:$0x3f] %vm281_vm3, %v1998_v25  ;;  %8845 = vmatmul.msk.bf16.gmra.mxu1 %vm547_vm1, %v4946_v20  ;;  %v5858_v25 = vpack.c.bf16 %v5763_v16, %v5762_v13 }
 0x4b4   : > { %v3274_v30 = vld [vmem:[#allocation2 + $0x330] sm:$0xff]  ;;  %8899 = vmatmul.msk.bf16.gmra.mxu2 %vm547_vm1, %v5856_v23 }
 0x4b5   : > { %v3816_v33 = vadd.f32 %v3705_v14, %v3274_v30  ;;  %3012 = vst.msk [vmem:[#allocation2 + $0x338] sm:$0xff] %vm176_vm2, %v2907_v29  ;;  %9007 = vmatmul.msk.bf16.gmra.mxu0 %vm547_vm1, %v7676_v57  ;;  %v7581_v14 = vld [vmem:[%s9141_s26 + $0xc6] sm:$0xff]  ;;  %v4994_v23 = vld [vmem:[#allocation2 + $0x10] sm:$0xff] }
 0x4b6   : > { %v4183_v34 = vld [vmem:[#allocation2 + $0x328] sm:$0xff] }
 0x4b7   : > { %v4725_v36 = vadd.f32 %v4612_v4, %v4183_v34  ;;  %3921 = vst.msk [vmem:[#allocation2 + $0x330] sm:$0xff] %vm176_vm2, %v3816_v33  ;;  %v2800_v37 = vpop.f32.mrf.mxu2  ;;  %v3712_v1 = vpop.f32.mrf.mxu3  ;;  %v6767_v4 = vpack.c.bf16 %v6671_v62, %v6670_v61  ;;  %v6672_v33 = vld [vmem:[%s9141_s26 + $0xcd] sm:$0xff]  ;;  %v6673_v34 = vld [vmem:[%s9141_s26 + $0xd5] sm:$0xff] }
 0x4b8   : > { %v1892_v39 = vpop.f32.mrf.mxu1  ;;  %v6768_v38 = vpack.c.bf16 %v6673_v34, %v6672_v33  ;;  %v6674_v1 = vld [vmem:[%s9141_s26 + $0xdd] sm:$0xff] }
 0x4b9   : > { %4830 = vst.msk [vmem:[#allocation2 + $0x328] sm:$0xff] %vm176_vm2, %v4725_v36  ;;  %8954 = vmatmul.msk.bf16.gmra.mxu3 %vm547_vm1, %v6767_v4  ;;  %v4995_v39 = vld [vmem:[#allocation2 + $0x18] sm:$0xff] }
 0x4ba   : > { %v2366_v15 = vld [vmem:[#allocation2 + $0x340] sm:$0x3f]  ;;  %v4622_v8 = vpop.f32.mrf.mxu0 }
 0x4bb   : > { %v2908_v41 = vadd.f32 %v2800_v37, %v2366_v15 }
 0x4bc   : > { %v3275_v43 = vld [vmem:[#allocation2 + $0x338] sm:$0xff] }
 0x4bd   : > { %v3817_v46 = vadd.f32 %v3707_v35, %v3275_v43  ;;  %3013 = vst.msk [vmem:[#allocation2 + $0x340] sm:$0x3f] %vm281_vm3, %v2908_v41 }
 0x4be   : > { %v4184_v50 = vld [vmem:[#allocation2 + $0x330] sm:$0xff] }
 0x4bf   : > { %v4726_v51 = vadd.f32 %v4615_v26, %v4184_v50  ;;  %3922 = vst.msk [vmem:[#allocation2 + $0x338] sm:$0xff] %vm176_vm2, %v3817_v46  ;;  %v2802_v52 = vpop.f32.mrf.mxu2  ;;  %v7090_v19 = vpop.f32.mrf.mxu3  ;;  %v7677_v26 = vpack.c.bf16 %v7581_v14, %v7580_v17  ;;  %v4855_v46 = vld [vmem:[%s9141_s26 + $0xc8] sm:$0xff]  ;;  %v4856_v17 = vld [vmem:[%s9141_s26 + $0xd0] sm:$0xff] }
 0x4c0   : > { %v5270_v55 = vpop.f32.mrf.mxu1  ;;  %v7582_v50 = vld [vmem:[%s9141_s26 + $0xce] sm:$0xff] }
 0x4c1   : > { %4831 = vst.msk [vmem:[#allocation2 + $0x330] sm:$0xff] %vm176_vm2, %v4726_v51  ;;  %v5534_v58 = vadd.f32 %v5270_v55, %v4992_v54  ;;  %v4949_v55 = vpack.c.bf16 %v4855_v46, %v4854_v44  ;;  %v4999_v46 = vld [vmem:[#allocation2 + $0x38] sm:$0xff] }
 0x4c2   : > { %v8000_v29 = vpop.f32.mrf.mxu0 }
 0x4c3   : > { %5639 = vst.msk [vmem:[#allocation2] sm:$0xff] %vm176_vm2, %v5534_v58  ;;  %8846 = vmatmul.msk.bf16.gmra.mxu1 %vm547_vm1, %v4947_v53  ;;  %v5859_v58 = vpack.c.bf16 %v5765_v49, %v5764_v47 }
 0x4c4   : > { %v3276_v60 = vld [vmem:[#allocation2 + $0x340] sm:$0x3f]  ;;  %8900 = vmatmul.msk.bf16.gmra.mxu2 %vm547_vm1, %v5857_v56 }
 0x4c5   : > { %v3818_v63 = vadd.f32 %v3710_v27, %v3276_v60  ;;  %9008 = vmatmul.msk.bf16.gmra.mxu0 %vm547_vm1, %v7677_v26  ;;  %v7583_v27 = vld [vmem:[%s9141_s26 + $0xd6] sm:$0xff]  ;;  %v4996_v56 = vld [vmem:[#allocation2 + $0x20] sm:$0xff] }
 0x4c6   : > { %v4185_v0 = vld [vmem:[#allocation2 + $0x338] sm:$0xff] }
 0x4c7   : > { %v4727_v2 = vadd.f32 %v4617_v40, %v4185_v0  ;;  %3923 = vst.msk [vmem:[#allocation2 + $0x340] sm:$0x3f] %vm281_vm3, %v3818_v63  ;;  %v6180_v3 = vpop.f32.mrf.mxu2  ;;  %v7092_v36 = vpop.f32.mrf.mxu3 }
 0x4c8   : > { %v5272_v6 = vpop.f32.mrf.mxu1 }
 0x4c9   : > { %4832 = vst.msk [vmem:[#allocation2 + $0x338] sm:$0xff] %vm176_vm2, %v4727_v2  ;;  %v5535_v7 = vadd.f32 %v5272_v6, %v4993_v5  ;;  %8955 = vmatmul.msk.bf16.gmra.mxu3 %vm547_vm1, %v6768_v38  ;;  %v6675_v2 = vld [vmem:[%s9141_s26 + $0xe5] sm:$0xff] }
 0x4ca   : > { %v5902_v9 = vld [vmem:[#allocation2] sm:$0xff]  ;;  %v8002_v41 = vpop.f32.mrf.mxu0  ;;  %v6769_v8 = vpack.c.bf16 %v6675_v2, %v6674_v1 }
 0x4cb   : > { %v6444_v10 = vadd.f32 %v6180_v3, %v5902_v9  ;;  %5640 = vst.msk [vmem:[#allocation2 + $0x8] sm:$0xff] %vm176_vm2, %v5535_v7  ;;  %v4997_v9 = vld [vmem:[#allocation2 + $0x28] sm:$0xff] }
 0x4cd   : > { %6549 = vst.msk [vmem:[#allocation2] sm:$0xff] %vm176_vm2, %v6444_v10 }
 0x4ce   : > { %v4186_v18 = vld [vmem:[#allocation2 + $0x340] sm:$0x3f] }
 0x4cf   : > { %v4728_v20 = vadd.f32 %v4620_v59, %v4186_v18  ;;  %v6182_v21 = vpop.f32.mrf.mxu2  ;;  %v7095_v52 = vpop.f32.mrf.mxu3  ;;  %v7678_v59 = vpack.c.bf16 %v7583_v27, %v7582_v50  ;;  %v4857_v18 = vld [vmem:[%s9141_s26 + $0xd8] sm:$0xff] }
 0x4d0   : > { %v5275_v24 = vpop.f32.mrf.mxu1 }
 0x4d1   : > { %4833 = vst.msk [vmem:[#allocation2 + $0x340] sm:$0x3f] %vm281_vm3, %v4728_v20  ;;  %v5536_v28 = vadd.f32 %v5275_v24, %v4994_v23  ;;  %v7585_v23 = vld [vmem:[%s9141_s26 + $0xe6] sm:$0xff] }
 0x4d2   : > { %v5903_v30 = vld [vmem:[#allocation2 + $0x8] sm:$0xff]  ;;  %v8005_v61 = vpop.f32.mrf.mxu0 }
 0x4d3   : > { %v6445_v31 = vadd.f32 %v6182_v21, %v5903_v30  ;;  %5641 = vst.msk [vmem:[#allocation2 + $0x10] sm:$0xff] %vm176_vm2, %v5536_v28  ;;  %8847 = vmatmul.msk.bf16.gmra.mxu1 %vm547_vm1, %v4948_v22  ;;  %v5767_v21 = vld [vmem:[%s9141_s26 + $0xf4] sm:$0xff]  ;;  %v7584_v22 = vld [vmem:[%s9141_s26 + $0xde] sm:$0xff] }
 0x4d4   : > { %v6812_v32 = vld [vmem:[#allocation2] sm:$0xff]  ;;  %8901 = vmatmul.msk.bf16.gmra.mxu2 %vm547_vm1, %v5858_v25  ;;  %v4998_v30 = vld [vmem:[#allocation2 + $0x30] sm:$0xff]  ;;  %v7679_v33 = vpack.c.bf16 %v7585_v23, %v7584_v22 }
 0x4d5   : > { %v7354_v35 = vadd.f32 %v7090_v19, %v6812_v32  ;;  %6550 = vst.msk [vmem:[#allocation2 + $0x8] sm:$0xff] %vm176_vm2, %v6445_v31  ;;  %9009 = vmatmul.msk.bf16.gmra.mxu0 %vm547_vm1, %v7678_v59  ;;  %v5766_v19 = vld [vmem:[%s9141_s26 + $0xec] sm:$0xff] }
 0x4d6   : > { %v5860_v32 = vpack.c.bf16 %v5767_v21, %v5766_v19 }
 0x4d7   : > { %7459 = vst.msk [vmem:[#allocation2] sm:$0xff] %vm176_vm2, %v7354_v35  ;;  %v6185_v37 = vpop.f32.mrf.mxu2  ;;  %v7097_v5 = vpop.f32.mrf.mxu3 }
 0x4d8   : > { %v5277_v40 = vpop.f32.mrf.mxu1 }
 0x4d9   : > { %v5537_v15 = vadd.f32 %v5277_v40, %v4995_v39  ;;  %8956 = vmatmul.msk.bf16.gmra.mxu3 %vm547_vm1, %v6769_v8  ;;  %v6676_v39 = vld [vmem:[%s9141_s26 + $0xed] sm:$0xff]  ;;  %v6677_v40 = vld [vmem:[%s9141_s26 + $0xf5] sm:$0xff] }
 0x4da   : > { %v5904_v42 = vld [vmem:[#allocation2 + $0x10] sm:$0xff]  ;;  %v8007_v12 = vpop.f32.mrf.mxu0 }
 0x4db   : > { %v6446_v43 = vadd.f32 %v6185_v37, %v5904_v42  ;;  %5642 = vst.msk [vmem:[#allocation2 + $0x18] sm:$0xff] %vm176_vm2, %v5537_v15 }
 0x4dc   : > { %v6813_v45 = vld [vmem:[#allocation2 + $0x8] sm:$0xff] }
 0x4dd   : > { %v7355_v48 = vadd.f32 %v7092_v36, %v6813_v45  ;;  %6551 = vst.msk [vmem:[#allocation2 + $0x10] sm:$0xff] %vm176_vm2, %v6446_v43  ;;  %v6770_v45 = vpack.c.bf16 %v6677_v40, %v6676_v39 }
 0x4de   : > { %v7722_v51 = vld [vmem:[#allocation2] sm:$0xff] }
 0x4df   : > { %v8264_v53 = vadd.f32 %v8000_v29, %v7722_v51  ;;  %7460 = vst.msk [vmem:[#allocation2 + $0x8] sm:$0xff] %vm176_vm2, %v7355_v48  ;;  %v6187_v54 = vpop.f32.mrf.mxu2  ;;  %v7100_v25 = vpop.f32.mrf.mxu3  ;;  %v4950_v29 = vpack.c.bf16 %v4857_v18, %v4856_v17  ;;  %v4858_v51 = vld [vmem:[%s9141_s26 + $0xe0] sm:$0xff]  ;;  %v5001_v18 = vld [vmem:[#allocation2 + $0x48] sm:$0xff] }
 0x4e0   : > { %v5280_v57 = vpop.f32.mrf.mxu1 }
 0x4e1   : > { %8369 = vst.msk [vmem:[#allocation2] sm:$0xff] %vm176_vm2, %v8264_v53  ;;  %v5538_v60 = vadd.f32 %v5280_v57, %v4996_v56  ;;  %v4859_v53 = vld [vmem:[%s9141_s26 + $0xe8] sm:$0xff] }
 0x4e2   : > { %v5905_v62 = vld [vmem:[#allocation2 + $0x18] sm:$0xff]  ;;  %v8010_v35 = vpop.f32.mrf.mxu0  ;;  %v5769_v56 = vld [vmem:[%s9141_s26 + $0x104] sm:$0xff]  ;;  %v7586_v57 = vld [vmem:[%s9141_s26 + $0xee] sm:$0xff] }
 0x4e3   : > { %v6447_v63 = vadd.f32 %v6187_v54, %v5905_v62  ;;  %5643 = vst.msk [vmem:[#allocation2 + $0x20] sm:$0xff] %vm176_vm2, %v5538_v60  ;;  %8848 = vmatmul.msk.bf16.gmra.mxu1 %vm547_vm1, %v4949_v55  ;;  %v5768_v54 = vld [vmem:[%s9141_s26 + $0xfc] sm:$0xff] }
 0x4e4   : > { %v6814_v0 = vld [vmem:[#allocation2 + $0x10] sm:$0xff]  ;;  %8902 = vmatmul.msk.bf16.gmra.mxu2 %vm547_vm1, %v5859_v58  ;;  %v5861_v2 = vpack.c.bf16 %v5769_v56, %v5768_v54 }
 0x4e5   : > { %v7356_v3 = vadd.f32 %v7095_v52, %v6814_v0  ;;  %6552 = vst.msk [vmem:[#allocation2 + $0x18] sm:$0xff] %vm176_vm2, %v6447_v63  ;;  %9010 = vmatmul.msk.bf16.gmra.mxu0 %vm547_vm1, %v7679_v33  ;;  %v7587_v58 = vld [vmem:[%s9141_s26 + $0xf6] sm:$0xff]  ;;  %v4951_v63 = vpack.c.bf16 %v4859_v53, %v4858_v51  ;;  %v5000_v0 = vld [vmem:[#allocation2 + $0x40] sm:$0xff] }
 0x4e6   : > { %v7723_v4 = vld [vmem:[#allocation2 + $0x8] sm:$0xff]  ;;  %v5003_v53 = vld [vmem:[#allocation2 + $0x58] sm:$0xff] }
 0x4e7   : > { %v8265_v6 = vadd.f32 %v8002_v41, %v7723_v4  ;;  %7461 = vst.msk [vmem:[#allocation2 + $0x10] sm:$0xff] %vm176_vm2, %v7356_v3  ;;  %v6190_v7 = vpop.f32.mrf.mxu2  ;;  %v7102_v42 = vpop.f32.mrf.mxu3  ;;  %v7680_v3 = vpack.c.bf16 %v7587_v58, %v7586_v57 }
 0x4e8   : > { %v5282_v10 = vpop.f32.mrf.mxu1 }
 0x4e9   : > { %8370 = vst.msk [vmem:[#allocation2 + $0x8] sm:$0xff] %vm176_vm2, %v8265_v6  ;;  %v5539_v11 = vadd.f32 %v5282_v10, %v4997_v9  ;;  %8957 = vmatmul.msk.bf16.gmra.mxu3 %vm547_vm1, %v6770_v45  ;;  %v6678_v9 = vld [vmem:[%s9141_s26 + $0xfd] sm:$0xff]  ;;  %v6679_v10 = vld [vmem:[%s9141_s26 + $0x105] sm:$0xff] }
 0x4ea   : > { %v5906_v13 = vld [vmem:[#allocation2 + $0x20] sm:$0xff]  ;;  %v8012_v49 = vpop.f32.mrf.mxu0 }
 0x4eb   : > { %v6448_v16 = vadd.f32 %v6190_v7, %v5906_v13  ;;  %5644 = vst.msk [vmem:[#allocation2 + $0x28] sm:$0xff] %vm176_vm2, %v5539_v11 }
 0x4ec   : > { %v6815_v14 = vld [vmem:[#allocation2 + $0x18] sm:$0xff] }
 0x4ed   : > { %v7357_v20 = vadd.f32 %v7097_v5, %v6815_v14  ;;  %6553 = vst.msk [vmem:[#allocation2 + $0x20] sm:$0xff] %vm176_vm2, %v6448_v16  ;;  %v6771_v14 = vpack.c.bf16 %v6679_v10, %v6678_v9 }
 0x4ee   : > { %v7724_v24 = vld [vmem:[#allocation2 + $0x10] sm:$0xff] }
 0x4ef   : > { %v8266_v26 = vadd.f32 %v8005_v61, %v7724_v24  ;;  %7462 = vst.msk [vmem:[#allocation2 + $0x18] sm:$0xff] %vm176_vm2, %v7357_v20  ;;  %v6192_v28 = vpop.f32.mrf.mxu2  ;;  %v7105_v60 = vpop.f32.mrf.mxu3  ;;  %v4860_v24 = vld [vmem:[%s9141_s26 + $0xf0] sm:$0xff] }
 0x4f0   : > { %v5285_v31 = vpop.f32.mrf.mxu1 }
 0x4f1   : > { %8371 = vst.msk [vmem:[#allocation2 + $0x10] sm:$0xff] %vm176_vm2, %v8266_v26  ;;  %v5540_v34 = vadd.f32 %v5285_v31, %v4998_v30  ;;  %v4861_v26 = vld [vmem:[%s9141_s26 + $0xf8] sm:$0xff] }
 0x4f2   : > { %v5907_v36 = vld [vmem:[#allocation2 + $0x28] sm:$0xff]  ;;  %v8015_v5 = vpop.f32.mrf.mxu0  ;;  %v5771_v30 = vld [vmem:[%s9141_s26 + $0x114] sm:$0xff]  ;;  %v7588_v31 = vld [vmem:[%s9141_s26 + $0xfe] sm:$0xff] }
 0x4f3   : > { %v6449_v37 = vadd.f32 %v6192_v28, %v5907_v36  ;;  %5645 = vst.msk [vmem:[#allocation2 + $0x30] sm:$0xff] %vm176_vm2, %v5540_v34  ;;  %8849 = vmatmul.msk.bf16.gmra.mxu1 %vm547_vm1, %v4950_v29  ;;  %v5770_v28 = vld [vmem:[%s9141_s26 + $0x10c] sm:$0xff] }
 0x4f4   : > { %v6816_v38 = vld [vmem:[#allocation2 + $0x20] sm:$0xff]  ;;  %8903 = vmatmul.msk.bf16.gmra.mxu2 %vm547_vm1, %v5860_v32  ;;  %v5862_v40 = vpack.c.bf16 %v5771_v30, %v5770_v28 }
 0x4f5   : > { %v7358_v15 = vadd.f32 %v7100_v25, %v6816_v38  ;;  %6554 = vst.msk [vmem:[#allocation2 + $0x28] sm:$0xff] %vm176_vm2, %v6449_v37  ;;  %9011 = vmatmul.msk.bf16.gmra.mxu0 %vm547_vm1, %v7680_v3  ;;  %v7589_v32 = vld [vmem:[%s9141_s26 + $0x106] sm:$0xff]  ;;  %v4952_v37 = vpack.c.bf16 %v4861_v26, %v4860_v24  ;;  %v5002_v38 = vld [vmem:[#allocation2 + $0x50] sm:$0xff] }
 0x4f6   : > { %v7725_v41 = vld [vmem:[#allocation2 + $0x18] sm:$0xff]  ;;  %v5005_v26 = vld [vmem:[#allocation2 + $0x68] sm:$0xff] }
 0x4f7   : > { %v8267_v43 = vadd.f32 %v8007_v12, %v7725_v41  ;;  %7463 = vst.msk [vmem:[#allocation2 + $0x20] sm:$0xff] %vm176_vm2, %v7358_v15  ;;  %v6195_v44 = vpop.f32.mrf.mxu2  ;;  %v7107_v13 = vpop.f32.mrf.mxu3  ;;  %v7681_v15 = vpack.c.bf16 %v7589_v32, %v7588_v31 }
 0x4f8   : > { %v5287_v47 = vpop.f32.mrf.mxu1 }
 0x4f9   : > { %8372 = vst.msk [vmem:[#allocation2 + $0x18] sm:$0xff] %vm176_vm2, %v8267_v43  ;;  %v5541_v48 = vadd.f32 %v5287_v47, %v4999_v46  ;;  %8958 = vmatmul.msk.bf16.gmra.mxu3 %vm547_vm1, %v6771_v14  ;;  %v6680_v46 = vld [vmem:[%s9141_s26 + $0x10d] sm:$0xff]  ;;  %v6681_v47 = vld [vmem:[%s9141_s26 + $0x115] sm:$0xff] }
 0x4fa   : > { %v5908_v50 = vld [vmem:[#allocation2 + $0x30] sm:$0xff]  ;;  %v8017_v21 = vpop.f32.mrf.mxu0 }
 0x4fb   : > { %v6450_v27 = vadd.f32 %v6195_v44, %v5908_v50  ;;  %5646 = vst.msk [vmem:[#allocation2 + $0x38] sm:$0xff] %vm176_vm2, %v5541_v48 }
 0x4fc   : > { %v6817_v52 = vld [vmem:[#allocation2 + $0x28] sm:$0xff] }
 0x4fd   : > { %v7359_v55 = vadd.f32 %v7102_v42, %v6817_v52  ;;  %6555 = vst.msk [vmem:[#allocation2 + $0x30] sm:$0xff] %vm176_vm2, %v6450_v27  ;;  %v6772_v52 = vpack.c.bf16 %v6681_v47, %v6680_v46 }
 0x4fe   : > { %v7726_v59 = vld [vmem:[#allocation2 + $0x20] sm:$0xff] }
 0x4ff   : > { %v8268_v61 = vadd.f32 %v8010_v35, %v7726_v59  ;;  %7464 = vst.msk [vmem:[#allocation2 + $0x28] sm:$0xff] %vm176_vm2, %v7359_v55  ;;  %v6197_v62 = vpop.f32.mrf.mxu2  ;;  %v7110_v34 = vpop.f32.mrf.mxu3  ;;  %v4862_v59 = vld [vmem:[%s9141_s26 + $0x100] sm:$0xff] }
 0x500   : > { %v5290_v1 = vpop.f32.mrf.mxu1 }
 0x501   : > { %8373 = vst.msk [vmem:[#allocation2 + $0x20] sm:$0xff] %vm176_vm2, %v8268_v61  ;;  %v5542_v4 = vadd.f32 %v5290_v1, %v5000_v0  ;;  %v4863_v61 = vld [vmem:[%s9141_s26 + $0x108] sm:$0xff] }
 0x502   : > { %v5909_v6 = vld [vmem:[#allocation2 + $0x38] sm:$0xff]  ;;  %v8020_v42 = vpop.f32.mrf.mxu0  ;;  %v5773_v0 = vld [vmem:[%s9141_s26 + $0x124] sm:$0xff]  ;;  %v7590_v1 = vld [vmem:[%s9141_s26 + $0x10e] sm:$0xff] }
 0x503   : > { %v6451_v7 = vadd.f32 %v6197_v62, %v5909_v6  ;;  %5647 = vst.msk [vmem:[#allocation2 + $0x40] sm:$0xff] %vm176_vm2, %v5542_v4  ;;  %8850 = vmatmul.msk.bf16.gmra.mxu1 %vm547_vm1, %v4951_v63  ;;  %v5772_v62 = vld [vmem:[%s9141_s26 + $0x11c] sm:$0xff] }
 0x504   : > { %v6818_v8 = vld [vmem:[#allocation2 + $0x30] sm:$0xff]  ;;  %8904 = vmatmul.msk.bf16.gmra.mxu2 %vm547_vm1, %v5861_v2  ;;  %v5863_v10 = vpack.c.bf16 %v5773_v0, %v5772_v62 }
 0x505   : > { %v7360_v11 = vadd.f32 %v7105_v60, %v6818_v8  ;;  %6556 = vst.msk [vmem:[#allocation2 + $0x38] sm:$0xff] %vm176_vm2, %v6451_v7  ;;  %9012 = vmatmul.msk.bf16.gmra.mxu0 %vm547_vm1, %v7681_v15  ;;  %v7591_v2 = vld [vmem:[%s9141_s26 + $0x116] sm:$0xff]  ;;  %v4953_v7 = vpack.c.bf16 %v4863_v61, %v4862_v59  ;;  %v5004_v8 = vld [vmem:[#allocation2 + $0x60] sm:$0xff] }
 0x506   : > { %v7727_v12 = vld [vmem:[#allocation2 + $0x28] sm:$0xff]  ;;  %v5007_v61 = vld [vmem:[#allocation2 + $0x78] sm:$0xff] }
 0x507   : > { %v8269_v16 = vadd.f32 %v8012_v49, %v7727_v12  ;;  %7465 = vst.msk [vmem:[#allocation2 + $0x30] sm:$0xff] %vm176_vm2, %v7360_v11  ;;  %v6200_v17 = vpop.f32.mrf.mxu2  ;;  %v7112_v50 = vpop.f32.mrf.mxu3  ;;  %v7682_v11 = vpack.c.bf16 %v7591_v2, %v7590_v1 }
 0x508   : > { %v5292_v19 = vpop.f32.mrf.mxu1 }
 0x509   : > { %8374 = vst.msk [vmem:[#allocation2 + $0x28] sm:$0xff] %vm176_vm2, %v8269_v16  ;;  %v5543_v20 = vadd.f32 %v5292_v19, %v5001_v18  ;;  %8959 = vmatmul.msk.bf16.gmra.mxu3 %vm547_vm1, %v6772_v52  ;;  %v6682_v18 = vld [vmem:[%s9141_s26 + $0x11d] sm:$0xff]  ;;  %v6683_v19 = vld [vmem:[%s9141_s26 + $0x125] sm:$0xff] }
 0x50a   : > { %v5910_v22 = vld [vmem:[#allocation2 + $0x40] sm:$0xff]  ;;  %v8022_v56 = vpop.f32.mrf.mxu0 }
 0x50b   : > { %v6452_v23 = vadd.f32 %v6200_v17, %v5910_v22  ;;  %5648 = vst.msk [vmem:[#allocation2 + $0x48] sm:$0xff] %vm176_vm2, %v5543_v20 }
 0x50c   : > { %v6819_v25 = vld [vmem:[#allocation2 + $0x38] sm:$0xff] }
 0x50d   : > { %v7361_v29 = vadd.f32 %v7107_v13, %v6819_v25  ;;  %6557 = vst.msk [vmem:[#allocation2 + $0x40] sm:$0xff] %vm176_vm2, %v6452_v23  ;;  %v6773_v25 = vpack.c.bf16 %v6683_v19, %v6682_v18 }
 0x50e   : > { %v7728_v33 = vld [vmem:[#allocation2 + $0x30] sm:$0xff] }
 0x50f   : > { %v8270_v35 = vadd.f32 %v8015_v5, %v7728_v33  ;;  %7466 = vst.msk [vmem:[#allocation2 + $0x38] sm:$0xff] %vm176_vm2, %v7361_v29  ;;  %v6202_v36 = vpop.f32.mrf.mxu2  ;;  %v7115_v4 = vpop.f32.mrf.mxu3  ;;  %v4864_v33 = vld [vmem:[%s9141_s26 + $0x110] sm:$0xff] }
 0x510   : > { %v5295_v39 = vpop.f32.mrf.mxu1 }
 0x511   : > { %8375 = vst.msk [vmem:[#allocation2 + $0x30] sm:$0xff] %vm176_vm2, %v8270_v35  ;;  %v5544_v41 = vadd.f32 %v5295_v39, %v5002_v38  ;;  %v4865_v35 = vld [vmem:[%s9141_s26 + $0x118] sm:$0xff] }
 0x512   : > { %v5911_v43 = vld [vmem:[#allocation2 + $0x48] sm:$0xff]  ;;  %v8025_v13 = vpop.f32.mrf.mxu0  ;;  %v5775_v38 = vld [vmem:[%s9141_s26 + $0x134] sm:$0xff]  ;;  %v7592_v39 = vld [vmem:[%s9141_s26 + $0x11e] sm:$0xff] }
 0x513   : > { %v6453_v44 = vadd.f32 %v6202_v36, %v5911_v43  ;;  %5649 = vst.msk [vmem:[#allocation2 + $0x50] sm:$0xff] %vm176_vm2, %v5544_v41  ;;  %8851 = vmatmul.msk.bf16.gmra.mxu1 %vm547_vm1, %v4952_v37  ;;  %v5774_v36 = vld [vmem:[%s9141_s26 + $0x12c] sm:$0xff] }
 0x514   : > { %v6820_v45 = vld [vmem:[#allocation2 + $0x40] sm:$0xff]  ;;  %8905 = vmatmul.msk.bf16.gmra.mxu2 %vm547_vm1, %v5862_v40  ;;  %v5864_v47 = vpack.c.bf16 %v5775_v38, %v5774_v36 }
 0x515   : > { %v7362_v48 = vadd.f32 %v7110_v34, %v6820_v45  ;;  %6558 = vst.msk [vmem:[#allocation2 + $0x48] sm:$0xff] %vm176_vm2, %v6453_v44  ;;  %9013 = vmatmul.msk.bf16.gmra.mxu0 %vm547_vm1, %v7682_v11  ;;  %v7593_v40 = vld [vmem:[%s9141_s26 + $0x126] sm:$0xff]  ;;  %v4954_v44 = vpack.c.bf16 %v4865_v35, %v4864_v33  ;;  %v5006_v45 = vld [vmem:[#allocation2 + $0x70] sm:$0xff] }
 0x516   : > { %v7729_v49 = vld [vmem:[#allocation2 + $0x38] sm:$0xff]  ;;  %v5009_v35 = vld [vmem:[#allocation2 + $0x88] sm:$0xff] }
 0x517   : > { %v8271_v27 = vadd.f32 %v8017_v21, %v7729_v49  ;;  %7467 = vst.msk [vmem:[#allocation2 + $0x40] sm:$0xff] %vm176_vm2, %v7362_v48  ;;  %v6205_v51 = vpop.f32.mrf.mxu2  ;;  %v7117_v22 = vpop.f32.mrf.mxu3  ;;  %v7683_v48 = vpack.c.bf16 %v7593_v40, %v7592_v39 }
 0x518   : > { %v5297_v54 = vpop.f32.mrf.mxu1 }
 0x519   : > { %8376 = vst.msk [vmem:[#allocation2 + $0x38] sm:$0xff] %vm176_vm2, %v8271_v27  ;;  %v5545_v55 = vadd.f32 %v5297_v54, %v5003_v53  ;;  %8960 = vmatmul.msk.bf16.gmra.mxu3 %vm547_vm1, %v6773_v25  ;;  %v6684_v53 = vld [vmem:[%s9141_s26 + $0x12d] sm:$0xff]  ;;  %v6685_v54 = vld [vmem:[%s9141_s26 + $0x135] sm:$0xff] }
 0x51a   : > { %v5912_v57 = vld [vmem:[#allocation2 + $0x50] sm:$0xff]  ;;  %v8027_v30 = vpop.f32.mrf.mxu0 }
 0x51b   : > { %v6454_v58 = vadd.f32 %v6205_v51, %v5912_v57  ;;  %5650 = vst.msk [vmem:[#allocation2 + $0x58] sm:$0xff] %vm176_vm2, %v5545_v55 }
 0x51c   : > { %v6821_v60 = vld [vmem:[#allocation2 + $0x48] sm:$0xff] }
 0x51d   : > { %v7363_v63 = vadd.f32 %v7112_v50, %v6821_v60  ;;  %6559 = vst.msk [vmem:[#allocation2 + $0x50] sm:$0xff] %vm176_vm2, %v6454_v58  ;;  %v6774_v60 = vpack.c.bf16 %v6685_v54, %v6684_v53 }
 0x51e   : > { %v7730_v3 = vld [vmem:[#allocation2 + $0x40] sm:$0xff] }
 0x51f   : > { %v8272_v5 = vadd.f32 %v8020_v42, %v7730_v3  ;;  %7468 = vst.msk [vmem:[#allocation2 + $0x48] sm:$0xff] %vm176_vm2, %v7363_v63  ;;  %v6207_v6 = vpop.f32.mrf.mxu2  ;;  %v7120_v41 = vpop.f32.mrf.mxu3  ;;  %v4866_v3 = vld [vmem:[%s9141_s26 + $0x120] sm:$0xff] }
 0x520   : > { %v5300_v9 = vpop.f32.mrf.mxu1 }
 0x521   : > { %8377 = vst.msk [vmem:[#allocation2 + $0x40] sm:$0xff] %vm176_vm2, %v8272_v5  ;;  %v5546_v12 = vadd.f32 %v5300_v9, %v5004_v8  ;;  %v4867_v5 = vld [vmem:[%s9141_s26 + $0x128] sm:$0xff] }
 0x522   : > { %v5913_v16 = vld [vmem:[#allocation2 + $0x58] sm:$0xff]  ;;  %v8030_v50 = vpop.f32.mrf.mxu0  ;;  %v5777_v8 = vld [vmem:[%s9141_s26 + $0x144] sm:$0xff]  ;;  %v7594_v9 = vld [vmem:[%s9141_s26 + $0x12e] sm:$0xff] }
 0x523   : > { %v6455_v17 = vadd.f32 %v6207_v6, %v5913_v16  ;;  %5651 = vst.msk [vmem:[#allocation2 + $0x60] sm:$0xff] %vm176_vm2, %v5546_v12  ;;  %8852 = vmatmul.msk.bf16.gmra.mxu1 %vm547_vm1, %v4953_v7  ;;  %v5776_v6 = vld [vmem:[%s9141_s26 + $0x13c] sm:$0xff] }
 0x524   : > { %v6822_v14 = vld [vmem:[#allocation2 + $0x50] sm:$0xff]  ;;  %8906 = vmatmul.msk.bf16.gmra.mxu2 %vm547_vm1, %v5863_v10  ;;  %v5865_v19 = vpack.c.bf16 %v5777_v8, %v5776_v6 }
 0x525   : > { %v7364_v20 = vadd.f32 %v7115_v4, %v6822_v14  ;;  %6560 = vst.msk [vmem:[#allocation2 + $0x58] sm:$0xff] %vm176_vm2, %v6455_v17  ;;  %9014 = vmatmul.msk.bf16.gmra.mxu0 %vm547_vm1, %v7683_v48  ;;  %v7595_v10 = vld [vmem:[%s9141_s26 + $0x136] sm:$0xff]  ;;  %v4955_v17 = vpack.c.bf16 %v4867_v5, %v4866_v3  ;;  %v5008_v14 = vld [vmem:[#allocation2 + $0x80] sm:$0xff] }
 0x526   : > { %v7731_v21 = vld [vmem:[#allocation2 + $0x48] sm:$0xff]  ;;  %v5011_v5 = vld [vmem:[#allocation2 + $0x98] sm:$0xff] }
 0x527   : > { %v8273_v23 = vadd.f32 %v8022_v56, %v7731_v21  ;;  %7469 = vst.msk [vmem:[#allocation2 + $0x50] sm:$0xff] %vm176_vm2, %v7364_v20  ;;  %v6210_v24 = vpop.f32.mrf.mxu2  ;;  %v7122_v57 = vpop.f32.mrf.mxu3  ;;  %v7684_v20 = vpack.c.bf16 %v7595_v10, %v7594_v9 }
 0x528   : > { %v5302_v28 = vpop.f32.mrf.mxu1 }
 0x529   : > { %8378 = vst.msk [vmem:[#allocation2 + $0x48] sm:$0xff] %vm176_vm2, %v8273_v23  ;;  %v5547_v29 = vadd.f32 %v5302_v28, %v5005_v26  ;;  %8961 = vmatmul.msk.bf16.gmra.mxu3 %vm547_vm1, %v6774_v60  ;;  %v6686_v26 = vld [vmem:[%s9141_s26 + $0x13d] sm:$0xff]  ;;  %v6687_v28 = vld [vmem:[%s9141_s26 + $0x145] sm:$0xff] }
 0x52a   : > { %v5914_v31 = vld [vmem:[#allocation2 + $0x60] sm:$0xff]  ;;  %v8032_v0 = vpop.f32.mrf.mxu0 }
 0x52b   : > { %v6456_v32 = vadd.f32 %v6210_v24, %v5914_v31  ;;  %5652 = vst.msk [vmem:[#allocation2 + $0x68] sm:$0xff] %vm176_vm2, %v5547_v29 }
 0x52c   : > { %v6823_v34 = vld [vmem:[#allocation2 + $0x58] sm:$0xff] }
 0x52d   : > { %v7365_v37 = vadd.f32 %v7117_v22, %v6823_v34  ;;  %6561 = vst.msk [vmem:[#allocation2 + $0x60] sm:$0xff] %vm176_vm2, %v6456_v32  ;;  %v6775_v34 = vpack.c.bf16 %v6687_v28, %v6686_v26 }
 0x52e   : > { %v7732_v15 = vld [vmem:[#allocation2 + $0x50] sm:$0xff] }
 0x52f   : > { %v8274_v42 = vadd.f32 %v8025_v13, %v7732_v15  ;;  %7470 = vst.msk [vmem:[#allocation2 + $0x58] sm:$0xff] %vm176_vm2, %v7365_v37  ;;  %v6212_v43 = vpop.f32.mrf.mxu2  ;;  %v7125_v12 = vpop.f32.mrf.mxu3  ;;  %v4868_v15 = vld [vmem:[%s9141_s26 + $0x130] sm:$0xff] }
 0x530   : > { %v5305_v46 = vpop.f32.mrf.mxu1 }
 0x531   : > { %8379 = vst.msk [vmem:[#allocation2 + $0x50] sm:$0xff] %vm176_vm2, %v8274_v42  ;;  %v5548_v49 = vadd.f32 %v5305_v46, %v5006_v45  ;;  %v4869_v42 = vld [vmem:[%s9141_s26 + $0x138] sm:$0xff] }
 0x532   : > { %v5915_v27 = vld [vmem:[#allocation2 + $0x68] sm:$0xff]  ;;  %v8035_v22 = vpop.f32.mrf.mxu0  ;;  %v5779_v45 = vld [vmem:[%s9141_s26 + $0x154] sm:$0xff]  ;;  %v7596_v46 = vld [vmem:[%s9141_s26 + $0x13e] sm:$0xff] }
 0x533   : > { %v6457_v51 = vadd.f32 %v6212_v43, %v5915_v27  ;;  %5653 = vst.msk [vmem:[#allocation2 + $0x70] sm:$0xff] %vm176_vm2, %v5548_v49  ;;  %8853 = vmatmul.msk.bf16.gmra.mxu1 %vm547_vm1, %v4954_v44  ;;  %v5778_v43 = vld [vmem:[%s9141_s26 + $0x14c] sm:$0xff] }
 0x534   : > { %v6824_v52 = vld [vmem:[#allocation2 + $0x60] sm:$0xff]  ;;  %8907 = vmatmul.msk.bf16.gmra.mxu2 %vm547_vm1, %v5864_v47  ;;  %v5866_v54 = vpack.c.bf16 %v5779_v45, %v5778_v43 }
 0x535   : > { %v7366_v55 = vadd.f32 %v7120_v41, %v6824_v52  ;;  %6562 = vst.msk [vmem:[#allocation2 + $0x68] sm:$0xff] %vm176_vm2, %v6457_v51  ;;  %9015 = vmatmul.msk.bf16.gmra.mxu0 %vm547_vm1, %v7684_v20  ;;  %v7597_v47 = vld [vmem:[%s9141_s26 + $0x146] sm:$0xff]  ;;  %v4956_v51 = vpack.c.bf16 %v4869_v42, %v4868_v15  ;;  %v5010_v52 = vld [vmem:[#allocation2 + $0x90] sm:$0xff] }
 0x536   : > { %v7733_v56 = vld [vmem:[#allocation2 + $0x58] sm:$0xff]  ;;  %v5013_v42 = vld [vmem:[#allocation2 + $0xa8] sm:$0xff] }
 0x537   : > { %v8275_v58 = vadd.f32 %v8027_v30, %v7733_v56  ;;  %7471 = vst.msk [vmem:[#allocation2 + $0x60] sm:$0xff] %vm176_vm2, %v7366_v55  ;;  %v6215_v59 = vpop.f32.mrf.mxu2  ;;  %v7127_v31 = vpop.f32.mrf.mxu3  ;;  %v7685_v55 = vpack.c.bf16 %v7597_v47, %v7596_v46 }
 0x538   : > { %v5307_v62 = vpop.f32.mrf.mxu1 }
 0x539   : > { %8380 = vst.msk [vmem:[#allocation2 + $0x58] sm:$0xff] %vm176_vm2, %v8275_v58  ;;  %v5549_v63 = vadd.f32 %v5307_v62, %v5007_v61  ;;  %8962 = vmatmul.msk.bf16.gmra.mxu3 %vm547_vm1, %v6775_v34  ;;  %v6688_v61 = vld [vmem:[%s9141_s26 + $0x14d] sm:$0xff]  ;;  %v6689_v62 = vld [vmem:[%s9141_s26 + $0x155] sm:$0xff] }
 0x53a   : > { %v5916_v1 = vld [vmem:[#allocation2 + $0x70] sm:$0xff]  ;;  %v8037_v38 = vpop.f32.mrf.mxu0 }
 0x53b   : > { %v6458_v2 = vadd.f32 %v6215_v59, %v5916_v1  ;;  %5654 = vst.msk [vmem:[#allocation2 + $0x78] sm:$0xff] %vm176_vm2, %v5549_v63 }
 0x53c   : > { %v6825_v4 = vld [vmem:[#allocation2 + $0x68] sm:$0xff] }
 0x53d   : > { %v7367_v7 = vadd.f32 %v7122_v57, %v6825_v4  ;;  %6563 = vst.msk [vmem:[#allocation2 + $0x70] sm:$0xff] %vm176_vm2, %v6458_v2  ;;  %v6776_v4 = vpack.c.bf16 %v6689_v62, %v6688_v61 }
 0x53e   : > { %v7734_v11 = vld [vmem:[#allocation2 + $0x60] sm:$0xff] }
 0x53f   : > { %v8276_v13 = vadd.f32 %v8030_v50, %v7734_v11  ;;  %7472 = vst.msk [vmem:[#allocation2 + $0x68] sm:$0xff] %vm176_vm2, %v7367_v7  ;;  %v6217_v16 = vpop.f32.mrf.mxu2  ;;  %v7130_v49 = vpop.f32.mrf.mxu3  ;;  %v4870_v11 = vld [vmem:[%s9141_s26 + $0x140] sm:$0xff] }
 0x540   : > { %v5310_v18 = vpop.f32.mrf.mxu1 }
 0x541   : > { %8381 = vst.msk [vmem:[#allocation2 + $0x60] sm:$0xff] %vm176_vm2, %v8276_v13  ;;  %v5550_v21 = vadd.f32 %v5310_v18, %v5008_v14  ;;  %v4871_v13 = vld [vmem:[%s9141_s26 + $0x148] sm:$0xff] }
 0x542   : > { %v5917_v23 = vld [vmem:[#allocation2 + $0x78] sm:$0xff]  ;;  %v8040_v57 = vpop.f32.mrf.mxu0  ;;  %v5781_v14 = vld [vmem:[%s9141_s26 + $0x164] sm:$0xff]  ;;  %v7598_v18 = vld [vmem:[%s9141_s26 + $0x14e] sm:$0xff] }
 0x543   : > { %v6459_v24 = vadd.f32 %v6217_v16, %v5917_v23  ;;  %5655 = vst.msk [vmem:[#allocation2 + $0x80] sm:$0xff] %vm176_vm2, %v5550_v21  ;;  %8854 = vmatmul.msk.bf16.gmra.mxu1 %vm547_vm1, %v4955_v17  ;;  %v5780_v16 = vld [vmem:[%s9141_s26 + $0x15c] sm:$0xff] }
 0x544   : > { %v6826_v25 = vld [vmem:[#allocation2 + $0x70] sm:$0xff]  ;;  %8908 = vmatmul.msk.bf16.gmra.mxu2 %vm547_vm1, %v5865_v19  ;;  %v5867_v28 = vpack.c.bf16 %v5781_v14, %v5780_v16 }
 0x545   : > { %v7368_v29 = vadd.f32 %v7125_v12, %v6826_v25  ;;  %6564 = vst.msk [vmem:[#allocation2 + $0x78] sm:$0xff] %vm176_vm2, %v6459_v24  ;;  %9016 = vmatmul.msk.bf16.gmra.mxu0 %vm547_vm1, %v7685_v55  ;;  %v7599_v19 = vld [vmem:[%s9141_s26 + $0x156] sm:$0xff]  ;;  %v4957_v24 = vpack.c.bf16 %v4871_v13, %v4870_v11  ;;  %v5012_v25 = vld [vmem:[#allocation2 + $0xa0] sm:$0xff] }
 0x546   : > { %v7735_v30 = vld [vmem:[#allocation2 + $0x68] sm:$0xff]  ;;  %v5015_v13 = vld [vmem:[#allocation2 + $0xb8] sm:$0xff] }
 0x547   : > { %v8277_v32 = vadd.f32 %v8032_v0, %v7735_v30  ;;  %7473 = vst.msk [vmem:[#allocation2 + $0x70] sm:$0xff] %vm176_vm2, %v7368_v29  ;;  %v6220_v33 = vpop.f32.mrf.mxu2  ;;  %v7132_v1 = vpop.f32.mrf.mxu3  ;;  %v7686_v29 = vpack.c.bf16 %v7599_v19, %v7598_v18 }
 0x548   : > { %v5312_v36 = vpop.f32.mrf.mxu1 }
 0x549   : > { %8382 = vst.msk [vmem:[#allocation2 + $0x68] sm:$0xff] %vm176_vm2, %v8277_v32  ;;  %v5551_v37 = vadd.f32 %v5312_v36, %v5009_v35  ;;  %8963 = vmatmul.msk.bf16.gmra.mxu3 %vm547_vm1, %v6776_v4  ;;  %v6690_v35 = vld [vmem:[%s9141_s26 + $0x15d] sm:$0xff]  ;;  %v6691_v36 = vld [vmem:[%s9141_s26 + $0x165] sm:$0xff] }
 0x54a   : > { %v5918_v39 = vld [vmem:[#allocation2 + $0x80] sm:$0xff]  ;;  %v8042_v8 = vpop.f32.mrf.mxu0 }
 0x54b   : > { %v6460_v40 = vadd.f32 %v6220_v33, %v5918_v39  ;;  %5656 = vst.msk [vmem:[#allocation2 + $0x88] sm:$0xff] %vm176_vm2, %v5551_v37 }
 0x54c   : > { %v6827_v41 = vld [vmem:[#allocation2 + $0x78] sm:$0xff] }
 0x54d   : > { %v7369_v44 = vadd.f32 %v7127_v31, %v6827_v41  ;;  %6565 = vst.msk [vmem:[#allocation2 + $0x80] sm:$0xff] %vm176_vm2, %v6460_v40  ;;  %v6777_v41 = vpack.c.bf16 %v6691_v36, %v6690_v35 }
 0x54e   : > { %v7736_v48 = vld [vmem:[#allocation2 + $0x70] sm:$0xff] }
 0x54f   : > { %v8278_v50 = vadd.f32 %v8035_v22, %v7736_v48  ;;  %7474 = vst.msk [vmem:[#allocation2 + $0x78] sm:$0xff] %vm176_vm2, %v7369_v44  ;;  %v6222_v27 = vpop.f32.mrf.mxu2  ;;  %v7135_v21 = vpop.f32.mrf.mxu3  ;;  %v4872_v48 = vld [vmem:[%s9141_s26 + $0x150] sm:$0xff] }
 0x550   : > { %v5315_v53 = vpop.f32.mrf.mxu1 }
 0x551   : > { %8383 = vst.msk [vmem:[#allocation2 + $0x70] sm:$0xff] %vm176_vm2, %v8278_v50  ;;  %v5552_v56 = vadd.f32 %v5315_v53, %v5010_v52  ;;  %v4873_v50 = vld [vmem:[%s9141_s26 + $0x158] sm:$0xff] }
 0x552   : > { %v5919_v58 = vld [vmem:[#allocation2 + $0x88] sm:$0xff]  ;;  %v8045_v31 = vpop.f32.mrf.mxu0  ;;  %v5783_v52 = vld [vmem:[%s9141_s26 + $0x174] sm:$0xff]  ;;  %v7600_v53 = vld [vmem:[%s9141_s26 + $0x15e] sm:$0xff] }
 0x553   : > { %v6461_v59 = vadd.f32 %v6222_v27, %v5919_v58  ;;  %5657 = vst.msk [vmem:[#allocation2 + $0x90] sm:$0xff] %vm176_vm2, %v5552_v56  ;;  %8855 = vmatmul.msk.bf16.gmra.mxu1 %vm547_vm1, %v4956_v51  ;;  %v5782_v27 = vld [vmem:[%s9141_s26 + $0x16c] sm:$0xff] }
 0x554   : > { %v6828_v60 = vld [vmem:[#allocation2 + $0x80] sm:$0xff]  ;;  %8909 = vmatmul.msk.bf16.gmra.mxu2 %vm547_vm1, %v5866_v54  ;;  %v5868_v62 = vpack.c.bf16 %v5783_v52, %v5782_v27 }
 0x555   : > { %v7370_v63 = vadd.f32 %v7130_v49, %v6828_v60  ;;  %6566 = vst.msk [vmem:[#allocation2 + $0x88] sm:$0xff] %vm176_vm2, %v6461_v59  ;;  %9017 = vmatmul.msk.bf16.gmra.mxu0 %vm547_vm1, %v7686_v29  ;;  %v7601_v54 = vld [vmem:[%s9141_s26 + $0x166] sm:$0xff]  ;;  %v4958_v59 = vpack.c.bf16 %v4873_v50, %v4872_v48  ;;  %v5014_v60 = vld [vmem:[#allocation2 + $0xb0] sm:$0xff] }
 0x556   : > { %v7737_v0 = vld [vmem:[#allocation2 + $0x78] sm:$0xff]  ;;  %v5017_v50 = vld [vmem:[#allocation2 + $0xc8] sm:$0xff] }
 0x557   : > { %v8279_v2 = vadd.f32 %v8037_v38, %v7737_v0  ;;  %7475 = vst.msk [vmem:[#allocation2 + $0x80] sm:$0xff] %vm176_vm2, %v7370_v63  ;;  %v6225_v3 = vpop.f32.mrf.mxu2  ;;  %v7137_v39 = vpop.f32.mrf.mxu3  ;;  %v7687_v63 = vpack.c.bf16 %v7601_v54, %v7600_v53 }
 0x558   : > { %v5317_v6 = vpop.f32.mrf.mxu1 }
 0x559   : > { %8384 = vst.msk [vmem:[#allocation2 + $0x78] sm:$0xff] %vm176_vm2, %v8279_v2  ;;  %v5553_v7 = vadd.f32 %v5317_v6, %v5011_v5  ;;  %8964 = vmatmul.msk.bf16.gmra.mxu3 %vm547_vm1, %v6777_v41  ;;  %v6692_v5 = vld [vmem:[%s9141_s26 + $0x16d] sm:$0xff]  ;;  %v6693_v6 = vld [vmem:[%s9141_s26 + $0x175] sm:$0xff] }
 0x55a   : > { %v5920_v9 = vld [vmem:[#allocation2 + $0x90] sm:$0xff]  ;;  %v8047_v45 = vpop.f32.mrf.mxu0 }
 0x55b   : > { %v6462_v10 = vadd.f32 %v6225_v3, %v5920_v9  ;;  %5658 = vst.msk [vmem:[#allocation2 + $0x98] sm:$0xff] %vm176_vm2, %v5553_v7 }
 0x55c   : > { %v6829_v12 = vld [vmem:[#allocation2 + $0x88] sm:$0xff] }
 0x55d   : > { %v7371_v17 = vadd.f32 %v7132_v1, %v6829_v12  ;;  %6567 = vst.msk [vmem:[#allocation2 + $0x90] sm:$0xff] %vm176_vm2, %v6462_v10  ;;  %v6778_v12 = vpack.c.bf16 %v6693_v6, %v6692_v5 }
 0x55e   : > { %v7738_v20 = vld [vmem:[#allocation2 + $0x80] sm:$0xff] }
 0x55f   : > { %v8280_v22 = vadd.f32 %v8040_v57, %v7738_v20  ;;  %7476 = vst.msk [vmem:[#allocation2 + $0x88] sm:$0xff] %vm176_vm2, %v7371_v17  ;;  %v6227_v23 = vpop.f32.mrf.mxu2  ;;  %v7140_v56 = vpop.f32.mrf.mxu3  ;;  %v4874_v20 = vld [vmem:[%s9141_s26 + $0x160] sm:$0xff] }
 0x560   : > { %v5320_v26 = vpop.f32.mrf.mxu1 }
 0x561   : > { %8385 = vst.msk [vmem:[#allocation2 + $0x80] sm:$0xff] %vm176_vm2, %v8280_v22  ;;  %v5554_v30 = vadd.f32 %v5320_v26, %v5012_v25  ;;  %v4875_v22 = vld [vmem:[%s9141_s26 + $0x168] sm:$0xff] }
 0x562   : > { %v5921_v32 = vld [vmem:[#allocation2 + $0x98] sm:$0xff]  ;;  %v8050_v1 = vpop.f32.mrf.mxu0  ;;  %v5785_v25 = vld [vmem:[%s9141_s26 + $0x184] sm:$0xff]  ;;  %v7602_v26 = vld [vmem:[%s9141_s26 + $0x16e] sm:$0xff] }
 0x563   : > { %v6463_v33 = vadd.f32 %v6227_v23, %v5921_v32  ;;  %5659 = vst.msk [vmem:[#allocation2 + $0xa0] sm:$0xff] %vm176_vm2, %v5554_v30  ;;  %8856 = vmatmul.msk.bf16.gmra.mxu1 %vm547_vm1, %v4957_v24  ;;  %v5784_v23 = vld [vmem:[%s9141_s26 + $0x17c] sm:$0xff] }
 0x564   : > { %v6830_v34 = vld [vmem:[#allocation2 + $0x90] sm:$0xff]  ;;  %8910 = vmatmul.msk.bf16.gmra.mxu2 %vm547_vm1, %v5867_v28  ;;  %v5869_v36 = vpack.c.bf16 %v5785_v25, %v5784_v23 }
 0x565   : > { %v7372_v37 = vadd.f32 %v7135_v21, %v6830_v34  ;;  %6568 = vst.msk [vmem:[#allocation2 + $0x98] sm:$0xff] %vm176_vm2, %v6463_v33  ;;  %9018 = vmatmul.msk.bf16.gmra.mxu0 %vm547_vm1, %v7687_v63  ;;  %v7603_v28 = vld [vmem:[%s9141_s26 + $0x176] sm:$0xff]  ;;  %v4959_v33 = vpack.c.bf16 %v4875_v22, %v4874_v20  ;;  %v5016_v34 = vld [vmem:[#allocation2 + $0xc0] sm:$0xff] }
 0x566   : > { %v7739_v38 = vld [vmem:[#allocation2 + $0x88] sm:$0xff]  ;;  %v5019_v22 = vld [vmem:[#allocation2 + $0xd8] sm:$0xff] }
 0x567   : > { %v8281_v40 = vadd.f32 %v8042_v8, %v7739_v38  ;;  %7477 = vst.msk [vmem:[#allocation2 + $0x90] sm:$0xff] %vm176_vm2, %v7372_v37  ;;  %v6230_v15 = vpop.f32.mrf.mxu2  ;;  %v7142_v9 = vpop.f32.mrf.mxu3  ;;  %v7688_v37 = vpack.c.bf16 %v7603_v28, %v7602_v26 }
 0x568   : > { %v5322_v43 = vpop.f32.mrf.mxu1 }
 0x569   : > { %8386 = vst.msk [vmem:[#allocation2 + $0x88] sm:$0xff] %vm176_vm2, %v8281_v40  ;;  %v5555_v44 = vadd.f32 %v5322_v43, %v5013_v42  ;;  %8965 = vmatmul.msk.bf16.gmra.mxu3 %vm547_vm1, %v6778_v12  ;;  %v6694_v42 = vld [vmem:[%s9141_s26 + $0x17d] sm:$0xff]  ;;  %v6695_v43 = vld [vmem:[%s9141_s26 + $0x185] sm:$0xff] }
 0x56a   : > { %v5922_v46 = vld [vmem:[#allocation2 + $0xa0] sm:$0xff]  ;;  %v8052_v14 = vpop.f32.mrf.mxu0 }
 0x56b   : > { %v6464_v47 = vadd.f32 %v6230_v15, %v5922_v46  ;;  %5660 = vst.msk [vmem:[#allocation2 + $0xa8] sm:$0xff] %vm176_vm2, %v5555_v44 }
 0x56c   : > { %v6831_v49 = vld [vmem:[#allocation2 + $0x98] sm:$0xff] }
 0x56d   : > { %v7373_v51 = vadd.f32 %v7137_v39, %v6831_v49  ;;  %6569 = vst.msk [vmem:[#allocation2 + $0xa0] sm:$0xff] %vm176_vm2, %v6464_v47  ;;  %v6779_v49 = vpack.c.bf16 %v6695_v43, %v6694_v42 }
 0x56e   : > { %v7740_v55 = vld [vmem:[#allocation2 + $0x90] sm:$0xff] }
 0x56f   : > { %v8282_v57 = vadd.f32 %v8045_v31, %v7740_v55  ;;  %7478 = vst.msk [vmem:[#allocation2 + $0x98] sm:$0xff] %vm176_vm2, %v7373_v51  ;;  %v6232_v58 = vpop.f32.mrf.mxu2  ;;  %v7145_v30 = vpop.f32.mrf.mxu3  ;;  %v4876_v55 = vld [vmem:[%s9141_s26 + $0x170] sm:$0xff] }
 0x570   : > { %v5325_v61 = vpop.f32.mrf.mxu1 }
 0x571   : > { %8387 = vst.msk [vmem:[#allocation2 + $0x90] sm:$0xff] %vm176_vm2, %v8282_v57  ;;  %v5556_v0 = vadd.f32 %v5325_v61, %v5014_v60  ;;  %v4877_v57 = vld [vmem:[%s9141_s26 + $0x178] sm:$0xff] }
 0x572   : > { %v5923_v2 = vld [vmem:[#allocation2 + $0xa8] sm:$0xff]  ;;  %v8055_v39 = vpop.f32.mrf.mxu0  ;;  %v5787_v60 = vld [vmem:[%s9141_s26 + $0x194] sm:$0xff]  ;;  %v7604_v61 = vld [vmem:[%s9141_s26 + $0x17e] sm:$0xff] }
 0x573   : > { %v6465_v3 = vadd.f32 %v6232_v58, %v5923_v2  ;;  %5661 = vst.msk [vmem:[#allocation2 + $0xb0] sm:$0xff] %vm176_vm2, %v5556_v0  ;;  %8857 = vmatmul.msk.bf16.gmra.mxu1 %vm547_vm1, %v4958_v59  ;;  %v5786_v58 = vld [vmem:[%s9141_s26 + $0x18c] sm:$0xff] }
 0x574   : > { %v6832_v4 = vld [vmem:[#allocation2 + $0xa0] sm:$0xff]  ;;  %8911 = vmatmul.msk.bf16.gmra.mxu2 %vm547_vm1, %v5868_v62  ;;  %v5870_v6 = vpack.c.bf16 %v5787_v60, %v5786_v58 }
 0x575   : > { %v7374_v7 = vadd.f32 %v7140_v56, %v6832_v4  ;;  %6570 = vst.msk [vmem:[#allocation2 + $0xa8] sm:$0xff] %vm176_vm2, %v6465_v3  ;;  %9019 = vmatmul.msk.bf16.gmra.mxu0 %vm547_vm1, %v7688_v37  ;;  %v7605_v62 = vld [vmem:[%s9141_s26 + $0x186] sm:$0xff]  ;;  %v4960_v3 = vpack.c.bf16 %v4877_v57, %v4876_v55  ;;  %v5018_v4 = vld [vmem:[#allocation2 + $0xd0] sm:$0xff] }
 0x576   : > { %v7741_v8 = vld [vmem:[#allocation2 + $0x98] sm:$0xff]  ;;  %v5021_v57 = vld [vmem:[#allocation2 + $0xe8] sm:$0xff] }
 0x577   : > { %v8283_v10 = vadd.f32 %v8047_v45, %v7741_v8  ;;  %7479 = vst.msk [vmem:[#allocation2 + $0xa0] sm:$0xff] %vm176_vm2, %v7374_v7  ;;  %v6235_v11 = vpop.f32.mrf.mxu2  ;;  %v7147_v46 = vpop.f32.mrf.mxu3  ;;  %v7689_v7 = vpack.c.bf16 %v7605_v62, %v7604_v61 }
 0x578   : > { %v5327_v16 = vpop.f32.mrf.mxu1 }
 0x579   : > { %8388 = vst.msk [vmem:[#allocation2 + $0x98] sm:$0xff] %vm176_vm2, %v8283_v10  ;;  %v5557_v17 = vadd.f32 %v5327_v16, %v5015_v13  ;;  %8966 = vmatmul.msk.bf16.gmra.mxu3 %vm547_vm1, %v6779_v49  ;;  %v6696_v13 = vld [vmem:[%s9141_s26 + $0x18d] sm:$0xff]  ;;  %v6697_v16 = vld [vmem:[%s9141_s26 + $0x195] sm:$0xff] }
 0x57a   : > { %v5924_v18 = vld [vmem:[#allocation2 + $0xb0] sm:$0xff]  ;;  %v8057_v52 = vpop.f32.mrf.mxu0 }
 0x57b   : > { %v6466_v19 = vadd.f32 %v6235_v11, %v5924_v18  ;;  %5662 = vst.msk [vmem:[#allocation2 + $0xb8] sm:$0xff] %vm176_vm2, %v5557_v17 }
 0x57c   : > { %v6833_v21 = vld [vmem:[#allocation2 + $0xa8] sm:$0xff] }
 0x57d   : > { %v7375_v24 = vadd.f32 %v7142_v9, %v6833_v21  ;;  %6571 = vst.msk [vmem:[#allocation2 + $0xb0] sm:$0xff] %vm176_vm2, %v6466_v19  ;;  %v6780_v21 = vpack.c.bf16 %v6697_v16, %v6696_v13 }
 0x57e   : > { %v7742_v29 = vld [vmem:[#allocation2 + $0xa0] sm:$0xff] }
 0x57f   : > { %v8284_v31 = vadd.f32 %v8050_v1, %v7742_v29  ;;  %7480 = vst.msk [vmem:[#allocation2 + $0xa8] sm:$0xff] %vm176_vm2, %v7375_v24  ;;  %v6237_v32 = vpop.f32.mrf.mxu2  ;;  %v7150_v0 = vpop.f32.mrf.mxu3  ;;  %v4878_v29 = vld [vmem:[%s9141_s26 + $0x180] sm:$0xff] }
 0x580   : > { %v5330_v35 = vpop.f32.mrf.mxu1 }
 0x581   : > { %8389 = vst.msk [vmem:[#allocation2 + $0xa0] sm:$0xff] %vm176_vm2, %v8284_v31  ;;  %v5558_v38 = vadd.f32 %v5330_v35, %v5016_v34  ;;  %v4879_v31 = vld [vmem:[%s9141_s26 + $0x188] sm:$0xff] }
 0x582   : > { %v5925_v40 = vld [vmem:[#allocation2 + $0xb8] sm:$0xff]  ;;  %v8060_v9 = vpop.f32.mrf.mxu0  ;;  %v5789_v34 = vld [vmem:[%s9141_s26 + $0x1a4] sm:$0xff]  ;;  %v7606_v35 = vld [vmem:[%s9141_s26 + $0x18e] sm:$0xff] }
 0x583   : > { %v6467_v15 = vadd.f32 %v6237_v32, %v5925_v40  ;;  %5663 = vst.msk [vmem:[#allocation2 + $0xc0] sm:$0xff] %vm176_vm2, %v5558_v38  ;;  %8858 = vmatmul.msk.bf16.gmra.mxu1 %vm547_vm1, %v4959_v33  ;;  %v5788_v32 = vld [vmem:[%s9141_s26 + $0x19c] sm:$0xff] }
 0x584   : > { %v6834_v41 = vld [vmem:[#allocation2 + $0xb0] sm:$0xff]  ;;  %8912 = vmatmul.msk.bf16.gmra.mxu2 %vm547_vm1, %v5869_v36  ;;  %v5871_v43 = vpack.c.bf16 %v5789_v34, %v5788_v32 }
 0x585   : > { %v7376_v44 = vadd.f32 %v7145_v30, %v6834_v41  ;;  %6572 = vst.msk [vmem:[#allocation2 + $0xb8] sm:$0xff] %vm176_vm2, %v6467_v15  ;;  %9020 = vmatmul.msk.bf16.gmra.mxu0 %vm547_vm1, %v7689_v7  ;;  %v7607_v36 = vld [vmem:[%s9141_s26 + $0x196] sm:$0xff]  ;;  %v4961_v15 = vpack.c.bf16 %v4879_v31, %v4878_v29  ;;  %v5020_v41 = vld [vmem:[#allocation2 + $0xe0] sm:$0xff] }
 0x586   : > { %v7743_v45 = vld [vmem:[#allocation2 + $0xa8] sm:$0xff]  ;;  %v5023_v31 = vld [vmem:[#allocation2 + $0xf8] sm:$0xff] }
 0x587   : > { %v8285_v47 = vadd.f32 %v8052_v14, %v7743_v45  ;;  %7481 = vst.msk [vmem:[#allocation2 + $0xb0] sm:$0xff] %vm176_vm2, %v7376_v44  ;;  %v6240_v48 = vpop.f32.mrf.mxu2  ;;  %v7152_v18 = vpop.f32.mrf.mxu3  ;;  %v7690_v44 = vpack.c.bf16 %v7607_v36, %v7606_v35 }
 0x588   : > { %v5332_v27 = vpop.f32.mrf.mxu1 }
 0x589   : > { %8390 = vst.msk [vmem:[#allocation2 + $0xa8] sm:$0xff] %vm176_vm2, %v8285_v47  ;;  %v5559_v51 = vadd.f32 %v5332_v27, %v5017_v50  ;;  %8967 = vmatmul.msk.bf16.gmra.mxu3 %vm547_vm1, %v6780_v21  ;;  %v6698_v50 = vld [vmem:[%s9141_s26 + $0x19d] sm:$0xff]  ;;  %v6699_v27 = vld [vmem:[%s9141_s26 + $0x1a5] sm:$0xff] }
 0x58a   : > { %v5926_v53 = vld [vmem:[#allocation2 + $0xc0] sm:$0xff]  ;;  %v8062_v25 = vpop.f32.mrf.mxu0 }
 0x58b   : > { %v6468_v54 = vadd.f32 %v6240_v48, %v5926_v53  ;;  %5664 = vst.msk [vmem:[#allocation2 + $0xc8] sm:$0xff] %vm176_vm2, %v5559_v51 }
 0x58c   : > { %v6835_v56 = vld [vmem:[#allocation2 + $0xb8] sm:$0xff] }
 0x58d   : > { %v7377_v59 = vadd.f32 %v7147_v46, %v6835_v56  ;;  %6573 = vst.msk [vmem:[#allocation2 + $0xc0] sm:$0xff] %vm176_vm2, %v6468_v54  ;;  %v6781_v56 = vpack.c.bf16 %v6699_v27, %v6698_v50 }
 0x58e   : > { %v7744_v63 = vld [vmem:[#allocation2 + $0xb0] sm:$0xff] }
 0x58f   : > { %v8286_v1 = vadd.f32 %v8055_v39, %v7744_v63  ;;  %7482 = vst.msk [vmem:[#allocation2 + $0xb8] sm:$0xff] %vm176_vm2, %v7377_v59  ;;  %v6242_v2 = vpop.f32.mrf.mxu2  ;;  %v7155_v38 = vpop.f32.mrf.mxu3  ;;  %v4880_v63 = vld [vmem:[%s9141_s26 + $0x190] sm:$0xff] }
 0x590   : > { %v5335_v5 = vpop.f32.mrf.mxu1 }
 0x591   : > { %8391 = vst.msk [vmem:[#allocation2 + $0xb0] sm:$0xff] %vm176_vm2, %v8286_v1  ;;  %v5560_v8 = vadd.f32 %v5335_v5, %v5018_v4  ;;  %v4881_v1 = vld [vmem:[%s9141_s26 + $0x198] sm:$0xff] }
 0x592   : > { %v5927_v10 = vld [vmem:[#allocation2 + $0xc8] sm:$0xff]  ;;  %v8065_v46 = vpop.f32.mrf.mxu0  ;;  %v5791_v4 = vld [vmem:[%s9141_s26 + $0x1b4] sm:$0xff]  ;;  %v7608_v5 = vld [vmem:[%s9141_s26 + $0x19e] sm:$0xff] }
 0x593   : > { %v6469_v11 = vadd.f32 %v6242_v2, %v5927_v10  ;;  %5665 = vst.msk [vmem:[#allocation2 + $0xd0] sm:$0xff] %vm176_vm2, %v5560_v8  ;;  %8859 = vmatmul.msk.bf16.gmra.mxu1 %vm547_vm1, %v4960_v3  ;;  %v5790_v2 = vld [vmem:[%s9141_s26 + $0x1ac] sm:$0xff] }
 0x594   : > { %v6836_v12 = vld [vmem:[#allocation2 + $0xc0] sm:$0xff]  ;;  %8913 = vmatmul.msk.bf16.gmra.mxu2 %vm547_vm1, %v5870_v6  ;;  %v5872_v16 = vpack.c.bf16 %v5791_v4, %v5790_v2 }
 0x595   : > { %v7378_v17 = vadd.f32 %v7150_v0, %v6836_v12  ;;  %6574 = vst.msk [vmem:[#allocation2 + $0xc8] sm:$0xff] %vm176_vm2, %v6469_v11  ;;  %9021 = vmatmul.msk.bf16.gmra.mxu0 %vm547_vm1, %v7690_v44  ;;  %v7609_v6 = vld [vmem:[%s9141_s26 + $0x1a6] sm:$0xff]  ;;  %v4962_v11 = vpack.c.bf16 %v4881_v1, %v4880_v63  ;;  %v5022_v12 = vld [vmem:[#allocation2 + $0xf0] sm:$0xff] }
 0x596   : > { %v7745_v14 = vld [vmem:[#allocation2 + $0xb8] sm:$0xff]  ;;  %v5025_v1 = vld [vmem:[#allocation2 + $0x108] sm:$0xff] }
 0x597   : > { %v8287_v19 = vadd.f32 %v8057_v52, %v7745_v14  ;;  %7483 = vst.msk [vmem:[#allocation2 + $0xc0] sm:$0xff] %vm176_vm2, %v7378_v17  ;;  %v6245_v20 = vpop.f32.mrf.mxu2  ;;  %v7157_v53 = vpop.f32.mrf.mxu3  ;;  %v7691_v17 = vpack.c.bf16 %v7609_v6, %v7608_v5 }
 0x598   : > { %v5337_v23 = vpop.f32.mrf.mxu1 }
 0x599   : > { %8392 = vst.msk [vmem:[#allocation2 + $0xb8] sm:$0xff] %vm176_vm2, %v8287_v19  ;;  %v5561_v24 = vadd.f32 %v5337_v23, %v5019_v22  ;;  %8968 = vmatmul.msk.bf16.gmra.mxu3 %vm547_vm1, %v6781_v56  ;;  %v6700_v22 = vld [vmem:[%s9141_s26 + $0x1ad] sm:$0xff]  ;;  %v6701_v23 = vld [vmem:[%s9141_s26 + $0x1b5] sm:$0xff] }
 0x59a   : > { %v5928_v26 = vld [vmem:[#allocation2 + $0xd0] sm:$0xff]  ;;  %v8067_v60 = vpop.f32.mrf.mxu0 }
 0x59b   : > { %v6470_v28 = vadd.f32 %v6245_v20, %v5928_v26  ;;  %5666 = vst.msk [vmem:[#allocation2 + $0xd8] sm:$0xff] %vm176_vm2, %v5561_v24 }
 0x59c   : > { %v6837_v30 = vld [vmem:[#allocation2 + $0xc8] sm:$0xff] }
 0x59d   : > { %v7379_v33 = vadd.f32 %v7152_v18, %v6837_v30  ;;  %6575 = vst.msk [vmem:[#allocation2 + $0xd0] sm:$0xff] %vm176_vm2, %v6470_v28  ;;  %v6782_v30 = vpack.c.bf16 %v6701_v23, %v6700_v22 }
 0x59e   : > { %v7746_v37 = vld [vmem:[#allocation2 + $0xc0] sm:$0xff] }
 0x59f   : > { %v8288_v39 = vadd.f32 %v8060_v9, %v7746_v37  ;;  %7484 = vst.msk [vmem:[#allocation2 + $0xc8] sm:$0xff] %vm176_vm2, %v7379_v33  ;;  %v6247_v40 = vpop.f32.mrf.mxu2  ;;  %v7160_v8 = vpop.f32.mrf.mxu3  ;;  %v4882_v37 = vld [vmem:[%s9141_s26 + $0x1a0] sm:$0xff] }
 0x5a0   : > { %v5340_v42 = vpop.f32.mrf.mxu1 }
 0x5a1   : > { %8393 = vst.msk [vmem:[#allocation2 + $0xc0] sm:$0xff] %vm176_vm2, %v8288_v39  ;;  %v5562_v45 = vadd.f32 %v5340_v42, %v5020_v41  ;;  %v4883_v39 = vld [vmem:[%s9141_s26 + $0x1a8] sm:$0xff] }
 0x5a2   : > { %v5929_v47 = vld [vmem:[#allocation2 + $0xd8] sm:$0xff]  ;;  %v8070_v18 = vpop.f32.mrf.mxu0  ;;  %v5793_v41 = vld [vmem:[%s9141_s26 + $0x1c4] sm:$0xff]  ;;  %v7610_v42 = vld [vmem:[%s9141_s26 + $0x1ae] sm:$0xff] }
 0x5a3   : > { %v6471_v48 = vadd.f32 %v6247_v40, %v5929_v47  ;;  %5667 = vst.msk [vmem:[#allocation2 + $0xe0] sm:$0xff] %vm176_vm2, %v5562_v45  ;;  %8860 = vmatmul.msk.bf16.gmra.mxu1 %vm547_vm1, %v4961_v15  ;;  %v5792_v40 = vld [vmem:[%s9141_s26 + $0x1bc] sm:$0xff] }
 0x5a4   : > { %v6838_v49 = vld [vmem:[#allocation2 + $0xd0] sm:$0xff]  ;;  %8914 = vmatmul.msk.bf16.gmra.mxu2 %vm547_vm1, %v5871_v43  ;;  %v5873_v27 = vpack.c.bf16 %v5793_v41, %v5792_v40 }
 0x5a5   : > { %v7380_v51 = vadd.f32 %v7155_v38, %v6838_v49  ;;  %6576 = vst.msk [vmem:[#allocation2 + $0xd8] sm:$0xff] %vm176_vm2, %v6471_v48  ;;  %9022 = vmatmul.msk.bf16.gmra.mxu0 %vm547_vm1, %v7691_v17  ;;  %v7611_v43 = vld [vmem:[%s9141_s26 + $0x1b6] sm:$0xff]  ;;  %v4963_v48 = vpack.c.bf16 %v4883_v39, %v4882_v37  ;;  %v5024_v49 = vld [vmem:[#allocation2 + $0x100] sm:$0xff] }
 0x5a6   : > { %v7747_v52 = vld [vmem:[#allocation2 + $0xc8] sm:$0xff]  ;;  %v5027_v39 = vld [vmem:[#allocation2 + $0x118] sm:$0xff] }
 0x5a7   : > { %v8289_v54 = vadd.f32 %v8062_v25, %v7747_v52  ;;  %7485 = vst.msk [vmem:[#allocation2 + $0xd0] sm:$0xff] %vm176_vm2, %v7380_v51  ;;  %v6250_v55 = vpop.f32.mrf.mxu2  ;;  %v7162_v26 = vpop.f32.mrf.mxu3  ;;  %v7692_v51 = vpack.c.bf16 %v7611_v43, %v7610_v42 }
 0x5a8   : > { %v5342_v58 = vpop.f32.mrf.mxu1 }
 0x5a9   : > { %8394 = vst.msk [vmem:[#allocation2 + $0xc8] sm:$0xff] %vm176_vm2, %v8289_v54  ;;  %v5563_v59 = vadd.f32 %v5342_v58, %v5021_v57  ;;  %8969 = vmatmul.msk.bf16.gmra.mxu3 %vm547_vm1, %v6782_v30  ;;  %v6702_v57 = vld [vmem:[%s9141_s26 + $0x1bd] sm:$0xff]  ;;  %v6703_v58 = vld [vmem:[%s9141_s26 + $0x1c5] sm:$0xff] }
 0x5aa   : > { %v5930_v61 = vld [vmem:[#allocation2 + $0xe0] sm:$0xff]  ;;  %v8072_v34 = vpop.f32.mrf.mxu0 }
 0x5ab   : > { %v6472_v62 = vadd.f32 %v6250_v55, %v5930_v61  ;;  %5668 = vst.msk [vmem:[#allocation2 + $0xe8] sm:$0xff] %vm176_vm2, %v5563_v59 }
 0x5ac   : > { %v6839_v0 = vld [vmem:[#allocation2 + $0xd8] sm:$0xff] }
 0x5ad   : > { %v7381_v3 = vadd.f32 %v7157_v53, %v6839_v0  ;;  %6577 = vst.msk [vmem:[#allocation2 + $0xe0] sm:$0xff] %vm176_vm2, %v6472_v62  ;;  %v6783_v0 = vpack.c.bf16 %v6703_v58, %v6702_v57 }
 0x5ae   : > { %v7748_v7 = vld [vmem:[#allocation2 + $0xd0] sm:$0xff] }
 0x5af   : > { %v8290_v9 = vadd.f32 %v8065_v46, %v7748_v7  ;;  %7486 = vst.msk [vmem:[#allocation2 + $0xd8] sm:$0xff] %vm176_vm2, %v7381_v3  ;;  %v6252_v10 = vpop.f32.mrf.mxu2  ;;  %v7165_v45 = vpop.f32.mrf.mxu3  ;;  %v4884_v7 = vld [vmem:[%s9141_s26 + $0x1b0] sm:$0xff] }
 0x5b0   : > { %v5345_v13 = vpop.f32.mrf.mxu1 }
 0x5b1   : > { %8395 = vst.msk [vmem:[#allocation2 + $0xd0] sm:$0xff] %vm176_vm2, %v8290_v9  ;;  %v5564_v14 = vadd.f32 %v5345_v13, %v5022_v12  ;;  %v4885_v9 = vld [vmem:[%s9141_s26 + $0x1b8] sm:$0xff] }
 0x5b2   : > { %v5931_v19 = vld [vmem:[#allocation2 + $0xe8] sm:$0xff]  ;;  %v8075_v53 = vpop.f32.mrf.mxu0  ;;  %v5795_v12 = vld [vmem:[%s9141_s26 + $0x1d4] sm:$0xff]  ;;  %v7612_v13 = vld [vmem:[%s9141_s26 + $0x1be] sm:$0xff] }
 0x5b3   : > { %v6473_v20 = vadd.f32 %v6252_v10, %v5931_v19  ;;  %5669 = vst.msk [vmem:[#allocation2 + $0xf0] sm:$0xff] %vm176_vm2, %v5564_v14  ;;  %8861 = vmatmul.msk.bf16.gmra.mxu1 %vm547_vm1, %v4962_v11  ;;  %v5794_v10 = vld [vmem:[%s9141_s26 + $0x1cc] sm:$0xff] }
 0x5b4   : > { %v6840_v21 = vld [vmem:[#allocation2 + $0xe0] sm:$0xff]  ;;  %8915 = vmatmul.msk.bf16.gmra.mxu2 %vm547_vm1, %v5872_v16  ;;  %v5874_v23 = vpack.c.bf16 %v5795_v12, %v5794_v10 }
 0x5b5   : > { %v7382_v24 = vadd.f32 %v7160_v8, %v6840_v21  ;;  %6578 = vst.msk [vmem:[#allocation2 + $0xe8] sm:$0xff] %vm176_vm2, %v6473_v20  ;;  %9023 = vmatmul.msk.bf16.gmra.mxu0 %vm547_vm1, %v7692_v51  ;;  %v7613_v16 = vld [vmem:[%s9141_s26 + $0x1c6] sm:$0xff]  ;;  %v4964_v20 = vpack.c.bf16 %v4885_v9, %v4884_v7  ;;  %v5026_v21 = vld [vmem:[#allocation2 + $0x110] sm:$0xff] }
 0x5b6   : > { %v7749_v25 = vld [vmem:[#allocation2 + $0xd8] sm:$0xff]  ;;  %v5029_v9 = vld [vmem:[#allocation2 + $0x128] sm:$0xff] }
 0x5b7   : > { %v8291_v28 = vadd.f32 %v8067_v60, %v7749_v25  ;;  %7487 = vst.msk [vmem:[#allocation2 + $0xe0] sm:$0xff] %vm176_vm2, %v7382_v24  ;;  %v6255_v29 = vpop.f32.mrf.mxu2  ;;  %v7167_v61 = vpop.f32.mrf.mxu3  ;;  %v7693_v24 = vpack.c.bf16 %v7613_v16, %v7612_v13 }
 0x5b8   : > { %v5347_v32 = vpop.f32.mrf.mxu1 }
 0x5b9   : > { %8396 = vst.msk [vmem:[#allocation2 + $0xd8] sm:$0xff] %vm176_vm2, %v8291_v28  ;;  %v5565_v33 = vadd.f32 %v5347_v32, %v5023_v31  ;;  %8970 = vmatmul.msk.bf16.gmra.mxu3 %vm547_vm1, %v6783_v0  ;;  %v6704_v31 = vld [vmem:[%s9141_s26 + $0x1cd] sm:$0xff]  ;;  %v6705_v32 = vld [vmem:[%s9141_s26 + $0x1d5] sm:$0xff] }
 0x5ba   : > { %v5932_v35 = vld [vmem:[#allocation2 + $0xf0] sm:$0xff]  ;;  %v8077_v4 = vpop.f32.mrf.mxu0 }
 0x5bb   : > { %v6474_v36 = vadd.f32 %v6255_v29, %v5932_v35  ;;  %5670 = vst.msk [vmem:[#allocation2 + $0xf8] sm:$0xff] %vm176_vm2, %v5565_v33 }
 0x5bc   : > { %v6841_v38 = vld [vmem:[#allocation2 + $0xe8] sm:$0xff] }
 0x5bd   : > { %v7383_v15 = vadd.f32 %v7162_v26, %v6841_v38  ;;  %6579 = vst.msk [vmem:[#allocation2 + $0xf0] sm:$0xff] %vm176_vm2, %v6474_v36  ;;  %v6784_v38 = vpack.c.bf16 %v6705_v32, %v6704_v31 }
 0x5be   : > { %v7750_v44 = vld [vmem:[#allocation2 + $0xe0] sm:$0xff] }
 0x5bf   : > { %v8292_v46 = vadd.f32 %v8070_v18, %v7750_v44  ;;  %7488 = vst.msk [vmem:[#allocation2 + $0xe8] sm:$0xff] %vm176_vm2, %v7383_v15  ;;  %v6257_v47 = vpop.f32.mrf.mxu2  ;;  %v7170_v14 = vpop.f32.mrf.mxu3  ;;  %v4886_v44 = vld [vmem:[%s9141_s26 + $0x1c0] sm:$0xff] }
 0x5c0   : > { %v5350_v50 = vpop.f32.mrf.mxu1 }
 0x5c1   : > { %8397 = vst.msk [vmem:[#allocation2 + $0xe0] sm:$0xff] %vm176_vm2, %v8292_v46  ;;  %v5566_v52 = vadd.f32 %v5350_v50, %v5024_v49  ;;  %v4887_v46 = vld [vmem:[%s9141_s26 + $0x1c8] sm:$0xff] }
 0x5c2   : > { %v5933_v54 = vld [vmem:[#allocation2 + $0xf8] sm:$0xff]  ;;  %v8080_v26 = vpop.f32.mrf.mxu0  ;;  %v5797_v49 = vld [vmem:[%s9141_s26 + $0x1e4] sm:$0xff]  ;;  %v7614_v50 = vld [vmem:[%s9141_s26 + $0x1ce] sm:$0xff] }
 0x5c3   : > { %v6475_v55 = vadd.f32 %v6257_v47, %v5933_v54  ;;  %5671 = vst.msk [vmem:[#allocation2 + $0x100] sm:$0xff] %vm176_vm2, %v5566_v52  ;;  %8862 = vmatmul.msk.bf16.gmra.mxu1 %vm547_vm1, %v4963_v48  ;;  %v5796_v47 = vld [vmem:[%s9141_s26 + $0x1dc] sm:$0xff] }
 0x5c4   : > { %v6842_v56 = vld [vmem:[#allocation2 + $0xf0] sm:$0xff]  ;;  %8916 = vmatmul.msk.bf16.gmra.mxu2 %vm547_vm1, %v5873_v27  ;;  %v5875_v58 = vpack.c.bf16 %v5797_v49, %v5796_v47 }
 0x5c5   : > { %v7384_v59 = vadd.f32 %v7165_v45, %v6842_v56  ;;  %6580 = vst.msk [vmem:[#allocation2 + $0xf8] sm:$0xff] %vm176_vm2, %v6475_v55  ;;  %9024 = vmatmul.msk.bf16.gmra.mxu0 %vm547_vm1, %v7693_v24  ;;  %v7615_v27 = vld [vmem:[%s9141_s26 + $0x1d6] sm:$0xff]  ;;  %v4965_v55 = vpack.c.bf16 %v4887_v46, %v4886_v44  ;;  %v5028_v56 = vld [vmem:[#allocation2 + $0x120] sm:$0xff] }
 0x5c6   : > { %v7751_v60 = vld [vmem:[#allocation2 + $0xe8] sm:$0xff]  ;;  %v5031_v46 = vld [vmem:[#allocation2 + $0x138] sm:$0xff] }
 0x5c7   : > { %v8293_v62 = vadd.f32 %v8072_v34, %v7751_v60  ;;  %7489 = vst.msk [vmem:[#allocation2 + $0xf0] sm:$0xff] %vm176_vm2, %v7384_v59  ;;  %v6260_v63 = vpop.f32.mrf.mxu2  ;;  %v7172_v35 = vpop.f32.mrf.mxu3  ;;  %v7694_v59 = vpack.c.bf16 %v7615_v27, %v7614_v50 }
 0x5c8   : > { %v5352_v2 = vpop.f32.mrf.mxu1 }
 0x5c9   : > { %8398 = vst.msk [vmem:[#allocation2 + $0xe8] sm:$0xff] %vm176_vm2, %v8293_v62  ;;  %v5567_v3 = vadd.f32 %v5352_v2, %v5025_v1  ;;  %8971 = vmatmul.msk.bf16.gmra.mxu3 %vm547_vm1, %v6784_v38  ;;  %v6706_v1 = vld [vmem:[%s9141_s26 + $0x1dd] sm:$0xff]  ;;  %v6707_v2 = vld [vmem:[%s9141_s26 + $0x1e5] sm:$0xff] }
 0x5ca   : > { %v5934_v5 = vld [vmem:[#allocation2 + $0x100] sm:$0xff]  ;;  %v8082_v41 = vpop.f32.mrf.mxu0 }
 0x5cb   : > { %v6476_v6 = vadd.f32 %v6260_v63, %v5934_v5  ;;  %5672 = vst.msk [vmem:[#allocation2 + $0x108] sm:$0xff] %vm176_vm2, %v5567_v3 }
 0x5cc   : > { %v6843_v8 = vld [vmem:[#allocation2 + $0xf8] sm:$0xff] }
 0x5cd   : > { %v7385_v11 = vadd.f32 %v7167_v61, %v6843_v8  ;;  %6581 = vst.msk [vmem:[#allocation2 + $0x100] sm:$0xff] %vm176_vm2, %v6476_v6  ;;  %v6785_v8 = vpack.c.bf16 %v6707_v2, %v6706_v1 }
 0x5ce   : > { %v7752_v17 = vld [vmem:[#allocation2 + $0xf0] sm:$0xff] }
 0x5cf   : > { %v8294_v18 = vadd.f32 %v8075_v53, %v7752_v17  ;;  %7490 = vst.msk [vmem:[#allocation2 + $0xf8] sm:$0xff] %vm176_vm2, %v7385_v11  ;;  %v6262_v19 = vpop.f32.mrf.mxu2  ;;  %v7175_v52 = vpop.f32.mrf.mxu3  ;;  %v4888_v17 = vld [vmem:[%s9141_s26 + $0x1d0] sm:$0xff] }
 0x5d0   : > { %v5355_v22 = vpop.f32.mrf.mxu1 }
 0x5d1   : > { %8399 = vst.msk [vmem:[#allocation2 + $0xf0] sm:$0xff] %vm176_vm2, %v8294_v18  ;;  %v5568_v25 = vadd.f32 %v5355_v22, %v5026_v21  ;;  %v4889_v18 = vld [vmem:[%s9141_s26 + $0x1d8] sm:$0xff] }
 0x5d2   : > { %v5935_v28 = vld [vmem:[#allocation2 + $0x108] sm:$0xff]  ;;  %v8085_v61 = vpop.f32.mrf.mxu0  ;;  %v5799_v21 = vld [vmem:[%s9141_s26 + $0x1f4] sm:$0xff]  ;;  %v7616_v22 = vld [vmem:[%s9141_s26 + $0x1de] sm:$0xff] }
 0x5d3   : > { %v6477_v29 = vadd.f32 %v6262_v19, %v5935_v28  ;;  %5673 = vst.msk [vmem:[#allocation2 + $0x110] sm:$0xff] %vm176_vm2, %v5568_v25  ;;  %8863 = vmatmul.msk.bf16.gmra.mxu1 %vm547_vm1, %v4964_v20  ;;  %v5798_v19 = vld [vmem:[%s9141_s26 + $0x1ec] sm:$0xff] }
 0x5d4   : > { %v6844_v30 = vld [vmem:[#allocation2 + $0x100] sm:$0xff]  ;;  %8917 = vmatmul.msk.bf16.gmra.mxu2 %vm547_vm1, %v5874_v23  ;;  %v5876_v32 = vpack.c.bf16 %v5799_v21, %v5798_v19 }
 0x5d5   : > { %v7386_v33 = vadd.f32 %v7170_v14, %v6844_v30  ;;  %6582 = vst.msk [vmem:[#allocation2 + $0x108] sm:$0xff] %vm176_vm2, %v6477_v29  ;;  %9025 = vmatmul.msk.bf16.gmra.mxu0 %vm547_vm1, %v7694_v59  ;;  %v7617_v23 = vld [vmem:[%s9141_s26 + $0x1e6] sm:$0xff]  ;;  %v4966_v29 = vpack.c.bf16 %v4889_v18, %v4888_v17  ;;  %v5030_v30 = vld [vmem:[#allocation2 + $0x130] sm:$0xff] }
 0x5d6   : > { %v7753_v34 = vld [vmem:[#allocation2 + $0xf8] sm:$0xff]  ;;  %v5033_v18 = vld [vmem:[#allocation2 + $0x148] sm:$0xff] }
 0x5d7   : > { %v8295_v36 = vadd.f32 %v8077_v4, %v7753_v34  ;;  %7491 = vst.msk [vmem:[#allocation2 + $0x100] sm:$0xff] %vm176_vm2, %v7386_v33  ;;  %v6265_v37 = vpop.f32.mrf.mxu2  ;;  %v7177_v5 = vpop.f32.mrf.mxu3  ;;  %v7695_v33 = vpack.c.bf16 %v7617_v23, %v7616_v22 }
 0x5d8   : > { %v5357_v40 = vpop.f32.mrf.mxu1 }
 0x5d9   : > { %8400 = vst.msk [vmem:[#allocation2 + $0xf8] sm:$0xff] %vm176_vm2, %v8295_v36  ;;  %v5569_v15 = vadd.f32 %v5357_v40, %v5027_v39  ;;  %8972 = vmatmul.msk.bf16.gmra.mxu3 %vm547_vm1, %v6785_v8  ;;  %v6708_v39 = vld [vmem:[%s9141_s26 + $0x1ed] sm:$0xff]  ;;  %v6709_v40 = vld [vmem:[%s9141_s26 + $0x1f5] sm:$0xff] }
 0x5da   : > { %v5936_v42 = vld [vmem:[#allocation2 + $0x110] sm:$0xff]  ;;  %v8087_v12 = vpop.f32.mrf.mxu0 }
 0x5db   : > { %v6478_v43 = vadd.f32 %v6265_v37, %v5936_v42  ;;  %5674 = vst.msk [vmem:[#allocation2 + $0x118] sm:$0xff] %vm176_vm2, %v5569_v15 }
 0x5dc   : > { %v6845_v45 = vld [vmem:[#allocation2 + $0x108] sm:$0xff] }
 0x5dd   : > { %v7387_v48 = vadd.f32 %v7172_v35, %v6845_v45  ;;  %6583 = vst.msk [vmem:[#allocation2 + $0x110] sm:$0xff] %vm176_vm2, %v6478_v43  ;;  %v6786_v45 = vpack.c.bf16 %v6709_v40, %v6708_v39 }
 0x5de   : > { %v7754_v51 = vld [vmem:[#allocation2 + $0x100] sm:$0xff] }
 0x5df   : > { %v8296_v53 = vadd.f32 %v8080_v26, %v7754_v51  ;;  %7492 = vst.msk [vmem:[#allocation2 + $0x108] sm:$0xff] %vm176_vm2, %v7387_v48  ;;  %v6267_v54 = vpop.f32.mrf.mxu2  ;;  %v7180_v25 = vpop.f32.mrf.mxu3  ;;  %v4890_v51 = vld [vmem:[%s9141_s26 + $0x1e0] sm:$0xff] }
 0x5e0   : > { %v5360_v57 = vpop.f32.mrf.mxu1 }
 0x5e1   : > { %8401 = vst.msk [vmem:[#allocation2 + $0x100] sm:$0xff] %vm176_vm2, %v8296_v53  ;;  %v5570_v60 = vadd.f32 %v5360_v57, %v5028_v56  ;;  %v4891_v53 = vld [vmem:[%s9141_s26 + $0x1e8] sm:$0xff] }
 0x5e2   : > { %v5937_v62 = vld [vmem:[#allocation2 + $0x118] sm:$0xff]  ;;  %v8090_v35 = vpop.f32.mrf.mxu0  ;;  %v5801_v56 = vld [vmem:[%s9141_s26 + $0x204] sm:$0xff]  ;;  %v7618_v57 = vld [vmem:[%s9141_s26 + $0x1ee] sm:$0xff] }
 0x5e3   : > { %v6479_v63 = vadd.f32 %v6267_v54, %v5937_v62  ;;  %5675 = vst.msk [vmem:[#allocation2 + $0x120] sm:$0xff] %vm176_vm2, %v5570_v60  ;;  %8864 = vmatmul.msk.bf16.gmra.mxu1 %vm547_vm1, %v4965_v55  ;;  %v5800_v54 = vld [vmem:[%s9141_s26 + $0x1fc] sm:$0xff] }
 0x5e4   : > { %v6846_v0 = vld [vmem:[#allocation2 + $0x110] sm:$0xff]  ;;  %8918 = vmatmul.msk.bf16.gmra.mxu2 %vm547_vm1, %v5875_v58  ;;  %v5877_v2 = vpack.c.bf16 %v5801_v56, %v5800_v54 }
 0x5e5   : > { %v7388_v3 = vadd.f32 %v7175_v52, %v6846_v0  ;;  %6584 = vst.msk [vmem:[#allocation2 + $0x118] sm:$0xff] %vm176_vm2, %v6479_v63  ;;  %9026 = vmatmul.msk.bf16.gmra.mxu0 %vm547_vm1, %v7695_v33  ;;  %v7619_v58 = vld [vmem:[%s9141_s26 + $0x1f6] sm:$0xff]  ;;  %v4967_v63 = vpack.c.bf16 %v4891_v53, %v4890_v51  ;;  %v5032_v0 = vld [vmem:[#allocation2 + $0x140] sm:$0xff] }
 0x5e6   : > { %v7755_v4 = vld [vmem:[#allocation2 + $0x108] sm:$0xff]  ;;  %v5035_v53 = vld [vmem:[#allocation2 + $0x158] sm:$0xff] }
 0x5e7   : > { %v8297_v6 = vadd.f32 %v8082_v41, %v7755_v4  ;;  %7493 = vst.msk [vmem:[#allocation2 + $0x110] sm:$0xff] %vm176_vm2, %v7388_v3  ;;  %v6270_v7 = vpop.f32.mrf.mxu2  ;;  %v7182_v42 = vpop.f32.mrf.mxu3  ;;  %v7696_v3 = vpack.c.bf16 %v7619_v58, %v7618_v57 }
 0x5e8   : > { %v5362_v10 = vpop.f32.mrf.mxu1 }
 0x5e9   : > { %8402 = vst.msk [vmem:[#allocation2 + $0x108] sm:$0xff] %vm176_vm2, %v8297_v6  ;;  %v5571_v11 = vadd.f32 %v5362_v10, %v5029_v9  ;;  %8973 = vmatmul.msk.bf16.gmra.mxu3 %vm547_vm1, %v6786_v45  ;;  %v6710_v9 = vld [vmem:[%s9141_s26 + $0x1fd] sm:$0xff]  ;;  %v6711_v10 = vld [vmem:[%s9141_s26 + $0x205] sm:$0xff] }
 0x5ea   : > { %v5938_v13 = vld [vmem:[#allocation2 + $0x120] sm:$0xff]  ;;  %v8092_v49 = vpop.f32.mrf.mxu0 }
 0x5eb   : > { %v6480_v16 = vadd.f32 %v6270_v7, %v5938_v13  ;;  %5676 = vst.msk [vmem:[#allocation2 + $0x128] sm:$0xff] %vm176_vm2, %v5571_v11 }
 0x5ec   : > { %v6847_v14 = vld [vmem:[#allocation2 + $0x118] sm:$0xff] }
 0x5ed   : > { %v7389_v20 = vadd.f32 %v7177_v5, %v6847_v14  ;;  %6585 = vst.msk [vmem:[#allocation2 + $0x120] sm:$0xff] %vm176_vm2, %v6480_v16  ;;  %v6787_v14 = vpack.c.bf16 %v6711_v10, %v6710_v9 }
 0x5ee   : > { %v7756_v24 = vld [vmem:[#allocation2 + $0x110] sm:$0xff] }
 0x5ef   : > { %v8298_v26 = vadd.f32 %v8085_v61, %v7756_v24  ;;  %7494 = vst.msk [vmem:[#allocation2 + $0x118] sm:$0xff] %vm176_vm2, %v7389_v20  ;;  %v6272_v28 = vpop.f32.mrf.mxu2  ;;  %v7185_v60 = vpop.f32.mrf.mxu3  ;;  %v4892_v24 = vld [vmem:[%s9141_s26 + $0x1f0] sm:$0xff] }
 0x5f0   : > { %v5365_v31 = vpop.f32.mrf.mxu1 }
 0x5f1   : > { %8403 = vst.msk [vmem:[#allocation2 + $0x110] sm:$0xff] %vm176_vm2, %v8298_v26  ;;  %v5572_v34 = vadd.f32 %v5365_v31, %v5030_v30  ;;  %v4893_v26 = vld [vmem:[%s9141_s26 + $0x1f8] sm:$0xff] }
 0x5f2   : > { %v5939_v36 = vld [vmem:[#allocation2 + $0x128] sm:$0xff]  ;;  %v8095_v5 = vpop.f32.mrf.mxu0  ;;  %v5803_v30 = vld [vmem:[%s9141_s26 + $0x214] sm:$0xff]  ;;  %v7620_v31 = vld [vmem:[%s9141_s26 + $0x1fe] sm:$0xff] }
 0x5f3   : > { %v6481_v37 = vadd.f32 %v6272_v28, %v5939_v36  ;;  %5677 = vst.msk [vmem:[#allocation2 + $0x130] sm:$0xff] %vm176_vm2, %v5572_v34  ;;  %8865 = vmatmul.msk.bf16.gmra.mxu1 %vm547_vm1, %v4966_v29  ;;  %v5802_v28 = vld [vmem:[%s9141_s26 + $0x20c] sm:$0xff] }
 0x5f4   : > { %v6848_v38 = vld [vmem:[#allocation2 + $0x120] sm:$0xff]  ;;  %8919 = vmatmul.msk.bf16.gmra.mxu2 %vm547_vm1, %v5876_v32  ;;  %v5878_v40 = vpack.c.bf16 %v5803_v30, %v5802_v28 }
 0x5f5   : > { %v7390_v15 = vadd.f32 %v7180_v25, %v6848_v38  ;;  %6586 = vst.msk [vmem:[#allocation2 + $0x128] sm:$0xff] %vm176_vm2, %v6481_v37  ;;  %9027 = vmatmul.msk.bf16.gmra.mxu0 %vm547_vm1, %v7696_v3  ;;  %v7621_v32 = vld [vmem:[%s9141_s26 + $0x206] sm:$0xff]  ;;  %v4968_v37 = vpack.c.bf16 %v4893_v26, %v4892_v24  ;;  %v5034_v38 = vld [vmem:[#allocation2 + $0x150] sm:$0xff] }
 0x5f6   : > { %v7757_v41 = vld [vmem:[#allocation2 + $0x118] sm:$0xff]  ;;  %v5037_v26 = vld [vmem:[#allocation2 + $0x168] sm:$0xff] }
 0x5f7   : > { %v8299_v43 = vadd.f32 %v8087_v12, %v7757_v41  ;;  %7495 = vst.msk [vmem:[#allocation2 + $0x120] sm:$0xff] %vm176_vm2, %v7390_v15  ;;  %v6275_v44 = vpop.f32.mrf.mxu2  ;;  %v7187_v13 = vpop.f32.mrf.mxu3  ;;  %v7697_v15 = vpack.c.bf16 %v7621_v32, %v7620_v31 }
 0x5f8   : > { %v5367_v47 = vpop.f32.mrf.mxu1 }
 0x5f9   : > { %8404 = vst.msk [vmem:[#allocation2 + $0x118] sm:$0xff] %vm176_vm2, %v8299_v43  ;;  %v5573_v48 = vadd.f32 %v5367_v47, %v5031_v46  ;;  %8974 = vmatmul.msk.bf16.gmra.mxu3 %vm547_vm1, %v6787_v14  ;;  %v6712_v46 = vld [vmem:[%s9141_s26 + $0x20d] sm:$0xff]  ;;  %v6713_v47 = vld [vmem:[%s9141_s26 + $0x215] sm:$0xff] }
 0x5fa   : > { %v5940_v50 = vld [vmem:[#allocation2 + $0x130] sm:$0xff]  ;;  %v8097_v21 = vpop.f32.mrf.mxu0 }
 0x5fb   : > { %v6482_v27 = vadd.f32 %v6275_v44, %v5940_v50  ;;  %5678 = vst.msk [vmem:[#allocation2 + $0x138] sm:$0xff] %vm176_vm2, %v5573_v48 }
 0x5fc   : > { %v6849_v52 = vld [vmem:[#allocation2 + $0x128] sm:$0xff] }
 0x5fd   : > { %v7391_v55 = vadd.f32 %v7182_v42, %v6849_v52  ;;  %6587 = vst.msk [vmem:[#allocation2 + $0x130] sm:$0xff] %vm176_vm2, %v6482_v27  ;;  %v6788_v52 = vpack.c.bf16 %v6713_v47, %v6712_v46 }
 0x5fe   : > { %v7758_v59 = vld [vmem:[#allocation2 + $0x120] sm:$0xff] }
 0x5ff   : > { %v8300_v61 = vadd.f32 %v8090_v35, %v7758_v59  ;;  %7496 = vst.msk [vmem:[#allocation2 + $0x128] sm:$0xff] %vm176_vm2, %v7391_v55  ;;  %v6277_v62 = vpop.f32.mrf.mxu2  ;;  %v7190_v34 = vpop.f32.mrf.mxu3  ;;  %v4894_v59 = vld [vmem:[%s9141_s26 + $0x200] sm:$0xff] }
 0x600   : > { %v5370_v1 = vpop.f32.mrf.mxu1 }
 0x601   : > { %8405 = vst.msk [vmem:[#allocation2 + $0x120] sm:$0xff] %vm176_vm2, %v8300_v61  ;;  %v5574_v4 = vadd.f32 %v5370_v1, %v5032_v0  ;;  %v4895_v61 = vld [vmem:[%s9141_s26 + $0x208] sm:$0xff] }
 0x602   : > { %v5941_v6 = vld [vmem:[#allocation2 + $0x138] sm:$0xff]  ;;  %v8100_v42 = vpop.f32.mrf.mxu0  ;;  %v5805_v0 = vld [vmem:[%s9141_s26 + $0x224] sm:$0xff]  ;;  %v7622_v1 = vld [vmem:[%s9141_s26 + $0x20e] sm:$0xff] }
 0x603   : > { %v6483_v7 = vadd.f32 %v6277_v62, %v5941_v6  ;;  %5679 = vst.msk [vmem:[#allocation2 + $0x140] sm:$0xff] %vm176_vm2, %v5574_v4  ;;  %8866 = vmatmul.msk.bf16.gmra.mxu1 %vm547_vm1, %v4967_v63  ;;  %v5804_v62 = vld [vmem:[%s9141_s26 + $0x21c] sm:$0xff] }
 0x604   : > { %v6850_v8 = vld [vmem:[#allocation2 + $0x130] sm:$0xff]  ;;  %8920 = vmatmul.msk.bf16.gmra.mxu2 %vm547_vm1, %v5877_v2  ;;  %v5879_v10 = vpack.c.bf16 %v5805_v0, %v5804_v62 }
 0x605   : > { %v7392_v11 = vadd.f32 %v7185_v60, %v6850_v8  ;;  %6588 = vst.msk [vmem:[#allocation2 + $0x138] sm:$0xff] %vm176_vm2, %v6483_v7  ;;  %9028 = vmatmul.msk.bf16.gmra.mxu0 %vm547_vm1, %v7697_v15  ;;  %v7623_v2 = vld [vmem:[%s9141_s26 + $0x216] sm:$0xff]  ;;  %v4969_v7 = vpack.c.bf16 %v4895_v61, %v4894_v59  ;;  %v5036_v8 = vld [vmem:[#allocation2 + $0x160] sm:$0xff] }
 0x606   : > { %v7759_v12 = vld [vmem:[#allocation2 + $0x128] sm:$0xff]  ;;  %v5039_v61 = vld [vmem:[#allocation2 + $0x178] sm:$0xff] }
 0x607   : > { %v8301_v16 = vadd.f32 %v8092_v49, %v7759_v12  ;;  %7497 = vst.msk [vmem:[#allocation2 + $0x130] sm:$0xff] %vm176_vm2, %v7392_v11  ;;  %v6280_v17 = vpop.f32.mrf.mxu2  ;;  %v7192_v50 = vpop.f32.mrf.mxu3  ;;  %v7698_v11 = vpack.c.bf16 %v7623_v2, %v7622_v1 }
 0x608   : > { %v5372_v19 = vpop.f32.mrf.mxu1 }
 0x609   : > { %8406 = vst.msk [vmem:[#allocation2 + $0x128] sm:$0xff] %vm176_vm2, %v8301_v16  ;;  %v5575_v20 = vadd.f32 %v5372_v19, %v5033_v18  ;;  %8975 = vmatmul.msk.bf16.gmra.mxu3 %vm547_vm1, %v6788_v52  ;;  %v6714_v18 = vld [vmem:[%s9141_s26 + $0x21d] sm:$0xff]  ;;  %v6715_v19 = vld [vmem:[%s9141_s26 + $0x225] sm:$0xff] }
 0x60a   : > { %v5942_v22 = vld [vmem:[#allocation2 + $0x140] sm:$0xff]  ;;  %v8102_v56 = vpop.f32.mrf.mxu0 }
 0x60b   : > { %v6484_v23 = vadd.f32 %v6280_v17, %v5942_v22  ;;  %5680 = vst.msk [vmem:[#allocation2 + $0x148] sm:$0xff] %vm176_vm2, %v5575_v20 }
 0x60c   : > { %v6851_v25 = vld [vmem:[#allocation2 + $0x138] sm:$0xff] }
 0x60d   : > { %v7393_v29 = vadd.f32 %v7187_v13, %v6851_v25  ;;  %6589 = vst.msk [vmem:[#allocation2 + $0x140] sm:$0xff] %vm176_vm2, %v6484_v23  ;;  %v6789_v25 = vpack.c.bf16 %v6715_v19, %v6714_v18 }
 0x60e   : > { %v7760_v33 = vld [vmem:[#allocation2 + $0x130] sm:$0xff] }
 0x60f   : > { %v8302_v35 = vadd.f32 %v8095_v5, %v7760_v33  ;;  %7498 = vst.msk [vmem:[#allocation2 + $0x138] sm:$0xff] %vm176_vm2, %v7393_v29  ;;  %v6282_v36 = vpop.f32.mrf.mxu2  ;;  %v7195_v4 = vpop.f32.mrf.mxu3  ;;  %v4896_v33 = vld [vmem:[%s9141_s26 + $0x210] sm:$0xff] }
 0x610   : > { %v5375_v39 = vpop.f32.mrf.mxu1 }
 0x611   : > { %8407 = vst.msk [vmem:[#allocation2 + $0x130] sm:$0xff] %vm176_vm2, %v8302_v35  ;;  %v5576_v41 = vadd.f32 %v5375_v39, %v5034_v38  ;;  %v4897_v35 = vld [vmem:[%s9141_s26 + $0x218] sm:$0xff] }
 0x612   : > { %v5943_v43 = vld [vmem:[#allocation2 + $0x148] sm:$0xff]  ;;  %v8105_v13 = vpop.f32.mrf.mxu0  ;;  %v5807_v38 = vld [vmem:[%s9141_s26 + $0x234] sm:$0xff]  ;;  %v7624_v39 = vld [vmem:[%s9141_s26 + $0x21e] sm:$0xff] }
 0x613   : > { %v6485_v44 = vadd.f32 %v6282_v36, %v5943_v43  ;;  %5681 = vst.msk [vmem:[#allocation2 + $0x150] sm:$0xff] %vm176_vm2, %v5576_v41  ;;  %8867 = vmatmul.msk.bf16.gmra.mxu1 %vm547_vm1, %v4968_v37  ;;  %v5806_v36 = vld [vmem:[%s9141_s26 + $0x22c] sm:$0xff] }
 0x614   : > { %v6852_v45 = vld [vmem:[#allocation2 + $0x140] sm:$0xff]  ;;  %8921 = vmatmul.msk.bf16.gmra.mxu2 %vm547_vm1, %v5878_v40  ;;  %v5880_v47 = vpack.c.bf16 %v5807_v38, %v5806_v36 }
 0x615   : > { %v7394_v48 = vadd.f32 %v7190_v34, %v6852_v45  ;;  %6590 = vst.msk [vmem:[#allocation2 + $0x148] sm:$0xff] %vm176_vm2, %v6485_v44  ;;  %9029 = vmatmul.msk.bf16.gmra.mxu0 %vm547_vm1, %v7698_v11  ;;  %v7625_v40 = vld [vmem:[%s9141_s26 + $0x226] sm:$0xff]  ;;  %v4970_v44 = vpack.c.bf16 %v4897_v35, %v4896_v33  ;;  %v5038_v45 = vld [vmem:[#allocation2 + $0x170] sm:$0xff] }
 0x616   : > { %v7761_v49 = vld [vmem:[#allocation2 + $0x138] sm:$0xff]  ;;  %v5041_v35 = vld [vmem:[#allocation2 + $0x188] sm:$0xff] }
 0x617   : > { %v8303_v27 = vadd.f32 %v8097_v21, %v7761_v49  ;;  %7499 = vst.msk [vmem:[#allocation2 + $0x140] sm:$0xff] %vm176_vm2, %v7394_v48  ;;  %v6285_v51 = vpop.f32.mrf.mxu2  ;;  %v7197_v22 = vpop.f32.mrf.mxu3  ;;  %v7699_v48 = vpack.c.bf16 %v7625_v40, %v7624_v39 }
 0x618   : > { %v5377_v54 = vpop.f32.mrf.mxu1 }
 0x619   : > { %8408 = vst.msk [vmem:[#allocation2 + $0x138] sm:$0xff] %vm176_vm2, %v8303_v27  ;;  %v5577_v55 = vadd.f32 %v5377_v54, %v5035_v53  ;;  %8976 = vmatmul.msk.bf16.gmra.mxu3 %vm547_vm1, %v6789_v25  ;;  %v6716_v53 = vld [vmem:[%s9141_s26 + $0x22d] sm:$0xff]  ;;  %v6717_v54 = vld [vmem:[%s9141_s26 + $0x235] sm:$0xff] }
 0x61a   : > { %v5944_v57 = vld [vmem:[#allocation2 + $0x150] sm:$0xff]  ;;  %v8107_v30 = vpop.f32.mrf.mxu0 }
 0x61b   : > { %v6486_v58 = vadd.f32 %v6285_v51, %v5944_v57  ;;  %5682 = vst.msk [vmem:[#allocation2 + $0x158] sm:$0xff] %vm176_vm2, %v5577_v55 }
 0x61c   : > { %v6853_v60 = vld [vmem:[#allocation2 + $0x148] sm:$0xff] }
 0x61d   : > { %v7395_v63 = vadd.f32 %v7192_v50, %v6853_v60  ;;  %6591 = vst.msk [vmem:[#allocation2 + $0x150] sm:$0xff] %vm176_vm2, %v6486_v58  ;;  %v6790_v60 = vpack.c.bf16 %v6717_v54, %v6716_v53 }
 0x61e   : > { %v7762_v3 = vld [vmem:[#allocation2 + $0x140] sm:$0xff] }
 0x61f   : > { %v8304_v5 = vadd.f32 %v8100_v42, %v7762_v3  ;;  %7500 = vst.msk [vmem:[#allocation2 + $0x148] sm:$0xff] %vm176_vm2, %v7395_v63  ;;  %v6287_v6 = vpop.f32.mrf.mxu2  ;;  %v7200_v41 = vpop.f32.mrf.mxu3  ;;  %v4898_v3 = vld [vmem:[%s9141_s26 + $0x220] sm:$0xff] }
 0x620   : > { %v5380_v9 = vpop.f32.mrf.mxu1 }
 0x621   : > { %8409 = vst.msk [vmem:[#allocation2 + $0x140] sm:$0xff] %vm176_vm2, %v8304_v5  ;;  %v5578_v12 = vadd.f32 %v5380_v9, %v5036_v8  ;;  %v4899_v5 = vld [vmem:[%s9141_s26 + $0x228] sm:$0xff] }
 0x622   : > { %v5945_v16 = vld [vmem:[#allocation2 + $0x158] sm:$0xff]  ;;  %v8110_v50 = vpop.f32.mrf.mxu0  ;;  %v5809_v8 = vld [vmem:[%s9141_s26 + $0x244] sm:$0xff]  ;;  %v7626_v9 = vld [vmem:[%s9141_s26 + $0x22e] sm:$0xff] }
 0x623   : > { %v6487_v17 = vadd.f32 %v6287_v6, %v5945_v16  ;;  %5683 = vst.msk [vmem:[#allocation2 + $0x160] sm:$0xff] %vm176_vm2, %v5578_v12  ;;  %8868 = vmatmul.msk.bf16.gmra.mxu1 %vm547_vm1, %v4969_v7  ;;  %v5808_v6 = vld [vmem:[%s9141_s26 + $0x23c] sm:$0xff] }
 0x624   : > { %v6854_v14 = vld [vmem:[#allocation2 + $0x150] sm:$0xff]  ;;  %8922 = vmatmul.msk.bf16.gmra.mxu2 %vm547_vm1, %v5879_v10  ;;  %v5881_v19 = vpack.c.bf16 %v5809_v8, %v5808_v6 }
 0x625   : > { %v7396_v20 = vadd.f32 %v7195_v4, %v6854_v14  ;;  %6592 = vst.msk [vmem:[#allocation2 + $0x158] sm:$0xff] %vm176_vm2, %v6487_v17  ;;  %9030 = vmatmul.msk.bf16.gmra.mxu0 %vm547_vm1, %v7699_v48  ;;  %v7627_v10 = vld [vmem:[%s9141_s26 + $0x236] sm:$0xff]  ;;  %v4971_v17 = vpack.c.bf16 %v4899_v5, %v4898_v3  ;;  %v5040_v14 = vld [vmem:[#allocation2 + $0x180] sm:$0xff] }
 0x626   : > { %v7763_v21 = vld [vmem:[#allocation2 + $0x148] sm:$0xff]  ;;  %v5043_v5 = vld [vmem:[#allocation2 + $0x198] sm:$0xff] }
 0x627   : > { %v8305_v23 = vadd.f32 %v8102_v56, %v7763_v21  ;;  %7501 = vst.msk [vmem:[#allocation2 + $0x150] sm:$0xff] %vm176_vm2, %v7396_v20  ;;  %v6290_v24 = vpop.f32.mrf.mxu2  ;;  %v7202_v57 = vpop.f32.mrf.mxu3  ;;  %v7700_v20 = vpack.c.bf16 %v7627_v10, %v7626_v9 }
 0x628   : > { %v5382_v28 = vpop.f32.mrf.mxu1 }
 0x629   : > { %8410 = vst.msk [vmem:[#allocation2 + $0x148] sm:$0xff] %vm176_vm2, %v8305_v23  ;;  %v5579_v29 = vadd.f32 %v5382_v28, %v5037_v26  ;;  %8977 = vmatmul.msk.bf16.gmra.mxu3 %vm547_vm1, %v6790_v60  ;;  %v6718_v26 = vld [vmem:[%s9141_s26 + $0x23d] sm:$0xff]  ;;  %v6719_v28 = vld [vmem:[%s9141_s26 + $0x245] sm:$0xff] }
 0x62a   : > { %v5946_v31 = vld [vmem:[#allocation2 + $0x160] sm:$0xff]  ;;  %v8112_v0 = vpop.f32.mrf.mxu0 }
 0x62b   : > { %v6488_v32 = vadd.f32 %v6290_v24, %v5946_v31  ;;  %5684 = vst.msk [vmem:[#allocation2 + $0x168] sm:$0xff] %vm176_vm2, %v5579_v29 }
 0x62c   : > { %v6855_v34 = vld [vmem:[#allocation2 + $0x158] sm:$0xff] }
 0x62d   : > { %v7397_v37 = vadd.f32 %v7197_v22, %v6855_v34  ;;  %6593 = vst.msk [vmem:[#allocation2 + $0x160] sm:$0xff] %vm176_vm2, %v6488_v32  ;;  %v6791_v34 = vpack.c.bf16 %v6719_v28, %v6718_v26 }
 0x62e   : > { %v7764_v15 = vld [vmem:[#allocation2 + $0x150] sm:$0xff] }
 0x62f   : > { %v8306_v42 = vadd.f32 %v8105_v13, %v7764_v15  ;;  %7502 = vst.msk [vmem:[#allocation2 + $0x158] sm:$0xff] %vm176_vm2, %v7397_v37  ;;  %v6292_v43 = vpop.f32.mrf.mxu2  ;;  %v7205_v12 = vpop.f32.mrf.mxu3  ;;  %v4900_v15 = vld [vmem:[%s9141_s26 + $0x230] sm:$0xff] }
 0x630   : > { %v5385_v46 = vpop.f32.mrf.mxu1 }
 0x631   : > { %8411 = vst.msk [vmem:[#allocation2 + $0x150] sm:$0xff] %vm176_vm2, %v8306_v42  ;;  %v5580_v49 = vadd.f32 %v5385_v46, %v5038_v45  ;;  %v4901_v42 = vld [vmem:[%s9141_s26 + $0x238] sm:$0xff] }
 0x632   : > { %v5947_v27 = vld [vmem:[#allocation2 + $0x168] sm:$0xff]  ;;  %v8115_v22 = vpop.f32.mrf.mxu0  ;;  %v5811_v45 = vld [vmem:[%s9141_s26 + $0x254] sm:$0xff]  ;;  %v7628_v46 = vld [vmem:[%s9141_s26 + $0x23e] sm:$0xff] }
 0x633   : > { %v6489_v51 = vadd.f32 %v6292_v43, %v5947_v27  ;;  %5685 = vst.msk [vmem:[#allocation2 + $0x170] sm:$0xff] %vm176_vm2, %v5580_v49  ;;  %8869 = vmatmul.msk.bf16.gmra.mxu1 %vm547_vm1, %v4970_v44  ;;  %v5810_v43 = vld [vmem:[%s9141_s26 + $0x24c] sm:$0xff] }
 0x634   : > { %v6856_v52 = vld [vmem:[#allocation2 + $0x160] sm:$0xff]  ;;  %8923 = vmatmul.msk.bf16.gmra.mxu2 %vm547_vm1, %v5880_v47  ;;  %v5882_v54 = vpack.c.bf16 %v5811_v45, %v5810_v43 }
 0x635   : > { %v7398_v55 = vadd.f32 %v7200_v41, %v6856_v52  ;;  %6594 = vst.msk [vmem:[#allocation2 + $0x168] sm:$0xff] %vm176_vm2, %v6489_v51  ;;  %9031 = vmatmul.msk.bf16.gmra.mxu0 %vm547_vm1, %v7700_v20  ;;  %v7629_v47 = vld [vmem:[%s9141_s26 + $0x246] sm:$0xff]  ;;  %v4972_v51 = vpack.c.bf16 %v4901_v42, %v4900_v15  ;;  %v5042_v52 = vld [vmem:[#allocation2 + $0x190] sm:$0xff] }
 0x636   : > { %v7765_v56 = vld [vmem:[#allocation2 + $0x158] sm:$0xff]  ;;  %v5045_v42 = vld [vmem:[#allocation2 + $0x1a8] sm:$0xff] }
 0x637   : > { %v8307_v58 = vadd.f32 %v8107_v30, %v7765_v56  ;;  %7503 = vst.msk [vmem:[#allocation2 + $0x160] sm:$0xff] %vm176_vm2, %v7398_v55  ;;  %v6295_v59 = vpop.f32.mrf.mxu2  ;;  %v7207_v31 = vpop.f32.mrf.mxu3  ;;  %v7701_v55 = vpack.c.bf16 %v7629_v47, %v7628_v46 }
 0x638   : > { %v5387_v62 = vpop.f32.mrf.mxu1 }
 0x639   : > { %8412 = vst.msk [vmem:[#allocation2 + $0x158] sm:$0xff] %vm176_vm2, %v8307_v58  ;;  %v5581_v63 = vadd.f32 %v5387_v62, %v5039_v61  ;;  %8978 = vmatmul.msk.bf16.gmra.mxu3 %vm547_vm1, %v6791_v34  ;;  %v6720_v61 = vld [vmem:[%s9141_s26 + $0x24d] sm:$0xff]  ;;  %v6721_v62 = vld [vmem:[%s9141_s26 + $0x255] sm:$0xff] }
 0x63a   : > { %v5948_v1 = vld [vmem:[#allocation2 + $0x170] sm:$0xff]  ;;  %v8117_v38 = vpop.f32.mrf.mxu0 }
 0x63b   : > { %v6490_v2 = vadd.f32 %v6295_v59, %v5948_v1  ;;  %5686 = vst.msk [vmem:[#allocation2 + $0x178] sm:$0xff] %vm176_vm2, %v5581_v63 }
 0x63c   : > { %v6857_v4 = vld [vmem:[#allocation2 + $0x168] sm:$0xff] }
 0x63d   : > { %v7399_v7 = vadd.f32 %v7202_v57, %v6857_v4  ;;  %6595 = vst.msk [vmem:[#allocation2 + $0x170] sm:$0xff] %vm176_vm2, %v6490_v2  ;;  %v6792_v4 = vpack.c.bf16 %v6721_v62, %v6720_v61 }
 0x63e   : > { %v7766_v11 = vld [vmem:[#allocation2 + $0x160] sm:$0xff] }
 0x63f   : > { %v8308_v13 = vadd.f32 %v8110_v50, %v7766_v11  ;;  %7504 = vst.msk [vmem:[#allocation2 + $0x168] sm:$0xff] %vm176_vm2, %v7399_v7  ;;  %v6297_v16 = vpop.f32.mrf.mxu2  ;;  %v7210_v49 = vpop.f32.mrf.mxu3  ;;  %v4902_v11 = vld [vmem:[%s9141_s26 + $0x240] sm:$0xff] }
 0x640   : > { %v5390_v18 = vpop.f32.mrf.mxu1 }
 0x641   : > { %8413 = vst.msk [vmem:[#allocation2 + $0x160] sm:$0xff] %vm176_vm2, %v8308_v13  ;;  %v5582_v21 = vadd.f32 %v5390_v18, %v5040_v14  ;;  %v4903_v13 = vld [vmem:[%s9141_s26 + $0x248] sm:$0xff] }
 0x642   : > { %v5949_v23 = vld [vmem:[#allocation2 + $0x178] sm:$0xff]  ;;  %v8120_v57 = vpop.f32.mrf.mxu0  ;;  %v5813_v14 = vld [vmem:[%s9141_s26 + $0x264] sm:$0xff]  ;;  %v7630_v18 = vld [vmem:[%s9141_s26 + $0x24e] sm:$0xff] }
 0x643   : > { %v6491_v24 = vadd.f32 %v6297_v16, %v5949_v23  ;;  %5687 = vst.msk [vmem:[#allocation2 + $0x180] sm:$0xff] %vm176_vm2, %v5582_v21  ;;  %8870 = vmatmul.msk.bf16.gmra.mxu1 %vm547_vm1, %v4971_v17  ;;  %v5812_v16 = vld [vmem:[%s9141_s26 + $0x25c] sm:$0xff] }
 0x644   : > { %v6858_v25 = vld [vmem:[#allocation2 + $0x170] sm:$0xff]  ;;  %8924 = vmatmul.msk.bf16.gmra.mxu2 %vm547_vm1, %v5881_v19  ;;  %v5883_v28 = vpack.c.bf16 %v5813_v14, %v5812_v16 }
 0x645   : > { %v7400_v29 = vadd.f32 %v7205_v12, %v6858_v25  ;;  %6596 = vst.msk [vmem:[#allocation2 + $0x178] sm:$0xff] %vm176_vm2, %v6491_v24  ;;  %9032 = vmatmul.msk.bf16.gmra.mxu0 %vm547_vm1, %v7701_v55  ;;  %v7631_v19 = vld [vmem:[%s9141_s26 + $0x256] sm:$0xff]  ;;  %v4973_v24 = vpack.c.bf16 %v4903_v13, %v4902_v11  ;;  %v5044_v25 = vld [vmem:[#allocation2 + $0x1a0] sm:$0xff] }
 0x646   : > { %v7767_v30 = vld [vmem:[#allocation2 + $0x168] sm:$0xff]  ;;  %v5047_v13 = vld [vmem:[#allocation2 + $0x1b8] sm:$0xff] }
 0x647   : > { %v8309_v32 = vadd.f32 %v8112_v0, %v7767_v30  ;;  %7505 = vst.msk [vmem:[#allocation2 + $0x170] sm:$0xff] %vm176_vm2, %v7400_v29  ;;  %v6300_v33 = vpop.f32.mrf.mxu2  ;;  %v7212_v1 = vpop.f32.mrf.mxu3  ;;  %v7702_v29 = vpack.c.bf16 %v7631_v19, %v7630_v18 }
 0x648   : > { %v5392_v36 = vpop.f32.mrf.mxu1 }
 0x649   : > { %8414 = vst.msk [vmem:[#allocation2 + $0x168] sm:$0xff] %vm176_vm2, %v8309_v32  ;;  %v5583_v37 = vadd.f32 %v5392_v36, %v5041_v35  ;;  %8979 = vmatmul.msk.bf16.gmra.mxu3 %vm547_vm1, %v6792_v4  ;;  %v6722_v35 = vld [vmem:[%s9141_s26 + $0x25d] sm:$0xff]  ;;  %v6723_v36 = vld [vmem:[%s9141_s26 + $0x265] sm:$0xff] }
 0x64a   : > { %v5950_v39 = vld [vmem:[#allocation2 + $0x180] sm:$0xff]  ;;  %v8122_v8 = vpop.f32.mrf.mxu0 }
 0x64b   : > { %v6492_v40 = vadd.f32 %v6300_v33, %v5950_v39  ;;  %5688 = vst.msk [vmem:[#allocation2 + $0x188] sm:$0xff] %vm176_vm2, %v5583_v37 }
 0x64c   : > { %v6859_v41 = vld [vmem:[#allocation2 + $0x178] sm:$0xff] }
 0x64d   : > { %v7401_v44 = vadd.f32 %v7207_v31, %v6859_v41  ;;  %6597 = vst.msk [vmem:[#allocation2 + $0x180] sm:$0xff] %vm176_vm2, %v6492_v40  ;;  %v6793_v41 = vpack.c.bf16 %v6723_v36, %v6722_v35 }
 0x64e   : > { %v7768_v48 = vld [vmem:[#allocation2 + $0x170] sm:$0xff] }
 0x64f   : > { %v8310_v50 = vadd.f32 %v8115_v22, %v7768_v48  ;;  %7506 = vst.msk [vmem:[#allocation2 + $0x178] sm:$0xff] %vm176_vm2, %v7401_v44  ;;  %v6302_v27 = vpop.f32.mrf.mxu2  ;;  %v7215_v21 = vpop.f32.mrf.mxu3  ;;  %v4904_v48 = vld [vmem:[%s9141_s26 + $0x250] sm:$0xff] }
 0x650   : > { %v5395_v53 = vpop.f32.mrf.mxu1 }
 0x651   : > { %8415 = vst.msk [vmem:[#allocation2 + $0x170] sm:$0xff] %vm176_vm2, %v8310_v50  ;;  %v5584_v56 = vadd.f32 %v5395_v53, %v5042_v52  ;;  %v4905_v50 = vld [vmem:[%s9141_s26 + $0x258] sm:$0xff] }
 0x652   : > { %v5951_v58 = vld [vmem:[#allocation2 + $0x188] sm:$0xff]  ;;  %v8125_v31 = vpop.f32.mrf.mxu0  ;;  %v5815_v52 = vld [vmem:[%s9141_s26 + $0x274] sm:$0xff]  ;;  %v7632_v53 = vld [vmem:[%s9141_s26 + $0x25e] sm:$0xff] }
 0x653   : > { %v6493_v59 = vadd.f32 %v6302_v27, %v5951_v58  ;;  %5689 = vst.msk [vmem:[#allocation2 + $0x190] sm:$0xff] %vm176_vm2, %v5584_v56  ;;  %8871 = vmatmul.msk.bf16.gmra.mxu1 %vm547_vm1, %v4972_v51  ;;  %v5814_v27 = vld [vmem:[%s9141_s26 + $0x26c] sm:$0xff] }
 0x654   : > { %v6860_v60 = vld [vmem:[#allocation2 + $0x180] sm:$0xff]  ;;  %8925 = vmatmul.msk.bf16.gmra.mxu2 %vm547_vm1, %v5882_v54  ;;  %v5884_v62 = vpack.c.bf16 %v5815_v52, %v5814_v27 }
 0x655   : > { %v7402_v63 = vadd.f32 %v7210_v49, %v6860_v60  ;;  %6598 = vst.msk [vmem:[#allocation2 + $0x188] sm:$0xff] %vm176_vm2, %v6493_v59  ;;  %9033 = vmatmul.msk.bf16.gmra.mxu0 %vm547_vm1, %v7702_v29  ;;  %v7633_v54 = vld [vmem:[%s9141_s26 + $0x266] sm:$0xff]  ;;  %v4974_v59 = vpack.c.bf16 %v4905_v50, %v4904_v48  ;;  %v5046_v60 = vld [vmem:[#allocation2 + $0x1b0] sm:$0xff] }
 0x656   : > { %v7769_v0 = vld [vmem:[#allocation2 + $0x178] sm:$0xff]  ;;  %v5049_v50 = vld [vmem:[#allocation2 + $0x1c8] sm:$0xff] }
 0x657   : > { %v8311_v2 = vadd.f32 %v8117_v38, %v7769_v0  ;;  %7507 = vst.msk [vmem:[#allocation2 + $0x180] sm:$0xff] %vm176_vm2, %v7402_v63  ;;  %v6305_v3 = vpop.f32.mrf.mxu2  ;;  %v7217_v39 = vpop.f32.mrf.mxu3  ;;  %v7703_v63 = vpack.c.bf16 %v7633_v54, %v7632_v53 }
 0x658   : > { %v5397_v6 = vpop.f32.mrf.mxu1 }
 0x659   : > { %8416 = vst.msk [vmem:[#allocation2 + $0x178] sm:$0xff] %vm176_vm2, %v8311_v2  ;;  %v5585_v7 = vadd.f32 %v5397_v6, %v5043_v5  ;;  %8980 = vmatmul.msk.bf16.gmra.mxu3 %vm547_vm1, %v6793_v41  ;;  %v6724_v5 = vld [vmem:[%s9141_s26 + $0x26d] sm:$0xff]  ;;  %v6725_v6 = vld [vmem:[%s9141_s26 + $0x275] sm:$0xff] }
 0x65a   : > { %v5952_v9 = vld [vmem:[#allocation2 + $0x190] sm:$0xff]  ;;  %v8127_v45 = vpop.f32.mrf.mxu0 }
 0x65b   : > { %v6494_v10 = vadd.f32 %v6305_v3, %v5952_v9  ;;  %5690 = vst.msk [vmem:[#allocation2 + $0x198] sm:$0xff] %vm176_vm2, %v5585_v7 }
 0x65c   : > { %v6861_v12 = vld [vmem:[#allocation2 + $0x188] sm:$0xff] }
 0x65d   : > { %v7403_v17 = vadd.f32 %v7212_v1, %v6861_v12  ;;  %6599 = vst.msk [vmem:[#allocation2 + $0x190] sm:$0xff] %vm176_vm2, %v6494_v10  ;;  %v6794_v12 = vpack.c.bf16 %v6725_v6, %v6724_v5 }
 0x65e   : > { %v7770_v20 = vld [vmem:[#allocation2 + $0x180] sm:$0xff] }
 0x65f   : > { %v8312_v22 = vadd.f32 %v8120_v57, %v7770_v20  ;;  %7508 = vst.msk [vmem:[#allocation2 + $0x188] sm:$0xff] %vm176_vm2, %v7403_v17  ;;  %v6307_v23 = vpop.f32.mrf.mxu2  ;;  %v7220_v56 = vpop.f32.mrf.mxu3  ;;  %v4906_v20 = vld [vmem:[%s9141_s26 + $0x260] sm:$0xff] }
 0x660   : > { %v5400_v26 = vpop.f32.mrf.mxu1 }
 0x661   : > { %8417 = vst.msk [vmem:[#allocation2 + $0x180] sm:$0xff] %vm176_vm2, %v8312_v22  ;;  %v5586_v30 = vadd.f32 %v5400_v26, %v5044_v25  ;;  %v4907_v22 = vld [vmem:[%s9141_s26 + $0x268] sm:$0xff] }
 0x662   : > { %v5953_v32 = vld [vmem:[#allocation2 + $0x198] sm:$0xff]  ;;  %v8130_v1 = vpop.f32.mrf.mxu0  ;;  %v5817_v25 = vld [vmem:[%s9141_s26 + $0x284] sm:$0xff]  ;;  %v7634_v26 = vld [vmem:[%s9141_s26 + $0x26e] sm:$0xff] }
 0x663   : > { %v6495_v33 = vadd.f32 %v6307_v23, %v5953_v32  ;;  %5691 = vst.msk [vmem:[#allocation2 + $0x1a0] sm:$0xff] %vm176_vm2, %v5586_v30  ;;  %8872 = vmatmul.msk.bf16.gmra.mxu1 %vm547_vm1, %v4973_v24  ;;  %v5816_v23 = vld [vmem:[%s9141_s26 + $0x27c] sm:$0xff] }
 0x664   : > { %v6862_v34 = vld [vmem:[#allocation2 + $0x190] sm:$0xff]  ;;  %8926 = vmatmul.msk.bf16.gmra.mxu2 %vm547_vm1, %v5883_v28  ;;  %v5885_v36 = vpack.c.bf16 %v5817_v25, %v5816_v23 }
 0x665   : > { %v7404_v37 = vadd.f32 %v7215_v21, %v6862_v34  ;;  %6600 = vst.msk [vmem:[#allocation2 + $0x198] sm:$0xff] %vm176_vm2, %v6495_v33  ;;  %9034 = vmatmul.msk.bf16.gmra.mxu0 %vm547_vm1, %v7703_v63  ;;  %v7635_v28 = vld [vmem:[%s9141_s26 + $0x276] sm:$0xff]  ;;  %v4975_v33 = vpack.c.bf16 %v4907_v22, %v4906_v20  ;;  %v5048_v34 = vld [vmem:[#allocation2 + $0x1c0] sm:$0xff] }
 0x666   : > { %v7771_v38 = vld [vmem:[#allocation2 + $0x188] sm:$0xff]  ;;  %v5051_v22 = vld [vmem:[#allocation2 + $0x1d8] sm:$0xff] }
 0x667   : > { %v8313_v40 = vadd.f32 %v8122_v8, %v7771_v38  ;;  %7509 = vst.msk [vmem:[#allocation2 + $0x190] sm:$0xff] %vm176_vm2, %v7404_v37  ;;  %v6310_v15 = vpop.f32.mrf.mxu2  ;;  %v7222_v9 = vpop.f32.mrf.mxu3  ;;  %v7704_v37 = vpack.c.bf16 %v7635_v28, %v7634_v26 }
 0x668   : > { %v5402_v43 = vpop.f32.mrf.mxu1 }
 0x669   : > { %8418 = vst.msk [vmem:[#allocation2 + $0x188] sm:$0xff] %vm176_vm2, %v8313_v40  ;;  %v5587_v44 = vadd.f32 %v5402_v43, %v5045_v42  ;;  %8981 = vmatmul.msk.bf16.gmra.mxu3 %vm547_vm1, %v6794_v12  ;;  %v6726_v42 = vld [vmem:[%s9141_s26 + $0x27d] sm:$0xff]  ;;  %v6727_v43 = vld [vmem:[%s9141_s26 + $0x285] sm:$0xff] }
 0x66a   : > { %v5954_v46 = vld [vmem:[#allocation2 + $0x1a0] sm:$0xff]  ;;  %v8132_v14 = vpop.f32.mrf.mxu0 }
 0x66b   : > { %v6496_v47 = vadd.f32 %v6310_v15, %v5954_v46  ;;  %5692 = vst.msk [vmem:[#allocation2 + $0x1a8] sm:$0xff] %vm176_vm2, %v5587_v44 }
 0x66c   : > { %v6863_v49 = vld [vmem:[#allocation2 + $0x198] sm:$0xff] }
 0x66d   : > { %v7405_v51 = vadd.f32 %v7217_v39, %v6863_v49  ;;  %6601 = vst.msk [vmem:[#allocation2 + $0x1a0] sm:$0xff] %vm176_vm2, %v6496_v47  ;;  %v6795_v49 = vpack.c.bf16 %v6727_v43, %v6726_v42 }
 0x66e   : > { %v7772_v55 = vld [vmem:[#allocation2 + $0x190] sm:$0xff] }
 0x66f   : > { %v8314_v57 = vadd.f32 %v8125_v31, %v7772_v55  ;;  %7510 = vst.msk [vmem:[#allocation2 + $0x198] sm:$0xff] %vm176_vm2, %v7405_v51  ;;  %v6312_v58 = vpop.f32.mrf.mxu2  ;;  %v7225_v30 = vpop.f32.mrf.mxu3  ;;  %v4908_v55 = vld [vmem:[%s9141_s26 + $0x270] sm:$0xff] }
 0x670   : > { %v5405_v61 = vpop.f32.mrf.mxu1 }
 0x671   : > { %8419 = vst.msk [vmem:[#allocation2 + $0x190] sm:$0xff] %vm176_vm2, %v8314_v57  ;;  %v5588_v0 = vadd.f32 %v5405_v61, %v5046_v60  ;;  %v4909_v57 = vld [vmem:[%s9141_s26 + $0x278] sm:$0xff] }
 0x672   : > { %v5955_v2 = vld [vmem:[#allocation2 + $0x1a8] sm:$0xff]  ;;  %v8135_v39 = vpop.f32.mrf.mxu0  ;;  %v5819_v60 = vld [vmem:[%s9141_s26 + $0x294] sm:$0xff]  ;;  %v7636_v61 = vld [vmem:[%s9141_s26 + $0x27e] sm:$0xff] }
 0x673   : > { %v6497_v3 = vadd.f32 %v6312_v58, %v5955_v2  ;;  %5693 = vst.msk [vmem:[#allocation2 + $0x1b0] sm:$0xff] %vm176_vm2, %v5588_v0  ;;  %8873 = vmatmul.msk.bf16.gmra.mxu1 %vm547_vm1, %v4974_v59  ;;  %v5818_v58 = vld [vmem:[%s9141_s26 + $0x28c] sm:$0xff] }
 0x674   : > { %v6864_v4 = vld [vmem:[#allocation2 + $0x1a0] sm:$0xff]  ;;  %8927 = vmatmul.msk.bf16.gmra.mxu2 %vm547_vm1, %v5884_v62  ;;  %v5886_v6 = vpack.c.bf16 %v5819_v60, %v5818_v58 }
 0x675   : > { %v7406_v7 = vadd.f32 %v7220_v56, %v6864_v4  ;;  %6602 = vst.msk [vmem:[#allocation2 + $0x1a8] sm:$0xff] %vm176_vm2, %v6497_v3  ;;  %9035 = vmatmul.msk.bf16.gmra.mxu0 %vm547_vm1, %v7704_v37  ;;  %v7637_v62 = vld [vmem:[%s9141_s26 + $0x286] sm:$0xff]  ;;  %v4976_v3 = vpack.c.bf16 %v4909_v57, %v4908_v55  ;;  %v5050_v4 = vld [vmem:[#allocation2 + $0x1d0] sm:$0xff] }
 0x676   : > { %v7773_v8 = vld [vmem:[#allocation2 + $0x198] sm:$0xff]  ;;  %v5053_v57 = vld [vmem:[#allocation2 + $0x1e8] sm:$0xff] }
 0x677   : > { %v8315_v10 = vadd.f32 %v8127_v45, %v7773_v8  ;;  %7511 = vst.msk [vmem:[#allocation2 + $0x1a0] sm:$0xff] %vm176_vm2, %v7406_v7  ;;  %v6315_v11 = vpop.f32.mrf.mxu2  ;;  %v7227_v46 = vpop.f32.mrf.mxu3  ;;  %v7705_v7 = vpack.c.bf16 %v7637_v62, %v7636_v61 }
 0x678   : > { %v5407_v16 = vpop.f32.mrf.mxu1 }
 0x679   : > { %8420 = vst.msk [vmem:[#allocation2 + $0x198] sm:$0xff] %vm176_vm2, %v8315_v10  ;;  %v5589_v17 = vadd.f32 %v5407_v16, %v5047_v13  ;;  %8982 = vmatmul.msk.bf16.gmra.mxu3 %vm547_vm1, %v6795_v49  ;;  %v6728_v13 = vld [vmem:[%s9141_s26 + $0x28d] sm:$0xff]  ;;  %v6729_v16 = vld [vmem:[%s9141_s26 + $0x295] sm:$0xff] }
 0x67a   : > { %v5956_v18 = vld [vmem:[#allocation2 + $0x1b0] sm:$0xff]  ;;  %v8137_v52 = vpop.f32.mrf.mxu0 }
 0x67b   : > { %v6498_v19 = vadd.f32 %v6315_v11, %v5956_v18  ;;  %5694 = vst.msk [vmem:[#allocation2 + $0x1b8] sm:$0xff] %vm176_vm2, %v5589_v17 }
 0x67c   : > { %v6865_v21 = vld [vmem:[#allocation2 + $0x1a8] sm:$0xff] }
 0x67d   : > { %v7407_v24 = vadd.f32 %v7222_v9, %v6865_v21  ;;  %6603 = vst.msk [vmem:[#allocation2 + $0x1b0] sm:$0xff] %vm176_vm2, %v6498_v19  ;;  %v6796_v21 = vpack.c.bf16 %v6729_v16, %v6728_v13 }
 0x67e   : > { %v7774_v29 = vld [vmem:[#allocation2 + $0x1a0] sm:$0xff] }
 0x67f   : > { %v8316_v31 = vadd.f32 %v8130_v1, %v7774_v29  ;;  %7512 = vst.msk [vmem:[#allocation2 + $0x1a8] sm:$0xff] %vm176_vm2, %v7407_v24  ;;  %v6317_v32 = vpop.f32.mrf.mxu2  ;;  %v7230_v0 = vpop.f32.mrf.mxu3  ;;  %v4910_v29 = vld [vmem:[%s9141_s26 + $0x280] sm:$0xff] }
 0x680   : > { %v5410_v35 = vpop.f32.mrf.mxu1 }
 0x681   : > { %8421 = vst.msk [vmem:[#allocation2 + $0x1a0] sm:$0xff] %vm176_vm2, %v8316_v31  ;;  %v5590_v38 = vadd.f32 %v5410_v35, %v5048_v34  ;;  %v4911_v31 = vld [vmem:[%s9141_s26 + $0x288] sm:$0xff] }
 0x682   : > { %v5957_v40 = vld [vmem:[#allocation2 + $0x1b8] sm:$0xff]  ;;  %v8140_v9 = vpop.f32.mrf.mxu0  ;;  %v5821_v34 = vld [vmem:[%s9141_s26 + $0x2a4] sm:$0xff]  ;;  %v7638_v35 = vld [vmem:[%s9141_s26 + $0x28e] sm:$0xff] }
 0x683   : > { %v6499_v15 = vadd.f32 %v6317_v32, %v5957_v40  ;;  %5695 = vst.msk [vmem:[#allocation2 + $0x1c0] sm:$0xff] %vm176_vm2, %v5590_v38  ;;  %8874 = vmatmul.msk.bf16.gmra.mxu1 %vm547_vm1, %v4975_v33  ;;  %v5820_v32 = vld [vmem:[%s9141_s26 + $0x29c] sm:$0xff] }
 0x684   : > { %v6866_v41 = vld [vmem:[#allocation2 + $0x1b0] sm:$0xff]  ;;  %8928 = vmatmul.msk.bf16.gmra.mxu2 %vm547_vm1, %v5885_v36  ;;  %v5887_v43 = vpack.c.bf16 %v5821_v34, %v5820_v32 }
 0x685   : > { %v7408_v44 = vadd.f32 %v7225_v30, %v6866_v41  ;;  %6604 = vst.msk [vmem:[#allocation2 + $0x1b8] sm:$0xff] %vm176_vm2, %v6499_v15  ;;  %9036 = vmatmul.msk.bf16.gmra.mxu0 %vm547_vm1, %v7705_v7  ;;  %v7639_v36 = vld [vmem:[%s9141_s26 + $0x296] sm:$0xff]  ;;  %v4977_v15 = vpack.c.bf16 %v4911_v31, %v4910_v29  ;;  %v5052_v41 = vld [vmem:[#allocation2 + $0x1e0] sm:$0xff] }
 0x686   : > { %v7775_v45 = vld [vmem:[#allocation2 + $0x1a8] sm:$0xff]  ;;  %v5055_v31 = vld [vmem:[#allocation2 + $0x1f8] sm:$0xff] }
 0x687   : > { %v8317_v47 = vadd.f32 %v8132_v14, %v7775_v45  ;;  %7513 = vst.msk [vmem:[#allocation2 + $0x1b0] sm:$0xff] %vm176_vm2, %v7408_v44  ;;  %v6320_v48 = vpop.f32.mrf.mxu2  ;;  %v7232_v18 = vpop.f32.mrf.mxu3  ;;  %v7706_v44 = vpack.c.bf16 %v7639_v36, %v7638_v35 }
 0x688   : > { %v5412_v27 = vpop.f32.mrf.mxu1 }
 0x689   : > { %8422 = vst.msk [vmem:[#allocation2 + $0x1a8] sm:$0xff] %vm176_vm2, %v8317_v47  ;;  %v5591_v51 = vadd.f32 %v5412_v27, %v5049_v50  ;;  %8983 = vmatmul.msk.bf16.gmra.mxu3 %vm547_vm1, %v6796_v21  ;;  %v6730_v50 = vld [vmem:[%s9141_s26 + $0x29d] sm:$0xff]  ;;  %v6731_v27 = vld [vmem:[%s9141_s26 + $0x2a5] sm:$0xff] }
 0x68a   : > { %v5958_v53 = vld [vmem:[#allocation2 + $0x1c0] sm:$0xff]  ;;  %v8142_v25 = vpop.f32.mrf.mxu0 }
 0x68b   : > { %v6500_v54 = vadd.f32 %v6320_v48, %v5958_v53  ;;  %5696 = vst.msk [vmem:[#allocation2 + $0x1c8] sm:$0xff] %vm176_vm2, %v5591_v51 }
 0x68c   : > { %v6867_v56 = vld [vmem:[#allocation2 + $0x1b8] sm:$0xff] }
 0x68d   : > { %v7409_v59 = vadd.f32 %v7227_v46, %v6867_v56  ;;  %6605 = vst.msk [vmem:[#allocation2 + $0x1c0] sm:$0xff] %vm176_vm2, %v6500_v54  ;;  %v6797_v56 = vpack.c.bf16 %v6731_v27, %v6730_v50 }
 0x68e   : > { %v7776_v63 = vld [vmem:[#allocation2 + $0x1b0] sm:$0xff] }
 0x68f   : > { %v8318_v1 = vadd.f32 %v8135_v39, %v7776_v63  ;;  %7514 = vst.msk [vmem:[#allocation2 + $0x1b8] sm:$0xff] %vm176_vm2, %v7409_v59  ;;  %v6322_v2 = vpop.f32.mrf.mxu2  ;;  %v7235_v38 = vpop.f32.mrf.mxu3  ;;  %v4912_v63 = vld [vmem:[%s9141_s26 + $0x290] sm:$0xff] }
 0x690   : > { %v5415_v5 = vpop.f32.mrf.mxu1 }
 0x691   : > { %8423 = vst.msk [vmem:[#allocation2 + $0x1b0] sm:$0xff] %vm176_vm2, %v8318_v1  ;;  %v5592_v8 = vadd.f32 %v5415_v5, %v5050_v4  ;;  %v4913_v1 = vld [vmem:[%s9141_s26 + $0x298] sm:$0xff] }
 0x692   : > { %v5959_v10 = vld [vmem:[#allocation2 + $0x1c8] sm:$0xff]  ;;  %v8145_v46 = vpop.f32.mrf.mxu0  ;;  %v5823_v4 = vld [vmem:[%s9141_s26 + $0x2b4] sm:$0xff]  ;;  %v7640_v5 = vld [vmem:[%s9141_s26 + $0x29e] sm:$0xff] }
 0x693   : > { %v6501_v11 = vadd.f32 %v6322_v2, %v5959_v10  ;;  %5697 = vst.msk [vmem:[#allocation2 + $0x1d0] sm:$0xff] %vm176_vm2, %v5592_v8  ;;  %8875 = vmatmul.msk.bf16.gmra.mxu1 %vm547_vm1, %v4976_v3  ;;  %v5822_v2 = vld [vmem:[%s9141_s26 + $0x2ac] sm:$0xff] }
 0x694   : > { %v6868_v12 = vld [vmem:[#allocation2 + $0x1c0] sm:$0xff]  ;;  %8929 = vmatmul.msk.bf16.gmra.mxu2 %vm547_vm1, %v5886_v6  ;;  %v5888_v16 = vpack.c.bf16 %v5823_v4, %v5822_v2 }
 0x695   : > { %v7410_v17 = vadd.f32 %v7230_v0, %v6868_v12  ;;  %6606 = vst.msk [vmem:[#allocation2 + $0x1c8] sm:$0xff] %vm176_vm2, %v6501_v11  ;;  %9037 = vmatmul.msk.bf16.gmra.mxu0 %vm547_vm1, %v7706_v44  ;;  %v7641_v6 = vld [vmem:[%s9141_s26 + $0x2a6] sm:$0xff]  ;;  %v4978_v11 = vpack.c.bf16 %v4913_v1, %v4912_v63  ;;  %v5054_v12 = vld [vmem:[#allocation2 + $0x1f0] sm:$0xff] }
 0x696   : > { %v7777_v14 = vld [vmem:[#allocation2 + $0x1b8] sm:$0xff]  ;;  %v5057_v1 = vld [vmem:[#allocation2 + $0x208] sm:$0xff] }
 0x697   : > { %v8319_v19 = vadd.f32 %v8137_v52, %v7777_v14  ;;  %7515 = vst.msk [vmem:[#allocation2 + $0x1c0] sm:$0xff] %vm176_vm2, %v7410_v17  ;;  %v6325_v20 = vpop.f32.mrf.mxu2  ;;  %v7237_v53 = vpop.f32.mrf.mxu3  ;;  %v7707_v17 = vpack.c.bf16 %v7641_v6, %v7640_v5 }
 0x698   : > { %v5417_v23 = vpop.f32.mrf.mxu1 }
 0x699   : > { %8424 = vst.msk [vmem:[#allocation2 + $0x1b8] sm:$0xff] %vm176_vm2, %v8319_v19  ;;  %v5593_v24 = vadd.f32 %v5417_v23, %v5051_v22  ;;  %8984 = vmatmul.msk.bf16.gmra.mxu3 %vm547_vm1, %v6797_v56  ;;  %v6732_v22 = vld [vmem:[%s9141_s26 + $0x2ad] sm:$0xff]  ;;  %v6733_v23 = vld [vmem:[%s9141_s26 + $0x2b5] sm:$0xff] }
 0x69a   : > { %v5960_v26 = vld [vmem:[#allocation2 + $0x1d0] sm:$0xff]  ;;  %v8147_v60 = vpop.f32.mrf.mxu0 }
 0x69b   : > { %v6502_v28 = vadd.f32 %v6325_v20, %v5960_v26  ;;  %5698 = vst.msk [vmem:[#allocation2 + $0x1d8] sm:$0xff] %vm176_vm2, %v5593_v24 }
 0x69c   : > { %v6869_v30 = vld [vmem:[#allocation2 + $0x1c8] sm:$0xff] }
 0x69d   : > { %v7411_v33 = vadd.f32 %v7232_v18, %v6869_v30  ;;  %6607 = vst.msk [vmem:[#allocation2 + $0x1d0] sm:$0xff] %vm176_vm2, %v6502_v28  ;;  %v6798_v30 = vpack.c.bf16 %v6733_v23, %v6732_v22 }
 0x69e   : > { %v7778_v37 = vld [vmem:[#allocation2 + $0x1c0] sm:$0xff] }
 0x69f   : > { %v8320_v39 = vadd.f32 %v8140_v9, %v7778_v37  ;;  %7516 = vst.msk [vmem:[#allocation2 + $0x1c8] sm:$0xff] %vm176_vm2, %v7411_v33  ;;  %v6327_v40 = vpop.f32.mrf.mxu2  ;;  %v7240_v8 = vpop.f32.mrf.mxu3  ;;  %v4914_v37 = vld [vmem:[%s9141_s26 + $0x2a0] sm:$0xff] }
 0x6a0   : > { %v5420_v42 = vpop.f32.mrf.mxu1 }
 0x6a1   : > { %8425 = vst.msk [vmem:[#allocation2 + $0x1c0] sm:$0xff] %vm176_vm2, %v8320_v39  ;;  %v5594_v45 = vadd.f32 %v5420_v42, %v5052_v41  ;;  %v4915_v39 = vld [vmem:[%s9141_s26 + $0x2a8] sm:$0xff] }
 0x6a2   : > { %v5961_v47 = vld [vmem:[#allocation2 + $0x1d8] sm:$0xff]  ;;  %v8150_v18 = vpop.f32.mrf.mxu0  ;;  %v5825_v41 = vld [vmem:[%s9141_s26 + $0x2c4] sm:$0xff]  ;;  %v7642_v42 = vld [vmem:[%s9141_s26 + $0x2ae] sm:$0xff] }
 0x6a3   : > { %v6503_v48 = vadd.f32 %v6327_v40, %v5961_v47  ;;  %5699 = vst.msk [vmem:[#allocation2 + $0x1e0] sm:$0xff] %vm176_vm2, %v5594_v45  ;;  %8876 = vmatmul.msk.bf16.gmra.mxu1 %vm547_vm1, %v4977_v15  ;;  %v5824_v40 = vld [vmem:[%s9141_s26 + $0x2bc] sm:$0xff] }
 0x6a4   : > { %v6870_v49 = vld [vmem:[#allocation2 + $0x1d0] sm:$0xff]  ;;  %8930 = vmatmul.msk.bf16.gmra.mxu2 %vm547_vm1, %v5887_v43  ;;  %v5889_v27 = vpack.c.bf16 %v5825_v41, %v5824_v40 }
 0x6a5   : > { %v7412_v51 = vadd.f32 %v7235_v38, %v6870_v49  ;;  %6608 = vst.msk [vmem:[#allocation2 + $0x1d8] sm:$0xff] %vm176_vm2, %v6503_v48  ;;  %9038 = vmatmul.msk.bf16.gmra.mxu0 %vm547_vm1, %v7707_v17  ;;  %v7643_v43 = vld [vmem:[%s9141_s26 + $0x2b6] sm:$0xff]  ;;  %v4979_v48 = vpack.c.bf16 %v4915_v39, %v4914_v37  ;;  %v5056_v49 = vld [vmem:[#allocation2 + $0x200] sm:$0xff] }
 0x6a6   : > { %v7779_v52 = vld [vmem:[#allocation2 + $0x1c8] sm:$0xff]  ;;  %v5059_v39 = vld [vmem:[#allocation2 + $0x218] sm:$0xff] }
 0x6a7   : > { %v8321_v54 = vadd.f32 %v8142_v25, %v7779_v52  ;;  %7517 = vst.msk [vmem:[#allocation2 + $0x1d0] sm:$0xff] %vm176_vm2, %v7412_v51  ;;  %v6330_v55 = vpop.f32.mrf.mxu2  ;;  %v7242_v26 = vpop.f32.mrf.mxu3  ;;  %v7708_v51 = vpack.c.bf16 %v7643_v43, %v7642_v42 }
 0x6a8   : > { %v5422_v58 = vpop.f32.mrf.mxu1 }
 0x6a9   : > { %8426 = vst.msk [vmem:[#allocation2 + $0x1c8] sm:$0xff] %vm176_vm2, %v8321_v54  ;;  %v5595_v59 = vadd.f32 %v5422_v58, %v5053_v57  ;;  %8985 = vmatmul.msk.bf16.gmra.mxu3 %vm547_vm1, %v6798_v30  ;;  %v6734_v57 = vld [vmem:[%s9141_s26 + $0x2bd] sm:$0xff]  ;;  %v6735_v58 = vld [vmem:[%s9141_s26 + $0x2c5] sm:$0xff] }
 0x6aa   : > { %v5962_v61 = vld [vmem:[#allocation2 + $0x1e0] sm:$0xff]  ;;  %v8152_v34 = vpop.f32.mrf.mxu0 }
 0x6ab   : > { %v6504_v62 = vadd.f32 %v6330_v55, %v5962_v61  ;;  %5700 = vst.msk [vmem:[#allocation2 + $0x1e8] sm:$0xff] %vm176_vm2, %v5595_v59 }
 0x6ac   : > { %v6871_v0 = vld [vmem:[#allocation2 + $0x1d8] sm:$0xff] }
 0x6ad   : > { %v7413_v3 = vadd.f32 %v7237_v53, %v6871_v0  ;;  %6609 = vst.msk [vmem:[#allocation2 + $0x1e0] sm:$0xff] %vm176_vm2, %v6504_v62  ;;  %v6799_v0 = vpack.c.bf16 %v6735_v58, %v6734_v57 }
 0x6ae   : > { %v7780_v7 = vld [vmem:[#allocation2 + $0x1d0] sm:$0xff] }
 0x6af   : > { %v8322_v9 = vadd.f32 %v8145_v46, %v7780_v7  ;;  %7518 = vst.msk [vmem:[#allocation2 + $0x1d8] sm:$0xff] %vm176_vm2, %v7413_v3  ;;  %v6332_v10 = vpop.f32.mrf.mxu2  ;;  %v7245_v45 = vpop.f32.mrf.mxu3  ;;  %v4916_v7 = vld [vmem:[%s9141_s26 + $0x2b0] sm:$0xff] }
 0x6b0   : > { %v5425_v13 = vpop.f32.mrf.mxu1 }
 0x6b1   : > { %8427 = vst.msk [vmem:[#allocation2 + $0x1d0] sm:$0xff] %vm176_vm2, %v8322_v9  ;;  %v5596_v14 = vadd.f32 %v5425_v13, %v5054_v12  ;;  %v4917_v9 = vld [vmem:[%s9141_s26 + $0x2b8] sm:$0xff] }
 0x6b2   : > { %v5963_v19 = vld [vmem:[#allocation2 + $0x1e8] sm:$0xff]  ;;  %v8155_v53 = vpop.f32.mrf.mxu0  ;;  %v5827_v12 = vld [vmem:[%s9141_s26 + $0x2d4] sm:$0xff]  ;;  %v7644_v13 = vld [vmem:[%s9141_s26 + $0x2be] sm:$0xff] }
 0x6b3   : > { %v6505_v20 = vadd.f32 %v6332_v10, %v5963_v19  ;;  %5701 = vst.msk [vmem:[#allocation2 + $0x1f0] sm:$0xff] %vm176_vm2, %v5596_v14  ;;  %8877 = vmatmul.msk.bf16.gmra.mxu1 %vm547_vm1, %v4978_v11  ;;  %v5826_v10 = vld [vmem:[%s9141_s26 + $0x2cc] sm:$0xff] }
 0x6b4   : > { %v6872_v21 = vld [vmem:[#allocation2 + $0x1e0] sm:$0xff]  ;;  %8931 = vmatmul.msk.bf16.gmra.mxu2 %vm547_vm1, %v5888_v16  ;;  %v5890_v23 = vpack.c.bf16 %v5827_v12, %v5826_v10 }
 0x6b5   : > { %v7414_v24 = vadd.f32 %v7240_v8, %v6872_v21  ;;  %6610 = vst.msk [vmem:[#allocation2 + $0x1e8] sm:$0xff] %vm176_vm2, %v6505_v20  ;;  %9039 = vmatmul.msk.bf16.gmra.mxu0 %vm547_vm1, %v7708_v51  ;;  %v7645_v16 = vld [vmem:[%s9141_s26 + $0x2c6] sm:$0xff]  ;;  %v4980_v20 = vpack.c.bf16 %v4917_v9, %v4916_v7  ;;  %v5058_v21 = vld [vmem:[#allocation2 + $0x210] sm:$0xff] }
 0x6b6   : > { %v7781_v25 = vld [vmem:[#allocation2 + $0x1d8] sm:$0xff]  ;;  %v5061_v9 = vld [vmem:[#allocation2 + $0x228] sm:$0xff] }
 0x6b7   : > { %v8323_v28 = vadd.f32 %v8147_v60, %v7781_v25  ;;  %7519 = vst.msk [vmem:[#allocation2 + $0x1e0] sm:$0xff] %vm176_vm2, %v7414_v24  ;;  %v6335_v29 = vpop.f32.mrf.mxu2  ;;  %v7247_v61 = vpop.f32.mrf.mxu3  ;;  %v7709_v24 = vpack.c.bf16 %v7645_v16, %v7644_v13 }
 0x6b8   : > { %v5427_v32 = vpop.f32.mrf.mxu1 }
 0x6b9   : > { %8428 = vst.msk [vmem:[#allocation2 + $0x1d8] sm:$0xff] %vm176_vm2, %v8323_v28  ;;  %v5597_v33 = vadd.f32 %v5427_v32, %v5055_v31  ;;  %8986 = vmatmul.msk.bf16.gmra.mxu3 %vm547_vm1, %v6799_v0  ;;  %v6736_v31 = vld [vmem:[%s9141_s26 + $0x2cd] sm:$0xff]  ;;  %v6737_v32 = vld [vmem:[%s9141_s26 + $0x2d5] sm:$0xff] }
 0x6ba   : > { %v5964_v35 = vld [vmem:[#allocation2 + $0x1f0] sm:$0xff]  ;;  %v8157_v4 = vpop.f32.mrf.mxu0 }
 0x6bb   : > { %v6506_v36 = vadd.f32 %v6335_v29, %v5964_v35  ;;  %5702 = vst.msk [vmem:[#allocation2 + $0x1f8] sm:$0xff] %vm176_vm2, %v5597_v33 }
 0x6bc   : > { %v6873_v38 = vld [vmem:[#allocation2 + $0x1e8] sm:$0xff] }
 0x6bd   : > { %v7415_v15 = vadd.f32 %v7242_v26, %v6873_v38  ;;  %6611 = vst.msk [vmem:[#allocation2 + $0x1f0] sm:$0xff] %vm176_vm2, %v6506_v36  ;;  %v6800_v38 = vpack.c.bf16 %v6737_v32, %v6736_v31 }
 0x6be   : > { %v7782_v44 = vld [vmem:[#allocation2 + $0x1e0] sm:$0xff] }
 0x6bf   : > { %v8324_v46 = vadd.f32 %v8150_v18, %v7782_v44  ;;  %7520 = vst.msk [vmem:[#allocation2 + $0x1e8] sm:$0xff] %vm176_vm2, %v7415_v15  ;;  %v6337_v47 = vpop.f32.mrf.mxu2  ;;  %v7250_v14 = vpop.f32.mrf.mxu3  ;;  %v4918_v44 = vld [vmem:[%s9141_s26 + $0x2c0] sm:$0xff] }
 0x6c0   : > { %v5430_v50 = vpop.f32.mrf.mxu1 }
 0x6c1   : > { %8429 = vst.msk [vmem:[#allocation2 + $0x1e0] sm:$0xff] %vm176_vm2, %v8324_v46  ;;  %v5598_v52 = vadd.f32 %v5430_v50, %v5056_v49  ;;  %v4919_v46 = vld [vmem:[%s9141_s26 + $0x2c8] sm:$0xff] }
 0x6c2   : > { %v5965_v54 = vld [vmem:[#allocation2 + $0x1f8] sm:$0xff]  ;;  %v8160_v26 = vpop.f32.mrf.mxu0  ;;  %v5829_v49 = vld [vmem:[%s9141_s26 + $0x2e4] sm:$0xff]  ;;  %v7646_v50 = vld [vmem:[%s9141_s26 + $0x2ce] sm:$0xff] }
 0x6c3   : > { %v6507_v55 = vadd.f32 %v6337_v47, %v5965_v54  ;;  %5703 = vst.msk [vmem:[#allocation2 + $0x200] sm:$0xff] %vm176_vm2, %v5598_v52  ;;  %8878 = vmatmul.msk.bf16.gmra.mxu1 %vm547_vm1, %v4979_v48  ;;  %v5828_v47 = vld [vmem:[%s9141_s26 + $0x2dc] sm:$0xff] }
 0x6c4   : > { %v6874_v56 = vld [vmem:[#allocation2 + $0x1f0] sm:$0xff]  ;;  %8932 = vmatmul.msk.bf16.gmra.mxu2 %vm547_vm1, %v5889_v27  ;;  %v5891_v58 = vpack.c.bf16 %v5829_v49, %v5828_v47 }
 0x6c5   : > { %v7416_v59 = vadd.f32 %v7245_v45, %v6874_v56  ;;  %6612 = vst.msk [vmem:[#allocation2 + $0x1f8] sm:$0xff] %vm176_vm2, %v6507_v55  ;;  %9040 = vmatmul.msk.bf16.gmra.mxu0 %vm547_vm1, %v7709_v24  ;;  %v7647_v27 = vld [vmem:[%s9141_s26 + $0x2d6] sm:$0xff]  ;;  %v4981_v55 = vpack.c.bf16 %v4919_v46, %v4918_v44  ;;  %v5060_v56 = vld [vmem:[#allocation2 + $0x220] sm:$0xff] }
 0x6c6   : > { %v7783_v60 = vld [vmem:[#allocation2 + $0x1e8] sm:$0xff]  ;;  %v5063_v46 = vld [vmem:[#allocation2 + $0x238] sm:$0xff] }
 0x6c7   : > { %v8325_v62 = vadd.f32 %v8152_v34, %v7783_v60  ;;  %7521 = vst.msk [vmem:[#allocation2 + $0x1f0] sm:$0xff] %vm176_vm2, %v7416_v59  ;;  %v6340_v63 = vpop.f32.mrf.mxu2  ;;  %v7252_v35 = vpop.f32.mrf.mxu3  ;;  %v7710_v59 = vpack.c.bf16 %v7647_v27, %v7646_v50 }
 0x6c8   : > { %v5432_v2 = vpop.f32.mrf.mxu1 }
 0x6c9   : > { %8430 = vst.msk [vmem:[#allocation2 + $0x1e8] sm:$0xff] %vm176_vm2, %v8325_v62  ;;  %v5599_v3 = vadd.f32 %v5432_v2, %v5057_v1  ;;  %8987 = vmatmul.msk.bf16.gmra.mxu3 %vm547_vm1, %v6800_v38  ;;  %v6738_v1 = vld [vmem:[%s9141_s26 + $0x2dd] sm:$0xff]  ;;  %v6739_v2 = vld [vmem:[%s9141_s26 + $0x2e5] sm:$0xff] }
 0x6ca   : > { %v5966_v5 = vld [vmem:[#allocation2 + $0x200] sm:$0xff]  ;;  %v8162_v41 = vpop.f32.mrf.mxu0 }
 0x6cb   : > { %v6508_v6 = vadd.f32 %v6340_v63, %v5966_v5  ;;  %5704 = vst.msk [vmem:[#allocation2 + $0x208] sm:$0xff] %vm176_vm2, %v5599_v3 }
 0x6cc   : > { %v6875_v8 = vld [vmem:[#allocation2 + $0x1f8] sm:$0xff] }
 0x6cd   : > { %v7417_v11 = vadd.f32 %v7247_v61, %v6875_v8  ;;  %6613 = vst.msk [vmem:[#allocation2 + $0x200] sm:$0xff] %vm176_vm2, %v6508_v6  ;;  %v6801_v8 = vpack.c.bf16 %v6739_v2, %v6738_v1 }
 0x6ce   : > { %v7784_v17 = vld [vmem:[#allocation2 + $0x1f0] sm:$0xff] }
 0x6cf   : > { %v8326_v18 = vadd.f32 %v8155_v53, %v7784_v17  ;;  %7522 = vst.msk [vmem:[#allocation2 + $0x1f8] sm:$0xff] %vm176_vm2, %v7417_v11  ;;  %v6342_v19 = vpop.f32.mrf.mxu2  ;;  %v7255_v52 = vpop.f32.mrf.mxu3  ;;  %v4920_v17 = vld [vmem:[%s9141_s26 + $0x2d0] sm:$0xff] }
 0x6d0   : > { %v5435_v22 = vpop.f32.mrf.mxu1 }
 0x6d1   : > { %8431 = vst.msk [vmem:[#allocation2 + $0x1f0] sm:$0xff] %vm176_vm2, %v8326_v18  ;;  %v5600_v25 = vadd.f32 %v5435_v22, %v5058_v21  ;;  %v4921_v18 = vld [vmem:[%s9141_s26 + $0x2d8] sm:$0xff] }
 0x6d2   : > { %v5967_v28 = vld [vmem:[#allocation2 + $0x208] sm:$0xff]  ;;  %v8165_v61 = vpop.f32.mrf.mxu0  ;;  %v5831_v21 = vld [vmem:[%s9141_s26 + $0x2f4] sm:$0xff]  ;;  %v7648_v22 = vld [vmem:[%s9141_s26 + $0x2de] sm:$0xff] }
 0x6d3   : > { %v6509_v29 = vadd.f32 %v6342_v19, %v5967_v28  ;;  %5705 = vst.msk [vmem:[#allocation2 + $0x210] sm:$0xff] %vm176_vm2, %v5600_v25  ;;  %8879 = vmatmul.msk.bf16.gmra.mxu1 %vm547_vm1, %v4980_v20  ;;  %v5830_v19 = vld [vmem:[%s9141_s26 + $0x2ec] sm:$0xff] }
 0x6d4   : > { %v6876_v30 = vld [vmem:[#allocation2 + $0x200] sm:$0xff]  ;;  %8933 = vmatmul.msk.bf16.gmra.mxu2 %vm547_vm1, %v5890_v23  ;;  %v5892_v32 = vpack.c.bf16 %v5831_v21, %v5830_v19 }
 0x6d5   : > { %v7418_v33 = vadd.f32 %v7250_v14, %v6876_v30  ;;  %6614 = vst.msk [vmem:[#allocation2 + $0x208] sm:$0xff] %vm176_vm2, %v6509_v29  ;;  %9041 = vmatmul.msk.bf16.gmra.mxu0 %vm547_vm1, %v7710_v59  ;;  %v7649_v23 = vld [vmem:[%s9141_s26 + $0x2e6] sm:$0xff]  ;;  %v4982_v29 = vpack.c.bf16 %v4921_v18, %v4920_v17  ;;  %v5062_v30 = vld [vmem:[#allocation2 + $0x230] sm:$0xff] }
 0x6d6   : > { %v7785_v34 = vld [vmem:[#allocation2 + $0x1f8] sm:$0xff]  ;;  %v5065_v18 = vld [vmem:[#allocation2 + $0x248] sm:$0xff] }
 0x6d7   : > { %v8327_v36 = vadd.f32 %v8157_v4, %v7785_v34  ;;  %7523 = vst.msk [vmem:[#allocation2 + $0x200] sm:$0xff] %vm176_vm2, %v7418_v33  ;;  %v6345_v37 = vpop.f32.mrf.mxu2  ;;  %v7257_v5 = vpop.f32.mrf.mxu3  ;;  %v7711_v33 = vpack.c.bf16 %v7649_v23, %v7648_v22 }
 0x6d8   : > { %v5437_v40 = vpop.f32.mrf.mxu1 }
 0x6d9   : > { %8432 = vst.msk [vmem:[#allocation2 + $0x1f8] sm:$0xff] %vm176_vm2, %v8327_v36  ;;  %v5601_v15 = vadd.f32 %v5437_v40, %v5059_v39  ;;  %8988 = vmatmul.msk.bf16.gmra.mxu3 %vm547_vm1, %v6801_v8  ;;  %v6740_v39 = vld [vmem:[%s9141_s26 + $0x2ed] sm:$0xff]  ;;  %v6741_v40 = vld [vmem:[%s9141_s26 + $0x2f5] sm:$0xff] }
 0x6da   : > { %v5968_v42 = vld [vmem:[#allocation2 + $0x210] sm:$0xff]  ;;  %v8167_v12 = vpop.f32.mrf.mxu0 }
 0x6db   : > { %v6510_v43 = vadd.f32 %v6345_v37, %v5968_v42  ;;  %5706 = vst.msk [vmem:[#allocation2 + $0x218] sm:$0xff] %vm176_vm2, %v5601_v15 }
 0x6dc   : > { %v6877_v45 = vld [vmem:[#allocation2 + $0x208] sm:$0xff] }
 0x6dd   : > { %v7419_v48 = vadd.f32 %v7252_v35, %v6877_v45  ;;  %6615 = vst.msk [vmem:[#allocation2 + $0x210] sm:$0xff] %vm176_vm2, %v6510_v43  ;;  %v6802_v45 = vpack.c.bf16 %v6741_v40, %v6740_v39 }
 0x6de   : > { %v7786_v51 = vld [vmem:[#allocation2 + $0x200] sm:$0xff] }
 0x6df   : > { %v8328_v53 = vadd.f32 %v8160_v26, %v7786_v51  ;;  %7524 = vst.msk [vmem:[#allocation2 + $0x208] sm:$0xff] %vm176_vm2, %v7419_v48  ;;  %v6347_v54 = vpop.f32.mrf.mxu2  ;;  %v7260_v25 = vpop.f32.mrf.mxu3  ;;  %v4922_v51 = vld [vmem:[%s9141_s26 + $0x2e0] sm:$0xff] }
 0x6e0   : > { %v5440_v57 = vpop.f32.mrf.mxu1 }
 0x6e1   : > { %8433 = vst.msk [vmem:[#allocation2 + $0x200] sm:$0xff] %vm176_vm2, %v8328_v53  ;;  %v5602_v60 = vadd.f32 %v5440_v57, %v5060_v56  ;;  %v4923_v53 = vld [vmem:[%s9141_s26 + $0x2e8] sm:$0xff] }
 0x6e2   : > { %v5969_v62 = vld [vmem:[#allocation2 + $0x218] sm:$0xff]  ;;  %v8170_v35 = vpop.f32.mrf.mxu0  ;;  %v5833_v56 = vld [vmem:[%s9141_s26 + $0x304] sm:$0xff]  ;;  %v7650_v57 = vld [vmem:[%s9141_s26 + $0x2ee] sm:$0xff] }
 0x6e3   : > { %v6511_v63 = vadd.f32 %v6347_v54, %v5969_v62  ;;  %5707 = vst.msk [vmem:[#allocation2 + $0x220] sm:$0xff] %vm176_vm2, %v5602_v60  ;;  %8880 = vmatmul.msk.bf16.gmra.mxu1 %vm547_vm1, %v4981_v55  ;;  %v5832_v54 = vld [vmem:[%s9141_s26 + $0x2fc] sm:$0xff] }
 0x6e4   : > { %v6878_v0 = vld [vmem:[#allocation2 + $0x210] sm:$0xff]  ;;  %8934 = vmatmul.msk.bf16.gmra.mxu2 %vm547_vm1, %v5891_v58  ;;  %v5893_v2 = vpack.c.bf16 %v5833_v56, %v5832_v54 }
 0x6e5   : > { %v7420_v3 = vadd.f32 %v7255_v52, %v6878_v0  ;;  %6616 = vst.msk [vmem:[#allocation2 + $0x218] sm:$0xff] %vm176_vm2, %v6511_v63  ;;  %9042 = vmatmul.msk.bf16.gmra.mxu0 %vm547_vm1, %v7711_v33  ;;  %v7651_v58 = vld [vmem:[%s9141_s26 + $0x2f6] sm:$0xff]  ;;  %v4983_v63 = vpack.c.bf16 %v4923_v53, %v4922_v51  ;;  %v5064_v0 = vld [vmem:[#allocation2 + $0x240] sm:$0xff] }
 0x6e6   : > { %v7787_v4 = vld [vmem:[#allocation2 + $0x208] sm:$0xff]  ;;  %v5067_v53 = vld [vmem:[#allocation2 + $0x258] sm:$0xff] }
 0x6e7   : > { %v8329_v6 = vadd.f32 %v8162_v41, %v7787_v4  ;;  %7525 = vst.msk [vmem:[#allocation2 + $0x210] sm:$0xff] %vm176_vm2, %v7420_v3  ;;  %v6350_v7 = vpop.f32.mrf.mxu2  ;;  %v7262_v42 = vpop.f32.mrf.mxu3  ;;  %v7712_v3 = vpack.c.bf16 %v7651_v58, %v7650_v57 }
 0x6e8   : > { %v5442_v10 = vpop.f32.mrf.mxu1 }
 0x6e9   : > { %8434 = vst.msk [vmem:[#allocation2 + $0x208] sm:$0xff] %vm176_vm2, %v8329_v6  ;;  %v5603_v11 = vadd.f32 %v5442_v10, %v5061_v9  ;;  %8989 = vmatmul.msk.bf16.gmra.mxu3 %vm547_vm1, %v6802_v45  ;;  %v6742_v9 = vld [vmem:[%s9141_s26 + $0x2fd] sm:$0xff]  ;;  %v6743_v10 = vld [vmem:[%s9141_s26 + $0x305] sm:$0xff] }
 0x6ea   : > { %v5970_v13 = vld [vmem:[#allocation2 + $0x220] sm:$0xff]  ;;  %v8172_v49 = vpop.f32.mrf.mxu0 }
 0x6eb   : > { %v6512_v16 = vadd.f32 %v6350_v7, %v5970_v13  ;;  %5708 = vst.msk [vmem:[#allocation2 + $0x228] sm:$0xff] %vm176_vm2, %v5603_v11 }
 0x6ec   : > { %v6879_v14 = vld [vmem:[#allocation2 + $0x218] sm:$0xff] }
 0x6ed   : > { %v7421_v20 = vadd.f32 %v7257_v5, %v6879_v14  ;;  %6617 = vst.msk [vmem:[#allocation2 + $0x220] sm:$0xff] %vm176_vm2, %v6512_v16  ;;  %v6803_v14 = vpack.c.bf16 %v6743_v10, %v6742_v9 }
 0x6ee   : > { %v7788_v24 = vld [vmem:[#allocation2 + $0x210] sm:$0xff] }
 0x6ef   : > { %v8330_v26 = vadd.f32 %v8165_v61, %v7788_v24  ;;  %7526 = vst.msk [vmem:[#allocation2 + $0x218] sm:$0xff] %vm176_vm2, %v7421_v20  ;;  %v6352_v28 = vpop.f32.mrf.mxu2  ;;  %v7265_v60 = vpop.f32.mrf.mxu3  ;;  %v4924_v24 = vld [vmem:[%s9141_s26 + $0x2f0] sm:$0xff] }
 0x6f0   : > { %v5445_v31 = vpop.f32.mrf.mxu1 }
 0x6f1   : > { %8435 = vst.msk [vmem:[#allocation2 + $0x210] sm:$0xff] %vm176_vm2, %v8330_v26  ;;  %v5604_v34 = vadd.f32 %v5445_v31, %v5062_v30  ;;  %v4925_v26 = vld [vmem:[%s9141_s26 + $0x2f8] sm:$0xff] }
 0x6f2   : > { %v5971_v36 = vld [vmem:[#allocation2 + $0x228] sm:$0xff]  ;;  %v8175_v5 = vpop.f32.mrf.mxu0  ;;  %v5835_v30 = vld [vmem:[%s9141_s26 + $0x314] sm:$0xff]  ;;  %v7652_v31 = vld [vmem:[%s9141_s26 + $0x2fe] sm:$0xff] }
 0x6f3   : > { %v6513_v37 = vadd.f32 %v6352_v28, %v5971_v36  ;;  %5709 = vst.msk [vmem:[#allocation2 + $0x230] sm:$0xff] %vm176_vm2, %v5604_v34  ;;  %8881 = vmatmul.msk.bf16.gmra.mxu1 %vm547_vm1, %v4982_v29  ;;  %v5834_v28 = vld [vmem:[%s9141_s26 + $0x30c] sm:$0xff] }
 0x6f4   : > { %v6880_v38 = vld [vmem:[#allocation2 + $0x220] sm:$0xff]  ;;  %8935 = vmatmul.msk.bf16.gmra.mxu2 %vm547_vm1, %v5892_v32  ;;  %v5894_v40 = vpack.c.bf16 %v5835_v30, %v5834_v28 }
 0x6f5   : > { %v7422_v15 = vadd.f32 %v7260_v25, %v6880_v38  ;;  %6618 = vst.msk [vmem:[#allocation2 + $0x228] sm:$0xff] %vm176_vm2, %v6513_v37  ;;  %9043 = vmatmul.msk.bf16.gmra.mxu0 %vm547_vm1, %v7712_v3  ;;  %v7653_v32 = vld [vmem:[%s9141_s26 + $0x306] sm:$0xff]  ;;  %v4984_v37 = vpack.c.bf16 %v4925_v26, %v4924_v24  ;;  %v5066_v38 = vld [vmem:[#allocation2 + $0x250] sm:$0xff] }
 0x6f6   : > { %v7789_v41 = vld [vmem:[#allocation2 + $0x218] sm:$0xff]  ;;  %v5069_v26 = vld [vmem:[#allocation2 + $0x268] sm:$0xff] }
 0x6f7   : > { %v8331_v43 = vadd.f32 %v8167_v12, %v7789_v41  ;;  %7527 = vst.msk [vmem:[#allocation2 + $0x220] sm:$0xff] %vm176_vm2, %v7422_v15  ;;  %v6355_v44 = vpop.f32.mrf.mxu2  ;;  %v7267_v13 = vpop.f32.mrf.mxu3  ;;  %v7713_v15 = vpack.c.bf16 %v7653_v32, %v7652_v31 }
 0x6f8   : > { %v5447_v47 = vpop.f32.mrf.mxu1 }
 0x6f9   : > { %8436 = vst.msk [vmem:[#allocation2 + $0x218] sm:$0xff] %vm176_vm2, %v8331_v43  ;;  %v5605_v48 = vadd.f32 %v5447_v47, %v5063_v46  ;;  %8990 = vmatmul.msk.bf16.gmra.mxu3 %vm547_vm1, %v6803_v14  ;;  %v6744_v46 = vld [vmem:[%s9141_s26 + $0x30d] sm:$0xff]  ;;  %v6745_v47 = vld [vmem:[%s9141_s26 + $0x315] sm:$0xff] }
 0x6fa   : > { %v5972_v50 = vld [vmem:[#allocation2 + $0x230] sm:$0xff]  ;;  %v8177_v21 = vpop.f32.mrf.mxu0 }
 0x6fb   : > { %v6514_v27 = vadd.f32 %v6355_v44, %v5972_v50  ;;  %5710 = vst.msk [vmem:[#allocation2 + $0x238] sm:$0xff] %vm176_vm2, %v5605_v48 }
 0x6fc   : > { %v6881_v52 = vld [vmem:[#allocation2 + $0x228] sm:$0xff] }
 0x6fd   : > { %v7423_v55 = vadd.f32 %v7262_v42, %v6881_v52  ;;  %6619 = vst.msk [vmem:[#allocation2 + $0x230] sm:$0xff] %vm176_vm2, %v6514_v27  ;;  %v6804_v52 = vpack.c.bf16 %v6745_v47, %v6744_v46 }
 0x6fe   : > { %v7790_v59 = vld [vmem:[#allocation2 + $0x220] sm:$0xff] }
 0x6ff   : > { %v8332_v61 = vadd.f32 %v8170_v35, %v7790_v59  ;;  %7528 = vst.msk [vmem:[#allocation2 + $0x228] sm:$0xff] %vm176_vm2, %v7423_v55  ;;  %v6357_v62 = vpop.f32.mrf.mxu2  ;;  %v7270_v34 = vpop.f32.mrf.mxu3  ;;  %v4926_v59 = vld [vmem:[%s9141_s26 + $0x300] sm:$0xff] }
 0x700   : > { %v5450_v1 = vpop.f32.mrf.mxu1 }
 0x701   : > { %8437 = vst.msk [vmem:[#allocation2 + $0x220] sm:$0xff] %vm176_vm2, %v8332_v61  ;;  %v5606_v4 = vadd.f32 %v5450_v1, %v5064_v0  ;;  %v4927_v61 = vld [vmem:[%s9141_s26 + $0x308] sm:$0xff] }
 0x702   : > { %v5973_v6 = vld [vmem:[#allocation2 + $0x238] sm:$0xff]  ;;  %v8180_v42 = vpop.f32.mrf.mxu0  ;;  %v5837_v0 = vld [vmem:[%s9141_s26 + $0x324] sm:$0xff]  ;;  %v7654_v1 = vld [vmem:[%s9141_s26 + $0x30e] sm:$0xff] }
 0x703   : > { %v6515_v7 = vadd.f32 %v6357_v62, %v5973_v6  ;;  %5711 = vst.msk [vmem:[#allocation2 + $0x240] sm:$0xff] %vm176_vm2, %v5606_v4  ;;  %8882 = vmatmul.msk.bf16.gmra.mxu1 %vm547_vm1, %v4983_v63  ;;  %v5836_v62 = vld [vmem:[%s9141_s26 + $0x31c] sm:$0xff] }
 0x704   : > { %v6882_v8 = vld [vmem:[#allocation2 + $0x230] sm:$0xff]  ;;  %8936 = vmatmul.msk.bf16.gmra.mxu2 %vm547_vm1, %v5893_v2  ;;  %v5895_v10 = vpack.c.bf16 %v5837_v0, %v5836_v62 }
 0x705   : > { %v7424_v11 = vadd.f32 %v7265_v60, %v6882_v8  ;;  %6620 = vst.msk [vmem:[#allocation2 + $0x238] sm:$0xff] %vm176_vm2, %v6515_v7  ;;  %9044 = vmatmul.msk.bf16.gmra.mxu0 %vm547_vm1, %v7713_v15  ;;  %v7655_v2 = vld [vmem:[%s9141_s26 + $0x316] sm:$0xff]  ;;  %v4985_v7 = vpack.c.bf16 %v4927_v61, %v4926_v59  ;;  %v5068_v8 = vld [vmem:[#allocation2 + $0x260] sm:$0xff] }
 0x706   : > { %v7791_v12 = vld [vmem:[#allocation2 + $0x228] sm:$0xff]  ;;  %v5071_v61 = vld [vmem:[#allocation2 + $0x278] sm:$0xff] }
 0x707   : > { %v8333_v16 = vadd.f32 %v8172_v49, %v7791_v12  ;;  %7529 = vst.msk [vmem:[#allocation2 + $0x230] sm:$0xff] %vm176_vm2, %v7424_v11  ;;  %v6360_v17 = vpop.f32.mrf.mxu2  ;;  %v7272_v50 = vpop.f32.mrf.mxu3  ;;  %v7714_v11 = vpack.c.bf16 %v7655_v2, %v7654_v1 }
 0x708   : > { %v5452_v19 = vpop.f32.mrf.mxu1 }
 0x709   : > { %8438 = vst.msk [vmem:[#allocation2 + $0x228] sm:$0xff] %vm176_vm2, %v8333_v16  ;;  %v5607_v20 = vadd.f32 %v5452_v19, %v5065_v18  ;;  %8991 = vmatmul.msk.bf16.gmra.mxu3 %vm547_vm1, %v6804_v52  ;;  %v6746_v18 = vld [vmem:[%s9141_s26 + $0x31d] sm:$0xff]  ;;  %v6747_v19 = vld [vmem:[%s9141_s26 + $0x325] sm:$0xff] }
 0x70a   : > { %v5974_v22 = vld [vmem:[#allocation2 + $0x240] sm:$0xff]  ;;  %v8182_v56 = vpop.f32.mrf.mxu0 }
 0x70b   : > { %v6516_v23 = vadd.f32 %v6360_v17, %v5974_v22  ;;  %5712 = vst.msk [vmem:[#allocation2 + $0x248] sm:$0xff] %vm176_vm2, %v5607_v20 }
 0x70c   : > { %v6883_v25 = vld [vmem:[#allocation2 + $0x238] sm:$0xff] }
 0x70d   : > { %v7425_v29 = vadd.f32 %v7267_v13, %v6883_v25  ;;  %6621 = vst.msk [vmem:[#allocation2 + $0x240] sm:$0xff] %vm176_vm2, %v6516_v23  ;;  %v6805_v25 = vpack.c.bf16 %v6747_v19, %v6746_v18 }
 0x70e   : > { %v7792_v33 = vld [vmem:[#allocation2 + $0x230] sm:$0xff] }
 0x70f   : > { %v8334_v35 = vadd.f32 %v8175_v5, %v7792_v33  ;;  %7530 = vst.msk [vmem:[#allocation2 + $0x238] sm:$0xff] %vm176_vm2, %v7425_v29  ;;  %v6362_v36 = vpop.f32.mrf.mxu2  ;;  %v7275_v4 = vpop.f32.mrf.mxu3  ;;  %v4928_v33 = vld [vmem:[%s9141_s26 + $0x310] sm:$0xff] }
 0x710   : > { %v5455_v39 = vpop.f32.mrf.mxu1 }
 0x711   : > { %8439 = vst.msk [vmem:[#allocation2 + $0x230] sm:$0xff] %vm176_vm2, %v8334_v35  ;;  %v5608_v41 = vadd.f32 %v5455_v39, %v5066_v38  ;;  %v4929_v35 = vld [vmem:[%s9141_s26 + $0x318] sm:$0xff] }
 0x712   : > { %v5975_v43 = vld [vmem:[#allocation2 + $0x248] sm:$0xff]  ;;  %v8185_v13 = vpop.f32.mrf.mxu0  ;;  %v5839_v38 = vld [vmem:[%s9141_s26 + $0x334] sm:$0xff]  ;;  %v7656_v39 = vld [vmem:[%s9141_s26 + $0x31e] sm:$0xff] }
 0x713   : > { %v6517_v44 = vadd.f32 %v6362_v36, %v5975_v43  ;;  %5713 = vst.msk [vmem:[#allocation2 + $0x250] sm:$0xff] %vm176_vm2, %v5608_v41  ;;  %8883 = vmatmul.msk.bf16.gmra.mxu1 %vm547_vm1, %v4984_v37  ;;  %v5838_v36 = vld [vmem:[%s9141_s26 + $0x32c] sm:$0xff] }
 0x714   : > { %v6884_v45 = vld [vmem:[#allocation2 + $0x240] sm:$0xff]  ;;  %8937 = vmatmul.msk.bf16.gmra.mxu2 %vm547_vm1, %v5894_v40  ;;  %v5896_v47 = vpack.c.bf16 %v5839_v38, %v5838_v36 }
 0x715   : > { %v7426_v48 = vadd.f32 %v7270_v34, %v6884_v45  ;;  %6622 = vst.msk [vmem:[#allocation2 + $0x248] sm:$0xff] %vm176_vm2, %v6517_v44  ;;  %9045 = vmatmul.msk.bf16.gmra.mxu0 %vm547_vm1, %v7714_v11  ;;  %v7657_v40 = vld [vmem:[%s9141_s26 + $0x326] sm:$0xff]  ;;  %v4986_v44 = vpack.c.bf16 %v4929_v35, %v4928_v33  ;;  %v5070_v45 = vld [vmem:[#allocation2 + $0x270] sm:$0xff] }
 0x716   : > { %v7793_v49 = vld [vmem:[#allocation2 + $0x238] sm:$0xff]  ;;  %v5073_v35 = vld [vmem:[#allocation2 + $0x288] sm:$0xff] }
 0x717   : > { %v8335_v27 = vadd.f32 %v8177_v21, %v7793_v49  ;;  %7531 = vst.msk [vmem:[#allocation2 + $0x240] sm:$0xff] %vm176_vm2, %v7426_v48  ;;  %v6365_v51 = vpop.f32.mrf.mxu2  ;;  %v7277_v22 = vpop.f32.mrf.mxu3  ;;  %v7715_v48 = vpack.c.bf16 %v7657_v40, %v7656_v39 }
 0x718   : > { %v5457_v54 = vpop.f32.mrf.mxu1 }
 0x719   : > { %8440 = vst.msk [vmem:[#allocation2 + $0x238] sm:$0xff] %vm176_vm2, %v8335_v27  ;;  %v5609_v55 = vadd.f32 %v5457_v54, %v5067_v53  ;;  %8992 = vmatmul.msk.bf16.gmra.mxu3 %vm547_vm1, %v6805_v25  ;;  %v6748_v53 = vld [vmem:[%s9141_s26 + $0x32d] sm:$0xff]  ;;  %v6749_v54 = vld [vmem:[%s9141_s26 + $0x335] sm:$0xff] }
 0x71a   : > { %v5976_v57 = vld [vmem:[#allocation2 + $0x250] sm:$0xff]  ;;  %v8187_v30 = vpop.f32.mrf.mxu0 }
 0x71b   : > { %v6518_v58 = vadd.f32 %v6365_v51, %v5976_v57  ;;  %5714 = vst.msk [vmem:[#allocation2 + $0x258] sm:$0xff] %vm176_vm2, %v5609_v55 }
 0x71c   : > { %v6885_v60 = vld [vmem:[#allocation2 + $0x248] sm:$0xff] }
 0x71d   : > { %v7427_v63 = vadd.f32 %v7272_v50, %v6885_v60  ;;  %6623 = vst.msk [vmem:[#allocation2 + $0x250] sm:$0xff] %vm176_vm2, %v6518_v58  ;;  %v6806_v60 = vpack.c.bf16 %v6749_v54, %v6748_v53 }
 0x71e   : > { %v7794_v3 = vld [vmem:[#allocation2 + $0x240] sm:$0xff] }
 0x71f   : > { %v8336_v5 = vadd.f32 %v8180_v42, %v7794_v3  ;;  %7532 = vst.msk [vmem:[#allocation2 + $0x248] sm:$0xff] %vm176_vm2, %v7427_v63  ;;  %v6367_v6 = vpop.f32.mrf.mxu2  ;;  %v7280_v41 = vpop.f32.mrf.mxu3  ;;  %v4930_v3 = vld [vmem:[%s9141_s26 + $0x320] sm:$0xff] }
 0x720   : > { %v5460_v9 = vpop.f32.mrf.mxu1 }
 0x721   : > { %8441 = vst.msk [vmem:[#allocation2 + $0x240] sm:$0xff] %vm176_vm2, %v8336_v5  ;;  %v5610_v12 = vadd.f32 %v5460_v9, %v5068_v8  ;;  %v4931_v5 = vld [vmem:[%s9141_s26 + $0x328] sm:$0xff] }
 0x722   : > { %v5977_v16 = vld [vmem:[#allocation2 + $0x258] sm:$0xff]  ;;  %v8190_v50 = vpop.f32.mrf.mxu0  ;;  %v5841_v8 = vld [vmem:[%s9141_s26 + $0x344] sm:$0xff]  ;;  %v7658_v9 = vld [vmem:[%s9141_s26 + $0x32e] sm:$0xff] }
 0x723   : > { %v6519_v17 = vadd.f32 %v6367_v6, %v5977_v16  ;;  %5715 = vst.msk [vmem:[#allocation2 + $0x260] sm:$0xff] %vm176_vm2, %v5610_v12  ;;  %8884 = vmatmul.msk.bf16.gmra.mxu1 %vm547_vm1, %v4985_v7  ;;  %v5840_v6 = vld [vmem:[%s9141_s26 + $0x33c] sm:$0xff] }
 0x724   : > { %v6886_v14 = vld [vmem:[#allocation2 + $0x250] sm:$0xff]  ;;  %8938 = vmatmul.msk.bf16.gmra.mxu2 %vm547_vm1, %v5895_v10  ;;  %v5897_v19 = vpack.c.bf16 %v5841_v8, %v5840_v6 }
 0x725   : > { %v7428_v20 = vadd.f32 %v7275_v4, %v6886_v14  ;;  %6624 = vst.msk [vmem:[#allocation2 + $0x258] sm:$0xff] %vm176_vm2, %v6519_v17  ;;  %9046 = vmatmul.msk.bf16.gmra.mxu0 %vm547_vm1, %v7715_v48  ;;  %v7659_v10 = vld [vmem:[%s9141_s26 + $0x336] sm:$0xff]  ;;  %v4987_v17 = vpack.c.bf16 %v4931_v5, %v4930_v3  ;;  %v5072_v14 = vld [vmem:[#allocation2 + $0x280] sm:$0xff] }
 0x726   : > { %v7795_v21 = vld [vmem:[#allocation2 + $0x248] sm:$0xff]  ;;  %v5075_v5 = vld [vmem:[#allocation2 + $0x298] sm:$0xff] }
 0x727   : > { %v8337_v23 = vadd.f32 %v8182_v56, %v7795_v21  ;;  %7533 = vst.msk [vmem:[#allocation2 + $0x250] sm:$0xff] %vm176_vm2, %v7428_v20  ;;  %v6370_v24 = vpop.f32.mrf.mxu2  ;;  %v7282_v57 = vpop.f32.mrf.mxu3  ;;  %v7716_v20 = vpack.c.bf16 %v7659_v10, %v7658_v9 }
 0x728   : > { %v5462_v28 = vpop.f32.mrf.mxu1 }
 0x729   : > { %8442 = vst.msk [vmem:[#allocation2 + $0x248] sm:$0xff] %vm176_vm2, %v8337_v23  ;;  %v5611_v29 = vadd.f32 %v5462_v28, %v5069_v26  ;;  %8993 = vmatmul.msk.bf16.gmra.mxu3 %vm547_vm1, %v6806_v60  ;;  %v6750_v26 = vld [vmem:[%s9141_s26 + $0x33d] sm:$0xff]  ;;  %v6751_v28 = vld [vmem:[%s9141_s26 + $0x345] sm:$0xff] }
 0x72a   : > { %v5978_v31 = vld [vmem:[#allocation2 + $0x260] sm:$0xff]  ;;  %v8192_v0 = vpop.f32.mrf.mxu0 }
 0x72b   : > { %v6520_v32 = vadd.f32 %v6370_v24, %v5978_v31  ;;  %5716 = vst.msk [vmem:[#allocation2 + $0x268] sm:$0xff] %vm176_vm2, %v5611_v29 }
 0x72c   : > { %v6887_v34 = vld [vmem:[#allocation2 + $0x258] sm:$0xff] }
 0x72d   : > { %v7429_v37 = vadd.f32 %v7277_v22, %v6887_v34  ;;  %6625 = vst.msk [vmem:[#allocation2 + $0x260] sm:$0xff] %vm176_vm2, %v6520_v32  ;;  %v6807_v34 = vpack.c.bf16 %v6751_v28, %v6750_v26 }
 0x72e   : > { %v7796_v15 = vld [vmem:[#allocation2 + $0x250] sm:$0xff] }
 0x72f   : > { %v8338_v42 = vadd.f32 %v8185_v13, %v7796_v15  ;;  %7534 = vst.msk [vmem:[#allocation2 + $0x258] sm:$0xff] %vm176_vm2, %v7429_v37  ;;  %v6372_v43 = vpop.f32.mrf.mxu2  ;;  %v7285_v12 = vpop.f32.mrf.mxu3  ;;  %v4932_v15 = vld [vmem:[%s9141_s26 + $0x330] sm:$0xff] }
 0x730   : > { %v5465_v46 = vpop.f32.mrf.mxu1 }
 0x731   : > { %8443 = vst.msk [vmem:[#allocation2 + $0x250] sm:$0xff] %vm176_vm2, %v8338_v42  ;;  %v5612_v49 = vadd.f32 %v5465_v46, %v5070_v45  ;;  %v4933_v42 = vld [vmem:[%s9141_s26 + $0x338] sm:$0xff] }
 0x732   : > { %v5979_v27 = vld [vmem:[#allocation2 + $0x268] sm:$0xff]  ;;  %v8195_v22 = vpop.f32.mrf.mxu0  ;;  %v5843_v45 = vld [vmem:[%s9141_s26 + $0x354] sm:$0xff]  ;;  %v7660_v46 = vld [vmem:[%s9141_s26 + $0x33e] sm:$0xff] }
 0x733   : > { %v6521_v51 = vadd.f32 %v6372_v43, %v5979_v27  ;;  %5717 = vst.msk [vmem:[#allocation2 + $0x270] sm:$0xff] %vm176_vm2, %v5612_v49  ;;  %8885 = vmatmul.msk.bf16.gmra.mxu1 %vm547_vm1, %v4986_v44  ;;  %v5842_v43 = vld [vmem:[%s9141_s26 + $0x34c] sm:$0xff] }
 0x734   : > { %v6888_v52 = vld [vmem:[#allocation2 + $0x260] sm:$0xff]  ;;  %8939 = vmatmul.msk.bf16.gmra.mxu2 %vm547_vm1, %v5896_v47  ;;  %v5898_v54 = vpack.c.bf16 %v5843_v45, %v5842_v43 }
 0x735   : > { %v7430_v55 = vadd.f32 %v7280_v41, %v6888_v52  ;;  %6626 = vst.msk [vmem:[#allocation2 + $0x268] sm:$0xff] %vm176_vm2, %v6521_v51  ;;  %9047 = vmatmul.msk.bf16.gmra.mxu0 %vm547_vm1, %v7716_v20  ;;  %v7661_v47 = vld [vmem:[%s9141_s26 + $0x346] sm:$0xff]  ;;  %v4988_v51 = vpack.c.bf16 %v4933_v42, %v4932_v15  ;;  %v5074_v52 = vld [vmem:[#allocation2 + $0x290] sm:$0xff] }
 0x736   : > { %v7797_v56 = vld [vmem:[#allocation2 + $0x258] sm:$0xff]  ;;  %v5077_v42 = vld [vmem:[#allocation2 + $0x2a8] sm:$0xff] }
 0x737   : > { %v8339_v58 = vadd.f32 %v8187_v30, %v7797_v56  ;;  %7535 = vst.msk [vmem:[#allocation2 + $0x260] sm:$0xff] %vm176_vm2, %v7430_v55  ;;  %v6375_v59 = vpop.f32.mrf.mxu2  ;;  %v7287_v31 = vpop.f32.mrf.mxu3  ;;  %v7717_v55 = vpack.c.bf16 %v7661_v47, %v7660_v46 }
 0x738   : > { %v5467_v62 = vpop.f32.mrf.mxu1 }
 0x739   : > { %8444 = vst.msk [vmem:[#allocation2 + $0x258] sm:$0xff] %vm176_vm2, %v8339_v58  ;;  %v5613_v63 = vadd.f32 %v5467_v62, %v5071_v61  ;;  %8994 = vmatmul.msk.bf16.gmra.mxu3 %vm547_vm1, %v6807_v34  ;;  %v6752_v61 = vld [vmem:[%s9141_s26 + $0x34d] sm:$0xff]  ;;  %v6753_v62 = vld [vmem:[%s9141_s26 + $0x355] sm:$0xff] }
 0x73a   : > { %v5980_v1 = vld [vmem:[#allocation2 + $0x270] sm:$0xff]  ;;  %v8197_v38 = vpop.f32.mrf.mxu0 }
 0x73b   : > { %v6522_v2 = vadd.f32 %v6375_v59, %v5980_v1  ;;  %5718 = vst.msk [vmem:[#allocation2 + $0x278] sm:$0xff] %vm176_vm2, %v5613_v63 }
 0x73c   : > { %v6889_v4 = vld [vmem:[#allocation2 + $0x268] sm:$0xff] }
 0x73d   : > { %v7431_v7 = vadd.f32 %v7282_v57, %v6889_v4  ;;  %6627 = vst.msk [vmem:[#allocation2 + $0x270] sm:$0xff] %vm176_vm2, %v6522_v2  ;;  %v6808_v4 = vpack.c.bf16 %v6753_v62, %v6752_v61 }
 0x73e   : > { %v7798_v11 = vld [vmem:[#allocation2 + $0x260] sm:$0xff] }
 0x73f   : > { %v8340_v13 = vadd.f32 %v8190_v50, %v7798_v11  ;;  %7536 = vst.msk [vmem:[#allocation2 + $0x268] sm:$0xff] %vm176_vm2, %v7431_v7  ;;  %v6377_v16 = vpop.f32.mrf.mxu2  ;;  %v7290_v49 = vpop.f32.mrf.mxu3  ;;  %v4934_v11 = vld [vmem:[%s9141_s26 + $0x340] sm:$0xff] }
 0x740   : > { %v5470_v18 = vpop.f32.mrf.mxu1 }
 0x741   : > { %8445 = vst.msk [vmem:[#allocation2 + $0x260] sm:$0xff] %vm176_vm2, %v8340_v13  ;;  %v5614_v21 = vadd.f32 %v5470_v18, %v5072_v14  ;;  %v4935_v13 = vld [vmem:[%s9141_s26 + $0x348] sm:$0xff] }
 0x742   : > { %v5981_v23 = vld [vmem:[#allocation2 + $0x278] sm:$0xff]  ;;  %v8200_v57 = vpop.f32.mrf.mxu0  ;;  %v5845_v14 = vld [vmem:[%s9141_s26 + $0x364] sm:$0xff]  ;;  %v7662_v18 = vld [vmem:[%s9141_s26 + $0x34e] sm:$0xff] }
 0x743   : > { %v6523_v24 = vadd.f32 %v6377_v16, %v5981_v23  ;;  %5719 = vst.msk [vmem:[#allocation2 + $0x280] sm:$0xff] %vm176_vm2, %v5614_v21  ;;  %8886 = vmatmul.msk.bf16.gmra.mxu1 %vm547_vm1, %v4987_v17  ;;  %v5844_v16 = vld [vmem:[%s9141_s26 + $0x35c] sm:$0xff] }
 0x744   : > { %v6890_v25 = vld [vmem:[#allocation2 + $0x270] sm:$0xff]  ;;  %8940 = vmatmul.msk.bf16.gmra.mxu2 %vm547_vm1, %v5897_v19  ;;  %v5899_v28 = vpack.c.bf16 %v5845_v14, %v5844_v16 }
 0x745   : > { %v7432_v29 = vadd.f32 %v7285_v12, %v6890_v25  ;;  %6628 = vst.msk [vmem:[#allocation2 + $0x278] sm:$0xff] %vm176_vm2, %v6523_v24  ;;  %9048 = vmatmul.msk.bf16.gmra.mxu0 %vm547_vm1, %v7717_v55  ;;  %v7663_v19 = vld [vmem:[%s9141_s26 + $0x356] sm:$0xff]  ;;  %v4989_v24 = vpack.c.bf16 %v4935_v13, %v4934_v11  ;;  %v5076_v25 = vld [vmem:[#allocation2 + $0x2a0] sm:$0xff] }
 0x746   : > { %v7799_v30 = vld [vmem:[#allocation2 + $0x268] sm:$0xff]  ;;  %v5079_v13 = vld [vmem:[#allocation2 + $0x2b8] sm:$0xff] }
 0x747   : > { %v8341_v32 = vadd.f32 %v8192_v0, %v7799_v30  ;;  %7537 = vst.msk [vmem:[#allocation2 + $0x270] sm:$0xff] %vm176_vm2, %v7432_v29  ;;  %v6380_v33 = vpop.f32.mrf.mxu2  ;;  %v7292_v1 = vpop.f32.mrf.mxu3  ;;  %v7718_v29 = vpack.c.bf16 %v7663_v19, %v7662_v18 }
 0x748   : > { %v5472_v36 = vpop.f32.mrf.mxu1 }
 0x749   : > { %8446 = vst.msk [vmem:[#allocation2 + $0x268] sm:$0xff] %vm176_vm2, %v8341_v32  ;;  %v5615_v37 = vadd.f32 %v5472_v36, %v5073_v35  ;;  %8995 = vmatmul.msk.bf16.gmra.mxu3 %vm547_vm1, %v6808_v4  ;;  %v6754_v35 = vld [vmem:[%s9141_s26 + $0x35d] sm:$0xff]  ;;  %v6755_v36 = vld [vmem:[%s9141_s26 + $0x365] sm:$0xff] }
 0x74a   : > { %v5982_v39 = vld [vmem:[#allocation2 + $0x280] sm:$0xff]  ;;  %v8202_v8 = vpop.f32.mrf.mxu0 }
 0x74b   : > { %v6524_v40 = vadd.f32 %v6380_v33, %v5982_v39  ;;  %5720 = vst.msk [vmem:[#allocation2 + $0x288] sm:$0xff] %vm176_vm2, %v5615_v37 }
 0x74c   : > { %v6891_v41 = vld [vmem:[#allocation2 + $0x278] sm:$0xff] }
 0x74d   : > { %v7433_v44 = vadd.f32 %v7287_v31, %v6891_v41  ;;  %6629 = vst.msk [vmem:[#allocation2 + $0x280] sm:$0xff] %vm176_vm2, %v6524_v40  ;;  %v6809_v41 = vpack.c.bf16 %v6755_v36, %v6754_v35 }
 0x74e   : > { %v7800_v48 = vld [vmem:[#allocation2 + $0x270] sm:$0xff] }
 0x74f   : > { %v8342_v50 = vadd.f32 %v8195_v22, %v7800_v48  ;;  %7538 = vst.msk [vmem:[#allocation2 + $0x278] sm:$0xff] %vm176_vm2, %v7433_v44  ;;  %v6382_v27 = vpop.f32.mrf.mxu2  ;;  %v7295_v21 = vpop.f32.mrf.mxu3  ;;  %v4936_v48 = vld [vmem:[%s9141_s26 + $0x350] sm:$0xff] }
 0x750   : > { %v5475_v53 = vpop.f32.mrf.mxu1 }
 0x751   : > { %8447 = vst.msk [vmem:[#allocation2 + $0x270] sm:$0xff] %vm176_vm2, %v8342_v50  ;;  %v5616_v56 = vadd.f32 %v5475_v53, %v5074_v52  ;;  %v4937_v50 = vld [vmem:[%s9141_s26 + $0x358] sm:$0xff] }
 0x752   : > { %v5983_v58 = vld [vmem:[#allocation2 + $0x288] sm:$0xff]  ;;  %v8205_v31 = vpop.f32.mrf.mxu0  ;;  %v5847_v52 = vld [vmem:[%s9141_s26 + $0x374] sm:$0xff]  ;;  %v7664_v53 = vld [vmem:[%s9141_s26 + $0x35e] sm:$0xff] }
 0x753   : > { %v6525_v59 = vadd.f32 %v6382_v27, %v5983_v58  ;;  %5721 = vst.msk [vmem:[#allocation2 + $0x290] sm:$0xff] %vm176_vm2, %v5616_v56  ;;  %8887 = vmatmul.msk.bf16.gmra.mxu1 %vm547_vm1, %v4988_v51  ;;  %v5846_v27 = vld [vmem:[%s9141_s26 + $0x36c] sm:$0xff] }
 0x754   : > { %v6892_v60 = vld [vmem:[#allocation2 + $0x280] sm:$0xff]  ;;  %8941 = vmatmul.msk.bf16.gmra.mxu2 %vm547_vm1, %v5898_v54  ;;  %v5900_v62 = vpack.c.bf16 %v5847_v52, %v5846_v27 }
 0x755   : > { %v7434_v63 = vadd.f32 %v7290_v49, %v6892_v60  ;;  %6630 = vst.msk [vmem:[#allocation2 + $0x288] sm:$0xff] %vm176_vm2, %v6525_v59  ;;  %9049 = vmatmul.msk.bf16.gmra.mxu0 %vm547_vm1, %v7718_v29  ;;  %v7665_v54 = vld [vmem:[%s9141_s26 + $0x366] sm:$0xff]  ;;  %v4990_v59 = vpack.c.bf16 %v4937_v50, %v4936_v48  ;;  %v5078_v60 = vld [vmem:[#allocation2 + $0x2b0] sm:$0xff] }
 0x756   : > { %v7801_v0 = vld [vmem:[#allocation2 + $0x278] sm:$0xff] }
 0x757   : > { %v8343_v2 = vadd.f32 %v8197_v38, %v7801_v0  ;;  %7539 = vst.msk [vmem:[#allocation2 + $0x280] sm:$0xff] %vm176_vm2, %v7434_v63  ;;  %v6385_v3 = vpop.f32.mrf.mxu2  ;;  %v7297_v39 = vpop.f32.mrf.mxu3  ;;  %v7719_v63 = vpack.c.bf16 %v7665_v54, %v7664_v53  ;;  %v7668_v54 = vld [vmem:[%s9141_s26 + $0x37e] sm:$0x3f] }
 0x758   : > { %v5477_v6 = vpop.f32.mrf.mxu1 }
 0x759   : > { %8448 = vst.msk [vmem:[#allocation2 + $0x278] sm:$0xff] %vm176_vm2, %v8343_v2  ;;  %v5617_v7 = vadd.f32 %v5477_v6, %v5075_v5  ;;  %8996 = vmatmul.msk.bf16.gmra.mxu3 %vm547_vm1, %v6809_v41  ;;  %v6756_v5 = vld [vmem:[%s9141_s26 + $0x36d] sm:$0xff]  ;;  %v6757_v6 = vld [vmem:[%s9141_s26 + $0x375] sm:$0xff] }
 0x75a   : > { %v5984_v9 = vld [vmem:[#allocation2 + $0x290] sm:$0xff]  ;;  %v8207_v45 = vpop.f32.mrf.mxu0 }
 0x75b   : > { %v6526_v10 = vadd.f32 %v6385_v3, %v5984_v9  ;;  %5722 = vst.msk [vmem:[#allocation2 + $0x298] sm:$0xff] %vm176_vm2, %v5617_v7 }
 0x75c   : > { %v6893_v12 = vld [vmem:[#allocation2 + $0x288] sm:$0xff] }
 0x75d   : > { %v7435_v17 = vadd.f32 %v7292_v1, %v6893_v12  ;;  %6631 = vst.msk [vmem:[#allocation2 + $0x290] sm:$0xff] %vm176_vm2, %v6526_v10  ;;  %v6810_v12 = vpack.c.bf16 %v6757_v6, %v6756_v5 }
 0x75e   : > { %v7802_v20 = vld [vmem:[#allocation2 + $0x280] sm:$0xff] }
 0x75f   : > { %v8344_v22 = vadd.f32 %v8200_v57, %v7802_v20  ;;  %7540 = vst.msk [vmem:[#allocation2 + $0x288] sm:$0xff] %vm176_vm2, %v7435_v17  ;;  %v6387_v23 = vpop.f32.mrf.mxu2  ;;  %v7300_v56 = vpop.f32.mrf.mxu3 }
 0x760   : > { %v5480_v26 = vpop.f32.mrf.mxu1 }
 0x761   : > { %8449 = vst.msk [vmem:[#allocation2 + $0x280] sm:$0xff] %vm176_vm2, %v8344_v22  ;;  %v5618_v30 = vadd.f32 %v5480_v26, %v5076_v25  ;;  %v7667_v25 = vld [vmem:[%s9141_s26 + $0x376] sm:$0xff] }
 0x762   : > { %v5985_v32 = vld [vmem:[#allocation2 + $0x298] sm:$0xff]  ;;  %v8210_v1 = vpop.f32.mrf.mxu0 }
 0x763   : > { %v6527_v33 = vadd.f32 %v6387_v23, %v5985_v32  ;;  %5723 = vst.msk [vmem:[#allocation2 + $0x2a0] sm:$0xff] %vm176_vm2, %v5618_v30  ;;  %8888 = vmatmul.msk.bf16.gmra.mxu1 %vm547_vm1, %v4989_v24  ;;  %v5848_v23 = vld [vmem:[%s9141_s26 + $0x37c] sm:$0x3f]  ;;  %v7666_v24 = vld [vmem:[%s9141_s26 + $0x36e] sm:$0xff] }
 0x764   : > { %v6894_v34 = vld [vmem:[#allocation2 + $0x290] sm:$0xff]  ;;  %8942 = vmatmul.msk.bf16.gmra.mxu2 %vm547_vm1, %v5899_v28  ;;  %v5080_v32 = vld [vmem:[#allocation2 + $0x2c0] sm:$0xff]  ;;  %v7720_v35 = vpack.c.bf16 %v7667_v25, %v7666_v24 }
 0x765   : > { %v7436_v37 = vadd.f32 %v7295_v21, %v6894_v34  ;;  %6632 = vst.msk [vmem:[#allocation2 + $0x298] sm:$0xff] %vm176_vm2, %v6527_v33  ;;  %9050 = vmatmul.msk.bf16.gmra.mxu0 %vm547_vm1, %v7719_v63  ;;  %v4938_v21 = vld [vmem:[%s9141_s26 + $0x360] sm:$0x3f]  ;;  %v5901_v34 = vpack.c.bf16 %v5848_v23, %v5848_v23 }
 0x766   : > { %v7803_v38 = vld [vmem:[#allocation2 + $0x288] sm:$0xff] }
 0x767   : > { %v8345_v40 = vadd.f32 %v8202_v8, %v7803_v38  ;;  %7541 = vst.msk [vmem:[#allocation2 + $0x290] sm:$0xff] %vm176_vm2, %v7436_v37  ;;  %v6390_v15 = vpop.f32.mrf.mxu2  ;;  %v7302_v9 = vpop.f32.mrf.mxu3 }
 0x768   : > { %v5482_v43 = vpop.f32.mrf.mxu1 }
 0x769   : > { %8450 = vst.msk [vmem:[#allocation2 + $0x288] sm:$0xff] %vm176_vm2, %v8345_v40  ;;  %v5619_v44 = vadd.f32 %v5482_v43, %v5077_v42  ;;  %8997 = vmatmul.msk.bf16.gmra.mxu3 %vm547_vm1, %v6810_v12 }
 0x76a   : > { %v5986_v46 = vld [vmem:[#allocation2 + $0x2a0] sm:$0xff]  ;;  %v8212_v14 = vpop.f32.mrf.mxu0 }
 0x76b   : > { %v6528_v47 = vadd.f32 %v6390_v15, %v5986_v46  ;;  %5724 = vst.msk [vmem:[#allocation2 + $0x2a8] sm:$0xff] %vm176_vm2, %v5619_v44  ;;  %v6758_v15 = vld [vmem:[%s9141_s26 + $0x37d] sm:$0x3f] }
 0x76c   : > { %v6895_v49 = vld [vmem:[#allocation2 + $0x298] sm:$0xff]  ;;  %v6811_v46 = vpack.c.bf16 %v6758_v15, %v6758_v15 }
 0x76d   : > { %v7437_v51 = vadd.f32 %v7297_v39, %v6895_v49  ;;  %6633 = vst.msk [vmem:[#allocation2 + $0x2a0] sm:$0xff] %vm176_vm2, %v6528_v47  ;;  %v5081_v47 = vld [vmem:[#allocation2 + $0x2c8] sm:$0xff] }
 0x76e   : > { %v7804_v55 = vld [vmem:[#allocation2 + $0x290] sm:$0xff] }
 0x76f   : > { %v8346_v57 = vadd.f32 %v8205_v31, %v7804_v55  ;;  %7542 = vst.msk [vmem:[#allocation2 + $0x298] sm:$0xff] %vm176_vm2, %v7437_v51  ;;  %v6392_v58 = vpop.f32.mrf.mxu2  ;;  %v7305_v28 = vpop.f32.mrf.mxu3  ;;  %v4991_v31 = vpack.c.bf16 %v4938_v21, %v4938_v21  ;;  %v5084_v21 = vld [vmem:[#allocation2 + $0x2e0] sm:$0xff] }
 0x770   : > { %v5485_v61 = vpop.f32.mrf.mxu1 }
 0x771   : > { %8451 = vst.msk [vmem:[#allocation2 + $0x290] sm:$0xff] %vm176_vm2, %v8346_v57  ;;  %v5620_v0 = vadd.f32 %v5485_v61, %v5078_v60  ;;  %v7721_v61 = vpack.c.bf16 %v7668_v54, %v7668_v54 }
 0x772   : > { %v5987_v2 = vld [vmem:[#allocation2 + $0x2a8] sm:$0xff]  ;;  %v8215_v37 = vpop.f32.mrf.mxu0 }
 0x773   : > { %v6529_v3 = vadd.f32 %v6392_v58, %v5987_v2  ;;  %5725 = vst.msk [vmem:[#allocation2 + $0x2b0] sm:$0xff] %vm176_vm2, %v5620_v0  ;;  %8889 = vmatmul.msk.bf16.gmra.mxu1 %vm547_vm1, %v4990_v59  ;;  %v5082_v59 = vld [vmem:[#allocation2 + $0x2d0] sm:$0xff] }
 0x774   : > { %v6896_v4 = vld [vmem:[#allocation2 + $0x2a0] sm:$0xff]  ;;  %8943 = vmatmul.msk.bf16.gmra.mxu2 %vm547_vm1, %v5900_v62 }
 0x775   : > { %v7438_v7 = vadd.f32 %v7300_v56, %v6896_v4  ;;  %6634 = vst.msk [vmem:[#allocation2 + $0x2a8] sm:$0xff] %vm176_vm2, %v6529_v3  ;;  %9051 = vmatmul.msk.bf16.gmra.mxu0 %vm547_vm1, %v7720_v35 }
 0x776   : > { %v7805_v8 = vld [vmem:[#allocation2 + $0x298] sm:$0xff] }
 0x777   : > { %v8347_v10 = vadd.f32 %v8207_v45, %v7805_v8  ;;  %7543 = vst.msk [vmem:[#allocation2 + $0x2a0] sm:$0xff] %vm176_vm2, %v7438_v7  ;;  %v6395_v11 = vpop.f32.mrf.mxu2  ;;  %v7307_v43 = vpop.f32.mrf.mxu3  ;;  %v5083_v8 = vld [vmem:[#allocation2 + $0x2d8] sm:$0xff] }
 0x778   : > { %v5487_v16 = vpop.f32.mrf.mxu1 }
 0x779   : > { %8452 = vst.msk [vmem:[#allocation2 + $0x298] sm:$0xff] %vm176_vm2, %v8347_v10  ;;  %v5621_v17 = vadd.f32 %v5487_v16, %v5079_v13  ;;  %8998 = vmatmul.msk.bf16.gmra.mxu3 %vm547_vm1, %v6811_v46 }
 0x77a   : > { %v5988_v18 = vld [vmem:[#allocation2 + $0x2b0] sm:$0xff]  ;;  %v8217_v50 = vpop.f32.mrf.mxu0 }
 0x77b   : > { %v6530_v19 = vadd.f32 %v6395_v11, %v5988_v18  ;;  %5726 = vst.msk [vmem:[#allocation2 + $0x2b8] sm:$0xff] %vm176_vm2, %v5621_v17 }
 0x77c   : > { %v6897_v20 = vld [vmem:[#allocation2 + $0x2a8] sm:$0xff] }
 0x77d   : > { %v7439_v22 = vadd.f32 %v7302_v9, %v6897_v20  ;;  %6635 = vst.msk [vmem:[#allocation2 + $0x2b0] sm:$0xff] %vm176_vm2, %v6530_v19 }
 0x77e   : > { %v7806_v26 = vld [vmem:[#allocation2 + $0x2a0] sm:$0xff] }
 0x77f   : > { %v8348_v29 = vadd.f32 %v8210_v1, %v7806_v26  ;;  %7544 = vst.msk [vmem:[#allocation2 + $0x2a8] sm:$0xff] %vm176_vm2, %v7439_v22  ;;  %v6397_v30 = vpop.f32.mrf.mxu2  ;;  %v7310_v56 = vpop.f32.mrf.mxu3 }
 0x780   : > { %v5490_v33 = vpop.f32.mrf.mxu1 }
 0x781   : > { %8453 = vst.msk [vmem:[#allocation2 + $0x2a0] sm:$0xff] %vm176_vm2, %v8348_v29  ;;  %v5622_v36 = vadd.f32 %v5490_v33, %v5080_v32 }
 0x782   : > { %v5989_v38 = vld [vmem:[#allocation2 + $0x2b8] sm:$0xff]  ;;  %v8220_v63 = vpop.f32.mrf.mxu0 }
 0x783   : > { %v6531_v39 = vadd.f32 %v6397_v30, %v5989_v38  ;;  %5727 = vst.msk [vmem:[#allocation2 + $0x2c0] sm:$0xff] %vm176_vm2, %v5622_v36  ;;  %8890 = vmatmul.msk.bf16.gmra.mxu1 %vm547_vm1, %v4991_v31 }
 0x784   : > { %v6898_v40 = vld [vmem:[#allocation2 + $0x2b0] sm:$0xff]  ;;  %8944 = vmatmul.msk.bf16.gmra.mxu2 %vm547_vm1, %v5901_v34  ;;  %v5085_v34 = vld [vmem:[#allocation2 + $0x2e8] sm:$0xff] }
 0x785   : > { %v7440_v41 = vadd.f32 %v7305_v28, %v6898_v40  ;;  %6636 = vst.msk [vmem:[#allocation2 + $0x2b8] sm:$0xff] %vm176_vm2, %v6531_v39  ;;  %9052 = vmatmul.msk.bf16.gmra.mxu0 %vm547_vm1, %v7721_v61 }
 0x786   : > { %v7807_v42 = vld [vmem:[#allocation2 + $0x2a8] sm:$0xff] }
 0x787   : > { %v8349_v44 = vadd.f32 %v8212_v14, %v7807_v42  ;;  %7545 = vst.msk [vmem:[#allocation2 + $0x2b0] sm:$0xff] %vm176_vm2, %v7440_v41  ;;  %v6400_v45 = vpop.f32.mrf.mxu2  ;;  %v7312_v5 = vpop.f32.mrf.mxu3 }
 0x788   : > { %v5492_v48 = vpop.f32.mrf.mxu1 }
 0x789   : > { %8454 = vst.msk [vmem:[#allocation2 + $0x2a8] sm:$0xff] %vm176_vm2, %v8349_v44  ;;  %v5623_v49 = vadd.f32 %v5492_v48, %v5081_v47 }
 0x78a   : > { %v5990_v27 = vld [vmem:[#allocation2 + $0x2c0] sm:$0xff]  ;;  %v8222_v11 = vpop.f32.mrf.mxu0 }
 0x78b   : > { %v6532_v51 = vadd.f32 %v6400_v45, %v5990_v27  ;;  %5728 = vst.msk [vmem:[#allocation2 + $0x2c8] sm:$0xff] %vm176_vm2, %v5623_v49  ;;  %v5086_v45 = vld [vmem:[#allocation2 + $0x2f0] sm:$0xff] }
 0x78c   : > { %v6899_v52 = vld [vmem:[#allocation2 + $0x2b8] sm:$0xff] }
 0x78d   : > { %v7441_v53 = vadd.f32 %v7307_v43, %v6899_v52  ;;  %6637 = vst.msk [vmem:[#allocation2 + $0x2c0] sm:$0xff] %vm176_vm2, %v6532_v51 }
 0x78e   : > { %v7808_v55 = vld [vmem:[#allocation2 + $0x2b0] sm:$0xff] }
 0x78f   : > { %v8350_v57 = vadd.f32 %v8215_v37, %v7808_v55  ;;  %7546 = vst.msk [vmem:[#allocation2 + $0x2b8] sm:$0xff] %vm176_vm2, %v7441_v53  ;;  %v6402_v58 = vpop.f32.mrf.mxu2  ;;  %v7315_v18 = vpop.f32.mrf.mxu3 }
 0x790   : > { %v5495_v60 = vpop.f32.mrf.mxu1 }
 0x791   : > { %8455 = vst.msk [vmem:[#allocation2 + $0x2b0] sm:$0xff] %vm176_vm2, %v8350_v57  ;;  %v5624_v62 = vadd.f32 %v5495_v60, %v5082_v59 }
 0x792   : > { %v5991_v0 = vld [vmem:[#allocation2 + $0x2c8] sm:$0xff]  ;;  %v8225_v24 = vpop.f32.mrf.mxu0 }
 0x793   : > { %v6533_v1 = vadd.f32 %v6402_v58, %v5991_v0  ;;  %5729 = vst.msk [vmem:[#allocation2 + $0x2d0] sm:$0xff] %vm176_vm2, %v5624_v62 }
 0x794   : > { %v6900_v2 = vld [vmem:[#allocation2 + $0x2c0] sm:$0xff] }
 0x795   : > { %v7442_v3 = vadd.f32 %v7310_v56, %v6900_v2  ;;  %6638 = vst.msk [vmem:[#allocation2 + $0x2c8] sm:$0xff] %vm176_vm2, %v6533_v1  ;;  %v5087_v56 = vld [vmem:[#allocation2 + $0x2f8] sm:$0xff] }
 0x796   : > { %v7809_v4 = vld [vmem:[#allocation2 + $0x2b8] sm:$0xff] }
 0x797   : > { %v8351_v6 = vadd.f32 %v8217_v50, %v7809_v4  ;;  %7547 = vst.msk [vmem:[#allocation2 + $0x2c0] sm:$0xff] %vm176_vm2, %v7442_v3  ;;  %v6405_v7 = vpop.f32.mrf.mxu2  ;;  %v7317_v31 = vpop.f32.mrf.mxu3  ;;  %v5088_v4 = vld [vmem:[#allocation2 + $0x300] sm:$0xff] }
 0x798   : > { %v5497_v9 = vpop.f32.mrf.mxu1 }
 0x799   : > { %8456 = vst.msk [vmem:[#allocation2 + $0x2b8] sm:$0xff] %vm176_vm2, %v8351_v6  ;;  %v5625_v10 = vadd.f32 %v5497_v9, %v5083_v8 }
 0x79a   : > { %v5992_v12 = vld [vmem:[#allocation2 + $0x2d0] sm:$0xff]  ;;  %v8227_v37 = vpop.f32.mrf.mxu0 }
 0x79b   : > { %v6534_v13 = vadd.f32 %v6405_v7, %v5992_v12  ;;  %5730 = vst.msk [vmem:[#allocation2 + $0x2d8] sm:$0xff] %vm176_vm2, %v5625_v10 }
 0x79c   : > { %v6901_v16 = vld [vmem:[#allocation2 + $0x2c8] sm:$0xff] }
 0x79d   : > { %v7443_v17 = vadd.f32 %v7312_v5, %v6901_v16  ;;  %6639 = vst.msk [vmem:[#allocation2 + $0x2d0] sm:$0xff] %vm176_vm2, %v6534_v13 }
 0x79e   : > { %v7810_v14 = vld [vmem:[#allocation2 + $0x2c0] sm:$0xff] }
 0x79f   : > { %v8352_v19 = vadd.f32 %v8220_v63, %v7810_v14  ;;  %7548 = vst.msk [vmem:[#allocation2 + $0x2c8] sm:$0xff] %vm176_vm2, %v7443_v17  ;;  %v6407_v20 = vpop.f32.mrf.mxu2  ;;  %v7320_v42 = vpop.f32.mrf.mxu3  ;;  %v5089_v14 = vld [vmem:[#allocation2 + $0x308] sm:$0xff] }
 0x7a0   : > { %v5500_v22 = vpop.f32.mrf.mxu1 }
 0x7a1   : > { %8457 = vst.msk [vmem:[#allocation2 + $0x2c0] sm:$0xff] %vm176_vm2, %v8352_v19  ;;  %v5626_v23 = vadd.f32 %v5500_v22, %v5084_v21 }
 0x7a2   : > { %v5993_v25 = vld [vmem:[#allocation2 + $0x2d8] sm:$0xff]  ;;  %v8230_v48 = vpop.f32.mrf.mxu0 }
 0x7a3   : > { %v6535_v26 = vadd.f32 %v6407_v20, %v5993_v25  ;;  %5731 = vst.msk [vmem:[#allocation2 + $0x2e0] sm:$0xff] %vm176_vm2, %v5626_v23 }
 0x7a4   : > { %v6902_v28 = vld [vmem:[#allocation2 + $0x2d0] sm:$0xff] }
 0x7a5   : > { %v7444_v29 = vadd.f32 %v7315_v18, %v6902_v28  ;;  %6640 = vst.msk [vmem:[#allocation2 + $0x2d8] sm:$0xff] %vm176_vm2, %v6535_v26 }
 0x7a6   : > { %v7811_v30 = vld [vmem:[#allocation2 + $0x2c8] sm:$0xff] }
 0x7a7   : > { %v8353_v32 = vadd.f32 %v8222_v11, %v7811_v30  ;;  %7549 = vst.msk [vmem:[#allocation2 + $0x2d0] sm:$0xff] %vm176_vm2, %v7444_v29  ;;  %v6410_v33 = vpop.f32.mrf.mxu2  ;;  %v7322_v53 = vpop.f32.mrf.mxu3  ;;  %v5090_v30 = vld [vmem:[#allocation2 + $0x310] sm:$0xff] }
 0x7a8   : > { %v5502_v35 = vpop.f32.mrf.mxu1 }
 0x7a9   : > { %8458 = vst.msk [vmem:[#allocation2 + $0x2c8] sm:$0xff] %vm176_vm2, %v8353_v32  ;;  %v5627_v36 = vadd.f32 %v5502_v35, %v5085_v34 }
 0x7aa   : > { %v5994_v38 = vld [vmem:[#allocation2 + $0x2e0] sm:$0xff]  ;;  %v8232_v59 = vpop.f32.mrf.mxu0 }
 0x7ab   : > { %v6536_v39 = vadd.f32 %v6410_v33, %v5994_v38  ;;  %5732 = vst.msk [vmem:[#allocation2 + $0x2e8] sm:$0xff] %vm176_vm2, %v5627_v36 }
 0x7ac   : > { %v6903_v40 = vld [vmem:[#allocation2 + $0x2d8] sm:$0xff] }
 0x7ad   : > { %v7445_v15 = vadd.f32 %v7317_v31, %v6903_v40  ;;  %6641 = vst.msk [vmem:[#allocation2 + $0x2e0] sm:$0xff] %vm176_vm2, %v6536_v39 }
 0x7ae   : > { %v7812_v41 = vld [vmem:[#allocation2 + $0x2d0] sm:$0xff] }
 0x7af   : > { %v8354_v43 = vadd.f32 %v8225_v24, %v7812_v41  ;;  %7550 = vst.msk [vmem:[#allocation2 + $0x2d8] sm:$0xff] %vm176_vm2, %v7445_v15  ;;  %v6412_v44 = vpop.f32.mrf.mxu2  ;;  %v7325_v1 = vpop.f32.mrf.mxu3  ;;  %v5091_v41 = vld [vmem:[#allocation2 + $0x318] sm:$0xff] }
 0x7b0   : > { %v5505_v46 = vpop.f32.mrf.mxu1 }
 0x7b1   : > { %8459 = vst.msk [vmem:[#allocation2 + $0x2d0] sm:$0xff] %vm176_vm2, %v8354_v43  ;;  %v5628_v47 = vadd.f32 %v5505_v46, %v5086_v45 }
 0x7b2   : > { %v5995_v49 = vld [vmem:[#allocation2 + $0x2e8] sm:$0xff]  ;;  %v8235_v7 = vpop.f32.mrf.mxu0 }
 0x7b3   : > { %v6537_v50 = vadd.f32 %v6412_v44, %v5995_v49  ;;  %5733 = vst.msk [vmem:[#allocation2 + $0x2f0] sm:$0xff] %vm176_vm2, %v5628_v47 }
 0x7b4   : > { %v6904_v27 = vld [vmem:[#allocation2 + $0x2e0] sm:$0xff] }
 0x7b5   : > { %v7446_v51 = vadd.f32 %v7320_v42, %v6904_v27  ;;  %6642 = vst.msk [vmem:[#allocation2 + $0x2e8] sm:$0xff] %vm176_vm2, %v6537_v50 }
 0x7b6   : > { %v7813_v52 = vld [vmem:[#allocation2 + $0x2d8] sm:$0xff] }
 0x7b7   : > { %v8355_v54 = vadd.f32 %v8227_v37, %v7813_v52  ;;  %7551 = vst.msk [vmem:[#allocation2 + $0x2e0] sm:$0xff] %vm176_vm2, %v7446_v51  ;;  %v6415_v55 = vpop.f32.mrf.mxu2  ;;  %v7327_v13 = vpop.f32.mrf.mxu3  ;;  %v5092_v52 = vld [vmem:[#allocation2 + $0x320] sm:$0xff] }
 0x7b8   : > { %v5507_v57 = vpop.f32.mrf.mxu1 }
 0x7b9   : > { %8460 = vst.msk [vmem:[#allocation2 + $0x2d8] sm:$0xff] %vm176_vm2, %v8355_v54  ;;  %v5629_v58 = vadd.f32 %v5507_v57, %v5087_v56 }
 0x7ba   : > { %v5996_v60 = vld [vmem:[#allocation2 + $0x2f0] sm:$0xff]  ;;  %v8237_v20 = vpop.f32.mrf.mxu0 }
 0x7bb   : > { %v6538_v61 = vadd.f32 %v6415_v55, %v5996_v60  ;;  %5734 = vst.msk [vmem:[#allocation2 + $0x2f8] sm:$0xff] %vm176_vm2, %v5629_v58 }
 0x7bc   : > { %v6905_v62 = vld [vmem:[#allocation2 + $0x2e8] sm:$0xff] }
 0x7bd   : > { %v7447_v63 = vadd.f32 %v7322_v53, %v6905_v62  ;;  %6643 = vst.msk [vmem:[#allocation2 + $0x2f0] sm:$0xff] %vm176_vm2, %v6538_v61 }
 0x7be   : > { %v7814_v0 = vld [vmem:[#allocation2 + $0x2e0] sm:$0xff] }
 0x7bf   : > { %v8356_v2 = vadd.f32 %v8230_v48, %v7814_v0  ;;  %7552 = vst.msk [vmem:[#allocation2 + $0x2e8] sm:$0xff] %vm176_vm2, %v7447_v63  ;;  %v6417_v3 = vpop.f32.mrf.mxu2  ;;  %v7330_v26 = vpop.f32.mrf.mxu3  ;;  %v5093_v0 = vld [vmem:[#allocation2 + $0x328] sm:$0xff] }
 0x7c0   : > { %v5510_v5 = vpop.f32.mrf.mxu1 }
 0x7c1   : > { %8461 = vst.msk [vmem:[#allocation2 + $0x2e0] sm:$0xff] %vm176_vm2, %v8356_v2  ;;  %v5630_v6 = vadd.f32 %v5510_v5, %v5088_v4 }
 0x7c2   : > { %v5997_v8 = vld [vmem:[#allocation2 + $0x2f8] sm:$0xff]  ;;  %v8240_v33 = vpop.f32.mrf.mxu0 }
 0x7c3   : > { %v6539_v9 = vadd.f32 %v6417_v3, %v5997_v8  ;;  %5735 = vst.msk [vmem:[#allocation2 + $0x300] sm:$0xff] %vm176_vm2, %v5630_v6 }
 0x7c4   : > { %v6906_v10 = vld [vmem:[#allocation2 + $0x2f0] sm:$0xff] }
 0x7c5   : > { %v7448_v11 = vadd.f32 %v7325_v1, %v6906_v10  ;;  %6644 = vst.msk [vmem:[#allocation2 + $0x2f8] sm:$0xff] %vm176_vm2, %v6539_v9 }
 0x7c6   : > { %v7815_v12 = vld [vmem:[#allocation2 + $0x2e8] sm:$0xff] }
 0x7c7   : > { %v8357_v16 = vadd.f32 %v8232_v59, %v7815_v12  ;;  %7553 = vst.msk [vmem:[#allocation2 + $0x2f0] sm:$0xff] %vm176_vm2, %v7448_v11  ;;  %v6420_v17 = vpop.f32.mrf.mxu2  ;;  %v7332_v39 = vpop.f32.mrf.mxu3  ;;  %v5094_v12 = vld [vmem:[#allocation2 + $0x330] sm:$0xff] }
 0x7c8   : > { %v5512_v18 = vpop.f32.mrf.mxu1 }
 0x7c9   : > { %8462 = vst.msk [vmem:[#allocation2 + $0x2e8] sm:$0xff] %vm176_vm2, %v8357_v16  ;;  %v5631_v19 = vadd.f32 %v5512_v18, %v5089_v14 }
 0x7ca   : > { %v5998_v21 = vld [vmem:[#allocation2 + $0x300] sm:$0xff]  ;;  %v8242_v44 = vpop.f32.mrf.mxu0 }
 0x7cb   : > { %v6540_v22 = vadd.f32 %v6420_v17, %v5998_v21  ;;  %5736 = vst.msk [vmem:[#allocation2 + $0x308] sm:$0xff] %vm176_vm2, %v5631_v19 }
 0x7cc   : > { %v6907_v23 = vld [vmem:[#allocation2 + $0x2f8] sm:$0xff] }
 0x7cd   : > { %v7449_v24 = vadd.f32 %v7327_v13, %v6907_v23  ;;  %6645 = vst.msk [vmem:[#allocation2 + $0x300] sm:$0xff] %vm176_vm2, %v6540_v22 }
 0x7ce   : > { %v7816_v25 = vld [vmem:[#allocation2 + $0x2f0] sm:$0xff] }
 0x7cf   : > { %v8358_v28 = vadd.f32 %v8235_v7, %v7816_v25  ;;  %7554 = vst.msk [vmem:[#allocation2 + $0x2f8] sm:$0xff] %vm176_vm2, %v7449_v24  ;;  %v6422_v29 = vpop.f32.mrf.mxu2  ;;  %v7335_v50 = vpop.f32.mrf.mxu3  ;;  %v5095_v25 = vld [vmem:[#allocation2 + $0x338] sm:$0xff] }
 0x7d0   : > { %v5515_v31 = vpop.f32.mrf.mxu1 }
 0x7d1   : > { %8463 = vst.msk [vmem:[#allocation2 + $0x2f0] sm:$0xff] %vm176_vm2, %v8358_v28  ;;  %v5632_v32 = vadd.f32 %v5515_v31, %v5090_v30 }
 0x7d2   : > { %v5999_v34 = vld [vmem:[#allocation2 + $0x308] sm:$0xff]  ;;  %v8245_v55 = vpop.f32.mrf.mxu0 }
 0x7d3   : > { %v6541_v35 = vadd.f32 %v6422_v29, %v5999_v34  ;;  %5737 = vst.msk [vmem:[#allocation2 + $0x310] sm:$0xff] %vm176_vm2, %v5632_v32 }
 0x7d4   : > { %v6908_v36 = vld [vmem:[#allocation2 + $0x300] sm:$0xff] }
 0x7d5   : > { %v7450_v37 = vadd.f32 %v7330_v26, %v6908_v36  ;;  %6646 = vst.msk [vmem:[#allocation2 + $0x308] sm:$0xff] %vm176_vm2, %v6541_v35 }
 0x7d6   : > { %v7817_v38 = vld [vmem:[#allocation2 + $0x2f8] sm:$0xff] }
 0x7d7   : > { %v8359_v40 = vadd.f32 %v8237_v20, %v7817_v38  ;;  %7555 = vst.msk [vmem:[#allocation2 + $0x300] sm:$0xff] %vm176_vm2, %v7450_v37  ;;  %v6425_v15 = vpop.f32.mrf.mxu2  ;;  %v7337_v61 = vpop.f32.mrf.mxu3  ;;  %v5096_v38 = vld [vmem:[#allocation2 + $0x340] sm:$0x3f] }
 0x7d8   : > { %v5517_v42 = vpop.f32.mrf.mxu1 }
 0x7d9   : > { %8464 = vst.msk [vmem:[#allocation2 + $0x2f8] sm:$0xff] %vm176_vm2, %v8359_v40  ;;  %v5633_v43 = vadd.f32 %v5517_v42, %v5091_v41 }
 0x7da   : > { %v6000_v45 = vld [vmem:[#allocation2 + $0x310] sm:$0xff]  ;;  %v8247_v3 = vpop.f32.mrf.mxu0 }
 0x7db   : > { %v6542_v46 = vadd.f32 %v6425_v15, %v6000_v45  ;;  %5738 = vst.msk [vmem:[#allocation2 + $0x318] sm:$0xff] %vm176_vm2, %v5633_v43 }
 0x7dc   : > { %v6909_v47 = vld [vmem:[#allocation2 + $0x308] sm:$0xff] }
 0x7dd   : > { %v7451_v48 = vadd.f32 %v7332_v39, %v6909_v47  ;;  %6647 = vst.msk [vmem:[#allocation2 + $0x310] sm:$0xff] %vm176_vm2, %v6542_v46 }
 0x7de   : > { %v7818_v49 = vld [vmem:[#allocation2 + $0x300] sm:$0xff] }
 0x7df   : > { %v8360_v27 = vadd.f32 %v8240_v33, %v7818_v49  ;;  %7556 = vst.msk [vmem:[#allocation2 + $0x308] sm:$0xff] %vm176_vm2, %v7451_v48  ;;  %v6427_v51 = vpop.f32.mrf.mxu2  ;;  %v7340_v9 = vpop.f32.mrf.mxu3 }
 0x7e0   : > { %v5520_v53 = vpop.f32.mrf.mxu1 }
 0x7e1   : > { %8465 = vst.msk [vmem:[#allocation2 + $0x300] sm:$0xff] %vm176_vm2, %v8360_v27  ;;  %v5634_v54 = vadd.f32 %v5520_v53, %v5092_v52 }
 0x7e2   : > { %v6001_v56 = vld [vmem:[#allocation2 + $0x318] sm:$0xff]  ;;  %v8250_v17 = vpop.f32.mrf.mxu0 }
 0x7e3   : > { %v6543_v57 = vadd.f32 %v6427_v51, %v6001_v56  ;;  %5739 = vst.msk [vmem:[#allocation2 + $0x320] sm:$0xff] %vm176_vm2, %v5634_v54 }
 0x7e4   : > { %v6910_v58 = vld [vmem:[#allocation2 + $0x310] sm:$0xff] }
 0x7e5   : > { %v7452_v59 = vadd.f32 %v7335_v50, %v6910_v58  ;;  %6648 = vst.msk [vmem:[#allocation2 + $0x318] sm:$0xff] %vm176_vm2, %v6543_v57 }
 0x7e6   : > { %v7819_v60 = vld [vmem:[#allocation2 + $0x308] sm:$0xff] }
 0x7e7   : > { %v8361_v62 = vadd.f32 %v8242_v44, %v7819_v60  ;;  %7557 = vst.msk [vmem:[#allocation2 + $0x310] sm:$0xff] %vm176_vm2, %v7452_v59  ;;  %v6430_v63 = vpop.f32.mrf.mxu2  ;;  %v7342_v22 = vpop.f32.mrf.mxu3 }
 0x7e8   : > { %v5522_v1 = vpop.f32.mrf.mxu1 }
 0x7e9   : > { %8466 = vst.msk [vmem:[#allocation2 + $0x308] sm:$0xff] %vm176_vm2, %v8361_v62  ;;  %v5635_v2 = vadd.f32 %v5522_v1, %v5093_v0 }
 0x7ea   : > { %v6002_v4 = vld [vmem:[#allocation2 + $0x320] sm:$0xff]  ;;  %v8252_v29 = vpop.f32.mrf.mxu0 }
 0x7eb   : > { %v6544_v5 = vadd.f32 %v6430_v63, %v6002_v4  ;;  %5740 = vst.msk [vmem:[#allocation2 + $0x328] sm:$0xff] %vm176_vm2, %v5635_v2 }
 0x7ec   : > { %v6911_v6 = vld [vmem:[#allocation2 + $0x318] sm:$0xff] }
 0x7ed   : > { %v7453_v7 = vadd.f32 %v7337_v61, %v6911_v6  ;;  %6649 = vst.msk [vmem:[#allocation2 + $0x320] sm:$0xff] %vm176_vm2, %v6544_v5 }
 0x7ee   : > { %v7820_v8 = vld [vmem:[#allocation2 + $0x310] sm:$0xff] }
 0x7ef   : > { %v8362_v10 = vadd.f32 %v8245_v55, %v7820_v8  ;;  %7558 = vst.msk [vmem:[#allocation2 + $0x318] sm:$0xff] %vm176_vm2, %v7453_v7  ;;  %v6432_v11 = vpop.f32.mrf.mxu2  ;;  %v7345_v35 = vpop.f32.mrf.mxu3 }
 0x7f0   : > { %v5525_v13 = vpop.f32.mrf.mxu1 }
 0x7f1   : > { %8467 = vst.msk [vmem:[#allocation2 + $0x310] sm:$0xff] %vm176_vm2, %v8362_v10  ;;  %v5636_v16 = vadd.f32 %v5525_v13, %v5094_v12 }
 0x7f2   : > { %v6003_v14 = vld [vmem:[#allocation2 + $0x328] sm:$0xff]  ;;  %v8255_v15 = vpop.f32.mrf.mxu0 }
 0x7f3   : > { %v6545_v18 = vadd.f32 %v6432_v11, %v6003_v14  ;;  %5741 = vst.msk [vmem:[#allocation2 + $0x330] sm:$0xff] %vm176_vm2, %v5636_v16 }
 0x7f4   : > { %v6912_v19 = vld [vmem:[#allocation2 + $0x320] sm:$0xff] }
 0x7f5   : > { %v7454_v20 = vadd.f32 %v7340_v9, %v6912_v19  ;;  %6650 = vst.msk [vmem:[#allocation2 + $0x328] sm:$0xff] %vm176_vm2, %v6545_v18 }
 0x7f6   : > { %v7821_v21 = vld [vmem:[#allocation2 + $0x318] sm:$0xff] }
 0x7f7   : > { %v8363_v23 = vadd.f32 %v8247_v3, %v7821_v21  ;;  %7559 = vst.msk [vmem:[#allocation2 + $0x320] sm:$0xff] %vm176_vm2, %v7454_v20  ;;  %v6435_v24 = vpop.f32.mrf.mxu2  ;;  %v7347_v46 = vpop.f32.mrf.mxu3 }
 0x7f8   : > { %v5527_v26 = vpop.f32.mrf.mxu1 }
 0x7f9   : > { %8468 = vst.msk [vmem:[#allocation2 + $0x318] sm:$0xff] %vm176_vm2, %v8363_v23  ;;  %v5637_v28 = vadd.f32 %v5527_v26, %v5095_v25 }
 0x7fa   : > { %v6004_v30 = vld [vmem:[#allocation2 + $0x330] sm:$0xff]  ;;  %v8257_v50 = vpop.f32.mrf.mxu0 }
 0x7fb   : > { %v6546_v31 = vadd.f32 %v6435_v24, %v6004_v30  ;;  %5742 = vst.msk [vmem:[#allocation2 + $0x338] sm:$0xff] %vm176_vm2, %v5637_v28 }
 0x7fc   : > { %v6913_v32 = vld [vmem:[#allocation2 + $0x328] sm:$0xff] }
 0x7fd   : > { %v7455_v33 = vadd.f32 %v7342_v22, %v6913_v32  ;;  %6651 = vst.msk [vmem:[#allocation2 + $0x330] sm:$0xff] %vm176_vm2, %v6546_v31 }
 0x7fe   : > { %v7822_v34 = vld [vmem:[#allocation2 + $0x320] sm:$0xff] }
 0x7ff   : > { %v8364_v36 = vadd.f32 %v8250_v17, %v7822_v34  ;;  %7560 = vst.msk [vmem:[#allocation2 + $0x328] sm:$0xff] %vm176_vm2, %v7455_v33  ;;  %v6437_v37 = vpop.f32.mrf.mxu2  ;;  %v7350_v55 = vpop.f32.mrf.mxu3 }
 0x800   : > { %v5530_v39 = vpop.f32.mrf.mxu1 }
 0x801   : > { %8469 = vst.msk [vmem:[#allocation2 + $0x320] sm:$0xff] %vm176_vm2, %v8364_v36  ;;  %v5638_v40 = vadd.f32 %v5530_v39, %v5096_v38 }
 0x802   : > { %v6005_v41 = vld [vmem:[#allocation2 + $0x338] sm:$0xff]  ;;  %v8260_v58 = vpop.f32.mrf.mxu0 }
 0x803   : > { %v6547_v42 = vadd.f32 %v6437_v37, %v6005_v41  ;;  %5743 = vst.msk [vmem:[#allocation2 + $0x340] sm:$0x3f] %vm281_vm3, %v5638_v40 }
 0x804   : > { %v6914_v43 = vld [vmem:[#allocation2 + $0x330] sm:$0xff] }
 0x805   : > { %v7456_v44 = vadd.f32 %v7345_v35, %v6914_v43  ;;  %6652 = vst.msk [vmem:[#allocation2 + $0x338] sm:$0xff] %vm176_vm2, %v6547_v42 }
 0x806   : > { %v7823_v45 = vld [vmem:[#allocation2 + $0x328] sm:$0xff] }
 0x807   : > { %v8365_v47 = vadd.f32 %v8252_v29, %v7823_v45  ;;  %7561 = vst.msk [vmem:[#allocation2 + $0x330] sm:$0xff] %vm176_vm2, %v7456_v44  ;;  %v6440_v48 = vpop.f32.mrf.mxu2  ;;  %v7352_v62 = vpop.f32.mrf.mxu3 }
 0x808   : > { %v5532_v49 = vpop.f32.mrf.mxu1 }
 0x809   : > { %8470 = vst.msk [vmem:[#allocation2 + $0x328] sm:$0xff] %vm176_vm2, %v8365_v47 }
 0x80a   : > { %v6006_v27 = vld [vmem:[#allocation2 + $0x340] sm:$0x3f]  ;;  %v8262_v0 = vpop.f32.mrf.mxu0 }
 0x80b   : > { %v6548_v51 = vadd.f32 %v6440_v48, %v6006_v27 }
 0x80c   : > { %v6915_v52 = vld [vmem:[#allocation2 + $0x338] sm:$0xff] }
 0x80d   : > { %v7457_v53 = vadd.f32 %v7347_v46, %v6915_v52  ;;  %6653 = vst.msk [vmem:[#allocation2 + $0x340] sm:$0x3f] %vm281_vm3, %v6548_v51 }
 0x80e   : > { %v7824_v54 = vld [vmem:[#allocation2 + $0x330] sm:$0xff] }
 0x80f   : > { %v8366_v56 = vadd.f32 %v8255_v15, %v7824_v54  ;;  %7562 = vst.msk [vmem:[#allocation2 + $0x338] sm:$0xff] %vm176_vm2, %v7457_v53  ;;  %v6442_v57 = vpop.f32.mrf.mxu2 }
 0x811   : > { %8471 = vst.msk [vmem:[#allocation2 + $0x330] sm:$0xff] %vm176_vm2, %v8366_v56 }
 0x814   : > { %v6916_v59 = vld [vmem:[#allocation2 + $0x340] sm:$0x3f] }
 0x815   : > { %v7458_v60 = vadd.f32 %v7350_v55, %v6916_v59 }
 0x816   : > { %v7825_v61 = vld [vmem:[#allocation2 + $0x338] sm:$0xff] }
 0x817   : > { %v8367_v63 = vadd.f32 %v8257_v50, %v7825_v61  ;;  %7563 = vst.msk [vmem:[#allocation2 + $0x340] sm:$0x3f] %vm281_vm3, %v7458_v60 }
 0x819   : > { %8472 = vst.msk [vmem:[#allocation2 + $0x338] sm:$0xff] %vm176_vm2, %v8367_v63 }
 0x81e   : > { %v7826_v1 = vld [vmem:[#allocation2 + $0x340] sm:$0x3f] }
 0x81f   : > { %v8368_v2 = vadd.f32 %v8260_v58, %v7826_v1 }
 0x821   : > { %8473 = vst.msk [vmem:[#allocation2 + $0x340] sm:$0x3f] %vm281_vm3, %v8368_v2 }
 0x822 LB: >> { %s8480_s17 = smul.u32 30, %s9092_s16  ;;  %s9053_s18 = sshll.u32 %s9092_s16, 5  ;;  %vm8495_vm4 = vcmask 519168   ;;  %s9092_s16 = sphi %s9090_s16, %s8479_s16  }
 0x823   : >> { %s8491_s20 = scalar_lea.vmem %s9146_s29, %s9053_s18  ;;  %s8479_s16 = sadd.s32 1, %s9092_s16  }
 0x824   : >> { %s8481_s19 = scalar_lea.vmem [#allocation2], %s8480_s17  ;;  %p8476_p4 = scmp.ge.s32.totalorder %s8479_s16, 28  }
 0x828   : >> { %v8482_v3 = vld [vmem:[%s8481_s19] sm:$0xff]  ;;  %v8483_v4 = vld [vmem:[%s8481_s19 + $0x8] sm:$0xff]  ;;  %v8484_v5 = vld [vmem:[%s8481_s19 + $0x10] sm:$0xff] }
 0x829   : >> { %v8486_v6 = vmax.f32 %v8482_v3, 0.0  ;;  %v8487_v7 = vmax.f32 %v8483_v4, 0.0  ;;  %v8488_v8 = vmax.f32 %v8484_v5, 0.0  ;;  %v8485_v9 = vld [vmem:[%s8481_s19 + $0x18] sm:$0xf] }
 0x82a   : >> { %v8489_v10 = vmax.f32 %v8485_v9, 0.0  ;;  %8478 = sbr.rel (!%p8476_p4) target bundleno = 2082 (0x822), region = 79 }
 0x82b   : >> { %8492 = vst.msk [vmem:[%s8491_s20] sm:$0xff] %vm176_vm2, %v8486_v6 }
 0x82c   : >> { %8493 = vst.msk [vmem:[%s8491_s20 + $0x8] sm:$0xff] %vm176_vm2, %v8487_v7 }
 0x82d   : >> { %8494 = vst.msk [vmem:[%s8491_s20 + $0x10] sm:$0xff] %vm176_vm2, %v8488_v8 }
 0x82e   : >> { %8496 = vst.msk [vmem:[%s8491_s20 + $0x18] sm:$0xf] %vm8495_vm4, %v8489_v10 }
 0x82f PF: > { %s13_s12 = sadd.s32 1, %s9088_s12  }
 0x830   : > { %p10_p5 = scmp.ge.s32.totalorder %s13_s12, 4  }
 0x832   :  { %12 = sbr.rel (!%p10_p5) target bundleno = 1 (0x1), region = 90 }

</bundles_post_ra>
